<compile_context>
chip_gen: v7x
topology: tpu7x:2x2x1
jax: 0.10.0
libtpu: 0.0.40
codegen_flags: <defaults>
</compile_context>

<pallas_src>
import jax
import jax.numpy as jnp
from jax.experimental import pallas as pl
from jax.experimental.pallas import tpu as pltpu


# ----------------------------------------------------------------------------
# Helper: full-array BlockSpec (single block, grid=(1,))
# ----------------------------------------------------------------------------
def _full_spec(a):
    nd = a.ndim
    return pl.BlockSpec(a.shape, lambda i, _nd=nd: (0,) * _nd)


# ----------------------------------------------------------------------------
# Pallas kernel 1: single-block GEMM  Y = relu(X @ W + b)   (conv1..conv3)
# ----------------------------------------------------------------------------
def _gemm_bias_relu_kernel(x_ref, w_ref, b_ref, o_ref):
    y = jnp.dot(x_ref[...], w_ref[...], preferred_element_type=jnp.float32)
    y = y + b_ref[...]
    o_ref[...] = jnp.maximum(y, 0.0).astype(o_ref.dtype)


def gemm_bias_relu(x, w, b_row):
    """x: [M, K] bf16, w: [K, N] bf16, b: [1, N] f32 -> [M, N] bf16."""
    M, K = x.shape
    K2, N = w.shape
    assert K == K2, (K, K2)
    return pl.pallas_call(
        _gemm_bias_relu_kernel,
        out_shape=jax.ShapeDtypeStruct((M, N), jnp.bfloat16),
        grid=(1,),
        in_specs=[
            pl.BlockSpec((M, K), lambda i: (0, 0)),
            pl.BlockSpec((K, N), lambda i: (0, 0)),
            pl.BlockSpec((1, N), lambda i: (0, 0)),
        ],
        out_specs=pl.BlockSpec((M, N), lambda i: (0, 0)),
        compiler_params=pltpu.CompilerParams(dimension_semantics=("arbitrary",)),
    )(x, w, b_row)


# ----------------------------------------------------------------------------
# Pallas kernel 2: fused conv4 + post-encoder head.
#   For each conv4 output position p in {0..3} (p = oh*2 + ow):
#     y4_p = relu(patch_p @ W4 + b4)                    [B, 256]
#     feat += y4_p @ MU_p                               [B, 32]
#   feat += mu_b
#   h1   = relu(feat @ [actor_w1 | critic_w1] + b1)     [B, 2048]
#   ha2  = relu(h1[:, :1024] @ wa2 + ba2)               [B, 256]
#   hc2  = relu(h1[:, 1024:] @ wc2 + bc2)               [B, 256]
#   actor_mu = sigmoid(ha2 @ wa3 + ba3)                 [B, 3]
#   value    = hc2 @ wc3 + bc3                          [B, 1]
# All intermediates stay in vregs/VMEM; nothing round-trips HBM.
# ----------------------------------------------------------------------------
def _conv4_head_kernel(p4_ref, w4_ref, b4_ref, muw_ref, mub_ref,
                       w1_ref, b1_ref, wa2_ref, ba2_ref, wc2_ref, bc2_ref,
                       wa3_ref, ba3_ref, wc3_ref, bc3_ref,
                       amu_ref, val_ref):
    w4 = w4_ref[...]
    b4 = b4_ref[...]
    acc = mub_ref[...]                                    # [1, 32] f32 (broadcasts)
    for p in range(4):                                    # static, unrolled
        y4 = jnp.dot(p4_ref[p], w4, preferred_element_type=jnp.float32) + b4
        y4 = jnp.maximum(y4, 0.0).astype(jnp.bfloat16)    # conv4 ReLU
        acc = acc + jnp.dot(y4, muw_ref[p], preferred_element_type=jnp.float32)
    feat = acc.astype(jnp.bfloat16)                       # [B, 32] latent mu

    h1 = jnp.dot(feat, w1_ref[...], preferred_element_type=jnp.float32) + b1_ref[...]
    h1 = jnp.maximum(h1, 0.0).astype(jnp.bfloat16)        # [B, 2048]
    ha = h1[:, :1024]                                     # actor branch
    hc = h1[:, 1024:]                                     # critic branch

    ha2 = jnp.dot(ha, wa2_ref[...], preferred_element_type=jnp.float32) + ba2_ref[...]
    ha2 = jnp.maximum(ha2, 0.0).astype(jnp.bfloat16)
    hc2 = jnp.dot(hc, wc2_ref[...], preferred_element_type=jnp.float32) + bc2_ref[...]
    hc2 = jnp.maximum(hc2, 0.0).astype(jnp.bfloat16)

    amu = jax.nn.sigmoid(
        jnp.dot(ha2, wa3_ref[...], preferred_element_type=jnp.float32) + ba3_ref[...])
    val = jnp.dot(hc2, wc3_ref[...], preferred_element_type=jnp.float32) + bc3_ref[...]

    amu_ref[...] = amu.astype(amu_ref.dtype)
    val_ref[...] = val.astype(val_ref.dtype)


def conv4_head_forward(prep, x3_nhwc):
    """x3_nhwc: conv3 output [B, 6, 6, 128] bf16 -> (actor_mu [B,3], value [B,1])."""
    B = x3_nhwc.shape[0]
    # conv4 patches per output position: 4 contiguous slices, flatten order (kh,kw,c)
    pats = []
    for oh in range(2):
        for ow in range(2):
            pats.append(
                x3_nhwc[:, 2 * oh:2 * oh + 4, 2 * ow:2 * ow + 4, :].reshape(B, 2048))
    p4 = jnp.stack(pats, axis=0)                          # [4, B, 2048] bf16

    args = (p4, prep["c4_w"], prep["c4_b"],
            prep["mu_w"], prep["mu_b"],
            prep["w1"], prep["b1"],
            prep["wa2"], prep["ba2"], prep["wc2"], prep["bc2"],
            prep["wa3"], prep["ba3"], prep["wc3"], prep["bc3"])
    actor_mu, value = pl.pallas_call(
        _conv4_head_kernel,
        out_shape=(jax.ShapeDtypeStruct((B, 3), jnp.float32),
                   jax.ShapeDtypeStruct((B, 1), jnp.float32)),
        grid=(1,),
        in_specs=[_full_spec(a) for a in args],
        out_specs=(pl.BlockSpec((B, 3), lambda i: (0, 0)),
                   pl.BlockSpec((B, 1), lambda i: (0, 0))),
        compiler_params=pltpu.CompilerParams(dimension_semantics=("arbitrary",)),
    )(*args)
    return actor_mu, value


# ----------------------------------------------------------------------------
# Conv2d(kernel=4, stride=2, padding=0) via XLA im2col + single-block Pallas GEMM
# ----------------------------------------------------------------------------
def conv_gemm(x_nhwc, w_mat, b_row, kh=4, kw=4, stride=2):
    B, H, W, C = x_nhwc.shape
    OH = (H - kh) // stride + 1
    OW = (W - kw) // stride + 1
    cols = [x_nhwc[:, i:i + stride * OH:stride, j:j + stride * OW:stride, :]
            for i in range(kh) for j in range(kw)]
    # Flattened patch ordering is (kh, kw, c), matching the prepared weights.
    patches = jnp.stack(cols, axis=3).reshape(B * OH * OW, kh * kw * C)
    y = gemm_bias_relu(patches, w_mat, b_row)
    return y.reshape(B, OH, OW, w_mat.shape[1])


# ----------------------------------------------------------------------------
# Parameters (deterministic synthetic init, PyTorch-layout shapes)
# ----------------------------------------------------------------------------
def init_params(key):
    def nrm(k, shape, scale=0.05):
        return scale * jax.random.normal(k, shape, dtype=jnp.float32)

    ks = jax.random.split(key, 12)
    p = {}
    # Encoder convs: (Cout, Cin, KH, KW)
    p["c1_w"], p["c1_b"] = nrm(ks[0], (32, 3, 4, 4)), jnp.zeros((32,), jnp.float32)
    p["c2_w"], p["c2_b"] = nrm(ks[1], (64, 32, 4, 4)), jnp.zeros((64,), jnp.float32)
    p["c3_w"], p["c3_b"] = nrm(ks[2], (128, 64, 4, 4)), jnp.zeros((128,), jnp.float32)
    p["c4_w"], p["c4_b"] = nrm(ks[3], (256, 128, 4, 4)), jnp.zeros((256,), jnp.float32)
    # Encoder head: Linear(1024 -> 32), torch weight shape (out, in)
    p["mu_w"], p["mu_b"] = nrm(ks[4], (32, 1024)), jnp.zeros((32,), jnp.float32)
    # Critic MLP: 32 -> 1024 -> 256 -> 1
    p["cr1_w"], p["cr1_b"] = nrm(ks[5], (1024, 32)), jnp.zeros((1024,), jnp.float32)
    p["cr2_w"], p["cr2_b"] = nrm(ks[6], (256, 1024)), jnp.zeros((256,), jnp.float32)
    p["cr3_w"], p["cr3_b"] = nrm(ks[7], (1, 256)), jnp.zeros((1,), jnp.float32)
    # Actor MLP: 32 -> 1024 -> 256 -> 3 (Sigmoid)
    p["ac1_w"], p["ac1_b"] = nrm(ks[8], (1024, 32)), jnp.zeros((1024,), jnp.float32)
    p["ac2_w"], p["ac2_b"] = nrm(ks[9], (256, 1024)), jnp.zeros((256,), jnp.float32)
    p["ac3_w"], p["ac3_b"] = nrm(ks[10], (3, 256)), jnp.zeros((3,), jnp.float32)
    # Learnable log-std (3,)
    p["actor_logstd"] = jnp.zeros((3,), jnp.float32)
    return p


def prepare_params(p):
    """One-time (outside jit) repack of torch-layout params into kernel layout (bf16)."""
    bf16 = jnp.bfloat16

    def conv_wmat(w_oihw, b, scale=1.0):
        cout, cin, kh, kw = w_oihw.shape
        # OIHW -> (kh, kw, cin, cout) to match the (kh, kw, c) patch ordering.
        w_mat = jnp.transpose(w_oihw, (2, 3, 1, 0)).reshape(kh * kw * cin, cout)
        return (w_mat * scale).astype(bf16), b.reshape(1, cout).astype(jnp.float32)

    prep = {}
    # conv1: obs/255 folded into the weights; NO lane padding (review item 4).
    prep["c1_w"], prep["c1_b"] = conv_wmat(p["c1_w"], p["c1_b"], scale=1.0 / 255.0)
    prep["c2_w"], prep["c2_b"] = conv_wmat(p["c2_w"], p["c2_b"])
    prep["c3_w"], prep["c3_b"] = conv_wmat(p["c3_w"], p["c3_b"])
    prep["c4_w"], prep["c4_b"] = conv_wmat(p["c4_w"], p["c4_b"])

    # mu Linear: torch weight indexes the channel-major flatten (c, h, w) of a
    # [B, 256, 2, 2] tensor.  Split it per conv4 output position p = h*2 + w so the
    # fused kernel can accumulate feat = sum_p y4_p @ MU_p with no in-kernel reshape.
    mu_w = p["mu_w"].T.reshape(256, 2, 2, 32)             # (c, h, w, out)
    prep["mu_w"] = jnp.transpose(mu_w, (1, 2, 0, 3)).reshape(4, 256, 32).astype(bf16)
    prep["mu_b"] = p["mu_b"].reshape(1, 32).astype(jnp.float32)

    # Head layer 1: concat actor/critic first layers -> one [32, 2048] GEMM.
    prep["w1"] = jnp.concatenate([p["ac1_w"].T, p["cr1_w"].T], axis=1).astype(bf16)
    prep["b1"] = jnp.concatenate([p["ac1_b"], p["cr1_b"]]).reshape(1, 2048).astype(jnp.float32)
    prep["wa2"] = p["ac2_w"].T.astype(bf16)
    prep["ba2"] = p["ac2_b"].reshape(1, 256).astype(jnp.float32)
    prep["wc2"] = p["cr2_w"].T.astype(bf16)
    prep["bc2"] = p["cr2_b"].reshape(1, 256).astype(jnp.float32)
    prep["wa3"] = p["ac3_w"].T.astype(bf16)
    prep["ba3"] = p["ac3_b"].reshape(1, 3).astype(jnp.float32)
    prep["wc3"] = p["cr3_w"].T.astype(bf16)
    prep["bc3"] = p["cr3_b"].reshape(1, 1).astype(jnp.float32)
    prep["actor_logstd"] = p["actor_logstd"].astype(jnp.float32)
    return prep


# ----------------------------------------------------------------------------
# Forward pass (matches MyModel.forward semantics)
# ----------------------------------------------------------------------------
def mymodel_forward(prep, obs_nchw):
    # NCHW -> NHWC, bf16 (the /255 scale is folded into the conv1 weights).
    x = jnp.transpose(obs_nchw.astype(jnp.float32), (0, 2, 3, 1)).astype(jnp.bfloat16)
    x = conv_gemm(x, prep["c1_w"], prep["c1_b"])          # [B, 31, 31,  32]
    x = conv_gemm(x, prep["c2_w"], prep["c2_b"])          # [B, 14, 14,  64]
    x = conv_gemm(x, prep["c3_w"], prep["c3_b"])          # [B,  6,  6, 128]
    actor_mu, value = conv4_head_forward(prep, x)         # [B,3] f32, [B,1] f32

    B = actor_mu.shape[0]
    actor_logstd = jnp.broadcast_to(prep["actor_logstd"][None, :], (B, 3))
    logits = jnp.concatenate([actor_mu, actor_logstd], axis=1)   # [B, 6]
    return logits, value[:, 0]                            # logits, value [B]


if __name__ == "__main__":
    key = jax.random.PRNGKey(0)
    k_obs, k_par = jax.random.split(key)

    # CarRacing-style observation: NCHW uint8-range pixels, 64x64 so that the
    # encoder's 2*2*256 flatten size is consistent with Linear(1024, 32).
    obs = jax.random.uniform(k_obs, (2, 3, 64, 64), minval=0.0, maxval=255.0,
                             dtype=jnp.float32)
    params = init_params(k_par)
    prep = prepare_params(params)   # one-time weight repack, outside jit

    fwd = jax.jit(mymodel_forward)
    logits, value = fwd(prep, obs)
    jax.block_until_ready((logits, value))

    assert logits.shape == (2, 6), logits.shape
    assert value.shape == (2,), value.shape
    assert bool(jnp.all(jnp.isfinite(logits))) and bool(jnp.all(jnp.isfinite(value)))
    # actor_mu (first 3 cols) is post-sigmoid, in (0, 1); logstd cols are 0.
    assert bool(jnp.all((logits[:, :3] > 0.0) & (logits[:, :3] < 1.0)))
    assert bool(jnp.all(logits[:, 3:] == 0.0))

    print("KERNEL_OK")
</pallas_src>

<mosaic_0001>
module attributes {stable_mosaic.version = 11 : i64} {
  func.func @_gemm_bias_relu_kernel(%arg0: i32, %arg1: memref<1922x48xbf16, #tpu.memory_space<vmem>>, %arg2: memref<48x32xbf16, #tpu.memory_space<vmem>>, %arg3: memref<1x32xf32, #tpu.memory_space<vmem>>, %arg4: memref<1922x32xbf16, #tpu.memory_space<vmem>>) attributes {dimension_semantics = [#tpu.dimension_semantics<arbitrary>], iteration_bounds = array<i64: 1>, scalar_prefetch = 0 : i64, scratch_operands = 0 : i64, tpu.core_type = #tpu.core_type<tc>, window_params = [{pipeline_mode = #tpu.pipeline_mode<synchronous>, transform_indices = @transform_0, window_bounds = array<i64: 1922, 48>}, {pipeline_mode = #tpu.pipeline_mode<synchronous>, transform_indices = @transform_1, window_bounds = array<i64: 48, 32>}, {pipeline_mode = #tpu.pipeline_mode<synchronous>, transform_indices = @transform_2, window_bounds = array<i64: 1, 32>}, {pipeline_mode = #tpu.pipeline_mode<synchronous>, transform_indices = @transform_3, window_bounds = array<i64: 1922, 32>}]} {
    %c0 = arith.constant 0 : index
    %c0_0 = arith.constant 0 : index
    %0 = vector.load %arg1[%c0, %c0_0] : memref<1922x48xbf16, #tpu.memory_space<vmem>>, vector<1922x48xbf16>
    %c0_1 = arith.constant 0 : index
    %c0_2 = arith.constant 0 : index
    %1 = vector.load %arg2[%c0_1, %c0_2] : memref<48x32xbf16, #tpu.memory_space<vmem>>, vector<48x32xbf16>
    %cst = arith.constant dense<0.000000e+00> : vector<1922x32xf32>
    %2 = tpu.matmul %0, %1, %cst {dimension_numbers = #tpu.dot_dimension_numbers<[1], [0], [0], [1], [0, 0, 1, 1], [], []>} : vector<1922x48xbf16>, vector<48x32xbf16>, vector<1922x32xf32> -> vector<1922x32xf32>
    %c0_3 = arith.constant 0 : index
    %c0_4 = arith.constant 0 : index
    %3 = vector.load %arg3[%c0_3, %c0_4] : memref<1x32xf32, #tpu.memory_space<vmem>>, vector<1x32xf32>
    %4 = vector.broadcast %3 : vector<1x32xf32> to vector<1922x32xf32>
    %5 = arith.addf %2, %4 : vector<1922x32xf32>
    %cst_5 = arith.constant 0.000000e+00 : f32
    %6 = vector.broadcast %cst_5 : f32 to vector<1922x32xf32>
    %7 = arith.maximumf %5, %6 : vector<1922x32xf32>
    %8 = arith.truncf %7 : vector<1922x32xf32> to vector<1922x32xbf16>
    %c0_6 = arith.constant 0 : index
    %c0_7 = arith.constant 0 : index
    %9 = vector.load %arg4[%c0_6, %c0_7] : memref<1922x32xbf16, #tpu.memory_space<vmem>>, vector<1922x32xbf16>
    tpu.vector_store %arg4[%c0_6, %c0_7], %8 {strides = array<i32>} : memref<1922x32xbf16, #tpu.memory_space<vmem>>, vector<1922x32xbf16>,
    return
  }
  func.func @transform_0(%arg0: i32) -> (i32, i32) {
    %c0_i32 = arith.constant 0 : i32
    %c0_i32_0 = arith.constant 0 : i32
    %c0_i32_1 = arith.constant 0 : i32
    return %c0_i32, %c0_i32_0 : i32, i32
  }
  func.func @transform_1(%arg0: i32) -> (i32, i32) {
    %c0_i32 = arith.constant 0 : i32
    %c0_i32_0 = arith.constant 0 : i32
    %c0_i32_1 = arith.constant 0 : i32
    return %c0_i32, %c0_i32_0 : i32, i32
  }
  func.func @transform_2(%arg0: i32) -> (i32, i32) {
    %c0_i32 = arith.constant 0 : i32
    %c0_i32_0 = arith.constant 0 : i32
    %c0_i32_1 = arith.constant 0 : i32
    return %c0_i32, %c0_i32_0 : i32, i32
  }
  func.func @transform_3(%arg0: i32) -> (i32, i32) {
    %c0_i32 = arith.constant 0 : i32
    %c0_i32_0 = arith.constant 0 : i32
    %c0_i32_1 = arith.constant 0 : i32
    return %c0_i32, %c0_i32_0 : i32, i32
  }
}

module attributes {stable_mosaic.version = 11 : i64} {
  func.func @_gemm_bias_relu_kernel(%arg0: i32, %arg1: memref<392x512xbf16, #tpu.memory_space<vmem>>, %arg2: memref<512x64xbf16, #tpu.memory_space<vmem>>, %arg3: memref<1x64xf32, #tpu.memory_space<vmem>>, %arg4: memref<392x64xbf16, #tpu.memory_space<vmem>>) attributes {dimension_semantics = [#tpu.dimension_semantics<arbitrary>], iteration_bounds = array<i64: 1>, scalar_prefetch = 0 : i64, scratch_operands = 0 : i64, tpu.core_type = #tpu.core_type<tc>, window_params = [{pipeline_mode = #tpu.pipeline_mode<synchronous>, transform_indices = @transform_0, window_bounds = array<i64: 392, 512>}, {pipeline_mode = #tpu.pipeline_mode<synchronous>, transform_indices = @transform_1, window_bounds = array<i64: 512, 64>}, {pipeline_mode = #tpu.pipeline_mode<synchronous>, transform_indices = @transform_2, window_bounds = array<i64: 1, 64>}, {pipeline_mode = #tpu.pipeline_mode<synchronous>, transform_indices = @transform_3, window_bounds = array<i64: 392, 64>}]} {
    %c0 = arith.constant 0 : index
    %c0_0 = arith.constant 0 : index
    %0 = vector.load %arg1[%c0, %c0_0] : memref<392x512xbf16, #tpu.memory_space<vmem>>, vector<392x512xbf16>
    %c0_1 = arith.constant 0 : index
    %c0_2 = arith.constant 0 : index
    %1 = vector.load %arg2[%c0_1, %c0_2] : memref<512x64xbf16, #tpu.memory_space<vmem>>, vector<512x64xbf16>
    %cst = arith.constant dense<0.000000e+00> : vector<392x64xf32>
    %2 = tpu.matmul %0, %1, %cst {dimension_numbers = #tpu.dot_dimension_numbers<[1], [0], [0], [1], [0, 0, 1, 1], [], []>} : vector<392x512xbf16>, vector<512x64xbf16>, vector<392x64xf32> -> vector<392x64xf32>
    %c0_3 = arith.constant 0 : index
    %c0_4 = arith.constant 0 : index
    %3 = vector.load %arg3[%c0_3, %c0_4] : memref<1x64xf32, #tpu.memory_space<vmem>>, vector<1x64xf32>
    %4 = vector.broadcast %3 : vector<1x64xf32> to vector<392x64xf32>
    %5 = arith.addf %2, %4 : vector<392x64xf32>
    %cst_5 = arith.constant 0.000000e+00 : f32
    %6 = vector.broadcast %cst_5 : f32 to vector<392x64xf32>
    %7 = arith.maximumf %5, %6 : vector<392x64xf32>
    %8 = arith.truncf %7 : vector<392x64xf32> to vector<392x64xbf16>
    %c0_6 = arith.constant 0 : index
    %c0_7 = arith.constant 0 : index
    %9 = vector.load %arg4[%c0_6, %c0_7] : memref<392x64xbf16, #tpu.memory_space<vmem>>, vector<392x64xbf16>
    tpu.vector_store %arg4[%c0_6, %c0_7], %8 {strides = array<i32>} : memref<392x64xbf16, #tpu.memory_space<vmem>>, vector<392x64xbf16>,
    return
  }
  func.func @transform_0(%arg0: i32) -> (i32, i32) {
    %c0_i32 = arith.constant 0 : i32
    %c0_i32_0 = arith.constant 0 : i32
    %c0_i32_1 = arith.constant 0 : i32
    return %c0_i32, %c0_i32_0 : i32, i32
  }
  func.func @transform_1(%arg0: i32) -> (i32, i32) {
    %c0_i32 = arith.constant 0 : i32
    %c0_i32_0 = arith.constant 0 : i32
    %c0_i32_1 = arith.constant 0 : i32
    return %c0_i32, %c0_i32_0 : i32, i32
  }
  func.func @transform_2(%arg0: i32) -> (i32, i32) {
    %c0_i32 = arith.constant 0 : i32
    %c0_i32_0 = arith.constant 0 : i32
    %c0_i32_1 = arith.constant 0 : i32
    return %c0_i32, %c0_i32_0 : i32, i32
  }
  func.func @transform_3(%arg0: i32) -> (i32, i32) {
    %c0_i32 = arith.constant 0 : i32
    %c0_i32_0 = arith.constant 0 : i32
    %c0_i32_1 = arith.constant 0 : i32
    return %c0_i32, %c0_i32_0 : i32, i32
  }
}

module attributes {stable_mosaic.version = 11 : i64} {
  func.func @_gemm_bias_relu_kernel(%arg0: i32, %arg1: memref<72x1024xbf16, #tpu.memory_space<vmem>>, %arg2: memref<1024x128xbf16, #tpu.memory_space<vmem>>, %arg3: memref<1x128xf32, #tpu.memory_space<vmem>>, %arg4: memref<72x128xbf16, #tpu.memory_space<vmem>>) attributes {dimension_semantics = [#tpu.dimension_semantics<arbitrary>], iteration_bounds = array<i64: 1>, scalar_prefetch = 0 : i64, scratch_operands = 0 : i64, tpu.core_type = #tpu.core_type<tc>, window_params = [{pipeline_mode = #tpu.pipeline_mode<synchronous>, transform_indices = @transform_0, window_bounds = array<i64: 72, 1024>}, {pipeline_mode = #tpu.pipeline_mode<synchronous>, transform_indices = @transform_1, window_bounds = array<i64: 1024, 128>}, {pipeline_mode = #tpu.pipeline_mode<synchronous>, transform_indices = @transform_2, window_bounds = array<i64: 1, 128>}, {pipeline_mode = #tpu.pipeline_mode<synchronous>, transform_indices = @transform_3, window_bounds = array<i64: 72, 128>}]} {
    %c0 = arith.constant 0 : index
    %c0_0 = arith.constant 0 : index
    %0 = vector.load %arg1[%c0, %c0_0] : memref<72x1024xbf16, #tpu.memory_space<vmem>>, vector<72x1024xbf16>
    %c0_1 = arith.constant 0 : index
    %c0_2 = arith.constant 0 : index
    %1 = vector.load %arg2[%c0_1, %c0_2] : memref<1024x128xbf16, #tpu.memory_space<vmem>>, vector<1024x128xbf16>
    %cst = arith.constant dense<0.000000e+00> : vector<72x128xf32>
    %2 = tpu.matmul %0, %1, %cst {dimension_numbers = #tpu.dot_dimension_numbers<[1], [0], [0], [1], [0, 0, 1, 1], [], []>} : vector<72x1024xbf16>, vector<1024x128xbf16>, vector<72x128xf32> -> vector<72x128xf32>
    %c0_3 = arith.constant 0 : index
    %c0_4 = arith.constant 0 : index
    %3 = vector.load %arg3[%c0_3, %c0_4] : memref<1x128xf32, #tpu.memory_space<vmem>>, vector<1x128xf32>
    %4 = vector.broadcast %3 : vector<1x128xf32> to vector<72x128xf32>
    %5 = arith.addf %2, %4 : vector<72x128xf32>
    %cst_5 = arith.constant 0.000000e+00 : f32
    %6 = vector.broadcast %cst_5 : f32 to vector<72x128xf32>
    %7 = arith.maximumf %5, %6 : vector<72x128xf32>
    %8 = arith.truncf %7 : vector<72x128xf32> to vector<72x128xbf16>
    %c0_6 = arith.constant 0 : index
    %c0_7 = arith.constant 0 : index
    %9 = vector.load %arg4[%c0_6, %c0_7] : memref<72x128xbf16, #tpu.memory_space<vmem>>, vector<72x128xbf16>
    tpu.vector_store %arg4[%c0_6, %c0_7], %8 {strides = array<i32>} : memref<72x128xbf16, #tpu.memory_space<vmem>>, vector<72x128xbf16>,
    return
  }
  func.func @transform_0(%arg0: i32) -> (i32, i32) {
    %c0_i32 = arith.constant 0 : i32
    %c0_i32_0 = arith.constant 0 : i32
    %c0_i32_1 = arith.constant 0 : i32
    return %c0_i32, %c0_i32_0 : i32, i32
  }
  func.func @transform_1(%arg0: i32) -> (i32, i32) {
    %c0_i32 = arith.constant 0 : i32
    %c0_i32_0 = arith.constant 0 : i32
    %c0_i32_1 = arith.constant 0 : i32
    return %c0_i32, %c0_i32_0 : i32, i32
  }
  func.func @transform_2(%arg0: i32) -> (i32, i32) {
    %c0_i32 = arith.constant 0 : i32
    %c0_i32_0 = arith.constant 0 : i32
    %c0_i32_1 = arith.constant 0 : i32
    return %c0_i32, %c0_i32_0 : i32, i32
  }
  func.func @transform_3(%arg0: i32) -> (i32, i32) {
    %c0_i32 = arith.constant 0 : i32
    %c0_i32_0 = arith.constant 0 : i32
    %c0_i32_1 = arith.constant 0 : i32
    return %c0_i32, %c0_i32_0 : i32, i32
  }
}

module attributes {stable_mosaic.version = 11 : i64} {
  func.func @_conv4_head_kernel(%arg0: i32, %arg1: memref<4x2x2048xbf16, #tpu.memory_space<vmem>>, %arg2: memref<2048x256xbf16, #tpu.memory_space<vmem>>, %arg3: memref<1x256xf32, #tpu.memory_space<vmem>>, %arg4: memref<4x256x32xbf16, #tpu.memory_space<vmem>>, %arg5: memref<1x32xf32, #tpu.memory_space<vmem>>, %arg6: memref<32x2048xbf16, #tpu.memory_space<vmem>>, %arg7: memref<1x2048xf32, #tpu.memory_space<vmem>>, %arg8: memref<1024x256xbf16, #tpu.memory_space<vmem>>, %arg9: memref<1x256xf32, #tpu.memory_space<vmem>>, %arg10: memref<1024x256xbf16, #tpu.memory_space<vmem>>, %arg11: memref<1x256xf32, #tpu.memory_space<vmem>>, %arg12: memref<256x3xbf16, #tpu.memory_space<vmem>>, %arg13: memref<1x3xf32, #tpu.memory_space<vmem>>, %arg14: memref<256x1xbf16, #tpu.memory_space<vmem>>, %arg15: memref<1x1xf32, #tpu.memory_space<vmem>>, %arg16: memref<2x3xf32, #tpu.memory_space<vmem>>, %arg17: memref<2x1xf32, #tpu.memory_space<vmem>>) attributes {dimension_semantics = [#tpu.dimension_semantics<arbitrary>], iteration_bounds = array<i64: 1>, scalar_prefetch = 0 : i64, scratch_operands = 0 : i64, tpu.core_type = #tpu.core_type<tc>, window_params = [{pipeline_mode = #tpu.pipeline_mode<synchronous>, transform_indices = @transform_0, window_bounds = array<i64: 4, 2, 2048>}, {pipeline_mode = #tpu.pipeline_mode<synchronous>, transform_indices = @transform_1, window_bounds = array<i64: 2048, 256>}, {pipeline_mode = #tpu.pipeline_mode<synchronous>, transform_indices = @transform_2, window_bounds = array<i64: 1, 256>}, {pipeline_mode = #tpu.pipeline_mode<synchronous>, transform_indices = @transform_3, window_bounds = array<i64: 4, 256, 32>}, {pipeline_mode = #tpu.pipeline_mode<synchronous>, transform_indices = @transform_4, window_bounds = array<i64: 1, 32>}, {pipeline_mode = #tpu.pipeline_mode<synchronous>, transform_indices = @transform_5, window_bounds = array<i64: 32, 2048>}, {pipeline_mode = #tpu.pipeline_mode<synchronous>, transform_indices = @transform_6, window_bounds = array<i64: 1, 2048>}, {pipeline_mode = #tpu.pipeline_mode<synchronous>, transform_indices = @transform_7, window_bounds = array<i64: 1024, 256>}, {pipeline_mode = #tpu.pipeline_mode<synchronous>, transform_indices = @transform_8, window_bounds = array<i64: 1, 256>}, {pipeline_mode = #tpu.pipeline_mode<synchronous>, transform_indices = @transform_9, window_bounds = array<i64: 1024, 256>}, {pipeline_mode = #tpu.pipeline_mode<synchronous>, transform_indices = @transform_10, window_bounds = array<i64: 1, 256>}, {pipeline_mode = #tpu.pipeline_mode<synchronous>, transform_indices = @transform_11, window_bounds = array<i64: 256, 3>}, {pipeline_mode = #tpu.pipeline_mode<synchronous>, transform_indices = @transform_12, window_bounds = array<i64: 1, 3>}, {pipeline_mode = #tpu.pipeline_mode<synchronous>, transform_indices = @transform_13, window_bounds = array<i64: 256, 1>}, {pipeline_mode = #tpu.pipeline_mode<synchronous>, transform_indices = @transform_14, window_bounds = array<i64: 1, 1>}, {pipeline_mode = #tpu.pipeline_mode<synchronous>, transform_indices = @transform_15, window_bounds = array<i64: 2, 3>}, {pipeline_mode = #tpu.pipeline_mode<synchronous>, transform_indices = @transform_16, window_bounds = array<i64: 2, 1>}]} {
    %c0 = arith.constant 0 : index
    %c0_0 = arith.constant 0 : index
    %0 = vector.load %arg2[%c0, %c0_0] : memref<2048x256xbf16, #tpu.memory_space<vmem>>, vector<2048x256xbf16>
    %c0_1 = arith.constant 0 : index
    %c0_2 = arith.constant 0 : index
    %1 = vector.load %arg3[%c0_1, %c0_2] : memref<1x256xf32, #tpu.memory_space<vmem>>, vector<1x256xf32>
    %c0_3 = arith.constant 0 : index
    %c0_4 = arith.constant 0 : index
    %2 = vector.load %arg5[%c0_3, %c0_4] : memref<1x32xf32, #tpu.memory_space<vmem>>, vector<1x32xf32>
    %c0_5 = arith.constant 0 : index
    %c0_6 = arith.constant 0 : index
    %c0_7 = arith.constant 0 : index
    %3 = vector.load %arg1[%c0_5, %c0_6, %c0_7] : memref<4x2x2048xbf16, #tpu.memory_space<vmem>>, vector<1x2x2048xbf16>
    %4 = vector.shape_cast %3 : vector<1x2x2048xbf16> to vector<2x2048xbf16>
    %cst = arith.constant dense<0.000000e+00> : vector<2x256xf32>
    %5 = tpu.matmul %4, %0, %cst {dimension_numbers = #tpu.dot_dimension_numbers<[1], [0], [0], [1], [0, 0, 1, 1], [], []>} : vector<2x2048xbf16>, vector<2048x256xbf16>, vector<2x256xf32> -> vector<2x256xf32>
    %6 = vector.broadcast %1 : vector<1x256xf32> to vector<2x256xf32>
    %7 = arith.addf %5, %6 : vector<2x256xf32>
    %cst_8 = arith.constant 0.000000e+00 : f32
    %8 = vector.broadcast %cst_8 : f32 to vector<2x256xf32>
    %9 = arith.maximumf %7, %8 : vector<2x256xf32>
    %10 = arith.truncf %9 : vector<2x256xf32> to vector<2x256xbf16>
    %c0_9 = arith.constant 0 : index
    %c0_10 = arith.constant 0 : index
    %c0_11 = arith.constant 0 : index
    %11 = vector.load %arg4[%c0_9, %c0_10, %c0_11] : memref<4x256x32xbf16, #tpu.memory_space<vmem>>, vector<1x256x32xbf16>
    %12 = vector.shape_cast %11 : vector<1x256x32xbf16> to vector<256x32xbf16>
    %cst_12 = arith.constant dense<0.000000e+00> : vector<2x32xf32>
    %13 = tpu.matmul %10, %12, %cst_12 {dimension_numbers = #tpu.dot_dimension_numbers<[1], [0], [0], [1], [0, 0, 1, 1], [], []>} : vector<2x256xbf16>, vector<256x32xbf16>, vector<2x32xf32> -> vector<2x32xf32>
    %14 = vector.broadcast %2 : vector<1x32xf32> to vector<2x32xf32>
    %15 = arith.addf %14, %13 : vector<2x32xf32>
    %c1 = arith.constant 1 : index
    %c0_13 = arith.constant 0 : index
    %c0_14 = arith.constant 0 : index
    %16 = vector.load %arg1[%c1, %c0_13, %c0_14] : memref<4x2x2048xbf16, #tpu.memory_space<vmem>>, vector<1x2x2048xbf16>
    %17 = vector.shape_cast %16 : vector<1x2x2048xbf16> to vector<2x2048xbf16>
    %cst_15 = arith.constant dense<0.000000e+00> : vector<2x256xf32>
    %18 = tpu.matmul %17, %0, %cst_15 {dimension_numbers = #tpu.dot_dimension_numbers<[1], [0], [0], [1], [0, 0, 1, 1], [], []>} : vector<2x2048xbf16>, vector<2048x256xbf16>, vector<2x256xf32> -> vector<2x256xf32>
    %19 = vector.broadcast %1 : vector<1x256xf32> to vector<2x256xf32>
    %20 = arith.addf %18, %19 : vector<2x256xf32>
    %cst_16 = arith.constant 0.000000e+00 : f32
    %21 = vector.broadcast %cst_16 : f32 to vector<2x256xf32>
    %22 = arith.maximumf %20, %21 : vector<2x256xf32>
    %23 = arith.truncf %22 : vector<2x256xf32> to vector<2x256xbf16>
    %c1_17 = arith.constant 1 : index
    %c0_18 = arith.constant 0 : index
    %c0_19 = arith.constant 0 : index
    %24 = vector.load %arg4[%c1_17, %c0_18, %c0_19] : memref<4x256x32xbf16, #tpu.memory_space<vmem>>, vector<1x256x32xbf16>
    %25 = vector.shape_cast %24 : vector<1x256x32xbf16> to vector<256x32xbf16>
    %cst_20 = arith.constant dense<0.000000e+00> : vector<2x32xf32>
    %26 = tpu.matmul %23, %25, %cst_20 {dimension_numbers = #tpu.dot_dimension_numbers<[1], [0], [0], [1], [0, 0, 1, 1], [], []>} : vector<2x256xbf16>, vector<256x32xbf16>, vector<2x32xf32> -> vector<2x32xf32>
    %27 = arith.addf %15, %26 : vector<2x32xf32>
    %c2 = arith.constant 2 : index
    %c0_21 = arith.constant 0 : index
    %c0_22 = arith.constant 0 : index
    %28 = vector.load %arg1[%c2, %c0_21, %c0_22] : memref<4x2x2048xbf16, #tpu.memory_space<vmem>>, vector<1x2x2048xbf16>
    %29 = vector.shape_cast %28 : vector<1x2x2048xbf16> to vector<2x2048xbf16>
    %cst_23 = arith.constant dense<0.000000e+00> : vector<2x256xf32>
    %30 = tpu.matmul %29, %0, %cst_23 {dimension_numbers = #tpu.dot_dimension_numbers<[1], [0], [0], [1], [0, 0, 1, 1], [], []>} : vector<2x2048xbf16>, vector<2048x256xbf16>, vector<2x256xf32> -> vector<2x256xf32>
    %31 = vector.broadcast %1 : vector<1x256xf32> to vector<2x256xf32>
    %32 = arith.addf %30, %31 : vector<2x256xf32>
    %cst_24 = arith.constant 0.000000e+00 : f32
    %33 = vector.broadcast %cst_24 : f32 to vector<2x256xf32>
    %34 = arith.maximumf %32, %33 : vector<2x256xf32>
    %35 = arith.truncf %34 : vector<2x256xf32> to vector<2x256xbf16>
    %c2_25 = arith.constant 2 : index
    %c0_26 = arith.constant 0 : index
    %c0_27 = arith.constant 0 : index
    %36 = vector.load %arg4[%c2_25, %c0_26, %c0_27] : memref<4x256x32xbf16, #tpu.memory_space<vmem>>, vector<1x256x32xbf16>
    %37 = vector.shape_cast %36 : vector<1x256x32xbf16> to vector<256x32xbf16>
    %cst_28 = arith.constant dense<0.000000e+00> : vector<2x32xf32>
    %38 = tpu.matmul %35, %37, %cst_28 {dimension_numbers = #tpu.dot_dimension_numbers<[1], [0], [0], [1], [0, 0, 1, 1], [], []>} : vector<2x256xbf16>, vector<256x32xbf16>, vector<2x32xf32> -> vector<2x32xf32>
    %39 = arith.addf %27, %38 : vector<2x32xf32>
    %c3 = arith.constant 3 : index
    %c0_29 = arith.constant 0 : index
    %c0_30 = arith.constant 0 : index
    %40 = vector.load %arg1[%c3, %c0_29, %c0_30] : memref<4x2x2048xbf16, #tpu.memory_space<vmem>>, vector<1x2x2048xbf16>
    %41 = vector.shape_cast %40 : vector<1x2x2048xbf16> to vector<2x2048xbf16>
    %cst_31 = arith.constant dense<0.000000e+00> : vector<2x256xf32>
    %42 = tpu.matmul %41, %0, %cst_31 {dimension_numbers = #tpu.dot_dimension_numbers<[1], [0], [0], [1], [0, 0, 1, 1], [], []>} : vector<2x2048xbf16>, vector<2048x256xbf16>, vector<2x256xf32> -> vector<2x256xf32>
    %43 = vector.broadcast %1 : vector<1x256xf32> to vector<2x256xf32>
    %44 = arith.addf %42, %43 : vector<2x256xf32>
    %cst_32 = arith.constant 0.000000e+00 : f32
    %45 = vector.broadcast %cst_32 : f32 to vector<2x256xf32>
    %46 = arith.maximumf %44, %45 : vector<2x256xf32>
    %47 = arith.truncf %46 : vector<2x256xf32> to vector<2x256xbf16>
    %c3_33 = arith.constant 3 : index
    %c0_34 = arith.constant 0 : index
    %c0_35 = arith.constant 0 : index
    %48 = vector.load %arg4[%c3_33, %c0_34, %c0_35] : memref<4x256x32xbf16, #tpu.memory_space<vmem>>, vector<1x256x32xbf16>
    %49 = vector.shape_cast %48 : vector<1x256x32xbf16> to vector<256x32xbf16>
    %cst_36 = arith.constant dense<0.000000e+00> : vector<2x32xf32>
    %50 = tpu.matmul %47, %49, %cst_36 {dimension_numbers = #tpu.dot_dimension_numbers<[1], [0], [0], [1], [0, 0, 1, 1], [], []>} : vector<2x256xbf16>, vector<256x32xbf16>, vector<2x32xf32> -> vector<2x32xf32>
    %51 = arith.addf %39, %50 : vector<2x32xf32>
    %52 = arith.truncf %51 : vector<2x32xf32> to vector<2x32xbf16>
    %c0_37 = arith.constant 0 : index
    %c0_38 = arith.constant 0 : index
    %53 = vector.load %arg6[%c0_37, %c0_38] : memref<32x2048xbf16, #tpu.memory_space<vmem>>, vector<32x2048xbf16>
    %cst_39 = arith.constant dense<0.000000e+00> : vector<2x2048xf32>
    %54 = tpu.matmul %52, %53, %cst_39 {dimension_numbers = #tpu.dot_dimension_numbers<[1], [0], [0], [1], [0, 0, 1, 1], [], []>} : vector<2x32xbf16>, vector<32x2048xbf16>, vector<2x2048xf32> -> vector<2x2048xf32>
    %c0_40 = arith.constant 0 : index
    %c0_41 = arith.constant 0 : index
    %55 = vector.load %arg7[%c0_40, %c0_41] : memref<1x2048xf32, #tpu.memory_space<vmem>>, vector<1x2048xf32>
    %56 = vector.broadcast %55 : vector<1x2048xf32> to vector<2x2048xf32>
    %57 = arith.addf %54, %56 : vector<2x2048xf32>
    %cst_42 = arith.constant 0.000000e+00 : f32
    %58 = vector.broadcast %cst_42 : f32 to vector<2x2048xf32>
    %59 = arith.maximumf %57, %58 : vector<2x2048xf32>
    %60 = arith.truncf %59 : vector<2x2048xf32> to vector<2x2048xbf16>
    %61 = vector.extract_strided_slice %60 {offsets = [0, 0], sizes = [2, 1024], strides = [1, 1]} : vector<2x2048xbf16> to vector<2x1024xbf16>
    %62 = vector.extract_strided_slice %60 {offsets = [0, 1024], sizes = [2, 1024], strides = [1, 1]} : vector<2x2048xbf16> to vector<2x1024xbf16>
    %c0_43 = arith.constant 0 : index
    %c0_44 = arith.constant 0 : index
    %63 = vector.load %arg8[%c0_43, %c0_44] : memref<1024x256xbf16, #tpu.memory_space<vmem>>, vector<1024x256xbf16>
    %cst_45 = arith.constant dense<0.000000e+00> : vector<2x256xf32>
    %64 = tpu.matmul %61, %63, %cst_45 {dimension_numbers = #tpu.dot_dimension_numbers<[1], [0], [0], [1], [0, 0, 1, 1], [], []>} : vector<2x1024xbf16>, vector<1024x256xbf16>, vector<2x256xf32> -> vector<2x256xf32>
    %c0_46 = arith.constant 0 : index
    %c0_47 = arith.constant 0 : index
    %65 = vector.load %arg9[%c0_46, %c0_47] : memref<1x256xf32, #tpu.memory_space<vmem>>, vector<1x256xf32>
    %66 = vector.broadcast %65 : vector<1x256xf32> to vector<2x256xf32>
    %67 = arith.addf %64, %66 : vector<2x256xf32>
    %cst_48 = arith.constant 0.000000e+00 : f32
    %68 = vector.broadcast %cst_48 : f32 to vector<2x256xf32>
    %69 = arith.maximumf %67, %68 : vector<2x256xf32>
    %70 = arith.truncf %69 : vector<2x256xf32> to vector<2x256xbf16>
    %c0_49 = arith.constant 0 : index
    %c0_50 = arith.constant 0 : index
    %71 = vector.load %arg10[%c0_49, %c0_50] : memref<1024x256xbf16, #tpu.memory_space<vmem>>, vector<1024x256xbf16>
    %cst_51 = arith.constant dense<0.000000e+00> : vector<2x256xf32>
    %72 = tpu.matmul %62, %71, %cst_51 {dimension_numbers = #tpu.dot_dimension_numbers<[1], [0], [0], [1], [0, 0, 1, 1], [], []>} : vector<2x1024xbf16>, vector<1024x256xbf16>, vector<2x256xf32> -> vector<2x256xf32>
    %c0_52 = arith.constant 0 : index
    %c0_53 = arith.constant 0 : index
    %73 = vector.load %arg11[%c0_52, %c0_53] : memref<1x256xf32, #tpu.memory_space<vmem>>, vector<1x256xf32>
    %74 = vector.broadcast %73 : vector<1x256xf32> to vector<2x256xf32>
    %75 = arith.addf %72, %74 : vector<2x256xf32>
    %cst_54 = arith.constant 0.000000e+00 : f32
    %76 = vector.broadcast %cst_54 : f32 to vector<2x256xf32>
    %77 = arith.maximumf %75, %76 : vector<2x256xf32>
    %78 = arith.truncf %77 : vector<2x256xf32> to vector<2x256xbf16>
    %c0_55 = arith.constant 0 : index
    %c0_56 = arith.constant 0 : index
    %79 = vector.load %arg12[%c0_55, %c0_56] : memref<256x3xbf16, #tpu.memory_space<vmem>>, vector<256x3xbf16>
    %cst_57 = arith.constant dense<0.000000e+00> : vector<2x3xf32>
    %80 = tpu.matmul %70, %79, %cst_57 {dimension_numbers = #tpu.dot_dimension_numbers<[1], [0], [0], [1], [0, 0, 1, 1], [], []>} : vector<2x256xbf16>, vector<256x3xbf16>, vector<2x3xf32> -> vector<2x3xf32>
    %c0_58 = arith.constant 0 : index
    %c0_59 = arith.constant 0 : index
    %81 = vector.load %arg13[%c0_58, %c0_59] : memref<1x3xf32, #tpu.memory_space<vmem>>, vector<1x3xf32>
    %82 = vector.broadcast %81 : vector<1x3xf32> to vector<2x3xf32>
    %83 = arith.addf %80, %82 : vector<2x3xf32>
    %84 = arith.negf %83 : vector<2x3xf32>
    %85 = math.exp %84 : vector<2x3xf32>
    %cst_60 = arith.constant 1.000000e+00 : f32
    %86 = vector.broadcast %cst_60 : f32 to vector<2x3xf32>
    %87 = arith.addf %86, %85 : vector<2x3xf32>
    %88 = arith.divf %86, %87 : vector<2x3xf32>
    %c0_61 = arith.constant 0 : index
    %c0_62 = arith.constant 0 : index
    %89 = vector.load %arg14[%c0_61, %c0_62] : memref<256x1xbf16, #tpu.memory_space<vmem>>, vector<256x1xbf16>
    %cst_63 = arith.constant dense<0.000000e+00> : vector<2x1xf32>
    %90 = tpu.matmul %78, %89, %cst_63 {dimension_numbers = #tpu.dot_dimension_numbers<[1], [0], [0], [1], [0, 0, 1, 1], [], []>} : vector<2x256xbf16>, vector<256x1xbf16>, vector<2x1xf32> -> vector<2x1xf32>
    %c0_64 = arith.constant 0 : index
    %c0_65 = arith.constant 0 : index
    %91 = vector.load %arg15[%c0_64, %c0_65] : memref<1x1xf32, #tpu.memory_space<vmem>>, vector<1x1xf32>
    %92 = vector.broadcast %91 : vector<1x1xf32> to vector<2x1xf32>
    %93 = arith.addf %90, %92 : vector<2x1xf32>
    %c0_66 = arith.constant 0 : index
    %c0_67 = arith.constant 0 : index
    %94 = vector.load %arg16[%c0_66, %c0_67] : memref<2x3xf32, #tpu.memory_space<vmem>>, vector<2x3xf32>
    tpu.vector_store %arg16[%c0_66, %c0_67], %88 {strides = array<i32>} : memref<2x3xf32, #tpu.memory_space<vmem>>, vector<2x3xf32>,
    %c0_68 = arith.constant 0 : index
    %c0_69 = arith.constant 0 : index
    %95 = vector.load %arg17[%c0_68, %c0_69] : memref<2x1xf32, #tpu.memory_space<vmem>>, vector<2x1xf32>
    tpu.vector_store %arg17[%c0_68, %c0_69], %93 {strides = array<i32>} : memref<2x1xf32, #tpu.memory_space<vmem>>, vector<2x1xf32>,
    return
  }
  func.func @transform_0(%arg0: i32) -> (i32, i32, i32) {
    %c0_i32 = arith.constant 0 : i32
    %c0_i32_0 = arith.constant 0 : i32
    %c0_i32_1 = arith.constant 0 : i32
    %c0_i32_2 = arith.constant 0 : i32
    return %c0_i32, %c0_i32_0, %c0_i32_1 : i32, i32, i32
  }
  func.func @transform_1(%arg0: i32) -> (i32, i32) {
    %c0_i32 = arith.constant 0 : i32
    %c0_i32_0 = arith.constant 0 : i32
    %c0_i32_1 = arith.constant 0 : i32
    return %c0_i32, %c0_i32_0 : i32, i32
  }
  func.func @transform_2(%arg0: i32) -> (i32, i32) {
    %c0_i32 = arith.constant 0 : i32
    %c0_i32_0 = arith.constant 0 : i32
    %c0_i32_1 = arith.constant 0 : i32
    return %c0_i32, %c0_i32_0 : i32, i32
  }
  func.func @transform_3(%arg0: i32) -> (i32, i32, i32) {
    %c0_i32 = arith.constant 0 : i32
    %c0_i32_0 = arith.constant 0 : i32
    %c0_i32_1 = arith.constant 0 : i32
    %c0_i32_2 = arith.constant 0 : i32
    return %c0_i32, %c0_i32_0, %c0_i32_1 : i32, i32, i32
  }
  func.func @transform_4(%arg0: i32) -> (i32, i32) {
    %c0_i32 = arith.constant 0 : i32
    %c0_i32_0 = arith.constant 0 : i32
    %c0_i32_1 = arith.constant 0 : i32
    return %c0_i32, %c0_i32_0 : i32, i32
  }
  func.func @transform_5(%arg0: i32) -> (i32, i32) {
    %c0_i32 = arith.constant 0 : i32
    %c0_i32_0 = arith.constant 0 : i32
    %c0_i32_1 = arith.constant 0 : i32
    return %c0_i32, %c0_i32_0 : i32, i32
  }
  func.func @transform_6(%arg0: i32) -> (i32, i32) {
    %c0_i32 = arith.constant 0 : i32
    %c0_i32_0 = arith.constant 0 : i32
    %c0_i32_1 = arith.constant 0 : i32
    return %c0_i32, %c0_i32_0 : i32, i32
  }
  func.func @transform_7(%arg0: i32) -> (i32, i32) {
    %c0_i32 = arith.constant 0 : i32
    %c0_i32_0 = arith.constant 0 : i32
    %c0_i32_1 = arith.constant 0 : i32
    return %c0_i32, %c0_i32_0 : i32, i32
  }
  func.func @transform_8(%arg0: i32) -> (i32, i32) {
    %c0_i32 = arith.constant 0 : i32
    %c0_i32_0 = arith.constant 0 : i32
    %c0_i32_1 = arith.constant 0 : i32
    return %c0_i32, %c0_i32_0 : i32, i32
  }
  func.func @transform_9(%arg0: i32) -> (i32, i32) {
    %c0_i32 = arith.constant 0 : i32
    %c0_i32_0 = arith.constant 0 : i32
    %c0_i32_1 = arith.constant 0 : i32
    return %c0_i32, %c0_i32_0 : i32, i32
  }
  func.func @transform_10(%arg0: i32) -> (i32, i32) {
    %c0_i32 = arith.constant 0 : i32
    %c0_i32_0 = arith.constant 0 : i32
    %c0_i32_1 = arith.constant 0 : i32
    return %c0_i32, %c0_i32_0 : i32, i32
  }
  func.func @transform_11(%arg0: i32) -> (i32, i32) {
    %c0_i32 = arith.constant 0 : i32
    %c0_i32_0 = arith.constant 0 : i32
    %c0_i32_1 = arith.constant 0 : i32
    return %c0_i32, %c0_i32_0 : i32, i32
  }
  func.func @transform_12(%arg0: i32) -> (i32, i32) {
    %c0_i32 = arith.constant 0 : i32
    %c0_i32_0 = arith.constant 0 : i32
    %c0_i32_1 = arith.constant 0 : i32
    return %c0_i32, %c0_i32_0 : i32, i32
  }
  func.func @transform_13(%arg0: i32) -> (i32, i32) {
    %c0_i32 = arith.constant 0 : i32
    %c0_i32_0 = arith.constant 0 : i32
    %c0_i32_1 = arith.constant 0 : i32
    return %c0_i32, %c0_i32_0 : i32, i32
  }
  func.func @transform_14(%arg0: i32) -> (i32, i32) {
    %c0_i32 = arith.constant 0 : i32
    %c0_i32_0 = arith.constant 0 : i32
    %c0_i32_1 = arith.constant 0 : i32
    return %c0_i32, %c0_i32_0 : i32, i32
  }
  func.func @transform_15(%arg0: i32) -> (i32, i32) {
    %c0_i32 = arith.constant 0 : i32
    %c0_i32_0 = arith.constant 0 : i32
    %c0_i32_1 = arith.constant 0 : i32
    return %c0_i32, %c0_i32_0 : i32, i32
  }
  func.func @transform_16(%arg0: i32) -> (i32, i32) {
    %c0_i32 = arith.constant 0 : i32
    %c0_i32_0 = arith.constant 0 : i32
    %c0_i32_1 = arith.constant 0 : i32
    return %c0_i32, %c0_i32_0 : i32, i32
  }
}

</mosaic_0001>

<bundles_post_ra>
// kernel: mymodel_forward.4
= control target key start
LH: loop header
LB: loop body
LE: loop exit
PB: predicated region body
PF: predicated region fallthrough
CT: control target
= control target key end

     0   :  { %v5184_v0 = vmov 0.0   ;;  %vm5185_vm0 = vmmov 0   ;;  %vm890_vm1 = vcmask 392192   ;;  %vm3460_vm2 = vcmask 257024   ;;  %s7171_s1 = inlined_call_operand.vmem [shape: bf16[48,32], index: 1, kind: input, shape index: {}]   ;;  %s7172_s0 = inlined_call_operand.vmem [shape: bf16[1922,48], index: 0, kind: input, shape index: {}]   ;;  %s7173_s2 = inlined_call_operand.vmem [shape: f32[1,32], index: 2, kind: input, shape index: {}]   ;;  %s7174_s3 = inlined_call_operand.vmem [shape: bf16[1922,32], index: 3, kind: output, shape index: {}]  }
   0x1   :  { %4559 = vmatprep.subr.bf16.mxu0 %v5184_v0  ;;  %v5057_v1 = vld [vmem:[%s7171_s1] sm:$0xff]   ;;  %5049 = vmatprep.subr.bf16.mxu1 %v5184_v0  ;;  %v5058_v2 = vld [vmem:[%s7171_s1 + $0x8] sm:$0xff]   ;;  %v5059_v3 = vld [vmem:[%s7171_s1 + $0x10] sm:$0xff]   ;;  %vm3701_vm3 = vcmask 253952  }
   0x2   :  { %4565 = vmatprep.mubr.msk.bf16.mxu0 %vm5185_vm0, %v5184_v0  ;;  %4809 = vmatprep.mubr.msk.bf16.mxu1 %vm5185_vm0, %v5184_v0  ;;  %v5060_v4 = vld [vmem:[%s7172_s0] sm:$0xff]   ;;  %v5061_v5 = vld [vmem:[%s7172_s0 + $0x1e8] sm:$0xff]   ;;  %v5063_v7 = vld [vmem:[%s7172_s0 + $0x1f0] sm:$0xff]  }
   0x3   :  { %4560 = vmatpush3.bf16.msra.mxu0 %v5057_v1  ;;  %5052 = vmatpush3.bf16.msra.mxu1 %v5057_v1  ;;  %v5062_v6 = vld [vmem:[%s7172_s0 + $0x8] sm:$0xff]   ;;  %v5064_v8 = vld [vmem:[%s7172_s0 + $0x10] sm:$0xff]   ;;  %v5065_v9 = vld [vmem:[%s7172_s0 + $0x1f8] sm:$0xff]  }
   0x4   :  { %4561 = vmatprep.subr.bf16.mxu0 %v5184_v0  ;;  %5050 = vmatprep.subr.bf16.mxu1 %v5184_v0  ;;  %v5066_v10 = vld [vmem:[%s7172_s0 + $0x18] sm:$0xff]   ;;  %v5067_v11 = vld [vmem:[%s7172_s0 + $0x200] sm:$0xff]   ;;  %v5069_v13 = vld [vmem:[%s7172_s0 + $0x208] sm:$0xff]  }
   0x5   :  { %v5068_v12 = vld [vmem:[%s7172_s0 + $0x20] sm:$0xff]   ;;  %v5070_v14 = vld [vmem:[%s7172_s0 + $0x28] sm:$0xff]   ;;  %v5071_v15 = vld [vmem:[%s7172_s0 + $0x210] sm:$0xff]  }
   0x6   :  { %v5072_v16 = vld [vmem:[%s7172_s0 + $0x30] sm:$0xff]   ;;  %v5073_v17 = vld [vmem:[%s7172_s0 + $0x218] sm:$0xff]   ;;  %v5075_v19 = vld [vmem:[%s7172_s0 + $0x220] sm:$0xff]  }
   0x7   :  { %4562 = vmatpush3.bf16.msra.mxu0 %v5058_v2  ;;  %5053 = vmatpush3.bf16.msra.mxu1 %v5058_v2  ;;  %v5074_v18 = vld [vmem:[%s7172_s0 + $0x38] sm:$0xff]   ;;  %v5076_v20 = vld [vmem:[%s7172_s0 + $0x40] sm:$0xff]   ;;  %v5077_v21 = vld [vmem:[%s7172_s0 + $0x228] sm:$0xff]  }
   0x8   :  { %4563 = vmatprep.subr.bf16.mxu0 %v5184_v0  ;;  %5051 = vmatprep.subr.bf16.mxu1 %v5184_v0  ;;  %v5078_v22 = vld [vmem:[%s7172_s0 + $0x48] sm:$0xff]   ;;  %v5079_v23 = vld [vmem:[%s7172_s0 + $0x230] sm:$0xff]   ;;  %v5081_v25 = vld [vmem:[%s7172_s0 + $0x238] sm:$0xff]  }
   0x9   :  { %v5080_v24 = vld [vmem:[%s7172_s0 + $0x50] sm:$0xff]   ;;  %v5082_v26 = vld [vmem:[%s7172_s0 + $0x58] sm:$0xff]   ;;  %v5083_v27 = vld [vmem:[%s7172_s0 + $0x240] sm:$0xff]  }
   0xa   :  { %v5084_v28 = vld [vmem:[%s7172_s0 + $0x60] sm:$0xff]   ;;  %v5085_v29 = vld [vmem:[%s7172_s0 + $0x248] sm:$0xff]   ;;  %v5087_v31 = vld [vmem:[%s7172_s0 + $0x250] sm:$0xff]  }
   0xb   :  { %4564 = vmatpush3.bf16.msra.mxu0 %v5059_v3  ;;  %5054 = vmatpush3.bf16.msra.mxu1 %v5059_v3  ;;  %v5086_v30 = vld [vmem:[%s7172_s0 + $0x68] sm:$0xff]   ;;  %v5088_v32 = vld [vmem:[%s7172_s0 + $0x70] sm:$0xff]   ;;  %v5089_v33 = vld [vmem:[%s7172_s0 + $0x258] sm:$0xff]  }
   0xc   :  { %v5090_v34 = vld [vmem:[%s7172_s0 + $0x78] sm:$0xff]   ;;  %v5091_v35 = vld [vmem:[%s7172_s0 + $0x260] sm:$0xff]   ;;  %v5093_v37 = vld [vmem:[%s7172_s0 + $0x268] sm:$0xff]  }
   0xd   :  { %v5092_v36 = vld [vmem:[%s7172_s0 + $0x80] sm:$0xff]   ;;  %v5094_v38 = vld [vmem:[%s7172_s0 + $0x88] sm:$0xff]   ;;  %v5095_v39 = vld [vmem:[%s7172_s0 + $0x270] sm:$0xff]  }
   0xe   :  { %4566 = vmatmul.mubr.msk.bf16.vlgmr.msra.gmra.mrb[0].mxu0 %vm890_vm1, %v5060_v4  ;;  %4810 = vmatmul.mubr.msk.bf16.vlgmr.msra.gmra.mrb[0].mxu1 %vm890_vm1, %v5061_v5  ;;  %v5096_v40 = vld [vmem:[%s7172_s0 + $0x90] sm:$0xff]   ;;  %v5097_v41 = vld [vmem:[%s7172_s0 + $0x278] sm:$0xff]   ;;  %v5099_v43 = vld [vmem:[%s7172_s0 + $0x280] sm:$0xff]  }
   0xf   :  { %4569 = vmatprep.mubr.msk.bf16.mxu0 %vm5185_vm0, %v5184_v0  ;;  %4813 = vmatprep.mubr.msk.bf16.mxu1 %vm5185_vm0, %v5184_v0  ;;  %v5098_v42 = vld [vmem:[%s7172_s0 + $0x98] sm:$0xff]   ;;  %v5100_v44 = vld [vmem:[%s7172_s0 + $0xa0] sm:$0xff]   ;;  %v5101_v45 = vld [vmem:[%s7172_s0 + $0x288] sm:$0xff]  }
  0x10   :  { %v5102_v46 = vld [vmem:[%s7172_s0 + $0xa8] sm:$0xff]   ;;  %v5103_v47 = vld [vmem:[%s7172_s0 + $0x290] sm:$0xff]   ;;  %v5105_v49 = vld [vmem:[%s7172_s0 + $0x298] sm:$0xff]  }
  0x11   :  { %v5104_v48 = vld [vmem:[%s7172_s0 + $0xb0] sm:$0xff]   ;;  %v5106_v50 = vld [vmem:[%s7172_s0 + $0xb8] sm:$0xff]   ;;  %v5107_v51 = vld [vmem:[%s7172_s0 + $0x2a0] sm:$0xff]  }
  0x12   :  { %v5108_v52 = vld [vmem:[%s7172_s0 + $0xc0] sm:$0xff]   ;;  %v5109_v53 = vld [vmem:[%s7172_s0 + $0x2a8] sm:$0xff]   ;;  %v5111_v55 = vld [vmem:[%s7172_s0 + $0x2b0] sm:$0xff]  }
  0x13   :  { %v5110_v54 = vld [vmem:[%s7172_s0 + $0xc8] sm:$0xff]   ;;  %v5112_v56 = vld [vmem:[%s7172_s0 + $0xd0] sm:$0xff]   ;;  %v5113_v57 = vld [vmem:[%s7172_s0 + $0x2b8] sm:$0xff]  }
  0x14   :  { %v5548_v58 = vld [vmem:[%s7173_s2] ss:$0 sm:$0xff]  ;;  %v5114_v63 = vld [vmem:[%s7172_s0 + $0xd8] sm:$0xff]  }
  0x15   :  { %v5115_v3 = vld [vmem:[%s7172_s0 + $0x2c0] sm:$0xff]  }
  0x16   :  { %4570 = vmatmul.mubr.msk.bf16.gmra.mrb[4].mxu0 %vm890_vm1, %v5062_v6  ;;  %4814 = vmatmul.mubr.msk.bf16.gmra.mrb[4].mxu1 %vm890_vm1, %v5063_v7 }
  0x17   :  { %4573 = vmatprep.mubr.msk.bf16.mxu0 %vm5185_vm0, %v5184_v0  ;;  %4817 = vmatprep.mubr.msk.bf16.mxu1 %vm5185_vm0, %v5184_v0 }
  0x1e   :  { %4574 = vmatmul.mubr.msk.bf16.gmra.mrb[8].mxu0 %vm890_vm1, %v5064_v8  ;;  %4818 = vmatmul.mubr.msk.bf16.gmra.mrb[8].mxu1 %vm890_vm1, %v5065_v9 }
  0x1f   :  { %4577 = vmatprep.mubr.msk.bf16.mxu0 %vm5185_vm0, %v5184_v0  ;;  %4821 = vmatprep.mubr.msk.bf16.mxu1 %vm5185_vm0, %v5184_v0 }
  0x26   :  { %4578 = vmatmul.mubr.msk.bf16.gmra.mrb[12].mxu0 %vm890_vm1, %v5066_v10  ;;  %4822 = vmatmul.mubr.msk.bf16.gmra.mrb[12].mxu1 %vm890_vm1, %v5067_v11 }
  0x27   :  { %4581 = vmatprep.mubr.msk.bf16.mxu0 %vm5185_vm0, %v5184_v0  ;;  %4825 = vmatprep.mubr.msk.bf16.mxu1 %vm5185_vm0, %v5184_v0 }
  0x2e   :  { %4582 = vmatmul.mubr.msk.bf16.gmra.mrb[16].mxu0 %vm890_vm1, %v5068_v12  ;;  %4826 = vmatmul.mubr.msk.bf16.gmra.mrb[16].mxu1 %vm890_vm1, %v5069_v13 }
  0x2f   :  { %4585 = vmatprep.mubr.msk.bf16.mxu0 %vm5185_vm0, %v5184_v0  ;;  %4829 = vmatprep.mubr.msk.bf16.mxu1 %vm5185_vm0, %v5184_v0 }
  0x36   :  { %4586 = vmatmul.mubr.msk.bf16.gmra.mrb[20].mxu0 %vm890_vm1, %v5070_v14  ;;  %4830 = vmatmul.mubr.msk.bf16.gmra.mrb[20].mxu1 %vm890_vm1, %v5071_v15 }
  0x37   :  { %4589 = vmatprep.mubr.msk.bf16.mxu0 %vm5185_vm0, %v5184_v0  ;;  %4833 = vmatprep.mubr.msk.bf16.mxu1 %vm5185_vm0, %v5184_v0 }
  0x3e   :  { %4590 = vmatmul.mubr.msk.bf16.gmra.mrb[24].mxu0 %vm890_vm1, %v5072_v16  ;;  %4834 = vmatmul.mubr.msk.bf16.gmra.mrb[24].mxu1 %vm890_vm1, %v5073_v17 }
  0x3f   :  { %4593 = vmatprep.mubr.msk.bf16.mxu0 %vm5185_vm0, %v5184_v0  ;;  %4837 = vmatprep.mubr.msk.bf16.mxu1 %vm5185_vm0, %v5184_v0 }
  0x46   :  { %4594 = vmatmul.mubr.msk.bf16.gmra.mrb[28].mxu0 %vm890_vm1, %v5074_v18  ;;  %4838 = vmatmul.mubr.msk.bf16.gmra.mrb[28].mxu1 %vm890_vm1, %v5075_v19 }
  0x47   :  { %4597 = vmatprep.mubr.msk.bf16.mxu0 %vm5185_vm0, %v5184_v0  ;;  %4841 = vmatprep.mubr.msk.bf16.mxu1 %vm5185_vm0, %v5184_v0 }
  0x4e   :  { %4598 = vmatmul.mubr.msk.bf16.gmra.mrb[32].mxu0 %vm890_vm1, %v5076_v20  ;;  %4842 = vmatmul.mubr.msk.bf16.gmra.mrb[32].mxu1 %vm890_vm1, %v5077_v21 }
  0x4f   :  { %4601 = vmatprep.mubr.msk.bf16.mxu0 %vm5185_vm0, %v5184_v0  ;;  %4845 = vmatprep.mubr.msk.bf16.mxu1 %vm5185_vm0, %v5184_v0 }
  0x56   :  { %4602 = vmatmul.mubr.msk.bf16.gmra.mrb[36].mxu0 %vm890_vm1, %v5078_v22  ;;  %4846 = vmatmul.mubr.msk.bf16.gmra.mrb[36].mxu1 %vm890_vm1, %v5079_v23  ;;  %v5116_v22 = vld [vmem:[%s7172_s0 + $0xe0] sm:$0xff]  }
  0x57   :  { %4605 = vmatprep.mubr.msk.bf16.mxu0 %vm5185_vm0, %v5184_v0  ;;  %4849 = vmatprep.mubr.msk.bf16.mxu1 %vm5185_vm0, %v5184_v0 }
  0x5e   :  { %4606 = vmatmul.mubr.msk.bf16.gmra.mrb[40].mxu0 %vm890_vm1, %v5080_v24  ;;  %4850 = vmatmul.mubr.msk.bf16.gmra.mrb[40].mxu1 %vm890_vm1, %v5081_v25  ;;  %v5117_v25 = vld [vmem:[%s7172_s0 + $0x2c8] sm:$0xff]  }
  0x5f   :  { %4609 = vmatprep.mubr.msk.bf16.mxu0 %vm5185_vm0, %v5184_v0  ;;  %4853 = vmatprep.mubr.msk.bf16.mxu1 %vm5185_vm0, %v5184_v0 }
  0x66   :  { %4610 = vmatmul.mubr.msk.bf16.gmra.mrb[44].mxu0 %vm890_vm1, %v5082_v26  ;;  %4854 = vmatmul.mubr.msk.bf16.gmra.mrb[44].mxu1 %vm890_vm1, %v5083_v27 }
  0x67   :  { %4613 = vmatprep.mubr.msk.bf16.mxu0 %vm5185_vm0, %v5184_v0  ;;  %4857 = vmatprep.mubr.msk.bf16.mxu1 %vm5185_vm0, %v5184_v0 }
  0x6e   :  { %4614 = vmatmul.mubr.msk.bf16.gmra.mrb[48].mxu0 %vm890_vm1, %v5084_v28  ;;  %4858 = vmatmul.mubr.msk.bf16.gmra.mrb[48].mxu1 %vm890_vm1, %v5085_v29 }
  0x6f   :  { %4617 = vmatprep.mubr.msk.bf16.mxu0 %vm5185_vm0, %v5184_v0  ;;  %4861 = vmatprep.mubr.msk.bf16.mxu1 %vm5185_vm0, %v5184_v0 }
  0x76   :  { %4618 = vmatmul.mubr.msk.bf16.gmra.mrb[52].mxu0 %vm890_vm1, %v5086_v30  ;;  %4862 = vmatmul.mubr.msk.bf16.gmra.mrb[52].mxu1 %vm890_vm1, %v5087_v31 }
  0x77   :  { %4621 = vmatprep.mubr.msk.bf16.mxu0 %vm5185_vm0, %v5184_v0  ;;  %4865 = vmatprep.mubr.msk.bf16.mxu1 %vm5185_vm0, %v5184_v0 }
  0x7e   :  { %4622 = vmatmul.mubr.msk.bf16.gmra.mrb[56].mxu0 %vm890_vm1, %v5088_v32  ;;  %4866 = vmatmul.mubr.msk.bf16.gmra.mrb[56].mxu1 %vm890_vm1, %v5089_v33 }
  0x7f   :  { %4625 = vmatprep.mubr.msk.bf16.mxu0 %vm5185_vm0, %v5184_v0  ;;  %4869 = vmatprep.mubr.msk.bf16.mxu1 %vm5185_vm0, %v5184_v0 }
  0x86   :  { %4626 = vmatmul.mubr.msk.bf16.gmra.mrb[60].mxu0 %vm890_vm1, %v5090_v34  ;;  %4870 = vmatmul.mubr.msk.bf16.gmra.mrb[60].mxu1 %vm890_vm1, %v5091_v35 }
  0x87   :  { %4629 = vmatprep.mubr.msk.bf16.mxu0 %vm5185_vm0, %v5184_v0  ;;  %4873 = vmatprep.mubr.msk.bf16.mxu1 %vm5185_vm0, %v5184_v0 }
  0x8e   :  { %4630 = vmatmul.mubr.msk.bf16.gmra.mrb[64].mxu0 %vm890_vm1, %v5092_v36  ;;  %4874 = vmatmul.mubr.msk.bf16.gmra.mrb[64].mxu1 %vm890_vm1, %v5093_v37 }
  0x8f   :  { %4633 = vmatprep.mubr.msk.bf16.mxu0 %vm5185_vm0, %v5184_v0  ;;  %4877 = vmatprep.mubr.msk.bf16.mxu1 %vm5185_vm0, %v5184_v0 }
  0x96   :  { %4634 = vmatmul.mubr.msk.bf16.gmra.mrb[68].mxu0 %vm890_vm1, %v5094_v38  ;;  %4878 = vmatmul.mubr.msk.bf16.gmra.mrb[68].mxu1 %vm890_vm1, %v5095_v39 }
  0x97   :  { %4637 = vmatprep.mubr.msk.bf16.mxu0 %vm5185_vm0, %v5184_v0  ;;  %4881 = vmatprep.mubr.msk.bf16.mxu1 %vm5185_vm0, %v5184_v0 }
  0x9e   :  { %4638 = vmatmul.mubr.msk.bf16.gmra.mrb[72].mxu0 %vm890_vm1, %v5096_v40  ;;  %4882 = vmatmul.mubr.msk.bf16.gmra.mrb[72].mxu1 %vm890_vm1, %v5097_v41 }
  0x9f   :  { %4641 = vmatprep.mubr.msk.bf16.mxu0 %vm5185_vm0, %v5184_v0  ;;  %4885 = vmatprep.mubr.msk.bf16.mxu1 %vm5185_vm0, %v5184_v0 }
  0xa6   :  { %4642 = vmatmul.mubr.msk.bf16.gmra.mrb[76].mxu0 %vm890_vm1, %v5098_v42  ;;  %4886 = vmatmul.mubr.msk.bf16.gmra.mrb[76].mxu1 %vm890_vm1, %v5099_v43 }
  0xa7   :  { %4645 = vmatprep.mubr.msk.bf16.mxu0 %vm5185_vm0, %v5184_v0  ;;  %4889 = vmatprep.mubr.msk.bf16.mxu1 %vm5185_vm0, %v5184_v0 }
  0xae   :  { %4646 = vmatmul.mubr.msk.bf16.gmra.mrb[80].mxu0 %vm890_vm1, %v5100_v44  ;;  %4890 = vmatmul.mubr.msk.bf16.gmra.mrb[80].mxu1 %vm890_vm1, %v5101_v45  ;;  %v5118_v44 = vld [vmem:[%s7172_s0 + $0xe8] sm:$0xff]  }
  0xaf   :  { %4649 = vmatprep.mubr.msk.bf16.mxu0 %vm5185_vm0, %v5184_v0  ;;  %4893 = vmatprep.mubr.msk.bf16.mxu1 %vm5185_vm0, %v5184_v0 }
  0xb6   :  { %4650 = vmatmul.mubr.msk.bf16.gmra.mrb[84].mxu0 %vm890_vm1, %v5102_v46  ;;  %4894 = vmatmul.mubr.msk.bf16.gmra.mrb[84].mxu1 %vm890_vm1, %v5103_v47  ;;  %v5119_v47 = vld [vmem:[%s7172_s0 + $0x2d0] sm:$0xff]  }
  0xb7   :  { %4653 = vmatprep.mubr.msk.bf16.mxu0 %vm5185_vm0, %v5184_v0  ;;  %4897 = vmatprep.mubr.msk.bf16.mxu1 %vm5185_vm0, %v5184_v0 }
  0xbe   :  { %4654 = vmatmul.mubr.msk.bf16.gmra.mrb[88].mxu0 %vm890_vm1, %v5104_v48  ;;  %4898 = vmatmul.mubr.msk.bf16.gmra.mrb[88].mxu1 %vm890_vm1, %v5105_v49 }
  0xbf   :  { %4657 = vmatprep.mubr.msk.bf16.mxu0 %vm5185_vm0, %v5184_v0  ;;  %4901 = vmatprep.mubr.msk.bf16.mxu1 %vm5185_vm0, %v5184_v0 }
  0xc6   :  { %4658 = vmatmul.mubr.msk.bf16.gmra.mrb[92].mxu0 %vm890_vm1, %v5106_v50  ;;  %4902 = vmatmul.mubr.msk.bf16.gmra.mrb[92].mxu1 %vm890_vm1, %v5107_v51 }
  0xc7   :  { %4661 = vmatprep.mubr.msk.bf16.mxu0 %vm5185_vm0, %v5184_v0  ;;  %4905 = vmatprep.mubr.msk.bf16.mxu1 %vm5185_vm0, %v5184_v0 }
  0xce   :  { %4662 = vmatmul.mubr.msk.bf16.gmra.mrb[96].mxu0 %vm890_vm1, %v5108_v52  ;;  %4906 = vmatmul.mubr.msk.bf16.gmra.mrb[96].mxu1 %vm890_vm1, %v5109_v53 }
  0xcf   :  { %4665 = vmatprep.mubr.msk.bf16.mxu0 %vm5185_vm0, %v5184_v0  ;;  %4909 = vmatprep.mubr.msk.bf16.mxu1 %vm5185_vm0, %v5184_v0 }
  0xd6   :  { %4666 = vmatmul.mubr.msk.bf16.gmra.mrb[100].mxu0 %vm890_vm1, %v5110_v54  ;;  %4910 = vmatmul.mubr.msk.bf16.gmra.mrb[100].mxu1 %vm890_vm1, %v5111_v55 }
  0xd7   :  { %4669 = vmatprep.mubr.msk.bf16.mxu0 %vm5185_vm0, %v5184_v0  ;;  %4913 = vmatprep.mubr.msk.bf16.mxu1 %vm5185_vm0, %v5184_v0 }
  0xde   :  { %4670 = vmatmul.mubr.msk.bf16.gmra.mrb[104].mxu0 %vm890_vm1, %v5112_v56  ;;  %4914 = vmatmul.mubr.msk.bf16.gmra.mrb[104].mxu1 %vm890_vm1, %v5113_v57 }
  0xdf   :  { %4673 = vmatprep.mubr.msk.bf16.mxu0 %vm5185_vm0, %v5184_v0  ;;  %4917 = vmatprep.mubr.msk.bf16.mxu1 %vm5185_vm0, %v5184_v0 }
  0xe1   :  { %v1288_v59 = vpop.f32.mrb[0].mxu0  ;;  %v1776_v60 = vpop.f32.mrb[0].mxu1 }
  0xe2   :  { %v1289_v61 = vadd.f32 %v5548_v58, %v1288_v59  ;;  %v4567_v62 = vpop.f32.mrb[1].mxu0  ;;  %v1777_v1 = vadd.f32 %v5548_v58, %v1776_v60  ;;  %v4811_v2 = vpop.f32.mrb[1].mxu1 }
  0xe3   :  { %v1291_v4 = vpop.f32.mrb[2].mxu0  ;;  %v1779_v5 = vpop.f32.mrb[2].mxu1 }
  0xe4   :  { %v2254_v6 = vmax.f32 %v1289_v61, 0.0  ;;  %v1292_v7 = vadd.f32 %v5548_v58, %v1291_v4  ;;  %v4568_v8 = vpop.f32.mrb[3].mxu0  ;;  %v2376_v9 = vmax.f32 %v1777_v1, 0.0  ;;  %v1780_v10 = vadd.f32 %v5548_v58, %v1779_v5  ;;  %v4812_v11 = vpop.f32.mrb[3].mxu1  ;;  %v5120_v4 = vld [vmem:[%s7172_s0 + $0xf0] sm:$0xff]  }
  0xe6   :  { %v4194_v12 = vpack.c.bf16 %v2254_v6, %v2254_v6  ;;  %v2255_v13 = vmax.f32 %v1292_v7, 0.0  ;;  %4674 = vmatmul.mubr.msk.bf16.gmra.mrb[108].mxu0 %vm890_vm1, %v5114_v63  ;;  %v4316_v14 = vpack.c.bf16 %v2376_v9, %v2376_v9  ;;  %v2377_v15 = vmax.f32 %v1780_v10, 0.0  ;;  %4918 = vmatmul.mubr.msk.bf16.gmra.mrb[108].mxu1 %vm890_vm1, %v5115_v3  ;;  %v5121_v7 = vld [vmem:[%s7172_s0 + $0x2d8] sm:$0xff]  }
  0xe7   :  { %4677 = vmatprep.mubr.msk.bf16.mxu0 %vm5185_vm0, %v5184_v0  ;;  %4921 = vmatprep.mubr.msk.bf16.mxu1 %vm5185_vm0, %v5184_v0 }
  0xe8   :  { %3461 = vst.msk [vmem:[%s7174_s3] sm:$0xf] %vm3460_vm2, %v4194_v12  ;;  %v4195_v16 = vpack.c.bf16 %v2255_v13, %v2255_v13  ;;  %3583 = vst.msk [vmem:[%s7174_s3 + $0x1e8] sm:$0xf] %vm3460_vm2, %v4316_v14  ;;  %v4317_v17 = vpack.c.bf16 %v2377_v15, %v2377_v15 }
  0xe9   :  { %v1296_v18 = vpop.f32.mrb[4].mxu0  ;;  %v1784_v19 = vpop.f32.mrb[4].mxu1 }
  0xea   :  { %3462 = vst.msk [vmem:[%s7174_s3 + $0x4] sm:$0xf] %vm3460_vm2, %v4195_v16  ;;  %v1297_v20 = vadd.f32 %v5548_v58, %v1296_v18  ;;  %v4571_v21 = vpop.f32.mrb[5].mxu0  ;;  %3584 = vst.msk [vmem:[%s7174_s3 + $0x1ec] sm:$0xf] %vm3460_vm2, %v4317_v17  ;;  %v1785_v23 = vadd.f32 %v5548_v58, %v1784_v19  ;;  %v4815_v24 = vpop.f32.mrb[5].mxu1 }
  0xeb   :  { %v1299_v26 = vpop.f32.mrb[6].mxu0  ;;  %v1787_v27 = vpop.f32.mrb[6].mxu1 }
  0xec   :  { %v2256_v28 = vmax.f32 %v1297_v20, 0.0  ;;  %v1300_v29 = vadd.f32 %v5548_v58, %v1299_v26  ;;  %v4572_v30 = vpop.f32.mrb[7].mxu0  ;;  %v2378_v31 = vmax.f32 %v1785_v23, 0.0  ;;  %v1788_v32 = vadd.f32 %v5548_v58, %v1787_v27  ;;  %v4816_v33 = vpop.f32.mrb[7].mxu1  ;;  %v5122_v26 = vld [vmem:[%s7172_s0 + $0xf8] sm:$0xff]  }
  0xee   :  { %v4196_v34 = vpack.c.bf16 %v2256_v28, %v2256_v28  ;;  %v2257_v35 = vmax.f32 %v1300_v29, 0.0  ;;  %4678 = vmatmul.mubr.msk.bf16.gmra.mrb[112].mxu0 %vm890_vm1, %v5116_v22  ;;  %v4318_v36 = vpack.c.bf16 %v2378_v31, %v2378_v31  ;;  %v2379_v37 = vmax.f32 %v1788_v32, 0.0  ;;  %4922 = vmatmul.mubr.msk.bf16.gmra.mrb[112].mxu1 %vm890_vm1, %v5117_v25  ;;  %v5123_v29 = vld [vmem:[%s7172_s0 + $0x2e0] sm:$0xff]  }
  0xef   :  { %4681 = vmatprep.mubr.msk.bf16.mxu0 %vm5185_vm0, %v5184_v0  ;;  %4925 = vmatprep.mubr.msk.bf16.mxu1 %vm5185_vm0, %v5184_v0 }
  0xf0   :  { %3463 = vst.msk [vmem:[%s7174_s3 + $0x8] sm:$0xf] %vm3460_vm2, %v4196_v34  ;;  %v4197_v38 = vpack.c.bf16 %v2257_v35, %v2257_v35  ;;  %3585 = vst.msk [vmem:[%s7174_s3 + $0x1f0] sm:$0xf] %vm3460_vm2, %v4318_v36  ;;  %v4319_v39 = vpack.c.bf16 %v2379_v37, %v2379_v37 }
  0xf1   :  { %v1304_v40 = vpop.f32.mrb[8].mxu0  ;;  %v1792_v41 = vpop.f32.mrb[8].mxu1 }
  0xf2   :  { %3464 = vst.msk [vmem:[%s7174_s3 + $0xc] sm:$0xf] %vm3460_vm2, %v4197_v38  ;;  %v1305_v42 = vadd.f32 %v5548_v58, %v1304_v40  ;;  %v4575_v43 = vpop.f32.mrb[9].mxu0  ;;  %3586 = vst.msk [vmem:[%s7174_s3 + $0x1f4] sm:$0xf] %vm3460_vm2, %v4319_v39  ;;  %v1793_v45 = vadd.f32 %v5548_v58, %v1792_v41  ;;  %v4819_v46 = vpop.f32.mrb[9].mxu1 }
  0xf3   :  { %v1307_v48 = vpop.f32.mrb[10].mxu0  ;;  %v1795_v49 = vpop.f32.mrb[10].mxu1 }
  0xf4   :  { %v2258_v50 = vmax.f32 %v1305_v42, 0.0  ;;  %v1308_v51 = vadd.f32 %v5548_v58, %v1307_v48  ;;  %v4576_v52 = vpop.f32.mrb[11].mxu0  ;;  %v2380_v53 = vmax.f32 %v1793_v45, 0.0  ;;  %v1796_v54 = vadd.f32 %v5548_v58, %v1795_v49  ;;  %v4820_v55 = vpop.f32.mrb[11].mxu1  ;;  %v5124_v48 = vld [vmem:[%s7172_s0 + $0x100] sm:$0xff]  }
  0xf6   :  { %v4198_v56 = vpack.c.bf16 %v2258_v50, %v2258_v50  ;;  %v2259_v57 = vmax.f32 %v1308_v51, 0.0  ;;  %4682 = vmatmul.mubr.msk.bf16.gmra.mrb[116].mxu0 %vm890_vm1, %v5118_v44  ;;  %v4320_v59 = vpack.c.bf16 %v2380_v53, %v2380_v53  ;;  %v2381_v60 = vmax.f32 %v1796_v54, 0.0  ;;  %4926 = vmatmul.mubr.msk.bf16.gmra.mrb[116].mxu1 %vm890_vm1, %v5119_v47  ;;  %v5125_v51 = vld [vmem:[%s7172_s0 + $0x2e8] sm:$0xff]  }
  0xf7   :  { %4685 = vmatprep.mubr.msk.bf16.mxu0 %vm5185_vm0, %v5184_v0  ;;  %4929 = vmatprep.mubr.msk.bf16.mxu1 %vm5185_vm0, %v5184_v0 }
  0xf8   :  { %3465 = vst.msk [vmem:[%s7174_s3 + $0x10] sm:$0xf] %vm3460_vm2, %v4198_v56  ;;  %v4199_v61 = vpack.c.bf16 %v2259_v57, %v2259_v57  ;;  %3587 = vst.msk [vmem:[%s7174_s3 + $0x1f8] sm:$0xf] %vm3460_vm2, %v4320_v59  ;;  %v4321_v62 = vpack.c.bf16 %v2381_v60, %v2381_v60 }
  0xf9   :  { %v1312_v63 = vpop.f32.mrb[12].mxu0  ;;  %v1800_v1 = vpop.f32.mrb[12].mxu1 }
  0xfa   :  { %3466 = vst.msk [vmem:[%s7174_s3 + $0x14] sm:$0xf] %vm3460_vm2, %v4199_v61  ;;  %v1313_v2 = vadd.f32 %v5548_v58, %v1312_v63  ;;  %v4579_v3 = vpop.f32.mrb[13].mxu0  ;;  %3588 = vst.msk [vmem:[%s7174_s3 + $0x1fc] sm:$0xf] %vm3460_vm2, %v4321_v62  ;;  %v1801_v5 = vadd.f32 %v5548_v58, %v1800_v1  ;;  %v4823_v6 = vpop.f32.mrb[13].mxu1 }
  0xfb   :  { %v1315_v8 = vpop.f32.mrb[14].mxu0  ;;  %v1803_v9 = vpop.f32.mrb[14].mxu1 }
  0xfc   :  { %v2260_v10 = vmax.f32 %v1313_v2, 0.0  ;;  %v1316_v11 = vadd.f32 %v5548_v58, %v1315_v8  ;;  %v4580_v12 = vpop.f32.mrb[15].mxu0  ;;  %v2382_v13 = vmax.f32 %v1801_v5, 0.0  ;;  %v1804_v14 = vadd.f32 %v5548_v58, %v1803_v9  ;;  %v4824_v15 = vpop.f32.mrb[15].mxu1  ;;  %v5126_v8 = vld [vmem:[%s7172_s0 + $0x108] sm:$0xff]  }
  0xfe   :  { %v4200_v16 = vpack.c.bf16 %v2260_v10, %v2260_v10  ;;  %v2261_v17 = vmax.f32 %v1316_v11, 0.0  ;;  %4686 = vmatmul.mubr.msk.bf16.gmra.mrb[120].mxu0 %vm890_vm1, %v5120_v4  ;;  %v4322_v18 = vpack.c.bf16 %v2382_v13, %v2382_v13  ;;  %v2383_v19 = vmax.f32 %v1804_v14, 0.0  ;;  %4930 = vmatmul.mubr.msk.bf16.gmra.mrb[120].mxu1 %vm890_vm1, %v5121_v7  ;;  %v5127_v11 = vld [vmem:[%s7172_s0 + $0x2f0] sm:$0xff]  }
  0xff   :  { %4689 = vmatprep.mubr.msk.bf16.mxu0 %vm5185_vm0, %v5184_v0  ;;  %4933 = vmatprep.mubr.msk.bf16.mxu1 %vm5185_vm0, %v5184_v0 }
 0x100   :  { %3467 = vst.msk [vmem:[%s7174_s3 + $0x18] sm:$0xf] %vm3460_vm2, %v4200_v16  ;;  %v4201_v20 = vpack.c.bf16 %v2261_v17, %v2261_v17  ;;  %3589 = vst.msk [vmem:[%s7174_s3 + $0x200] sm:$0xf] %vm3460_vm2, %v4322_v18  ;;  %v4323_v21 = vpack.c.bf16 %v2383_v19, %v2383_v19 }
 0x101   :  { %v1320_v22 = vpop.f32.mrb[16].mxu0  ;;  %v1808_v23 = vpop.f32.mrb[16].mxu1 }
 0x102   :  { %3468 = vst.msk [vmem:[%s7174_s3 + $0x1c] sm:$0xf] %vm3460_vm2, %v4201_v20  ;;  %v1321_v24 = vadd.f32 %v5548_v58, %v1320_v22  ;;  %v4583_v25 = vpop.f32.mrb[17].mxu0  ;;  %3590 = vst.msk [vmem:[%s7174_s3 + $0x204] sm:$0xf] %vm3460_vm2, %v4323_v21  ;;  %v1809_v27 = vadd.f32 %v5548_v58, %v1808_v23  ;;  %v4827_v28 = vpop.f32.mrb[17].mxu1 }
 0x103   :  { %v1323_v30 = vpop.f32.mrb[18].mxu0  ;;  %v1811_v31 = vpop.f32.mrb[18].mxu1 }
 0x104   :  { %v2262_v32 = vmax.f32 %v1321_v24, 0.0  ;;  %v1324_v33 = vadd.f32 %v5548_v58, %v1323_v30  ;;  %v4584_v34 = vpop.f32.mrb[19].mxu0  ;;  %v2384_v35 = vmax.f32 %v1809_v27, 0.0  ;;  %v1812_v36 = vadd.f32 %v5548_v58, %v1811_v31  ;;  %v4828_v37 = vpop.f32.mrb[19].mxu1  ;;  %v5128_v30 = vld [vmem:[%s7172_s0 + $0x110] sm:$0xff]  }
 0x106   :  { %v4202_v38 = vpack.c.bf16 %v2262_v32, %v2262_v32  ;;  %v2263_v39 = vmax.f32 %v1324_v33, 0.0  ;;  %4690 = vmatmul.mubr.msk.bf16.gmra.mrb[124].mxu0 %vm890_vm1, %v5122_v26  ;;  %v4324_v40 = vpack.c.bf16 %v2384_v35, %v2384_v35  ;;  %v2385_v41 = vmax.f32 %v1812_v36, 0.0  ;;  %4934 = vmatmul.mubr.msk.bf16.gmra.mrb[124].mxu1 %vm890_vm1, %v5123_v29  ;;  %v5129_v33 = vld [vmem:[%s7172_s0 + $0x2f8] sm:$0xff]  }
 0x107   :  { %4693 = vmatprep.mubr.msk.bf16.mxu0 %vm5185_vm0, %v5184_v0  ;;  %4937 = vmatprep.mubr.msk.bf16.mxu1 %vm5185_vm0, %v5184_v0 }
 0x108   :  { %3469 = vst.msk [vmem:[%s7174_s3 + $0x20] sm:$0xf] %vm3460_vm2, %v4202_v38  ;;  %v4203_v42 = vpack.c.bf16 %v2263_v39, %v2263_v39  ;;  %3591 = vst.msk [vmem:[%s7174_s3 + $0x208] sm:$0xf] %vm3460_vm2, %v4324_v40  ;;  %v4325_v43 = vpack.c.bf16 %v2385_v41, %v2385_v41 }
 0x109   :  { %v1328_v44 = vpop.f32.mrb[20].mxu0  ;;  %v1816_v45 = vpop.f32.mrb[20].mxu1 }
 0x10a   :  { %3470 = vst.msk [vmem:[%s7174_s3 + $0x24] sm:$0xf] %vm3460_vm2, %v4203_v42  ;;  %v1329_v46 = vadd.f32 %v5548_v58, %v1328_v44  ;;  %v4587_v47 = vpop.f32.mrb[21].mxu0  ;;  %3592 = vst.msk [vmem:[%s7174_s3 + $0x20c] sm:$0xf] %vm3460_vm2, %v4325_v43  ;;  %v1817_v49 = vadd.f32 %v5548_v58, %v1816_v45  ;;  %v4831_v50 = vpop.f32.mrb[21].mxu1 }
 0x10b   :  { %v1331_v52 = vpop.f32.mrb[22].mxu0  ;;  %v1819_v53 = vpop.f32.mrb[22].mxu1 }
 0x10c   :  { %v2264_v54 = vmax.f32 %v1329_v46, 0.0  ;;  %v1332_v55 = vadd.f32 %v5548_v58, %v1331_v52  ;;  %v4588_v56 = vpop.f32.mrb[23].mxu0  ;;  %v2386_v57 = vmax.f32 %v1817_v49, 0.0  ;;  %v1820_v59 = vadd.f32 %v5548_v58, %v1819_v53  ;;  %v4832_v60 = vpop.f32.mrb[23].mxu1  ;;  %v5130_v52 = vld [vmem:[%s7172_s0 + $0x118] sm:$0xff]  }
 0x10e   :  { %v4204_v61 = vpack.c.bf16 %v2264_v54, %v2264_v54  ;;  %v2265_v62 = vmax.f32 %v1332_v55, 0.0  ;;  %4694 = vmatmul.mubr.msk.bf16.gmra.mrb[128].mxu0 %vm890_vm1, %v5124_v48  ;;  %v4326_v63 = vpack.c.bf16 %v2386_v57, %v2386_v57  ;;  %v2387_v1 = vmax.f32 %v1820_v59, 0.0  ;;  %4938 = vmatmul.mubr.msk.bf16.gmra.mrb[128].mxu1 %vm890_vm1, %v5125_v51  ;;  %v5131_v55 = vld [vmem:[%s7172_s0 + $0x300] sm:$0xff]  }
 0x10f   :  { %4697 = vmatprep.mubr.msk.bf16.mxu0 %vm5185_vm0, %v5184_v0  ;;  %4941 = vmatprep.mubr.msk.bf16.mxu1 %vm5185_vm0, %v5184_v0 }
 0x110   :  { %3471 = vst.msk [vmem:[%s7174_s3 + $0x28] sm:$0xf] %vm3460_vm2, %v4204_v61  ;;  %v4205_v2 = vpack.c.bf16 %v2265_v62, %v2265_v62  ;;  %3593 = vst.msk [vmem:[%s7174_s3 + $0x210] sm:$0xf] %vm3460_vm2, %v4326_v63  ;;  %v4327_v3 = vpack.c.bf16 %v2387_v1, %v2387_v1 }
 0x111   :  { %v1336_v4 = vpop.f32.mrb[24].mxu0  ;;  %v1824_v5 = vpop.f32.mrb[24].mxu1 }
 0x112   :  { %3472 = vst.msk [vmem:[%s7174_s3 + $0x2c] sm:$0xf] %vm3460_vm2, %v4205_v2  ;;  %v1337_v6 = vadd.f32 %v5548_v58, %v1336_v4  ;;  %v4591_v7 = vpop.f32.mrb[25].mxu0  ;;  %3594 = vst.msk [vmem:[%s7174_s3 + $0x214] sm:$0xf] %vm3460_vm2, %v4327_v3  ;;  %v1825_v9 = vadd.f32 %v5548_v58, %v1824_v5  ;;  %v4835_v10 = vpop.f32.mrb[25].mxu1 }
 0x113   :  { %v1339_v12 = vpop.f32.mrb[26].mxu0  ;;  %v1827_v13 = vpop.f32.mrb[26].mxu1 }
 0x114   :  { %v2266_v14 = vmax.f32 %v1337_v6, 0.0  ;;  %v1340_v15 = vadd.f32 %v5548_v58, %v1339_v12  ;;  %v4592_v16 = vpop.f32.mrb[27].mxu0  ;;  %v2388_v17 = vmax.f32 %v1825_v9, 0.0  ;;  %v1828_v18 = vadd.f32 %v5548_v58, %v1827_v13  ;;  %v4836_v19 = vpop.f32.mrb[27].mxu1  ;;  %v5132_v12 = vld [vmem:[%s7172_s0 + $0x120] sm:$0xff]  }
 0x116   :  { %v4206_v20 = vpack.c.bf16 %v2266_v14, %v2266_v14  ;;  %v2267_v21 = vmax.f32 %v1340_v15, 0.0  ;;  %4698 = vmatmul.mubr.msk.bf16.gmra.mrb[132].mxu0 %vm890_vm1, %v5126_v8  ;;  %v4328_v22 = vpack.c.bf16 %v2388_v17, %v2388_v17  ;;  %v2389_v23 = vmax.f32 %v1828_v18, 0.0  ;;  %4942 = vmatmul.mubr.msk.bf16.gmra.mrb[132].mxu1 %vm890_vm1, %v5127_v11  ;;  %v5133_v15 = vld [vmem:[%s7172_s0 + $0x308] sm:$0xff]  }
 0x117   :  { %4701 = vmatprep.mubr.msk.bf16.mxu0 %vm5185_vm0, %v5184_v0  ;;  %4945 = vmatprep.mubr.msk.bf16.mxu1 %vm5185_vm0, %v5184_v0 }
 0x118   :  { %3473 = vst.msk [vmem:[%s7174_s3 + $0x30] sm:$0xf] %vm3460_vm2, %v4206_v20  ;;  %v4207_v24 = vpack.c.bf16 %v2267_v21, %v2267_v21  ;;  %3595 = vst.msk [vmem:[%s7174_s3 + $0x218] sm:$0xf] %vm3460_vm2, %v4328_v22  ;;  %v4329_v25 = vpack.c.bf16 %v2389_v23, %v2389_v23 }
 0x119   :  { %v1344_v26 = vpop.f32.mrb[28].mxu0  ;;  %v1832_v27 = vpop.f32.mrb[28].mxu1 }
 0x11a   :  { %3474 = vst.msk [vmem:[%s7174_s3 + $0x34] sm:$0xf] %vm3460_vm2, %v4207_v24  ;;  %v1345_v28 = vadd.f32 %v5548_v58, %v1344_v26  ;;  %v4595_v29 = vpop.f32.mrb[29].mxu0  ;;  %3596 = vst.msk [vmem:[%s7174_s3 + $0x21c] sm:$0xf] %vm3460_vm2, %v4329_v25  ;;  %v1833_v31 = vadd.f32 %v5548_v58, %v1832_v27  ;;  %v4839_v32 = vpop.f32.mrb[29].mxu1 }
 0x11b   :  { %v1347_v34 = vpop.f32.mrb[30].mxu0  ;;  %v1835_v35 = vpop.f32.mrb[30].mxu1 }
 0x11c   :  { %v2268_v36 = vmax.f32 %v1345_v28, 0.0  ;;  %v1348_v37 = vadd.f32 %v5548_v58, %v1347_v34  ;;  %v4596_v38 = vpop.f32.mrb[31].mxu0  ;;  %v2390_v39 = vmax.f32 %v1833_v31, 0.0  ;;  %v1836_v40 = vadd.f32 %v5548_v58, %v1835_v35  ;;  %v4840_v41 = vpop.f32.mrb[31].mxu1  ;;  %v5134_v34 = vld [vmem:[%s7172_s0 + $0x128] sm:$0xff]  }
 0x11e   :  { %v4208_v42 = vpack.c.bf16 %v2268_v36, %v2268_v36  ;;  %v2269_v43 = vmax.f32 %v1348_v37, 0.0  ;;  %4702 = vmatmul.mubr.msk.bf16.gmra.mrb[136].mxu0 %vm890_vm1, %v5128_v30  ;;  %v4330_v44 = vpack.c.bf16 %v2390_v39, %v2390_v39  ;;  %v2391_v45 = vmax.f32 %v1836_v40, 0.0  ;;  %4946 = vmatmul.mubr.msk.bf16.gmra.mrb[136].mxu1 %vm890_vm1, %v5129_v33  ;;  %v5135_v37 = vld [vmem:[%s7172_s0 + $0x310] sm:$0xff]  }
 0x11f   :  { %4705 = vmatprep.mubr.msk.bf16.mxu0 %vm5185_vm0, %v5184_v0  ;;  %4949 = vmatprep.mubr.msk.bf16.mxu1 %vm5185_vm0, %v5184_v0 }
 0x120   :  { %3475 = vst.msk [vmem:[%s7174_s3 + $0x38] sm:$0xf] %vm3460_vm2, %v4208_v42  ;;  %v4209_v46 = vpack.c.bf16 %v2269_v43, %v2269_v43  ;;  %3597 = vst.msk [vmem:[%s7174_s3 + $0x220] sm:$0xf] %vm3460_vm2, %v4330_v44  ;;  %v4331_v47 = vpack.c.bf16 %v2391_v45, %v2391_v45 }
 0x121   :  { %v1352_v48 = vpop.f32.mrb[32].mxu0  ;;  %v1840_v49 = vpop.f32.mrb[32].mxu1 }
 0x122   :  { %3476 = vst.msk [vmem:[%s7174_s3 + $0x3c] sm:$0xf] %vm3460_vm2, %v4209_v46  ;;  %v1353_v50 = vadd.f32 %v5548_v58, %v1352_v48  ;;  %v4599_v51 = vpop.f32.mrb[33].mxu0  ;;  %3598 = vst.msk [vmem:[%s7174_s3 + $0x224] sm:$0xf] %vm3460_vm2, %v4331_v47  ;;  %v1841_v53 = vadd.f32 %v5548_v58, %v1840_v49  ;;  %v4843_v54 = vpop.f32.mrb[33].mxu1 }
 0x123   :  { %v1355_v56 = vpop.f32.mrb[34].mxu0  ;;  %v1843_v57 = vpop.f32.mrb[34].mxu1 }
 0x124   :  { %v2270_v59 = vmax.f32 %v1353_v50, 0.0  ;;  %v1356_v60 = vadd.f32 %v5548_v58, %v1355_v56  ;;  %v4600_v61 = vpop.f32.mrb[35].mxu0  ;;  %v2392_v62 = vmax.f32 %v1841_v53, 0.0  ;;  %v1844_v63 = vadd.f32 %v5548_v58, %v1843_v57  ;;  %v4844_v1 = vpop.f32.mrb[35].mxu1  ;;  %v5136_v56 = vld [vmem:[%s7172_s0 + $0x130] sm:$0xff]  }
 0x126   :  { %v4210_v2 = vpack.c.bf16 %v2270_v59, %v2270_v59  ;;  %v2271_v3 = vmax.f32 %v1356_v60, 0.0  ;;  %4706 = vmatmul.mubr.msk.bf16.gmra.mrb[140].mxu0 %vm890_vm1, %v5130_v52  ;;  %v4332_v4 = vpack.c.bf16 %v2392_v62, %v2392_v62  ;;  %v2393_v5 = vmax.f32 %v1844_v63, 0.0  ;;  %4950 = vmatmul.mubr.msk.bf16.gmra.mrb[140].mxu1 %vm890_vm1, %v5131_v55  ;;  %v5137_v60 = vld [vmem:[%s7172_s0 + $0x318] sm:$0xff]  }
 0x127   :  { %4709 = vmatprep.mubr.msk.bf16.mxu0 %vm5185_vm0, %v5184_v0  ;;  %4953 = vmatprep.mubr.msk.bf16.mxu1 %vm5185_vm0, %v5184_v0 }
 0x128   :  { %3477 = vst.msk [vmem:[%s7174_s3 + $0x40] sm:$0xf] %vm3460_vm2, %v4210_v2  ;;  %v4211_v6 = vpack.c.bf16 %v2271_v3, %v2271_v3  ;;  %3599 = vst.msk [vmem:[%s7174_s3 + $0x228] sm:$0xf] %vm3460_vm2, %v4332_v4  ;;  %v4333_v7 = vpack.c.bf16 %v2393_v5, %v2393_v5 }
 0x129   :  { %v1360_v8 = vpop.f32.mrb[36].mxu0  ;;  %v1848_v9 = vpop.f32.mrb[36].mxu1 }
 0x12a   :  { %3478 = vst.msk [vmem:[%s7174_s3 + $0x44] sm:$0xf] %vm3460_vm2, %v4211_v6  ;;  %v1361_v10 = vadd.f32 %v5548_v58, %v1360_v8  ;;  %v4603_v11 = vpop.f32.mrb[37].mxu0  ;;  %3600 = vst.msk [vmem:[%s7174_s3 + $0x22c] sm:$0xf] %vm3460_vm2, %v4333_v7  ;;  %v1849_v13 = vadd.f32 %v5548_v58, %v1848_v9  ;;  %v4847_v14 = vpop.f32.mrb[37].mxu1 }
 0x12b   :  { %v1363_v16 = vpop.f32.mrb[38].mxu0  ;;  %v1851_v17 = vpop.f32.mrb[38].mxu1 }
 0x12c   :  { %v2272_v18 = vmax.f32 %v1361_v10, 0.0  ;;  %v1364_v19 = vadd.f32 %v5548_v58, %v1363_v16  ;;  %v4604_v20 = vpop.f32.mrb[39].mxu0  ;;  %v2394_v21 = vmax.f32 %v1849_v13, 0.0  ;;  %v1852_v22 = vadd.f32 %v5548_v58, %v1851_v17  ;;  %v4848_v23 = vpop.f32.mrb[39].mxu1  ;;  %v5138_v16 = vld [vmem:[%s7172_s0 + $0x138] sm:$0xff]  }
 0x12e   :  { %v4212_v24 = vpack.c.bf16 %v2272_v18, %v2272_v18  ;;  %v2273_v25 = vmax.f32 %v1364_v19, 0.0  ;;  %4710 = vmatmul.mubr.msk.bf16.gmra.mrb[144].mxu0 %vm890_vm1, %v5132_v12  ;;  %v4334_v26 = vpack.c.bf16 %v2394_v21, %v2394_v21  ;;  %v2395_v27 = vmax.f32 %v1852_v22, 0.0  ;;  %4954 = vmatmul.mubr.msk.bf16.gmra.mrb[144].mxu1 %vm890_vm1, %v5133_v15  ;;  %v5139_v19 = vld [vmem:[%s7172_s0 + $0x320] sm:$0xff]  }
 0x12f   :  { %4713 = vmatprep.mubr.msk.bf16.mxu0 %vm5185_vm0, %v5184_v0  ;;  %4957 = vmatprep.mubr.msk.bf16.mxu1 %vm5185_vm0, %v5184_v0 }
 0x130   :  { %3479 = vst.msk [vmem:[%s7174_s3 + $0x48] sm:$0xf] %vm3460_vm2, %v4212_v24  ;;  %v4213_v28 = vpack.c.bf16 %v2273_v25, %v2273_v25  ;;  %3601 = vst.msk [vmem:[%s7174_s3 + $0x230] sm:$0xf] %vm3460_vm2, %v4334_v26  ;;  %v4335_v29 = vpack.c.bf16 %v2395_v27, %v2395_v27 }
 0x131   :  { %v1368_v30 = vpop.f32.mrb[40].mxu0  ;;  %v1856_v31 = vpop.f32.mrb[40].mxu1 }
 0x132   :  { %3480 = vst.msk [vmem:[%s7174_s3 + $0x4c] sm:$0xf] %vm3460_vm2, %v4213_v28  ;;  %v1369_v32 = vadd.f32 %v5548_v58, %v1368_v30  ;;  %v4607_v33 = vpop.f32.mrb[41].mxu0  ;;  %3602 = vst.msk [vmem:[%s7174_s3 + $0x234] sm:$0xf] %vm3460_vm2, %v4335_v29  ;;  %v1857_v35 = vadd.f32 %v5548_v58, %v1856_v31  ;;  %v4851_v36 = vpop.f32.mrb[41].mxu1 }
 0x133   :  { %v1371_v38 = vpop.f32.mrb[42].mxu0  ;;  %v1859_v39 = vpop.f32.mrb[42].mxu1 }
 0x134   :  { %v2274_v40 = vmax.f32 %v1369_v32, 0.0  ;;  %v1372_v41 = vadd.f32 %v5548_v58, %v1371_v38  ;;  %v4608_v42 = vpop.f32.mrb[43].mxu0  ;;  %v2396_v43 = vmax.f32 %v1857_v35, 0.0  ;;  %v1860_v44 = vadd.f32 %v5548_v58, %v1859_v39  ;;  %v4852_v45 = vpop.f32.mrb[43].mxu1  ;;  %v5140_v38 = vld [vmem:[%s7172_s0 + $0x140] sm:$0xff]  }
 0x136   :  { %v4214_v46 = vpack.c.bf16 %v2274_v40, %v2274_v40  ;;  %v2275_v47 = vmax.f32 %v1372_v41, 0.0  ;;  %4714 = vmatmul.mubr.msk.bf16.gmra.mrb[148].mxu0 %vm890_vm1, %v5134_v34  ;;  %v4336_v48 = vpack.c.bf16 %v2396_v43, %v2396_v43  ;;  %v2397_v49 = vmax.f32 %v1860_v44, 0.0  ;;  %4958 = vmatmul.mubr.msk.bf16.gmra.mrb[148].mxu1 %vm890_vm1, %v5135_v37  ;;  %v5141_v41 = vld [vmem:[%s7172_s0 + $0x328] sm:$0xff]  }
 0x137   :  { %4717 = vmatprep.mubr.msk.bf16.mxu0 %vm5185_vm0, %v5184_v0  ;;  %4961 = vmatprep.mubr.msk.bf16.mxu1 %vm5185_vm0, %v5184_v0 }
 0x138   :  { %3481 = vst.msk [vmem:[%s7174_s3 + $0x50] sm:$0xf] %vm3460_vm2, %v4214_v46  ;;  %v4215_v50 = vpack.c.bf16 %v2275_v47, %v2275_v47  ;;  %3603 = vst.msk [vmem:[%s7174_s3 + $0x238] sm:$0xf] %vm3460_vm2, %v4336_v48  ;;  %v4337_v51 = vpack.c.bf16 %v2397_v49, %v2397_v49 }
 0x139   :  { %v1376_v52 = vpop.f32.mrb[44].mxu0  ;;  %v1864_v53 = vpop.f32.mrb[44].mxu1 }
 0x13a   :  { %3482 = vst.msk [vmem:[%s7174_s3 + $0x54] sm:$0xf] %vm3460_vm2, %v4215_v50  ;;  %v1377_v54 = vadd.f32 %v5548_v58, %v1376_v52  ;;  %v4611_v55 = vpop.f32.mrb[45].mxu0  ;;  %3604 = vst.msk [vmem:[%s7174_s3 + $0x23c] sm:$0xf] %vm3460_vm2, %v4337_v51  ;;  %v1865_v57 = vadd.f32 %v5548_v58, %v1864_v53  ;;  %v4855_v59 = vpop.f32.mrb[45].mxu1 }
 0x13b   :  { %v1379_v61 = vpop.f32.mrb[46].mxu0  ;;  %v1867_v62 = vpop.f32.mrb[46].mxu1 }
 0x13c   :  { %v2276_v63 = vmax.f32 %v1377_v54, 0.0  ;;  %v1380_v1 = vadd.f32 %v5548_v58, %v1379_v61  ;;  %v4612_v2 = vpop.f32.mrb[47].mxu0  ;;  %v2398_v3 = vmax.f32 %v1865_v57, 0.0  ;;  %v1868_v4 = vadd.f32 %v5548_v58, %v1867_v62  ;;  %v4856_v5 = vpop.f32.mrb[47].mxu1  ;;  %v5142_v61 = vld [vmem:[%s7172_s0 + $0x148] sm:$0xff]  }
 0x13e   :  { %v4216_v6 = vpack.c.bf16 %v2276_v63, %v2276_v63  ;;  %v2277_v7 = vmax.f32 %v1380_v1, 0.0  ;;  %4718 = vmatmul.mubr.msk.bf16.gmra.mrb[152].mxu0 %vm890_vm1, %v5136_v56  ;;  %v4338_v8 = vpack.c.bf16 %v2398_v3, %v2398_v3  ;;  %v2399_v9 = vmax.f32 %v1868_v4, 0.0  ;;  %4962 = vmatmul.mubr.msk.bf16.gmra.mrb[152].mxu1 %vm890_vm1, %v5137_v60  ;;  %v5143_v1 = vld [vmem:[%s7172_s0 + $0x330] sm:$0xff]  }
 0x13f   :  { %4721 = vmatprep.mubr.msk.bf16.mxu0 %vm5185_vm0, %v5184_v0  ;;  %4965 = vmatprep.mubr.msk.bf16.mxu1 %vm5185_vm0, %v5184_v0 }
 0x140   :  { %3483 = vst.msk [vmem:[%s7174_s3 + $0x58] sm:$0xf] %vm3460_vm2, %v4216_v6  ;;  %v4217_v10 = vpack.c.bf16 %v2277_v7, %v2277_v7  ;;  %3605 = vst.msk [vmem:[%s7174_s3 + $0x240] sm:$0xf] %vm3460_vm2, %v4338_v8  ;;  %v4339_v11 = vpack.c.bf16 %v2399_v9, %v2399_v9 }
 0x141   :  { %v1384_v12 = vpop.f32.mrb[48].mxu0  ;;  %v1872_v13 = vpop.f32.mrb[48].mxu1 }
 0x142   :  { %3484 = vst.msk [vmem:[%s7174_s3 + $0x5c] sm:$0xf] %vm3460_vm2, %v4217_v10  ;;  %v1385_v14 = vadd.f32 %v5548_v58, %v1384_v12  ;;  %v4615_v15 = vpop.f32.mrb[49].mxu0  ;;  %3606 = vst.msk [vmem:[%s7174_s3 + $0x244] sm:$0xf] %vm3460_vm2, %v4339_v11  ;;  %v1873_v17 = vadd.f32 %v5548_v58, %v1872_v13  ;;  %v4859_v18 = vpop.f32.mrb[49].mxu1 }
 0x143   :  { %v1387_v20 = vpop.f32.mrb[50].mxu0  ;;  %v1875_v21 = vpop.f32.mrb[50].mxu1 }
 0x144   :  { %v2278_v22 = vmax.f32 %v1385_v14, 0.0  ;;  %v1388_v23 = vadd.f32 %v5548_v58, %v1387_v20  ;;  %v4616_v24 = vpop.f32.mrb[51].mxu0  ;;  %v2400_v25 = vmax.f32 %v1873_v17, 0.0  ;;  %v1876_v26 = vadd.f32 %v5548_v58, %v1875_v21  ;;  %v4860_v27 = vpop.f32.mrb[51].mxu1  ;;  %v5144_v20 = vld [vmem:[%s7172_s0 + $0x150] sm:$0xff]  }
 0x146   :  { %v4218_v28 = vpack.c.bf16 %v2278_v22, %v2278_v22  ;;  %v2279_v29 = vmax.f32 %v1388_v23, 0.0  ;;  %4722 = vmatmul.mubr.msk.bf16.gmra.mrb[156].mxu0 %vm890_vm1, %v5138_v16  ;;  %v4340_v30 = vpack.c.bf16 %v2400_v25, %v2400_v25  ;;  %v2401_v31 = vmax.f32 %v1876_v26, 0.0  ;;  %4966 = vmatmul.mubr.msk.bf16.gmra.mrb[156].mxu1 %vm890_vm1, %v5139_v19  ;;  %v5145_v23 = vld [vmem:[%s7172_s0 + $0x338] sm:$0xff]  }
 0x147   :  { %4725 = vmatprep.mubr.msk.bf16.mxu0 %vm5185_vm0, %v5184_v0  ;;  %4969 = vmatprep.mubr.msk.bf16.mxu1 %vm5185_vm0, %v5184_v0 }
 0x148   :  { %3485 = vst.msk [vmem:[%s7174_s3 + $0x60] sm:$0xf] %vm3460_vm2, %v4218_v28  ;;  %v4219_v32 = vpack.c.bf16 %v2279_v29, %v2279_v29  ;;  %3607 = vst.msk [vmem:[%s7174_s3 + $0x248] sm:$0xf] %vm3460_vm2, %v4340_v30  ;;  %v4341_v33 = vpack.c.bf16 %v2401_v31, %v2401_v31 }
 0x149   :  { %v1392_v34 = vpop.f32.mrb[52].mxu0  ;;  %v1880_v35 = vpop.f32.mrb[52].mxu1 }
 0x14a   :  { %3486 = vst.msk [vmem:[%s7174_s3 + $0x64] sm:$0xf] %vm3460_vm2, %v4219_v32  ;;  %v1393_v36 = vadd.f32 %v5548_v58, %v1392_v34  ;;  %v4619_v37 = vpop.f32.mrb[53].mxu0  ;;  %3608 = vst.msk [vmem:[%s7174_s3 + $0x24c] sm:$0xf] %vm3460_vm2, %v4341_v33  ;;  %v1881_v39 = vadd.f32 %v5548_v58, %v1880_v35  ;;  %v4863_v40 = vpop.f32.mrb[53].mxu1 }
 0x14b   :  { %v1395_v42 = vpop.f32.mrb[54].mxu0  ;;  %v1883_v43 = vpop.f32.mrb[54].mxu1 }
 0x14c   :  { %v2280_v44 = vmax.f32 %v1393_v36, 0.0  ;;  %v1396_v45 = vadd.f32 %v5548_v58, %v1395_v42  ;;  %v4620_v46 = vpop.f32.mrb[55].mxu0  ;;  %v2402_v47 = vmax.f32 %v1881_v39, 0.0  ;;  %v1884_v48 = vadd.f32 %v5548_v58, %v1883_v43  ;;  %v4864_v49 = vpop.f32.mrb[55].mxu1  ;;  %v5146_v42 = vld [vmem:[%s7172_s0 + $0x158] sm:$0xff]  }
 0x14e   :  { %v4220_v50 = vpack.c.bf16 %v2280_v44, %v2280_v44  ;;  %v2281_v51 = vmax.f32 %v1396_v45, 0.0  ;;  %4726 = vmatmul.mubr.msk.bf16.gmra.mrb[160].mxu0 %vm890_vm1, %v5140_v38  ;;  %v4342_v52 = vpack.c.bf16 %v2402_v47, %v2402_v47  ;;  %v2403_v53 = vmax.f32 %v1884_v48, 0.0  ;;  %4970 = vmatmul.mubr.msk.bf16.gmra.mrb[160].mxu1 %vm890_vm1, %v5141_v41  ;;  %v5147_v45 = vld [vmem:[%s7172_s0 + $0x340] sm:$0xff]  }
 0x14f   :  { %4729 = vmatprep.mubr.msk.bf16.mxu0 %vm5185_vm0, %v5184_v0  ;;  %4973 = vmatprep.mubr.msk.bf16.mxu1 %vm5185_vm0, %v5184_v0 }
 0x150   :  { %3487 = vst.msk [vmem:[%s7174_s3 + $0x68] sm:$0xf] %vm3460_vm2, %v4220_v50  ;;  %v4221_v54 = vpack.c.bf16 %v2281_v51, %v2281_v51  ;;  %3609 = vst.msk [vmem:[%s7174_s3 + $0x250] sm:$0xf] %vm3460_vm2, %v4342_v52  ;;  %v4343_v55 = vpack.c.bf16 %v2403_v53, %v2403_v53 }
 0x151   :  { %v1400_v56 = vpop.f32.mrb[56].mxu0  ;;  %v1888_v57 = vpop.f32.mrb[56].mxu1 }
 0x152   :  { %3488 = vst.msk [vmem:[%s7174_s3 + $0x6c] sm:$0xf] %vm3460_vm2, %v4221_v54  ;;  %v1401_v59 = vadd.f32 %v5548_v58, %v1400_v56  ;;  %v4623_v60 = vpop.f32.mrb[57].mxu0  ;;  %3610 = vst.msk [vmem:[%s7174_s3 + $0x254] sm:$0xf] %vm3460_vm2, %v4343_v55  ;;  %v1889_v62 = vadd.f32 %v5548_v58, %v1888_v57  ;;  %v4867_v63 = vpop.f32.mrb[57].mxu1 }
 0x153   :  { %v1403_v2 = vpop.f32.mrb[58].mxu0  ;;  %v1891_v3 = vpop.f32.mrb[58].mxu1 }
 0x154   :  { %v2282_v4 = vmax.f32 %v1401_v59, 0.0  ;;  %v1404_v5 = vadd.f32 %v5548_v58, %v1403_v2  ;;  %v4624_v6 = vpop.f32.mrb[59].mxu0  ;;  %v2404_v7 = vmax.f32 %v1889_v62, 0.0  ;;  %v1892_v8 = vadd.f32 %v5548_v58, %v1891_v3  ;;  %v4868_v9 = vpop.f32.mrb[59].mxu1  ;;  %v6097_v62 = vld [vmem:[%s7173_s2] ss:$0 sm:$0xff] }
 0x155   :  { %v5148_v2 = vld [vmem:[%s7172_s0 + $0x160] sm:$0xff]  }
 0x156   :  { %v4222_v10 = vpack.c.bf16 %v2282_v4, %v2282_v4  ;;  %v2283_v11 = vmax.f32 %v1404_v5, 0.0  ;;  %4730 = vmatmul.mubr.msk.bf16.gmra.mrb[164].mxu0 %vm890_vm1, %v5142_v61  ;;  %v4344_v12 = vpack.c.bf16 %v2404_v7, %v2404_v7  ;;  %v2405_v13 = vmax.f32 %v1892_v8, 0.0  ;;  %4974 = vmatmul.mubr.msk.bf16.gmra.mrb[164].mxu1 %vm890_vm1, %v5143_v1  ;;  %v5149_v5 = vld [vmem:[%s7172_s0 + $0x348] sm:$0xff]  }
 0x157   :  { %4733 = vmatprep.mubr.msk.bf16.mxu0 %vm5185_vm0, %v5184_v0  ;;  %4977 = vmatprep.mubr.msk.bf16.mxu1 %vm5185_vm0, %v5184_v0 }
 0x158   :  { %3489 = vst.msk [vmem:[%s7174_s3 + $0x70] sm:$0xf] %vm3460_vm2, %v4222_v10  ;;  %v4223_v14 = vpack.c.bf16 %v2283_v11, %v2283_v11  ;;  %3611 = vst.msk [vmem:[%s7174_s3 + $0x258] sm:$0xf] %vm3460_vm2, %v4344_v12  ;;  %v4345_v15 = vpack.c.bf16 %v2405_v13, %v2405_v13 }
 0x159   :  { %v1408_v16 = vpop.f32.mrb[60].mxu0  ;;  %v1896_v17 = vpop.f32.mrb[60].mxu1 }
 0x15a   :  { %3490 = vst.msk [vmem:[%s7174_s3 + $0x74] sm:$0xf] %vm3460_vm2, %v4223_v14  ;;  %v1409_v18 = vadd.f32 %v5548_v58, %v1408_v16  ;;  %v4627_v19 = vpop.f32.mrb[61].mxu0  ;;  %3612 = vst.msk [vmem:[%s7174_s3 + $0x25c] sm:$0xf] %vm3460_vm2, %v4345_v15  ;;  %v1897_v21 = vadd.f32 %v5548_v58, %v1896_v17  ;;  %v4871_v22 = vpop.f32.mrb[61].mxu1 }
 0x15b   :  { %v1411_v24 = vpop.f32.mrb[62].mxu0  ;;  %v1899_v25 = vpop.f32.mrb[62].mxu1 }
 0x15c   :  { %v2284_v26 = vmax.f32 %v1409_v18, 0.0  ;;  %v1412_v27 = vadd.f32 %v5548_v58, %v1411_v24  ;;  %v4628_v28 = vpop.f32.mrb[63].mxu0  ;;  %v2406_v29 = vmax.f32 %v1897_v21, 0.0  ;;  %v1900_v30 = vadd.f32 %v5548_v58, %v1899_v25  ;;  %v4872_v31 = vpop.f32.mrb[63].mxu1  ;;  %v5150_v24 = vld [vmem:[%s7172_s0 + $0x168] sm:$0xff]  }
 0x15e   :  { %v4224_v32 = vpack.c.bf16 %v2284_v26, %v2284_v26  ;;  %v2285_v33 = vmax.f32 %v1412_v27, 0.0  ;;  %4734 = vmatmul.mubr.msk.bf16.gmra.mrb[168].mxu0 %vm890_vm1, %v5144_v20  ;;  %v4346_v34 = vpack.c.bf16 %v2406_v29, %v2406_v29  ;;  %v2407_v35 = vmax.f32 %v1900_v30, 0.0  ;;  %4978 = vmatmul.mubr.msk.bf16.gmra.mrb[168].mxu1 %vm890_vm1, %v5145_v23  ;;  %v5151_v27 = vld [vmem:[%s7172_s0 + $0x350] sm:$0xff]  }
 0x15f   :  { %4737 = vmatprep.mubr.msk.bf16.mxu0 %vm5185_vm0, %v5184_v0  ;;  %4981 = vmatprep.mubr.msk.bf16.mxu1 %vm5185_vm0, %v5184_v0 }
 0x160   :  { %3491 = vst.msk [vmem:[%s7174_s3 + $0x78] sm:$0xf] %vm3460_vm2, %v4224_v32  ;;  %v4225_v36 = vpack.c.bf16 %v2285_v33, %v2285_v33  ;;  %3613 = vst.msk [vmem:[%s7174_s3 + $0x260] sm:$0xf] %vm3460_vm2, %v4346_v34  ;;  %v4347_v37 = vpack.c.bf16 %v2407_v35, %v2407_v35 }
 0x161   :  { %v1416_v38 = vpop.f32.mrb[64].mxu0  ;;  %v1904_v39 = vpop.f32.mrb[64].mxu1 }
 0x162   :  { %3492 = vst.msk [vmem:[%s7174_s3 + $0x7c] sm:$0xf] %vm3460_vm2, %v4225_v36  ;;  %v1417_v40 = vadd.f32 %v5548_v58, %v1416_v38  ;;  %v4631_v41 = vpop.f32.mrb[65].mxu0  ;;  %3614 = vst.msk [vmem:[%s7174_s3 + $0x264] sm:$0xf] %vm3460_vm2, %v4347_v37  ;;  %v1905_v43 = vadd.f32 %v5548_v58, %v1904_v39  ;;  %v4875_v44 = vpop.f32.mrb[65].mxu1 }
 0x163   :  { %v1419_v46 = vpop.f32.mrb[66].mxu0  ;;  %v1907_v47 = vpop.f32.mrb[66].mxu1 }
 0x164   :  { %v2286_v48 = vmax.f32 %v1417_v40, 0.0  ;;  %v1420_v49 = vadd.f32 %v5548_v58, %v1419_v46  ;;  %v4632_v50 = vpop.f32.mrb[67].mxu0  ;;  %v2408_v51 = vmax.f32 %v1905_v43, 0.0  ;;  %v1908_v52 = vadd.f32 %v5548_v58, %v1907_v47  ;;  %v4876_v53 = vpop.f32.mrb[67].mxu1  ;;  %v5152_v46 = vld [vmem:[%s7172_s0 + $0x170] sm:$0xff]  }
 0x166   :  { %v4226_v54 = vpack.c.bf16 %v2286_v48, %v2286_v48  ;;  %v2287_v55 = vmax.f32 %v1420_v49, 0.0  ;;  %4738 = vmatmul.mubr.msk.bf16.gmra.mrb[172].mxu0 %vm890_vm1, %v5146_v42  ;;  %v4348_v56 = vpack.c.bf16 %v2408_v51, %v2408_v51  ;;  %v2409_v57 = vmax.f32 %v1908_v52, 0.0  ;;  %4982 = vmatmul.mubr.msk.bf16.gmra.mrb[172].mxu1 %vm890_vm1, %v5147_v45  ;;  %v5153_v49 = vld [vmem:[%s7172_s0 + $0x358] sm:$0xff]  }
 0x167   :  { %4741 = vmatprep.mubr.msk.bf16.mxu0 %vm5185_vm0, %v5184_v0  ;;  %4985 = vmatprep.mubr.msk.bf16.mxu1 %vm5185_vm0, %v5184_v0 }
 0x168   :  { %3493 = vst.msk [vmem:[%s7174_s3 + $0x80] sm:$0xf] %vm3460_vm2, %v4226_v54  ;;  %v4227_v58 = vpack.c.bf16 %v2287_v55, %v2287_v55  ;;  %3615 = vst.msk [vmem:[%s7174_s3 + $0x268] sm:$0xf] %vm3460_vm2, %v4348_v56  ;;  %v4349_v59 = vpack.c.bf16 %v2409_v57, %v2409_v57 }
 0x169   :  { %v1424_v60 = vpop.f32.mrb[68].mxu0  ;;  %v1912_v61 = vpop.f32.mrb[68].mxu1 }
 0x16a   :  { %3494 = vst.msk [vmem:[%s7174_s3 + $0x84] sm:$0xf] %vm3460_vm2, %v4227_v58  ;;  %v1425_v63 = vadd.f32 %v6097_v62, %v1424_v60  ;;  %v4635_v1 = vpop.f32.mrb[69].mxu0  ;;  %3616 = vst.msk [vmem:[%s7174_s3 + $0x26c] sm:$0xf] %vm3460_vm2, %v4349_v59  ;;  %v1913_v3 = vadd.f32 %v6097_v62, %v1912_v61  ;;  %v4879_v4 = vpop.f32.mrb[69].mxu1 }
 0x16b   :  { %v1427_v6 = vpop.f32.mrb[70].mxu0  ;;  %v1915_v7 = vpop.f32.mrb[70].mxu1 }
 0x16c   :  { %v2288_v8 = vmax.f32 %v1425_v63, 0.0  ;;  %v1428_v9 = vadd.f32 %v6097_v62, %v1427_v6  ;;  %v4636_v10 = vpop.f32.mrb[71].mxu0  ;;  %v2410_v11 = vmax.f32 %v1913_v3, 0.0  ;;  %v1916_v12 = vadd.f32 %v6097_v62, %v1915_v7  ;;  %v4880_v13 = vpop.f32.mrb[71].mxu1  ;;  %v5154_v6 = vld [vmem:[%s7172_s0 + $0x178] sm:$0xff]  }
 0x16e   :  { %v4228_v14 = vpack.c.bf16 %v2288_v8, %v2288_v8  ;;  %v2289_v15 = vmax.f32 %v1428_v9, 0.0  ;;  %4742 = vmatmul.mubr.msk.bf16.gmra.mrb[176].mxu0 %vm890_vm1, %v5148_v2  ;;  %v4350_v16 = vpack.c.bf16 %v2410_v11, %v2410_v11  ;;  %v2411_v17 = vmax.f32 %v1916_v12, 0.0  ;;  %4986 = vmatmul.mubr.msk.bf16.gmra.mrb[176].mxu1 %vm890_vm1, %v5149_v5  ;;  %v5155_v9 = vld [vmem:[%s7172_s0 + $0x360] sm:$0xff]  }
 0x16f   :  { %4745 = vmatprep.mubr.msk.bf16.mxu0 %vm5185_vm0, %v5184_v0  ;;  %4989 = vmatprep.mubr.msk.bf16.mxu1 %vm5185_vm0, %v5184_v0 }
 0x170   :  { %3495 = vst.msk [vmem:[%s7174_s3 + $0x88] sm:$0xf] %vm3460_vm2, %v4228_v14  ;;  %v4229_v18 = vpack.c.bf16 %v2289_v15, %v2289_v15  ;;  %3617 = vst.msk [vmem:[%s7174_s3 + $0x270] sm:$0xf] %vm3460_vm2, %v4350_v16  ;;  %v4351_v19 = vpack.c.bf16 %v2411_v17, %v2411_v17 }
 0x171   :  { %v1432_v20 = vpop.f32.mrb[72].mxu0  ;;  %v1920_v21 = vpop.f32.mrb[72].mxu1 }
 0x172   :  { %3496 = vst.msk [vmem:[%s7174_s3 + $0x8c] sm:$0xf] %vm3460_vm2, %v4229_v18  ;;  %v1433_v22 = vadd.f32 %v6097_v62, %v1432_v20  ;;  %v4639_v23 = vpop.f32.mrb[73].mxu0  ;;  %3618 = vst.msk [vmem:[%s7174_s3 + $0x274] sm:$0xf] %vm3460_vm2, %v4351_v19  ;;  %v1921_v25 = vadd.f32 %v6097_v62, %v1920_v21  ;;  %v4883_v26 = vpop.f32.mrb[73].mxu1 }
 0x173   :  { %v1435_v28 = vpop.f32.mrb[74].mxu0  ;;  %v1923_v29 = vpop.f32.mrb[74].mxu1 }
 0x174   :  { %v2290_v30 = vmax.f32 %v1433_v22, 0.0  ;;  %v1436_v31 = vadd.f32 %v6097_v62, %v1435_v28  ;;  %v4640_v32 = vpop.f32.mrb[75].mxu0  ;;  %v2412_v33 = vmax.f32 %v1921_v25, 0.0  ;;  %v1924_v34 = vadd.f32 %v6097_v62, %v1923_v29  ;;  %v4884_v35 = vpop.f32.mrb[75].mxu1  ;;  %v5156_v28 = vld [vmem:[%s7172_s0 + $0x180] sm:$0xff]  }
 0x176   :  { %v4230_v36 = vpack.c.bf16 %v2290_v30, %v2290_v30  ;;  %v2291_v37 = vmax.f32 %v1436_v31, 0.0  ;;  %4746 = vmatmul.mubr.msk.bf16.gmra.mrb[180].mxu0 %vm890_vm1, %v5150_v24  ;;  %v4352_v38 = vpack.c.bf16 %v2412_v33, %v2412_v33  ;;  %v2413_v39 = vmax.f32 %v1924_v34, 0.0  ;;  %4990 = vmatmul.mubr.msk.bf16.gmra.mrb[180].mxu1 %vm890_vm1, %v5151_v27  ;;  %v5157_v31 = vld [vmem:[%s7172_s0 + $0x368] sm:$0xff]  }
 0x177   :  { %4749 = vmatprep.mubr.msk.bf16.mxu0 %vm5185_vm0, %v5184_v0  ;;  %4993 = vmatprep.mubr.msk.bf16.mxu1 %vm5185_vm0, %v5184_v0 }
 0x178   :  { %3497 = vst.msk [vmem:[%s7174_s3 + $0x90] sm:$0xf] %vm3460_vm2, %v4230_v36  ;;  %v4231_v40 = vpack.c.bf16 %v2291_v37, %v2291_v37  ;;  %3619 = vst.msk [vmem:[%s7174_s3 + $0x278] sm:$0xf] %vm3460_vm2, %v4352_v38  ;;  %v4353_v41 = vpack.c.bf16 %v2413_v39, %v2413_v39 }
 0x179   :  { %v1440_v42 = vpop.f32.mrb[76].mxu0  ;;  %v1928_v43 = vpop.f32.mrb[76].mxu1 }
 0x17a   :  { %3498 = vst.msk [vmem:[%s7174_s3 + $0x94] sm:$0xf] %vm3460_vm2, %v4231_v40  ;;  %v1441_v44 = vadd.f32 %v6097_v62, %v1440_v42  ;;  %v4643_v45 = vpop.f32.mrb[77].mxu0  ;;  %3620 = vst.msk [vmem:[%s7174_s3 + $0x27c] sm:$0xf] %vm3460_vm2, %v4353_v41  ;;  %v1929_v47 = vadd.f32 %v6097_v62, %v1928_v43  ;;  %v4887_v48 = vpop.f32.mrb[77].mxu1 }
 0x17b   :  { %v1443_v50 = vpop.f32.mrb[78].mxu0  ;;  %v1931_v51 = vpop.f32.mrb[78].mxu1 }
 0x17c   :  { %v2292_v52 = vmax.f32 %v1441_v44, 0.0  ;;  %v1444_v53 = vadd.f32 %v6097_v62, %v1443_v50  ;;  %v4644_v54 = vpop.f32.mrb[79].mxu0  ;;  %v2414_v55 = vmax.f32 %v1929_v47, 0.0  ;;  %v1932_v56 = vadd.f32 %v6097_v62, %v1931_v51  ;;  %v4888_v57 = vpop.f32.mrb[79].mxu1  ;;  %v5158_v50 = vld [vmem:[%s7172_s0 + $0x188] sm:$0xff]  }
 0x17e   :  { %v4232_v58 = vpack.c.bf16 %v2292_v52, %v2292_v52  ;;  %v2293_v59 = vmax.f32 %v1444_v53, 0.0  ;;  %4750 = vmatmul.mubr.msk.bf16.gmra.mrb[184].mxu0 %vm890_vm1, %v5152_v46  ;;  %v4354_v60 = vpack.c.bf16 %v2414_v55, %v2414_v55  ;;  %v2415_v61 = vmax.f32 %v1932_v56, 0.0  ;;  %4994 = vmatmul.mubr.msk.bf16.gmra.mrb[184].mxu1 %vm890_vm1, %v5153_v49  ;;  %v5159_v53 = vld [vmem:[%s7172_s0 + $0x370] sm:$0xff]  }
 0x17f   :  { %4753 = vmatprep.mubr.msk.bf16.mxu0 %vm5185_vm0, %v5184_v0  ;;  %4997 = vmatprep.mubr.msk.bf16.mxu1 %vm5185_vm0, %v5184_v0 }
 0x180   :  { %3499 = vst.msk [vmem:[%s7174_s3 + $0x98] sm:$0xf] %vm3460_vm2, %v4232_v58  ;;  %v4233_v63 = vpack.c.bf16 %v2293_v59, %v2293_v59  ;;  %3621 = vst.msk [vmem:[%s7174_s3 + $0x280] sm:$0xf] %vm3460_vm2, %v4354_v60  ;;  %v4355_v1 = vpack.c.bf16 %v2415_v61, %v2415_v61 }
 0x181   :  { %v1448_v2 = vpop.f32.mrb[80].mxu0  ;;  %v1936_v3 = vpop.f32.mrb[80].mxu1 }
 0x182   :  { %3500 = vst.msk [vmem:[%s7174_s3 + $0x9c] sm:$0xf] %vm3460_vm2, %v4233_v63  ;;  %v1449_v4 = vadd.f32 %v6097_v62, %v1448_v2  ;;  %v4647_v5 = vpop.f32.mrb[81].mxu0  ;;  %3622 = vst.msk [vmem:[%s7174_s3 + $0x284] sm:$0xf] %vm3460_vm2, %v4355_v1  ;;  %v1937_v7 = vadd.f32 %v6097_v62, %v1936_v3  ;;  %v4891_v8 = vpop.f32.mrb[81].mxu1 }
 0x183   :  { %v1451_v10 = vpop.f32.mrb[82].mxu0  ;;  %v1939_v11 = vpop.f32.mrb[82].mxu1 }
 0x184   :  { %v2294_v12 = vmax.f32 %v1449_v4, 0.0  ;;  %v1452_v13 = vadd.f32 %v6097_v62, %v1451_v10  ;;  %v4648_v14 = vpop.f32.mrb[83].mxu0  ;;  %v2416_v15 = vmax.f32 %v1937_v7, 0.0  ;;  %v1940_v16 = vadd.f32 %v6097_v62, %v1939_v11  ;;  %v4892_v17 = vpop.f32.mrb[83].mxu1  ;;  %v5160_v10 = vld [vmem:[%s7172_s0 + $0x190] sm:$0xff]  }
 0x186   :  { %v4234_v18 = vpack.c.bf16 %v2294_v12, %v2294_v12  ;;  %v2295_v19 = vmax.f32 %v1452_v13, 0.0  ;;  %4754 = vmatmul.mubr.msk.bf16.gmra.mrb[188].mxu0 %vm890_vm1, %v5154_v6  ;;  %v4356_v20 = vpack.c.bf16 %v2416_v15, %v2416_v15  ;;  %v2417_v21 = vmax.f32 %v1940_v16, 0.0  ;;  %4998 = vmatmul.mubr.msk.bf16.gmra.mrb[188].mxu1 %vm890_vm1, %v5155_v9  ;;  %v5161_v13 = vld [vmem:[%s7172_s0 + $0x378] sm:$0xff]  }
 0x187   :  { %4757 = vmatprep.mubr.msk.bf16.mxu0 %vm5185_vm0, %v5184_v0  ;;  %5001 = vmatprep.mubr.msk.bf16.mxu1 %vm5185_vm0, %v5184_v0 }
 0x188   :  { %3501 = vst.msk [vmem:[%s7174_s3 + $0xa0] sm:$0xf] %vm3460_vm2, %v4234_v18  ;;  %v4235_v22 = vpack.c.bf16 %v2295_v19, %v2295_v19  ;;  %3623 = vst.msk [vmem:[%s7174_s3 + $0x288] sm:$0xf] %vm3460_vm2, %v4356_v20  ;;  %v4357_v23 = vpack.c.bf16 %v2417_v21, %v2417_v21 }
 0x189   :  { %v1456_v24 = vpop.f32.mrb[84].mxu0  ;;  %v1944_v25 = vpop.f32.mrb[84].mxu1 }
 0x18a   :  { %3502 = vst.msk [vmem:[%s7174_s3 + $0xa4] sm:$0xf] %vm3460_vm2, %v4235_v22  ;;  %v1457_v26 = vadd.f32 %v6097_v62, %v1456_v24  ;;  %v4651_v27 = vpop.f32.mrb[85].mxu0  ;;  %3624 = vst.msk [vmem:[%s7174_s3 + $0x28c] sm:$0xf] %vm3460_vm2, %v4357_v23  ;;  %v1945_v29 = vadd.f32 %v6097_v62, %v1944_v25  ;;  %v4895_v30 = vpop.f32.mrb[85].mxu1 }
 0x18b   :  { %v1459_v32 = vpop.f32.mrb[86].mxu0  ;;  %v1947_v33 = vpop.f32.mrb[86].mxu1 }
 0x18c   :  { %v2296_v34 = vmax.f32 %v1457_v26, 0.0  ;;  %v1460_v35 = vadd.f32 %v6097_v62, %v1459_v32  ;;  %v4652_v36 = vpop.f32.mrb[87].mxu0  ;;  %v2418_v37 = vmax.f32 %v1945_v29, 0.0  ;;  %v1948_v38 = vadd.f32 %v6097_v62, %v1947_v33  ;;  %v4896_v39 = vpop.f32.mrb[87].mxu1  ;;  %v5162_v32 = vld [vmem:[%s7172_s0 + $0x198] sm:$0xff]  }
 0x18e   :  { %v4236_v40 = vpack.c.bf16 %v2296_v34, %v2296_v34  ;;  %v2297_v41 = vmax.f32 %v1460_v35, 0.0  ;;  %4758 = vmatmul.mubr.msk.bf16.gmra.mrb[192].mxu0 %vm890_vm1, %v5156_v28  ;;  %v4358_v42 = vpack.c.bf16 %v2418_v37, %v2418_v37  ;;  %v2419_v43 = vmax.f32 %v1948_v38, 0.0  ;;  %5002 = vmatmul.mubr.msk.bf16.gmra.mrb[192].mxu1 %vm890_vm1, %v5157_v31  ;;  %v5163_v35 = vld [vmem:[%s7172_s0 + $0x380] sm:$0xff]  }
 0x18f   :  { %4761 = vmatprep.mubr.msk.bf16.mxu0 %vm5185_vm0, %v5184_v0  ;;  %5005 = vmatprep.mubr.msk.bf16.mxu1 %vm5185_vm0, %v5184_v0 }
 0x190   :  { %3503 = vst.msk [vmem:[%s7174_s3 + $0xa8] sm:$0xf] %vm3460_vm2, %v4236_v40  ;;  %v4237_v44 = vpack.c.bf16 %v2297_v41, %v2297_v41  ;;  %3625 = vst.msk [vmem:[%s7174_s3 + $0x290] sm:$0xf] %vm3460_vm2, %v4358_v42  ;;  %v4359_v45 = vpack.c.bf16 %v2419_v43, %v2419_v43 }
 0x191   :  { %v1464_v46 = vpop.f32.mrb[88].mxu0  ;;  %v1952_v47 = vpop.f32.mrb[88].mxu1 }
 0x192   :  { %3504 = vst.msk [vmem:[%s7174_s3 + $0xac] sm:$0xf] %vm3460_vm2, %v4237_v44  ;;  %v1465_v48 = vadd.f32 %v6097_v62, %v1464_v46  ;;  %v4655_v49 = vpop.f32.mrb[89].mxu0  ;;  %3626 = vst.msk [vmem:[%s7174_s3 + $0x294] sm:$0xf] %vm3460_vm2, %v4359_v45  ;;  %v1953_v51 = vadd.f32 %v6097_v62, %v1952_v47  ;;  %v4899_v52 = vpop.f32.mrb[89].mxu1 }
 0x193   :  { %v1467_v54 = vpop.f32.mrb[90].mxu0  ;;  %v1955_v55 = vpop.f32.mrb[90].mxu1 }
 0x194   :  { %v2298_v56 = vmax.f32 %v1465_v48, 0.0  ;;  %v1468_v57 = vadd.f32 %v6097_v62, %v1467_v54  ;;  %v4656_v58 = vpop.f32.mrb[91].mxu0  ;;  %v2420_v59 = vmax.f32 %v1953_v51, 0.0  ;;  %v1956_v60 = vadd.f32 %v6097_v62, %v1955_v55  ;;  %v4900_v61 = vpop.f32.mrb[91].mxu1  ;;  %v5164_v54 = vld [vmem:[%s7172_s0 + $0x1a0] sm:$0xff]  }
 0x196   :  { %v4238_v63 = vpack.c.bf16 %v2298_v56, %v2298_v56  ;;  %v2299_v1 = vmax.f32 %v1468_v57, 0.0  ;;  %4762 = vmatmul.mubr.msk.bf16.gmra.mrb[196].mxu0 %vm890_vm1, %v5158_v50  ;;  %v4360_v2 = vpack.c.bf16 %v2420_v59, %v2420_v59  ;;  %v2421_v3 = vmax.f32 %v1956_v60, 0.0  ;;  %5006 = vmatmul.mubr.msk.bf16.gmra.mrb[196].mxu1 %vm890_vm1, %v5159_v53  ;;  %v5165_v57 = vld [vmem:[%s7172_s0 + $0x388] sm:$0xff]  }
 0x197   :  { %4765 = vmatprep.mubr.msk.bf16.mxu0 %vm5185_vm0, %v5184_v0  ;;  %5009 = vmatprep.mubr.msk.bf16.mxu1 %vm5185_vm0, %v5184_v0 }
 0x198   :  { %3505 = vst.msk [vmem:[%s7174_s3 + $0xb0] sm:$0xf] %vm3460_vm2, %v4238_v63  ;;  %v4239_v4 = vpack.c.bf16 %v2299_v1, %v2299_v1  ;;  %3627 = vst.msk [vmem:[%s7174_s3 + $0x298] sm:$0xf] %vm3460_vm2, %v4360_v2  ;;  %v4361_v5 = vpack.c.bf16 %v2421_v3, %v2421_v3 }
 0x199   :  { %v1472_v6 = vpop.f32.mrb[92].mxu0  ;;  %v1960_v7 = vpop.f32.mrb[92].mxu1 }
 0x19a   :  { %3506 = vst.msk [vmem:[%s7174_s3 + $0xb4] sm:$0xf] %vm3460_vm2, %v4239_v4  ;;  %v1473_v8 = vadd.f32 %v6097_v62, %v1472_v6  ;;  %v4659_v9 = vpop.f32.mrb[93].mxu0  ;;  %3628 = vst.msk [vmem:[%s7174_s3 + $0x29c] sm:$0xf] %vm3460_vm2, %v4361_v5  ;;  %v1961_v11 = vadd.f32 %v6097_v62, %v1960_v7  ;;  %v4903_v12 = vpop.f32.mrb[93].mxu1 }
 0x19b   :  { %v1475_v14 = vpop.f32.mrb[94].mxu0  ;;  %v1963_v15 = vpop.f32.mrb[94].mxu1 }
 0x19c   :  { %v2300_v16 = vmax.f32 %v1473_v8, 0.0  ;;  %v1476_v17 = vadd.f32 %v6097_v62, %v1475_v14  ;;  %v4660_v18 = vpop.f32.mrb[95].mxu0  ;;  %v2422_v19 = vmax.f32 %v1961_v11, 0.0  ;;  %v1964_v20 = vadd.f32 %v6097_v62, %v1963_v15  ;;  %v4904_v21 = vpop.f32.mrb[95].mxu1  ;;  %v5166_v14 = vld [vmem:[%s7172_s0 + $0x1a8] sm:$0xff]  }
 0x19e   :  { %v4240_v22 = vpack.c.bf16 %v2300_v16, %v2300_v16  ;;  %v2301_v23 = vmax.f32 %v1476_v17, 0.0  ;;  %4766 = vmatmul.mubr.msk.bf16.gmra.mrb[200].mxu0 %vm890_vm1, %v5160_v10  ;;  %v4362_v24 = vpack.c.bf16 %v2422_v19, %v2422_v19  ;;  %v2423_v25 = vmax.f32 %v1964_v20, 0.0  ;;  %5010 = vmatmul.mubr.msk.bf16.gmra.mrb[200].mxu1 %vm890_vm1, %v5161_v13  ;;  %v5167_v17 = vld [vmem:[%s7172_s0 + $0x390] sm:$0xff]  }
 0x19f   :  { %4769 = vmatprep.mubr.msk.bf16.mxu0 %vm5185_vm0, %v5184_v0  ;;  %5013 = vmatprep.mubr.msk.bf16.mxu1 %vm5185_vm0, %v5184_v0 }
 0x1a0   :  { %3507 = vst.msk [vmem:[%s7174_s3 + $0xb8] sm:$0xf] %vm3460_vm2, %v4240_v22  ;;  %v4241_v26 = vpack.c.bf16 %v2301_v23, %v2301_v23  ;;  %3629 = vst.msk [vmem:[%s7174_s3 + $0x2a0] sm:$0xf] %vm3460_vm2, %v4362_v24  ;;  %v4363_v27 = vpack.c.bf16 %v2423_v25, %v2423_v25 }
 0x1a1   :  { %v1480_v28 = vpop.f32.mrb[96].mxu0  ;;  %v1968_v29 = vpop.f32.mrb[96].mxu1 }
 0x1a2   :  { %3508 = vst.msk [vmem:[%s7174_s3 + $0xbc] sm:$0xf] %vm3460_vm2, %v4241_v26  ;;  %v1481_v30 = vadd.f32 %v6097_v62, %v1480_v28  ;;  %v4663_v31 = vpop.f32.mrb[97].mxu0  ;;  %3630 = vst.msk [vmem:[%s7174_s3 + $0x2a4] sm:$0xf] %vm3460_vm2, %v4363_v27  ;;  %v1969_v33 = vadd.f32 %v6097_v62, %v1968_v29  ;;  %v4907_v34 = vpop.f32.mrb[97].mxu1 }
 0x1a3   :  { %v1483_v36 = vpop.f32.mrb[98].mxu0  ;;  %v1971_v37 = vpop.f32.mrb[98].mxu1 }
 0x1a4   :  { %v2302_v38 = vmax.f32 %v1481_v30, 0.0  ;;  %v1484_v39 = vadd.f32 %v6097_v62, %v1483_v36  ;;  %v4664_v40 = vpop.f32.mrb[99].mxu0  ;;  %v2424_v41 = vmax.f32 %v1969_v33, 0.0  ;;  %v1972_v42 = vadd.f32 %v6097_v62, %v1971_v37  ;;  %v4908_v43 = vpop.f32.mrb[99].mxu1  ;;  %v5168_v36 = vld [vmem:[%s7172_s0 + $0x1b0] sm:$0xff]  }
 0x1a6   :  { %v4242_v44 = vpack.c.bf16 %v2302_v38, %v2302_v38  ;;  %v2303_v45 = vmax.f32 %v1484_v39, 0.0  ;;  %4770 = vmatmul.mubr.msk.bf16.gmra.mrb[204].mxu0 %vm890_vm1, %v5162_v32  ;;  %v4364_v46 = vpack.c.bf16 %v2424_v41, %v2424_v41  ;;  %v2425_v47 = vmax.f32 %v1972_v42, 0.0  ;;  %5014 = vmatmul.mubr.msk.bf16.gmra.mrb[204].mxu1 %vm890_vm1, %v5163_v35  ;;  %v5169_v39 = vld [vmem:[%s7172_s0 + $0x398] sm:$0xff]  }
 0x1a7   :  { %4773 = vmatprep.mubr.msk.bf16.mxu0 %vm5185_vm0, %v5184_v0  ;;  %5017 = vmatprep.mubr.msk.bf16.mxu1 %vm5185_vm0, %v5184_v0 }
 0x1a8   :  { %3509 = vst.msk [vmem:[%s7174_s3 + $0xc0] sm:$0xf] %vm3460_vm2, %v4242_v44  ;;  %v4243_v48 = vpack.c.bf16 %v2303_v45, %v2303_v45  ;;  %3631 = vst.msk [vmem:[%s7174_s3 + $0x2a8] sm:$0xf] %vm3460_vm2, %v4364_v46  ;;  %v4365_v49 = vpack.c.bf16 %v2425_v47, %v2425_v47 }
 0x1a9   :  { %v1488_v50 = vpop.f32.mrb[100].mxu0  ;;  %v1976_v51 = vpop.f32.mrb[100].mxu1 }
 0x1aa   :  { %3510 = vst.msk [vmem:[%s7174_s3 + $0xc4] sm:$0xf] %vm3460_vm2, %v4243_v48  ;;  %v1489_v52 = vadd.f32 %v6097_v62, %v1488_v50  ;;  %v4667_v53 = vpop.f32.mrb[101].mxu0  ;;  %3632 = vst.msk [vmem:[%s7174_s3 + $0x2ac] sm:$0xf] %vm3460_vm2, %v4365_v49  ;;  %v1977_v55 = vadd.f32 %v6097_v62, %v1976_v51  ;;  %v4911_v56 = vpop.f32.mrb[101].mxu1 }
 0x1ab   :  { %v1491_v58 = vpop.f32.mrb[102].mxu0  ;;  %v1979_v59 = vpop.f32.mrb[102].mxu1 }
 0x1ac   :  { %v2304_v60 = vmax.f32 %v1489_v52, 0.0  ;;  %v1492_v61 = vadd.f32 %v6097_v62, %v1491_v58  ;;  %v4668_v63 = vpop.f32.mrb[103].mxu0  ;;  %v2426_v1 = vmax.f32 %v1977_v55, 0.0  ;;  %v1980_v2 = vadd.f32 %v6097_v62, %v1979_v59  ;;  %v4912_v3 = vpop.f32.mrb[103].mxu1  ;;  %v5170_v58 = vld [vmem:[%s7172_s0 + $0x1b8] sm:$0xff]  }
 0x1ae   :  { %v4244_v4 = vpack.c.bf16 %v2304_v60, %v2304_v60  ;;  %v2305_v5 = vmax.f32 %v1492_v61, 0.0  ;;  %4774 = vmatmul.mubr.msk.bf16.gmra.mrb[208].mxu0 %vm890_vm1, %v5164_v54  ;;  %v4366_v6 = vpack.c.bf16 %v2426_v1, %v2426_v1  ;;  %v2427_v7 = vmax.f32 %v1980_v2, 0.0  ;;  %5018 = vmatmul.mubr.msk.bf16.gmra.mrb[208].mxu1 %vm890_vm1, %v5165_v57  ;;  %v5171_v61 = vld [vmem:[%s7172_s0 + $0x3a0] sm:$0xff]  }
 0x1af   :  { %4777 = vmatprep.mubr.msk.bf16.mxu0 %vm5185_vm0, %v5184_v0  ;;  %5021 = vmatprep.mubr.msk.bf16.mxu1 %vm5185_vm0, %v5184_v0 }
 0x1b0   :  { %3511 = vst.msk [vmem:[%s7174_s3 + $0xc8] sm:$0xf] %vm3460_vm2, %v4244_v4  ;;  %v4245_v8 = vpack.c.bf16 %v2305_v5, %v2305_v5  ;;  %3633 = vst.msk [vmem:[%s7174_s3 + $0x2b0] sm:$0xf] %vm3460_vm2, %v4366_v6  ;;  %v4367_v9 = vpack.c.bf16 %v2427_v7, %v2427_v7 }
 0x1b1   :  { %v1496_v10 = vpop.f32.mrb[104].mxu0  ;;  %v1984_v11 = vpop.f32.mrb[104].mxu1 }
 0x1b2   :  { %3512 = vst.msk [vmem:[%s7174_s3 + $0xcc] sm:$0xf] %vm3460_vm2, %v4245_v8  ;;  %v1497_v12 = vadd.f32 %v6097_v62, %v1496_v10  ;;  %v4671_v13 = vpop.f32.mrb[105].mxu0  ;;  %3634 = vst.msk [vmem:[%s7174_s3 + $0x2b4] sm:$0xf] %vm3460_vm2, %v4367_v9  ;;  %v1985_v15 = vadd.f32 %v6097_v62, %v1984_v11  ;;  %v4915_v16 = vpop.f32.mrb[105].mxu1 }
 0x1b3   :  { %v1499_v18 = vpop.f32.mrb[106].mxu0  ;;  %v1987_v19 = vpop.f32.mrb[106].mxu1 }
 0x1b4   :  { %v2306_v20 = vmax.f32 %v1497_v12, 0.0  ;;  %v1500_v21 = vadd.f32 %v6097_v62, %v1499_v18  ;;  %v4672_v22 = vpop.f32.mrb[107].mxu0  ;;  %v2428_v23 = vmax.f32 %v1985_v15, 0.0  ;;  %v1988_v24 = vadd.f32 %v6097_v62, %v1987_v19  ;;  %v4916_v25 = vpop.f32.mrb[107].mxu1  ;;  %v5172_v18 = vld [vmem:[%s7172_s0 + $0x1c0] sm:$0xff]  }
 0x1b6   :  { %v4246_v26 = vpack.c.bf16 %v2306_v20, %v2306_v20  ;;  %v2307_v27 = vmax.f32 %v1500_v21, 0.0  ;;  %4778 = vmatmul.mubr.msk.bf16.gmra.mrb[212].mxu0 %vm890_vm1, %v5166_v14  ;;  %v4368_v28 = vpack.c.bf16 %v2428_v23, %v2428_v23  ;;  %v2429_v29 = vmax.f32 %v1988_v24, 0.0  ;;  %5022 = vmatmul.mubr.msk.bf16.gmra.mrb[212].mxu1 %vm890_vm1, %v5167_v17  ;;  %v5173_v21 = vld [vmem:[%s7172_s0 + $0x3a8] sm:$0xff]  }
 0x1b7   :  { %4781 = vmatprep.mubr.msk.bf16.mxu0 %vm5185_vm0, %v5184_v0  ;;  %5025 = vmatprep.mubr.msk.bf16.mxu1 %vm5185_vm0, %v5184_v0 }
 0x1b8   :  { %3513 = vst.msk [vmem:[%s7174_s3 + $0xd0] sm:$0xf] %vm3460_vm2, %v4246_v26  ;;  %v4247_v30 = vpack.c.bf16 %v2307_v27, %v2307_v27  ;;  %3635 = vst.msk [vmem:[%s7174_s3 + $0x2b8] sm:$0xf] %vm3460_vm2, %v4368_v28  ;;  %v4369_v31 = vpack.c.bf16 %v2429_v29, %v2429_v29 }
 0x1b9   :  { %v1504_v32 = vpop.f32.mrb[108].mxu0  ;;  %v1992_v33 = vpop.f32.mrb[108].mxu1 }
 0x1ba   :  { %3514 = vst.msk [vmem:[%s7174_s3 + $0xd4] sm:$0xf] %vm3460_vm2, %v4247_v30  ;;  %v1505_v34 = vadd.f32 %v6097_v62, %v1504_v32  ;;  %v4675_v35 = vpop.f32.mrb[109].mxu0  ;;  %3636 = vst.msk [vmem:[%s7174_s3 + $0x2bc] sm:$0xf] %vm3460_vm2, %v4369_v31  ;;  %v1993_v37 = vadd.f32 %v6097_v62, %v1992_v33  ;;  %v4919_v38 = vpop.f32.mrb[109].mxu1 }
 0x1bb   :  { %v1507_v40 = vpop.f32.mrb[110].mxu0  ;;  %v1995_v41 = vpop.f32.mrb[110].mxu1 }
 0x1bc   :  { %v2308_v42 = vmax.f32 %v1505_v34, 0.0  ;;  %v1508_v43 = vadd.f32 %v6097_v62, %v1507_v40  ;;  %v4676_v44 = vpop.f32.mrb[111].mxu0  ;;  %v2430_v45 = vmax.f32 %v1993_v37, 0.0  ;;  %v1996_v46 = vadd.f32 %v6097_v62, %v1995_v41  ;;  %v4920_v47 = vpop.f32.mrb[111].mxu1  ;;  %v5174_v40 = vld [vmem:[%s7172_s0 + $0x1c8] sm:$0xff]  }
 0x1be   :  { %v4248_v48 = vpack.c.bf16 %v2308_v42, %v2308_v42  ;;  %v2309_v49 = vmax.f32 %v1508_v43, 0.0  ;;  %4782 = vmatmul.mubr.msk.bf16.gmra.mrb[216].mxu0 %vm890_vm1, %v5168_v36  ;;  %v4370_v50 = vpack.c.bf16 %v2430_v45, %v2430_v45  ;;  %v2431_v51 = vmax.f32 %v1996_v46, 0.0  ;;  %5026 = vmatmul.mubr.msk.bf16.gmra.mrb[216].mxu1 %vm890_vm1, %v5169_v39  ;;  %v5175_v43 = vld [vmem:[%s7172_s0 + $0x3b0] sm:$0xff]  }
 0x1bf   :  { %4785 = vmatprep.mubr.msk.bf16.mxu0 %vm5185_vm0, %v5184_v0  ;;  %5029 = vmatprep.mubr.msk.bf16.mxu1 %vm5185_vm0, %v5184_v0 }
 0x1c0   :  { %3515 = vst.msk [vmem:[%s7174_s3 + $0xd8] sm:$0xf] %vm3460_vm2, %v4248_v48  ;;  %v4249_v52 = vpack.c.bf16 %v2309_v49, %v2309_v49  ;;  %3637 = vst.msk [vmem:[%s7174_s3 + $0x2c0] sm:$0xf] %vm3460_vm2, %v4370_v50  ;;  %v4371_v53 = vpack.c.bf16 %v2431_v51, %v2431_v51 }
 0x1c1   :  { %v1512_v54 = vpop.f32.mrb[112].mxu0  ;;  %v2000_v55 = vpop.f32.mrb[112].mxu1 }
 0x1c2   :  { %3516 = vst.msk [vmem:[%s7174_s3 + $0xdc] sm:$0xf] %vm3460_vm2, %v4249_v52  ;;  %v1513_v56 = vadd.f32 %v6097_v62, %v1512_v54  ;;  %v4679_v57 = vpop.f32.mrb[113].mxu0  ;;  %3638 = vst.msk [vmem:[%s7174_s3 + $0x2c4] sm:$0xf] %vm3460_vm2, %v4371_v53  ;;  %v2001_v59 = vadd.f32 %v6097_v62, %v2000_v55  ;;  %v4923_v60 = vpop.f32.mrb[113].mxu1 }
 0x1c3   :  { %v1515_v63 = vpop.f32.mrb[114].mxu0  ;;  %v2003_v1 = vpop.f32.mrb[114].mxu1 }
 0x1c4   :  { %v2310_v2 = vmax.f32 %v1513_v56, 0.0  ;;  %v1516_v3 = vadd.f32 %v6097_v62, %v1515_v63  ;;  %v4680_v4 = vpop.f32.mrb[115].mxu0  ;;  %v2432_v5 = vmax.f32 %v2001_v59, 0.0  ;;  %v2004_v6 = vadd.f32 %v6097_v62, %v2003_v1  ;;  %v4924_v7 = vpop.f32.mrb[115].mxu1  ;;  %v5176_v63 = vld [vmem:[%s7172_s0 + $0x1d0] sm:$0xff]  }
 0x1c6   :  { %v4250_v8 = vpack.c.bf16 %v2310_v2, %v2310_v2  ;;  %v2311_v9 = vmax.f32 %v1516_v3, 0.0  ;;  %4786 = vmatmul.mubr.msk.bf16.gmra.mrb[220].mxu0 %vm890_vm1, %v5170_v58  ;;  %v4372_v10 = vpack.c.bf16 %v2432_v5, %v2432_v5  ;;  %v2433_v11 = vmax.f32 %v2004_v6, 0.0  ;;  %5030 = vmatmul.mubr.msk.bf16.gmra.mrb[220].mxu1 %vm890_vm1, %v5171_v61  ;;  %v5177_v3 = vld [vmem:[%s7172_s0 + $0x3b8] sm:$0xff]  }
 0x1c7   :  { %4789 = vmatprep.mubr.msk.bf16.mxu0 %vm5185_vm0, %v5184_v0  ;;  %5033 = vmatprep.mubr.msk.bf16.mxu1 %vm5185_vm0, %v5184_v0 }
 0x1c8   :  { %3517 = vst.msk [vmem:[%s7174_s3 + $0xe0] sm:$0xf] %vm3460_vm2, %v4250_v8  ;;  %v4251_v12 = vpack.c.bf16 %v2311_v9, %v2311_v9  ;;  %3639 = vst.msk [vmem:[%s7174_s3 + $0x2c8] sm:$0xf] %vm3460_vm2, %v4372_v10  ;;  %v4373_v13 = vpack.c.bf16 %v2433_v11, %v2433_v11 }
 0x1c9   :  { %v1520_v14 = vpop.f32.mrb[116].mxu0  ;;  %v2008_v15 = vpop.f32.mrb[116].mxu1 }
 0x1ca   :  { %3518 = vst.msk [vmem:[%s7174_s3 + $0xe4] sm:$0xf] %vm3460_vm2, %v4251_v12  ;;  %v1521_v16 = vadd.f32 %v6097_v62, %v1520_v14  ;;  %v4683_v17 = vpop.f32.mrb[117].mxu0  ;;  %3640 = vst.msk [vmem:[%s7174_s3 + $0x2cc] sm:$0xf] %vm3460_vm2, %v4373_v13  ;;  %v2009_v19 = vadd.f32 %v6097_v62, %v2008_v15  ;;  %v4927_v20 = vpop.f32.mrb[117].mxu1 }
 0x1cb   :  { %v1523_v22 = vpop.f32.mrb[118].mxu0  ;;  %v2011_v23 = vpop.f32.mrb[118].mxu1 }
 0x1cc   :  { %v2312_v24 = vmax.f32 %v1521_v16, 0.0  ;;  %v1524_v25 = vadd.f32 %v6097_v62, %v1523_v22  ;;  %v4684_v26 = vpop.f32.mrb[119].mxu0  ;;  %v2434_v27 = vmax.f32 %v2009_v19, 0.0  ;;  %v2012_v28 = vadd.f32 %v6097_v62, %v2011_v23  ;;  %v4928_v29 = vpop.f32.mrb[119].mxu1  ;;  %v5178_v22 = vld [vmem:[%s7172_s0 + $0x1d8] sm:$0xff]  }
 0x1ce   :  { %v4252_v30 = vpack.c.bf16 %v2312_v24, %v2312_v24  ;;  %v2313_v31 = vmax.f32 %v1524_v25, 0.0  ;;  %4790 = vmatmul.mubr.msk.bf16.gmra.mrb[224].mxu0 %vm890_vm1, %v5172_v18  ;;  %v4374_v32 = vpack.c.bf16 %v2434_v27, %v2434_v27  ;;  %v2435_v33 = vmax.f32 %v2012_v28, 0.0  ;;  %5034 = vmatmul.mubr.msk.bf16.gmra.mrb[224].mxu1 %vm890_vm1, %v5173_v21  ;;  %v5179_v25 = vld [vmem:[%s7172_s0 + $0x3c0] ss:$0 sps:$4 sm:$0x11]  }
 0x1cf   :  { %4793 = vmatprep.mubr.msk.bf16.mxu0 %vm5185_vm0, %v5184_v0  ;;  %5037 = vmatprep.mubr.msk.bf16.mxu1 %vm5185_vm0, %v5184_v0 }
 0x1d0   :  { %3519 = vst.msk [vmem:[%s7174_s3 + $0xe8] sm:$0xf] %vm3460_vm2, %v4252_v30  ;;  %v4253_v34 = vpack.c.bf16 %v2313_v31, %v2313_v31  ;;  %3641 = vst.msk [vmem:[%s7174_s3 + $0x2d0] sm:$0xf] %vm3460_vm2, %v4374_v32  ;;  %v4375_v35 = vpack.c.bf16 %v2435_v33, %v2435_v33 }
 0x1d1   :  { %v1528_v36 = vpop.f32.mrb[120].mxu0  ;;  %v2016_v37 = vpop.f32.mrb[120].mxu1 }
 0x1d2   :  { %3520 = vst.msk [vmem:[%s7174_s3 + $0xec] sm:$0xf] %vm3460_vm2, %v4253_v34  ;;  %v1529_v38 = vadd.f32 %v6097_v62, %v1528_v36  ;;  %v4687_v39 = vpop.f32.mrb[121].mxu0  ;;  %3642 = vst.msk [vmem:[%s7174_s3 + $0x2d4] sm:$0xf] %vm3460_vm2, %v4375_v35  ;;  %v2017_v41 = vadd.f32 %v6097_v62, %v2016_v37  ;;  %v4931_v42 = vpop.f32.mrb[121].mxu1 }
 0x1d3   :  { %v1531_v44 = vpop.f32.mrb[122].mxu0  ;;  %v2019_v45 = vpop.f32.mrb[122].mxu1 }
 0x1d4   :  { %v2314_v46 = vmax.f32 %v1529_v38, 0.0  ;;  %v1532_v47 = vadd.f32 %v6097_v62, %v1531_v44  ;;  %v4688_v48 = vpop.f32.mrb[123].mxu0  ;;  %v2436_v49 = vmax.f32 %v2017_v41, 0.0  ;;  %v2020_v50 = vadd.f32 %v6097_v62, %v2019_v45  ;;  %v4932_v51 = vpop.f32.mrb[123].mxu1 }
 0x1d6   :  { %v4254_v52 = vpack.c.bf16 %v2314_v46, %v2314_v46  ;;  %v2315_v53 = vmax.f32 %v1532_v47, 0.0  ;;  %4794 = vmatmul.mubr.msk.bf16.gmra.mrb[228].mxu0 %vm890_vm1, %v5174_v40  ;;  %v4376_v54 = vpack.c.bf16 %v2436_v49, %v2436_v49  ;;  %v2437_v55 = vmax.f32 %v2020_v50, 0.0  ;;  %5038 = vmatmul.mubr.msk.bf16.gmra.mrb[228].mxu1 %vm890_vm1, %v5175_v43  ;;  %v5180_v43 = vld [vmem:[%s7172_s0 + $0x1e0] sm:$0xff]  }
 0x1d7   :  { %4797 = vmatprep.mubr.msk.bf16.mxu0 %vm5185_vm0, %v5184_v0  ;;  %5041 = vmatprep.mubr.msk.bf16.mxu1 %vm5185_vm0, %v5184_v0 }
 0x1d8   :  { %3521 = vst.msk [vmem:[%s7174_s3 + $0xf0] sm:$0xf] %vm3460_vm2, %v4254_v52  ;;  %v4255_v56 = vpack.c.bf16 %v2315_v53, %v2315_v53  ;;  %3643 = vst.msk [vmem:[%s7174_s3 + $0x2d8] sm:$0xf] %vm3460_vm2, %v4376_v54  ;;  %v4377_v57 = vpack.c.bf16 %v2437_v55, %v2437_v55 }
 0x1d9   :  { %v1536_v58 = vpop.f32.mrb[124].mxu0  ;;  %v2024_v59 = vpop.f32.mrb[124].mxu1 }
 0x1da   :  { %3522 = vst.msk [vmem:[%s7174_s3 + $0xf4] sm:$0xf] %vm3460_vm2, %v4255_v56  ;;  %v1537_v60 = vadd.f32 %v6097_v62, %v1536_v58  ;;  %v4691_v61 = vpop.f32.mrb[125].mxu0  ;;  %3644 = vst.msk [vmem:[%s7174_s3 + $0x2dc] sm:$0xf] %vm3460_vm2, %v4377_v57  ;;  %v2025_v1 = vadd.f32 %v6097_v62, %v2024_v59  ;;  %v4935_v2 = vpop.f32.mrb[125].mxu1 }
 0x1db   :  { %v1539_v4 = vpop.f32.mrb[126].mxu0  ;;  %v2027_v5 = vpop.f32.mrb[126].mxu1 }
 0x1dc   :  { %v2316_v6 = vmax.f32 %v1537_v60, 0.0  ;;  %v1540_v7 = vadd.f32 %v6097_v62, %v1539_v4  ;;  %v4692_v8 = vpop.f32.mrb[127].mxu0  ;;  %v2438_v9 = vmax.f32 %v2025_v1, 0.0  ;;  %v2028_v10 = vadd.f32 %v6097_v62, %v2027_v5  ;;  %v4936_v11 = vpop.f32.mrb[127].mxu1 }
 0x1de   :  { %v4256_v12 = vpack.c.bf16 %v2316_v6, %v2316_v6  ;;  %v2317_v13 = vmax.f32 %v1540_v7, 0.0  ;;  %4798 = vmatmul.mubr.msk.bf16.gmra.mrb[232].mxu0 %vm890_vm1, %v5176_v63  ;;  %v4378_v14 = vpack.c.bf16 %v2438_v9, %v2438_v9  ;;  %v2439_v15 = vmax.f32 %v2028_v10, 0.0  ;;  %5042 = vmatmul.mubr.msk.bf16.gmra.mrb[232].mxu1 %vm890_vm1, %v5177_v3  ;;  %v6642_v7 = vld [vmem:[%s7173_s2] ss:$0 sm:$0xff] }
 0x1df   :  { %4801 = vmatprep.mubr.msk.bf16.mxu0 %vm5185_vm0, %v5184_v0  ;;  %5045 = vmatprep.mubr.msk.bf16.mxu1 %vm5185_vm0, %v5184_v0 }
 0x1e0   :  { %3523 = vst.msk [vmem:[%s7174_s3 + $0xf8] sm:$0xf] %vm3460_vm2, %v4256_v12  ;;  %v4257_v16 = vpack.c.bf16 %v2317_v13, %v2317_v13  ;;  %3645 = vst.msk [vmem:[%s7174_s3 + $0x2e0] sm:$0xf] %vm3460_vm2, %v4378_v14  ;;  %v4379_v17 = vpack.c.bf16 %v2439_v15, %v2439_v15 }
 0x1e1   :  { %v1544_v18 = vpop.f32.mrb[128].mxu0  ;;  %v2032_v19 = vpop.f32.mrb[128].mxu1 }
 0x1e2   :  { %3524 = vst.msk [vmem:[%s7174_s3 + $0xfc] sm:$0xf] %vm3460_vm2, %v4257_v16  ;;  %v1545_v20 = vadd.f32 %v6097_v62, %v1544_v18  ;;  %v4695_v21 = vpop.f32.mrb[129].mxu0  ;;  %3646 = vst.msk [vmem:[%s7174_s3 + $0x2e4] sm:$0xf] %vm3460_vm2, %v4379_v17  ;;  %v2033_v23 = vadd.f32 %v6097_v62, %v2032_v19  ;;  %v4939_v24 = vpop.f32.mrb[129].mxu1 }
 0x1e3   :  { %v1547_v26 = vpop.f32.mrb[130].mxu0  ;;  %v2035_v27 = vpop.f32.mrb[130].mxu1 }
 0x1e4   :  { %v2318_v28 = vmax.f32 %v1545_v20, 0.0  ;;  %v1548_v29 = vadd.f32 %v6097_v62, %v1547_v26  ;;  %v4696_v30 = vpop.f32.mrb[131].mxu0  ;;  %v2440_v31 = vmax.f32 %v2033_v23, 0.0  ;;  %v2036_v32 = vadd.f32 %v6097_v62, %v2035_v27  ;;  %v4940_v33 = vpop.f32.mrb[131].mxu1 }
 0x1e6   :  { %v4258_v34 = vpack.c.bf16 %v2318_v28, %v2318_v28  ;;  %v2319_v35 = vmax.f32 %v1548_v29, 0.0  ;;  %4802 = vmatmul.mubr.msk.bf16.gmra.mrb[236].mxu0 %vm890_vm1, %v5178_v22  ;;  %v4380_v36 = vpack.c.bf16 %v2440_v31, %v2440_v31  ;;  %v2441_v37 = vmax.f32 %v2036_v32, 0.0  ;;  %5046 = vmatmul.mubr.msk.bf16.gmra.mrb[236].mxu1 %vm890_vm1, %v5179_v25 }
 0x1e7   :  { %4805 = vmatprep.mubr.msk.bf16.mxu0 %vm5185_vm0, %v5184_v0 }
 0x1e8   :  { %3525 = vst.msk [vmem:[%s7174_s3 + $0x100] sm:$0xf] %vm3460_vm2, %v4258_v34  ;;  %v4259_v38 = vpack.c.bf16 %v2319_v35, %v2319_v35  ;;  %3647 = vst.msk [vmem:[%s7174_s3 + $0x2e8] sm:$0xf] %vm3460_vm2, %v4380_v36  ;;  %v4381_v39 = vpack.c.bf16 %v2441_v37, %v2441_v37 }
 0x1e9   :  { %v1552_v40 = vpop.f32.mrb[132].mxu0  ;;  %v2040_v41 = vpop.f32.mrb[132].mxu1 }
 0x1ea   :  { %3526 = vst.msk [vmem:[%s7174_s3 + $0x104] sm:$0xf] %vm3460_vm2, %v4259_v38  ;;  %v1553_v0 = vadd.f32 %v6097_v62, %v1552_v40  ;;  %v4699_v42 = vpop.f32.mrb[133].mxu0  ;;  %3648 = vst.msk [vmem:[%s7174_s3 + $0x2ec] sm:$0xf] %vm3460_vm2, %v4381_v39  ;;  %v2041_v44 = vadd.f32 %v6097_v62, %v2040_v41  ;;  %v4943_v45 = vpop.f32.mrb[133].mxu1 }
 0x1eb   :  { %v1555_v46 = vpop.f32.mrb[134].mxu0  ;;  %v2043_v47 = vpop.f32.mrb[134].mxu1 }
 0x1ec   :  { %v2320_v48 = vmax.f32 %v1553_v0, 0.0  ;;  %v1556_v49 = vadd.f32 %v6097_v62, %v1555_v46  ;;  %v4700_v50 = vpop.f32.mrb[135].mxu0  ;;  %v2442_v51 = vmax.f32 %v2041_v44, 0.0  ;;  %v2044_v52 = vadd.f32 %v6097_v62, %v2043_v47  ;;  %v4944_v53 = vpop.f32.mrb[135].mxu1 }
 0x1ee   :  { %v4260_v54 = vpack.c.bf16 %v2320_v48, %v2320_v48  ;;  %v2321_v55 = vmax.f32 %v1556_v49, 0.0  ;;  %4806 = vmatmul.mubr.msk.bf16.gmra.mrb[240].mxu0 %vm890_vm1, %v5180_v43  ;;  %v4382_v56 = vpack.c.bf16 %v2442_v51, %v2442_v51  ;;  %v2443_v57 = vmax.f32 %v2044_v52, 0.0 }
 0x1f0   :  { %3527 = vst.msk [vmem:[%s7174_s3 + $0x108] sm:$0xf] %vm3460_vm2, %v4260_v54  ;;  %v4261_v58 = vpack.c.bf16 %v2321_v55, %v2321_v55  ;;  %3649 = vst.msk [vmem:[%s7174_s3 + $0x2f0] sm:$0xf] %vm3460_vm2, %v4382_v56  ;;  %v4383_v59 = vpack.c.bf16 %v2443_v57, %v2443_v57 }
 0x1f1   :  { %v1560_v60 = vpop.f32.mrb[136].mxu0  ;;  %v2048_v61 = vpop.f32.mrb[136].mxu1 }
 0x1f2   :  { %3528 = vst.msk [vmem:[%s7174_s3 + $0x10c] sm:$0xf] %vm3460_vm2, %v4261_v58  ;;  %v1561_v63 = vadd.f32 %v6097_v62, %v1560_v60  ;;  %v4703_v1 = vpop.f32.mrb[137].mxu0  ;;  %3650 = vst.msk [vmem:[%s7174_s3 + $0x2f4] sm:$0xf] %vm3460_vm2, %v4383_v59  ;;  %v2049_v2 = vadd.f32 %v6097_v62, %v2048_v61  ;;  %v4947_v3 = vpop.f32.mrb[137].mxu1 }
 0x1f3   :  { %v1563_v4 = vpop.f32.mrb[138].mxu0  ;;  %v2051_v5 = vpop.f32.mrb[138].mxu1 }
 0x1f4   :  { %v2322_v6 = vmax.f32 %v1561_v63, 0.0  ;;  %v1564_v8 = vadd.f32 %v6642_v7, %v1563_v4  ;;  %v4704_v9 = vpop.f32.mrb[139].mxu0  ;;  %v2444_v10 = vmax.f32 %v2049_v2, 0.0  ;;  %v2052_v11 = vadd.f32 %v6642_v7, %v2051_v5  ;;  %v4948_v12 = vpop.f32.mrb[139].mxu1 }
 0x1f6   :  { %v4262_v13 = vpack.c.bf16 %v2322_v6, %v2322_v6  ;;  %v2323_v14 = vmax.f32 %v1564_v8, 0.0  ;;  %v4384_v15 = vpack.c.bf16 %v2444_v10, %v2444_v10  ;;  %v2445_v62 = vmax.f32 %v2052_v11, 0.0 }
 0x1f8   :  { %3529 = vst.msk [vmem:[%s7174_s3 + $0x110] sm:$0xf] %vm3460_vm2, %v4262_v13  ;;  %v4263_v16 = vpack.c.bf16 %v2323_v14, %v2323_v14  ;;  %3651 = vst.msk [vmem:[%s7174_s3 + $0x2f8] sm:$0xf] %vm3460_vm2, %v4384_v15  ;;  %v4385_v17 = vpack.c.bf16 %v2445_v62, %v2445_v62 }
 0x1f9   :  { %v1568_v18 = vpop.f32.mrb[140].mxu0  ;;  %v2056_v19 = vpop.f32.mrb[140].mxu1 }
 0x1fa   :  { %3530 = vst.msk [vmem:[%s7174_s3 + $0x114] sm:$0xf] %vm3460_vm2, %v4263_v16  ;;  %v1569_v20 = vadd.f32 %v6642_v7, %v1568_v18  ;;  %v4707_v21 = vpop.f32.mrb[141].mxu0  ;;  %3652 = vst.msk [vmem:[%s7174_s3 + $0x2fc] sm:$0xf] %vm3460_vm2, %v4385_v17  ;;  %v2057_v22 = vadd.f32 %v6642_v7, %v2056_v19  ;;  %v4951_v23 = vpop.f32.mrb[141].mxu1 }
 0x1fb   :  { %v1571_v24 = vpop.f32.mrb[142].mxu0  ;;  %v2059_v25 = vpop.f32.mrb[142].mxu1 }
 0x1fc   :  { %v2324_v26 = vmax.f32 %v1569_v20, 0.0  ;;  %v1572_v27 = vadd.f32 %v6642_v7, %v1571_v24  ;;  %v4708_v28 = vpop.f32.mrb[143].mxu0  ;;  %v2446_v29 = vmax.f32 %v2057_v22, 0.0  ;;  %v2060_v30 = vadd.f32 %v6642_v7, %v2059_v25  ;;  %v4952_v31 = vpop.f32.mrb[143].mxu1 }
 0x1fe   :  { %v4264_v32 = vpack.c.bf16 %v2324_v26, %v2324_v26  ;;  %v2325_v33 = vmax.f32 %v1572_v27, 0.0  ;;  %v4386_v34 = vpack.c.bf16 %v2446_v29, %v2446_v29  ;;  %v2447_v35 = vmax.f32 %v2060_v30, 0.0 }
 0x200   :  { %3531 = vst.msk [vmem:[%s7174_s3 + $0x118] sm:$0xf] %vm3460_vm2, %v4264_v32  ;;  %v4265_v36 = vpack.c.bf16 %v2325_v33, %v2325_v33  ;;  %3653 = vst.msk [vmem:[%s7174_s3 + $0x300] sm:$0xf] %vm3460_vm2, %v4386_v34  ;;  %v4387_v37 = vpack.c.bf16 %v2447_v35, %v2447_v35 }
 0x201   :  { %v1576_v38 = vpop.f32.mrb[144].mxu0  ;;  %v2064_v39 = vpop.f32.mrb[144].mxu1 }
 0x202   :  { %3532 = vst.msk [vmem:[%s7174_s3 + $0x11c] sm:$0xf] %vm3460_vm2, %v4265_v36  ;;  %v1577_v40 = vadd.f32 %v6642_v7, %v1576_v38  ;;  %v4711_v41 = vpop.f32.mrb[145].mxu0  ;;  %3654 = vst.msk [vmem:[%s7174_s3 + $0x304] sm:$0xf] %vm3460_vm2, %v4387_v37  ;;  %v2065_v0 = vadd.f32 %v6642_v7, %v2064_v39  ;;  %v4955_v42 = vpop.f32.mrb[145].mxu1 }
 0x203   :  { %v1579_v43 = vpop.f32.mrb[146].mxu0  ;;  %v2067_v44 = vpop.f32.mrb[146].mxu1 }
 0x204   :  { %v2326_v45 = vmax.f32 %v1577_v40, 0.0  ;;  %v1580_v46 = vadd.f32 %v6642_v7, %v1579_v43  ;;  %v4712_v47 = vpop.f32.mrb[147].mxu0  ;;  %v2448_v48 = vmax.f32 %v2065_v0, 0.0  ;;  %v2068_v49 = vadd.f32 %v6642_v7, %v2067_v44  ;;  %v4956_v50 = vpop.f32.mrb[147].mxu1 }
 0x206   :  { %v4266_v51 = vpack.c.bf16 %v2326_v45, %v2326_v45  ;;  %v2327_v52 = vmax.f32 %v1580_v46, 0.0  ;;  %v4388_v53 = vpack.c.bf16 %v2448_v48, %v2448_v48  ;;  %v2449_v54 = vmax.f32 %v2068_v49, 0.0 }
 0x208   :  { %3533 = vst.msk [vmem:[%s7174_s3 + $0x120] sm:$0xf] %vm3460_vm2, %v4266_v51  ;;  %v4267_v55 = vpack.c.bf16 %v2327_v52, %v2327_v52  ;;  %3655 = vst.msk [vmem:[%s7174_s3 + $0x308] sm:$0xf] %vm3460_vm2, %v4388_v53  ;;  %v4389_v56 = vpack.c.bf16 %v2449_v54, %v2449_v54 }
 0x209   :  { %v1584_v57 = vpop.f32.mrb[148].mxu0  ;;  %v2072_v58 = vpop.f32.mrb[148].mxu1 }
 0x20a   :  { %3534 = vst.msk [vmem:[%s7174_s3 + $0x124] sm:$0xf] %vm3460_vm2, %v4267_v55  ;;  %v1585_v59 = vadd.f32 %v6642_v7, %v1584_v57  ;;  %v4715_v60 = vpop.f32.mrb[149].mxu0  ;;  %3656 = vst.msk [vmem:[%s7174_s3 + $0x30c] sm:$0xf] %vm3460_vm2, %v4389_v56  ;;  %v2073_v61 = vadd.f32 %v6642_v7, %v2072_v58  ;;  %v4959_v63 = vpop.f32.mrb[149].mxu1 }
 0x20b   :  { %v1587_v1 = vpop.f32.mrb[150].mxu0  ;;  %v2075_v2 = vpop.f32.mrb[150].mxu1 }
 0x20c   :  { %v2328_v3 = vmax.f32 %v1585_v59, 0.0  ;;  %v1588_v4 = vadd.f32 %v6642_v7, %v1587_v1  ;;  %v4716_v5 = vpop.f32.mrb[151].mxu0  ;;  %v2450_v6 = vmax.f32 %v2073_v61, 0.0  ;;  %v2076_v8 = vadd.f32 %v6642_v7, %v2075_v2  ;;  %v4960_v9 = vpop.f32.mrb[151].mxu1 }
 0x20e   :  { %v4268_v10 = vpack.c.bf16 %v2328_v3, %v2328_v3  ;;  %v2329_v11 = vmax.f32 %v1588_v4, 0.0  ;;  %v4390_v12 = vpack.c.bf16 %v2450_v6, %v2450_v6  ;;  %v2451_v13 = vmax.f32 %v2076_v8, 0.0 }
 0x210   :  { %3535 = vst.msk [vmem:[%s7174_s3 + $0x128] sm:$0xf] %vm3460_vm2, %v4268_v10  ;;  %v4269_v14 = vpack.c.bf16 %v2329_v11, %v2329_v11  ;;  %3657 = vst.msk [vmem:[%s7174_s3 + $0x310] sm:$0xf] %vm3460_vm2, %v4390_v12  ;;  %v4391_v15 = vpack.c.bf16 %v2451_v13, %v2451_v13 }
 0x211   :  { %v1592_v62 = vpop.f32.mrb[152].mxu0  ;;  %v2080_v16 = vpop.f32.mrb[152].mxu1 }
 0x212   :  { %3536 = vst.msk [vmem:[%s7174_s3 + $0x12c] sm:$0xf] %vm3460_vm2, %v4269_v14  ;;  %v1593_v17 = vadd.f32 %v6642_v7, %v1592_v62  ;;  %v4719_v18 = vpop.f32.mrb[153].mxu0  ;;  %3658 = vst.msk [vmem:[%s7174_s3 + $0x314] sm:$0xf] %vm3460_vm2, %v4391_v15  ;;  %v2081_v19 = vadd.f32 %v6642_v7, %v2080_v16  ;;  %v4963_v20 = vpop.f32.mrb[153].mxu1 }
 0x213   :  { %v1595_v21 = vpop.f32.mrb[154].mxu0  ;;  %v2083_v22 = vpop.f32.mrb[154].mxu1 }
 0x214   :  { %v2330_v23 = vmax.f32 %v1593_v17, 0.0  ;;  %v1596_v24 = vadd.f32 %v6642_v7, %v1595_v21  ;;  %v4720_v25 = vpop.f32.mrb[155].mxu0  ;;  %v2452_v26 = vmax.f32 %v2081_v19, 0.0  ;;  %v2084_v27 = vadd.f32 %v6642_v7, %v2083_v22  ;;  %v4964_v28 = vpop.f32.mrb[155].mxu1 }
 0x216   :  { %v4270_v29 = vpack.c.bf16 %v2330_v23, %v2330_v23  ;;  %v2331_v30 = vmax.f32 %v1596_v24, 0.0  ;;  %v4392_v31 = vpack.c.bf16 %v2452_v26, %v2452_v26  ;;  %v2453_v32 = vmax.f32 %v2084_v27, 0.0 }
 0x218   :  { %3537 = vst.msk [vmem:[%s7174_s3 + $0x130] sm:$0xf] %vm3460_vm2, %v4270_v29  ;;  %v4271_v33 = vpack.c.bf16 %v2331_v30, %v2331_v30  ;;  %3659 = vst.msk [vmem:[%s7174_s3 + $0x318] sm:$0xf] %vm3460_vm2, %v4392_v31  ;;  %v4393_v34 = vpack.c.bf16 %v2453_v32, %v2453_v32 }
 0x219   :  { %v1600_v35 = vpop.f32.mrb[156].mxu0  ;;  %v2088_v36 = vpop.f32.mrb[156].mxu1 }
 0x21a   :  { %3538 = vst.msk [vmem:[%s7174_s3 + $0x134] sm:$0xf] %vm3460_vm2, %v4271_v33  ;;  %v1601_v37 = vadd.f32 %v6642_v7, %v1600_v35  ;;  %v4723_v38 = vpop.f32.mrb[157].mxu0  ;;  %3660 = vst.msk [vmem:[%s7174_s3 + $0x31c] sm:$0xf] %vm3460_vm2, %v4393_v34  ;;  %v2089_v39 = vadd.f32 %v6642_v7, %v2088_v36  ;;  %v4967_v40 = vpop.f32.mrb[157].mxu1 }
 0x21b   :  { %v1603_v41 = vpop.f32.mrb[158].mxu0  ;;  %v2091_v0 = vpop.f32.mrb[158].mxu1 }
 0x21c   :  { %v2332_v42 = vmax.f32 %v1601_v37, 0.0  ;;  %v1604_v43 = vadd.f32 %v6642_v7, %v1603_v41  ;;  %v4724_v44 = vpop.f32.mrb[159].mxu0  ;;  %v2454_v45 = vmax.f32 %v2089_v39, 0.0  ;;  %v2092_v46 = vadd.f32 %v6642_v7, %v2091_v0  ;;  %v4968_v47 = vpop.f32.mrb[159].mxu1 }
 0x21e   :  { %v4272_v48 = vpack.c.bf16 %v2332_v42, %v2332_v42  ;;  %v2333_v49 = vmax.f32 %v1604_v43, 0.0  ;;  %v4394_v50 = vpack.c.bf16 %v2454_v45, %v2454_v45  ;;  %v2455_v51 = vmax.f32 %v2092_v46, 0.0 }
 0x220   :  { %3539 = vst.msk [vmem:[%s7174_s3 + $0x138] sm:$0xf] %vm3460_vm2, %v4272_v48  ;;  %v4273_v52 = vpack.c.bf16 %v2333_v49, %v2333_v49  ;;  %3661 = vst.msk [vmem:[%s7174_s3 + $0x320] sm:$0xf] %vm3460_vm2, %v4394_v50  ;;  %v4395_v53 = vpack.c.bf16 %v2455_v51, %v2455_v51 }
 0x221   :  { %v1608_v54 = vpop.f32.mrb[160].mxu0  ;;  %v2096_v55 = vpop.f32.mrb[160].mxu1 }
 0x222   :  { %3540 = vst.msk [vmem:[%s7174_s3 + $0x13c] sm:$0xf] %vm3460_vm2, %v4273_v52  ;;  %v1609_v56 = vadd.f32 %v6642_v7, %v1608_v54  ;;  %v4727_v57 = vpop.f32.mrb[161].mxu0  ;;  %3662 = vst.msk [vmem:[%s7174_s3 + $0x324] sm:$0xf] %vm3460_vm2, %v4395_v53  ;;  %v2097_v58 = vadd.f32 %v6642_v7, %v2096_v55  ;;  %v4971_v59 = vpop.f32.mrb[161].mxu1 }
 0x223   :  { %v1611_v60 = vpop.f32.mrb[162].mxu0  ;;  %v2099_v61 = vpop.f32.mrb[162].mxu1 }
 0x224   :  { %v2334_v63 = vmax.f32 %v1609_v56, 0.0  ;;  %v1612_v1 = vadd.f32 %v6642_v7, %v1611_v60  ;;  %v4728_v2 = vpop.f32.mrb[163].mxu0  ;;  %v2456_v3 = vmax.f32 %v2097_v58, 0.0  ;;  %v2100_v4 = vadd.f32 %v6642_v7, %v2099_v61  ;;  %v4972_v5 = vpop.f32.mrb[163].mxu1 }
 0x226   :  { %v4274_v6 = vpack.c.bf16 %v2334_v63, %v2334_v63  ;;  %v2335_v8 = vmax.f32 %v1612_v1, 0.0  ;;  %v4396_v9 = vpack.c.bf16 %v2456_v3, %v2456_v3  ;;  %v2457_v10 = vmax.f32 %v2100_v4, 0.0 }
 0x228   :  { %3541 = vst.msk [vmem:[%s7174_s3 + $0x140] sm:$0xf] %vm3460_vm2, %v4274_v6  ;;  %v4275_v11 = vpack.c.bf16 %v2335_v8, %v2335_v8  ;;  %3663 = vst.msk [vmem:[%s7174_s3 + $0x328] sm:$0xf] %vm3460_vm2, %v4396_v9  ;;  %v4397_v12 = vpack.c.bf16 %v2457_v10, %v2457_v10 }
 0x229   :  { %v1616_v13 = vpop.f32.mrb[164].mxu0  ;;  %v2104_v14 = vpop.f32.mrb[164].mxu1 }
 0x22a   :  { %3542 = vst.msk [vmem:[%s7174_s3 + $0x144] sm:$0xf] %vm3460_vm2, %v4275_v11  ;;  %v1617_v15 = vadd.f32 %v6642_v7, %v1616_v13  ;;  %v4731_v62 = vpop.f32.mrb[165].mxu0  ;;  %3664 = vst.msk [vmem:[%s7174_s3 + $0x32c] sm:$0xf] %vm3460_vm2, %v4397_v12  ;;  %v2105_v16 = vadd.f32 %v6642_v7, %v2104_v14  ;;  %v4975_v17 = vpop.f32.mrb[165].mxu1 }
 0x22b   :  { %v1619_v18 = vpop.f32.mrb[166].mxu0  ;;  %v2107_v19 = vpop.f32.mrb[166].mxu1 }
 0x22c   :  { %v2336_v20 = vmax.f32 %v1617_v15, 0.0  ;;  %v1620_v21 = vadd.f32 %v6642_v7, %v1619_v18  ;;  %v4732_v22 = vpop.f32.mrb[167].mxu0  ;;  %v2458_v23 = vmax.f32 %v2105_v16, 0.0  ;;  %v2108_v24 = vadd.f32 %v6642_v7, %v2107_v19  ;;  %v4976_v25 = vpop.f32.mrb[167].mxu1 }
 0x22e   :  { %v4276_v26 = vpack.c.bf16 %v2336_v20, %v2336_v20  ;;  %v2337_v27 = vmax.f32 %v1620_v21, 0.0  ;;  %v4398_v28 = vpack.c.bf16 %v2458_v23, %v2458_v23  ;;  %v2459_v29 = vmax.f32 %v2108_v24, 0.0 }
 0x230   :  { %3543 = vst.msk [vmem:[%s7174_s3 + $0x148] sm:$0xf] %vm3460_vm2, %v4276_v26  ;;  %v4277_v30 = vpack.c.bf16 %v2337_v27, %v2337_v27  ;;  %3665 = vst.msk [vmem:[%s7174_s3 + $0x330] sm:$0xf] %vm3460_vm2, %v4398_v28  ;;  %v4399_v31 = vpack.c.bf16 %v2459_v29, %v2459_v29 }
 0x231   :  { %v1624_v32 = vpop.f32.mrb[168].mxu0  ;;  %v2112_v33 = vpop.f32.mrb[168].mxu1 }
 0x232   :  { %3544 = vst.msk [vmem:[%s7174_s3 + $0x14c] sm:$0xf] %vm3460_vm2, %v4277_v30  ;;  %v1625_v34 = vadd.f32 %v6642_v7, %v1624_v32  ;;  %v4735_v35 = vpop.f32.mrb[169].mxu0  ;;  %3666 = vst.msk [vmem:[%s7174_s3 + $0x334] sm:$0xf] %vm3460_vm2, %v4399_v31  ;;  %v2113_v36 = vadd.f32 %v6642_v7, %v2112_v33  ;;  %v4979_v37 = vpop.f32.mrb[169].mxu1 }
 0x233   :  { %v1627_v38 = vpop.f32.mrb[170].mxu0  ;;  %v2115_v39 = vpop.f32.mrb[170].mxu1 }
 0x234   :  { %v2338_v40 = vmax.f32 %v1625_v34, 0.0  ;;  %v1628_v41 = vadd.f32 %v6642_v7, %v1627_v38  ;;  %v4736_v0 = vpop.f32.mrb[171].mxu0  ;;  %v2460_v42 = vmax.f32 %v2113_v36, 0.0  ;;  %v2116_v43 = vadd.f32 %v6642_v7, %v2115_v39  ;;  %v4980_v44 = vpop.f32.mrb[171].mxu1 }
 0x236   :  { %v4278_v45 = vpack.c.bf16 %v2338_v40, %v2338_v40  ;;  %v2339_v46 = vmax.f32 %v1628_v41, 0.0  ;;  %v4400_v47 = vpack.c.bf16 %v2460_v42, %v2460_v42  ;;  %v2461_v48 = vmax.f32 %v2116_v43, 0.0 }
 0x238   :  { %3545 = vst.msk [vmem:[%s7174_s3 + $0x150] sm:$0xf] %vm3460_vm2, %v4278_v45  ;;  %v4279_v49 = vpack.c.bf16 %v2339_v46, %v2339_v46  ;;  %3667 = vst.msk [vmem:[%s7174_s3 + $0x338] sm:$0xf] %vm3460_vm2, %v4400_v47  ;;  %v4401_v50 = vpack.c.bf16 %v2461_v48, %v2461_v48 }
 0x239   :  { %v1632_v51 = vpop.f32.mrb[172].mxu0  ;;  %v2120_v52 = vpop.f32.mrb[172].mxu1 }
 0x23a   :  { %3546 = vst.msk [vmem:[%s7174_s3 + $0x154] sm:$0xf] %vm3460_vm2, %v4279_v49  ;;  %v1633_v53 = vadd.f32 %v6642_v7, %v1632_v51  ;;  %v4739_v54 = vpop.f32.mrb[173].mxu0  ;;  %3668 = vst.msk [vmem:[%s7174_s3 + $0x33c] sm:$0xf] %vm3460_vm2, %v4401_v50  ;;  %v2121_v55 = vadd.f32 %v6642_v7, %v2120_v52  ;;  %v4983_v56 = vpop.f32.mrb[173].mxu1 }
 0x23b   :  { %v1635_v57 = vpop.f32.mrb[174].mxu0  ;;  %v2123_v58 = vpop.f32.mrb[174].mxu1 }
 0x23c   :  { %v2340_v59 = vmax.f32 %v1633_v53, 0.0  ;;  %v1636_v60 = vadd.f32 %v6642_v7, %v1635_v57  ;;  %v4740_v61 = vpop.f32.mrb[175].mxu0  ;;  %v2462_v63 = vmax.f32 %v2121_v55, 0.0  ;;  %v2124_v1 = vadd.f32 %v6642_v7, %v2123_v58  ;;  %v4984_v2 = vpop.f32.mrb[175].mxu1 }
 0x23e   :  { %v4280_v3 = vpack.c.bf16 %v2340_v59, %v2340_v59  ;;  %v2341_v4 = vmax.f32 %v1636_v60, 0.0  ;;  %v4402_v5 = vpack.c.bf16 %v2462_v63, %v2462_v63  ;;  %v2463_v6 = vmax.f32 %v2124_v1, 0.0 }
 0x240   :  { %3547 = vst.msk [vmem:[%s7174_s3 + $0x158] sm:$0xf] %vm3460_vm2, %v4280_v3  ;;  %v4281_v8 = vpack.c.bf16 %v2341_v4, %v2341_v4  ;;  %3669 = vst.msk [vmem:[%s7174_s3 + $0x340] sm:$0xf] %vm3460_vm2, %v4402_v5  ;;  %v4403_v9 = vpack.c.bf16 %v2463_v6, %v2463_v6 }
 0x241   :  { %v1640_v10 = vpop.f32.mrb[176].mxu0  ;;  %v2128_v11 = vpop.f32.mrb[176].mxu1 }
 0x242   :  { %3548 = vst.msk [vmem:[%s7174_s3 + $0x15c] sm:$0xf] %vm3460_vm2, %v4281_v8  ;;  %v1641_v12 = vadd.f32 %v6642_v7, %v1640_v10  ;;  %v4743_v13 = vpop.f32.mrb[177].mxu0  ;;  %3670 = vst.msk [vmem:[%s7174_s3 + $0x344] sm:$0xf] %vm3460_vm2, %v4403_v9  ;;  %v2129_v14 = vadd.f32 %v6642_v7, %v2128_v11  ;;  %v4987_v15 = vpop.f32.mrb[177].mxu1 }
 0x243   :  { %v1643_v62 = vpop.f32.mrb[178].mxu0  ;;  %v2131_v16 = vpop.f32.mrb[178].mxu1 }
 0x244   :  { %v2342_v17 = vmax.f32 %v1641_v12, 0.0  ;;  %v1644_v18 = vadd.f32 %v6642_v7, %v1643_v62  ;;  %v4744_v19 = vpop.f32.mrb[179].mxu0  ;;  %v2464_v20 = vmax.f32 %v2129_v14, 0.0  ;;  %v2132_v21 = vadd.f32 %v6642_v7, %v2131_v16  ;;  %v4988_v22 = vpop.f32.mrb[179].mxu1 }
 0x246   :  { %v4282_v23 = vpack.c.bf16 %v2342_v17, %v2342_v17  ;;  %v2343_v24 = vmax.f32 %v1644_v18, 0.0  ;;  %v4404_v25 = vpack.c.bf16 %v2464_v20, %v2464_v20  ;;  %v2465_v26 = vmax.f32 %v2132_v21, 0.0 }
 0x248   :  { %3549 = vst.msk [vmem:[%s7174_s3 + $0x160] sm:$0xf] %vm3460_vm2, %v4282_v23  ;;  %v4283_v27 = vpack.c.bf16 %v2343_v24, %v2343_v24  ;;  %3671 = vst.msk [vmem:[%s7174_s3 + $0x348] sm:$0xf] %vm3460_vm2, %v4404_v25  ;;  %v4405_v28 = vpack.c.bf16 %v2465_v26, %v2465_v26 }
 0x249   :  { %v1648_v29 = vpop.f32.mrb[180].mxu0  ;;  %v2136_v30 = vpop.f32.mrb[180].mxu1 }
 0x24a   :  { %3550 = vst.msk [vmem:[%s7174_s3 + $0x164] sm:$0xf] %vm3460_vm2, %v4283_v27  ;;  %v1649_v31 = vadd.f32 %v6642_v7, %v1648_v29  ;;  %v4747_v32 = vpop.f32.mrb[181].mxu0  ;;  %3672 = vst.msk [vmem:[%s7174_s3 + $0x34c] sm:$0xf] %vm3460_vm2, %v4405_v28  ;;  %v2137_v33 = vadd.f32 %v6642_v7, %v2136_v30  ;;  %v4991_v34 = vpop.f32.mrb[181].mxu1 }
 0x24b   :  { %v1651_v35 = vpop.f32.mrb[182].mxu0  ;;  %v2139_v36 = vpop.f32.mrb[182].mxu1 }
 0x24c   :  { %v2344_v37 = vmax.f32 %v1649_v31, 0.0  ;;  %v1652_v38 = vadd.f32 %v6642_v7, %v1651_v35  ;;  %v4748_v39 = vpop.f32.mrb[183].mxu0  ;;  %v2466_v40 = vmax.f32 %v2137_v33, 0.0  ;;  %v2140_v41 = vadd.f32 %v6642_v7, %v2139_v36  ;;  %v4992_v0 = vpop.f32.mrb[183].mxu1 }
 0x24e   :  { %v4284_v42 = vpack.c.bf16 %v2344_v37, %v2344_v37  ;;  %v2345_v43 = vmax.f32 %v1652_v38, 0.0  ;;  %v4406_v44 = vpack.c.bf16 %v2466_v40, %v2466_v40  ;;  %v2467_v45 = vmax.f32 %v2140_v41, 0.0 }
 0x250   :  { %3551 = vst.msk [vmem:[%s7174_s3 + $0x168] sm:$0xf] %vm3460_vm2, %v4284_v42  ;;  %v4285_v46 = vpack.c.bf16 %v2345_v43, %v2345_v43  ;;  %3673 = vst.msk [vmem:[%s7174_s3 + $0x350] sm:$0xf] %vm3460_vm2, %v4406_v44  ;;  %v4407_v47 = vpack.c.bf16 %v2467_v45, %v2467_v45 }
 0x251   :  { %v1656_v48 = vpop.f32.mrb[184].mxu0  ;;  %v2144_v49 = vpop.f32.mrb[184].mxu1 }
 0x252   :  { %3552 = vst.msk [vmem:[%s7174_s3 + $0x16c] sm:$0xf] %vm3460_vm2, %v4285_v46  ;;  %v1657_v50 = vadd.f32 %v6642_v7, %v1656_v48  ;;  %v4751_v51 = vpop.f32.mrb[185].mxu0  ;;  %3674 = vst.msk [vmem:[%s7174_s3 + $0x354] sm:$0xf] %vm3460_vm2, %v4407_v47  ;;  %v2145_v52 = vadd.f32 %v6642_v7, %v2144_v49  ;;  %v4995_v53 = vpop.f32.mrb[185].mxu1 }
 0x253   :  { %v1659_v54 = vpop.f32.mrb[186].mxu0  ;;  %v2147_v55 = vpop.f32.mrb[186].mxu1 }
 0x254   :  { %v2346_v56 = vmax.f32 %v1657_v50, 0.0  ;;  %v1660_v57 = vadd.f32 %v6642_v7, %v1659_v54  ;;  %v4752_v58 = vpop.f32.mrb[187].mxu0  ;;  %v2468_v59 = vmax.f32 %v2145_v52, 0.0  ;;  %v2148_v60 = vadd.f32 %v6642_v7, %v2147_v55  ;;  %v4996_v61 = vpop.f32.mrb[187].mxu1 }
 0x256   :  { %v4286_v63 = vpack.c.bf16 %v2346_v56, %v2346_v56  ;;  %v2347_v1 = vmax.f32 %v1660_v57, 0.0  ;;  %v4408_v2 = vpack.c.bf16 %v2468_v59, %v2468_v59  ;;  %v2469_v3 = vmax.f32 %v2148_v60, 0.0 }
 0x258   :  { %3553 = vst.msk [vmem:[%s7174_s3 + $0x170] sm:$0xf] %vm3460_vm2, %v4286_v63  ;;  %v4287_v4 = vpack.c.bf16 %v2347_v1, %v2347_v1  ;;  %3675 = vst.msk [vmem:[%s7174_s3 + $0x358] sm:$0xf] %vm3460_vm2, %v4408_v2  ;;  %v4409_v5 = vpack.c.bf16 %v2469_v3, %v2469_v3 }
 0x259   :  { %v1664_v6 = vpop.f32.mrb[188].mxu0  ;;  %v2152_v8 = vpop.f32.mrb[188].mxu1 }
 0x25a   :  { %3554 = vst.msk [vmem:[%s7174_s3 + $0x174] sm:$0xf] %vm3460_vm2, %v4287_v4  ;;  %v1665_v9 = vadd.f32 %v6642_v7, %v1664_v6  ;;  %v4755_v10 = vpop.f32.mrb[189].mxu0  ;;  %3676 = vst.msk [vmem:[%s7174_s3 + $0x35c] sm:$0xf] %vm3460_vm2, %v4409_v5  ;;  %v2153_v11 = vadd.f32 %v6642_v7, %v2152_v8  ;;  %v4999_v12 = vpop.f32.mrb[189].mxu1 }
 0x25b   :  { %v1667_v13 = vpop.f32.mrb[190].mxu0  ;;  %v2155_v14 = vpop.f32.mrb[190].mxu1 }
 0x25c   :  { %v2348_v15 = vmax.f32 %v1665_v9, 0.0  ;;  %v1668_v62 = vadd.f32 %v6642_v7, %v1667_v13  ;;  %v4756_v16 = vpop.f32.mrb[191].mxu0  ;;  %v2470_v17 = vmax.f32 %v2153_v11, 0.0  ;;  %v2156_v18 = vadd.f32 %v6642_v7, %v2155_v14  ;;  %v5000_v19 = vpop.f32.mrb[191].mxu1 }
 0x25e   :  { %v4288_v20 = vpack.c.bf16 %v2348_v15, %v2348_v15  ;;  %v2349_v21 = vmax.f32 %v1668_v62, 0.0  ;;  %v4410_v22 = vpack.c.bf16 %v2470_v17, %v2470_v17  ;;  %v2471_v23 = vmax.f32 %v2156_v18, 0.0 }
 0x260   :  { %3555 = vst.msk [vmem:[%s7174_s3 + $0x178] sm:$0xf] %vm3460_vm2, %v4288_v20  ;;  %v4289_v24 = vpack.c.bf16 %v2349_v21, %v2349_v21  ;;  %3677 = vst.msk [vmem:[%s7174_s3 + $0x360] sm:$0xf] %vm3460_vm2, %v4410_v22  ;;  %v4411_v25 = vpack.c.bf16 %v2471_v23, %v2471_v23 }
 0x261   :  { %v1672_v26 = vpop.f32.mrb[192].mxu0  ;;  %v2160_v27 = vpop.f32.mrb[192].mxu1 }
 0x262   :  { %3556 = vst.msk [vmem:[%s7174_s3 + $0x17c] sm:$0xf] %vm3460_vm2, %v4289_v24  ;;  %v1673_v28 = vadd.f32 %v6642_v7, %v1672_v26  ;;  %v4759_v29 = vpop.f32.mrb[193].mxu0  ;;  %3678 = vst.msk [vmem:[%s7174_s3 + $0x364] sm:$0xf] %vm3460_vm2, %v4411_v25  ;;  %v2161_v30 = vadd.f32 %v6642_v7, %v2160_v27  ;;  %v5003_v31 = vpop.f32.mrb[193].mxu1 }
 0x263   :  { %v1675_v32 = vpop.f32.mrb[194].mxu0  ;;  %v2163_v33 = vpop.f32.mrb[194].mxu1 }
 0x264   :  { %v2350_v34 = vmax.f32 %v1673_v28, 0.0  ;;  %v1676_v35 = vadd.f32 %v6642_v7, %v1675_v32  ;;  %v4760_v36 = vpop.f32.mrb[195].mxu0  ;;  %v2472_v37 = vmax.f32 %v2161_v30, 0.0  ;;  %v2164_v38 = vadd.f32 %v6642_v7, %v2163_v33  ;;  %v5004_v39 = vpop.f32.mrb[195].mxu1 }
 0x266   :  { %v4290_v40 = vpack.c.bf16 %v2350_v34, %v2350_v34  ;;  %v2351_v41 = vmax.f32 %v1676_v35, 0.0  ;;  %v4412_v0 = vpack.c.bf16 %v2472_v37, %v2472_v37  ;;  %v2473_v42 = vmax.f32 %v2164_v38, 0.0 }
 0x268   :  { %3557 = vst.msk [vmem:[%s7174_s3 + $0x180] sm:$0xf] %vm3460_vm2, %v4290_v40  ;;  %v4291_v43 = vpack.c.bf16 %v2351_v41, %v2351_v41  ;;  %3679 = vst.msk [vmem:[%s7174_s3 + $0x368] sm:$0xf] %vm3460_vm2, %v4412_v0  ;;  %v4413_v44 = vpack.c.bf16 %v2473_v42, %v2473_v42 }
 0x269   :  { %v1680_v45 = vpop.f32.mrb[196].mxu0  ;;  %v2168_v46 = vpop.f32.mrb[196].mxu1 }
 0x26a   :  { %3558 = vst.msk [vmem:[%s7174_s3 + $0x184] sm:$0xf] %vm3460_vm2, %v4291_v43  ;;  %v1681_v47 = vadd.f32 %v6642_v7, %v1680_v45  ;;  %v4763_v48 = vpop.f32.mrb[197].mxu0  ;;  %3680 = vst.msk [vmem:[%s7174_s3 + $0x36c] sm:$0xf] %vm3460_vm2, %v4413_v44  ;;  %v2169_v49 = vadd.f32 %v6642_v7, %v2168_v46  ;;  %v5007_v50 = vpop.f32.mrb[197].mxu1 }
 0x26b   :  { %v1683_v51 = vpop.f32.mrb[198].mxu0  ;;  %v2171_v52 = vpop.f32.mrb[198].mxu1 }
 0x26c   :  { %v2352_v53 = vmax.f32 %v1681_v47, 0.0  ;;  %v1684_v54 = vadd.f32 %v6642_v7, %v1683_v51  ;;  %v4764_v55 = vpop.f32.mrb[199].mxu0  ;;  %v2474_v56 = vmax.f32 %v2169_v49, 0.0  ;;  %v2172_v57 = vadd.f32 %v6642_v7, %v2171_v52  ;;  %v5008_v58 = vpop.f32.mrb[199].mxu1 }
 0x26e   :  { %v4292_v59 = vpack.c.bf16 %v2352_v53, %v2352_v53  ;;  %v2353_v60 = vmax.f32 %v1684_v54, 0.0  ;;  %v4414_v61 = vpack.c.bf16 %v2474_v56, %v2474_v56  ;;  %v2475_v63 = vmax.f32 %v2172_v57, 0.0 }
 0x270   :  { %3559 = vst.msk [vmem:[%s7174_s3 + $0x188] sm:$0xf] %vm3460_vm2, %v4292_v59  ;;  %v4293_v1 = vpack.c.bf16 %v2353_v60, %v2353_v60  ;;  %3681 = vst.msk [vmem:[%s7174_s3 + $0x370] sm:$0xf] %vm3460_vm2, %v4414_v61  ;;  %v4415_v2 = vpack.c.bf16 %v2475_v63, %v2475_v63 }
 0x271   :  { %v1688_v3 = vpop.f32.mrb[200].mxu0  ;;  %v2176_v4 = vpop.f32.mrb[200].mxu1 }
 0x272   :  { %3560 = vst.msk [vmem:[%s7174_s3 + $0x18c] sm:$0xf] %vm3460_vm2, %v4293_v1  ;;  %v1689_v5 = vadd.f32 %v6642_v7, %v1688_v3  ;;  %v4767_v6 = vpop.f32.mrb[201].mxu0  ;;  %3682 = vst.msk [vmem:[%s7174_s3 + $0x374] sm:$0xf] %vm3460_vm2, %v4415_v2  ;;  %v2177_v8 = vadd.f32 %v6642_v7, %v2176_v4  ;;  %v5011_v9 = vpop.f32.mrb[201].mxu1 }
 0x273   :  { %v1691_v10 = vpop.f32.mrb[202].mxu0  ;;  %v2179_v11 = vpop.f32.mrb[202].mxu1 }
 0x274   :  { %v2354_v12 = vmax.f32 %v1689_v5, 0.0  ;;  %v1692_v13 = vadd.f32 %v6642_v7, %v1691_v10  ;;  %v4768_v14 = vpop.f32.mrb[203].mxu0  ;;  %v2476_v15 = vmax.f32 %v2177_v8, 0.0  ;;  %v2180_v62 = vadd.f32 %v6642_v7, %v2179_v11  ;;  %v5012_v16 = vpop.f32.mrb[203].mxu1 }
 0x276   :  { %v4294_v17 = vpack.c.bf16 %v2354_v12, %v2354_v12  ;;  %v2355_v18 = vmax.f32 %v1692_v13, 0.0  ;;  %v4416_v19 = vpack.c.bf16 %v2476_v15, %v2476_v15  ;;  %v2477_v20 = vmax.f32 %v2180_v62, 0.0 }
 0x278   :  { %3561 = vst.msk [vmem:[%s7174_s3 + $0x190] sm:$0xf] %vm3460_vm2, %v4294_v17  ;;  %v4295_v21 = vpack.c.bf16 %v2355_v18, %v2355_v18  ;;  %3683 = vst.msk [vmem:[%s7174_s3 + $0x378] sm:$0xf] %vm3460_vm2, %v4416_v19  ;;  %v4417_v22 = vpack.c.bf16 %v2477_v20, %v2477_v20 }
 0x279   :  { %v1696_v23 = vpop.f32.mrb[204].mxu0  ;;  %v2184_v24 = vpop.f32.mrb[204].mxu1 }
 0x27a   :  { %3562 = vst.msk [vmem:[%s7174_s3 + $0x194] sm:$0xf] %vm3460_vm2, %v4295_v21  ;;  %v1697_v25 = vadd.f32 %v6642_v7, %v1696_v23  ;;  %v4771_v26 = vpop.f32.mrb[205].mxu0  ;;  %3684 = vst.msk [vmem:[%s7174_s3 + $0x37c] sm:$0xf] %vm3460_vm2, %v4417_v22  ;;  %v2185_v27 = vadd.f32 %v6642_v7, %v2184_v24  ;;  %v5015_v28 = vpop.f32.mrb[205].mxu1 }
 0x27b   :  { %v1699_v29 = vpop.f32.mrb[206].mxu0  ;;  %v2187_v30 = vpop.f32.mrb[206].mxu1 }
 0x27c   :  { %v2356_v31 = vmax.f32 %v1697_v25, 0.0  ;;  %v1700_v32 = vadd.f32 %v6642_v7, %v1699_v29  ;;  %v4772_v33 = vpop.f32.mrb[207].mxu0  ;;  %v2478_v34 = vmax.f32 %v2185_v27, 0.0  ;;  %v2188_v35 = vadd.f32 %v6642_v7, %v2187_v30  ;;  %v5016_v36 = vpop.f32.mrb[207].mxu1 }
 0x27e   :  { %v4296_v37 = vpack.c.bf16 %v2356_v31, %v2356_v31  ;;  %v2357_v38 = vmax.f32 %v1700_v32, 0.0  ;;  %v4418_v39 = vpack.c.bf16 %v2478_v34, %v2478_v34  ;;  %v2479_v40 = vmax.f32 %v2188_v35, 0.0 }
 0x280   :  { %3563 = vst.msk [vmem:[%s7174_s3 + $0x198] sm:$0xf] %vm3460_vm2, %v4296_v37  ;;  %v4297_v41 = vpack.c.bf16 %v2357_v38, %v2357_v38  ;;  %3685 = vst.msk [vmem:[%s7174_s3 + $0x380] sm:$0xf] %vm3460_vm2, %v4418_v39  ;;  %v4419_v0 = vpack.c.bf16 %v2479_v40, %v2479_v40 }
 0x281   :  { %v1704_v42 = vpop.f32.mrb[208].mxu0  ;;  %v2192_v43 = vpop.f32.mrb[208].mxu1 }
 0x282   :  { %3564 = vst.msk [vmem:[%s7174_s3 + $0x19c] sm:$0xf] %vm3460_vm2, %v4297_v41  ;;  %v1705_v44 = vadd.f32 %v6642_v7, %v1704_v42  ;;  %v4775_v45 = vpop.f32.mrb[209].mxu0  ;;  %3686 = vst.msk [vmem:[%s7174_s3 + $0x384] sm:$0xf] %vm3460_vm2, %v4419_v0  ;;  %v2193_v46 = vadd.f32 %v6642_v7, %v2192_v43  ;;  %v5019_v47 = vpop.f32.mrb[209].mxu1 }
 0x283   :  { %v1707_v48 = vpop.f32.mrb[210].mxu0  ;;  %v2195_v49 = vpop.f32.mrb[210].mxu1 }
 0x284   :  { %v2358_v50 = vmax.f32 %v1705_v44, 0.0  ;;  %v1708_v51 = vadd.f32 %v6642_v7, %v1707_v48  ;;  %v4776_v52 = vpop.f32.mrb[211].mxu0  ;;  %v2480_v53 = vmax.f32 %v2193_v46, 0.0  ;;  %v2196_v54 = vadd.f32 %v6642_v7, %v2195_v49  ;;  %v5020_v55 = vpop.f32.mrb[211].mxu1 }
 0x286   :  { %v4298_v56 = vpack.c.bf16 %v2358_v50, %v2358_v50  ;;  %v2359_v57 = vmax.f32 %v1708_v51, 0.0  ;;  %v4420_v58 = vpack.c.bf16 %v2480_v53, %v2480_v53  ;;  %v2481_v59 = vmax.f32 %v2196_v54, 0.0 }
 0x288   :  { %3565 = vst.msk [vmem:[%s7174_s3 + $0x1a0] sm:$0xf] %vm3460_vm2, %v4298_v56  ;;  %v4299_v60 = vpack.c.bf16 %v2359_v57, %v2359_v57  ;;  %3687 = vst.msk [vmem:[%s7174_s3 + $0x388] sm:$0xf] %vm3460_vm2, %v4420_v58  ;;  %v4421_v61 = vpack.c.bf16 %v2481_v59, %v2481_v59 }
 0x289   :  { %v1712_v63 = vpop.f32.mrb[212].mxu0  ;;  %v2200_v1 = vpop.f32.mrb[212].mxu1 }
 0x28a   :  { %3566 = vst.msk [vmem:[%s7174_s3 + $0x1a4] sm:$0xf] %vm3460_vm2, %v4299_v60  ;;  %v1713_v2 = vadd.f32 %v6642_v7, %v1712_v63  ;;  %v4779_v3 = vpop.f32.mrb[213].mxu0  ;;  %3688 = vst.msk [vmem:[%s7174_s3 + $0x38c] sm:$0xf] %vm3460_vm2, %v4421_v61  ;;  %v2201_v4 = vadd.f32 %v6642_v7, %v2200_v1  ;;  %v5023_v5 = vpop.f32.mrb[213].mxu1 }
 0x28b   :  { %v1715_v6 = vpop.f32.mrb[214].mxu0  ;;  %v2203_v8 = vpop.f32.mrb[214].mxu1 }
 0x28c   :  { %v2360_v9 = vmax.f32 %v1713_v2, 0.0  ;;  %v1716_v10 = vadd.f32 %v6642_v7, %v1715_v6  ;;  %v4780_v11 = vpop.f32.mrb[215].mxu0  ;;  %v2482_v12 = vmax.f32 %v2201_v4, 0.0  ;;  %v2204_v13 = vadd.f32 %v6642_v7, %v2203_v8  ;;  %v5024_v14 = vpop.f32.mrb[215].mxu1 }
 0x28e   :  { %v4300_v15 = vpack.c.bf16 %v2360_v9, %v2360_v9  ;;  %v2361_v62 = vmax.f32 %v1716_v10, 0.0  ;;  %v4422_v16 = vpack.c.bf16 %v2482_v12, %v2482_v12  ;;  %v2483_v17 = vmax.f32 %v2204_v13, 0.0 }
 0x290   :  { %3567 = vst.msk [vmem:[%s7174_s3 + $0x1a8] sm:$0xf] %vm3460_vm2, %v4300_v15  ;;  %v4301_v18 = vpack.c.bf16 %v2361_v62, %v2361_v62  ;;  %3689 = vst.msk [vmem:[%s7174_s3 + $0x390] sm:$0xf] %vm3460_vm2, %v4422_v16  ;;  %v4423_v19 = vpack.c.bf16 %v2483_v17, %v2483_v17 }
 0x291   :  { %v1720_v20 = vpop.f32.mrb[216].mxu0  ;;  %v2208_v21 = vpop.f32.mrb[216].mxu1 }
 0x292   :  { %3568 = vst.msk [vmem:[%s7174_s3 + $0x1ac] sm:$0xf] %vm3460_vm2, %v4301_v18  ;;  %v1721_v22 = vadd.f32 %v6642_v7, %v1720_v20  ;;  %v4783_v23 = vpop.f32.mrb[217].mxu0  ;;  %3690 = vst.msk [vmem:[%s7174_s3 + $0x394] sm:$0xf] %vm3460_vm2, %v4423_v19  ;;  %v2209_v24 = vadd.f32 %v6642_v7, %v2208_v21  ;;  %v5027_v25 = vpop.f32.mrb[217].mxu1 }
 0x293   :  { %v1723_v26 = vpop.f32.mrb[218].mxu0  ;;  %v2211_v27 = vpop.f32.mrb[218].mxu1 }
 0x294   :  { %v2362_v28 = vmax.f32 %v1721_v22, 0.0  ;;  %v1724_v29 = vadd.f32 %v6642_v7, %v1723_v26  ;;  %v4784_v30 = vpop.f32.mrb[219].mxu0  ;;  %v2484_v31 = vmax.f32 %v2209_v24, 0.0  ;;  %v2212_v32 = vadd.f32 %v6642_v7, %v2211_v27  ;;  %v5028_v33 = vpop.f32.mrb[219].mxu1 }
 0x296   :  { %v4302_v34 = vpack.c.bf16 %v2362_v28, %v2362_v28  ;;  %v2363_v35 = vmax.f32 %v1724_v29, 0.0  ;;  %v4424_v36 = vpack.c.bf16 %v2484_v31, %v2484_v31  ;;  %v2485_v37 = vmax.f32 %v2212_v32, 0.0 }
 0x298   :  { %3569 = vst.msk [vmem:[%s7174_s3 + $0x1b0] sm:$0xf] %vm3460_vm2, %v4302_v34  ;;  %v4303_v38 = vpack.c.bf16 %v2363_v35, %v2363_v35  ;;  %3691 = vst.msk [vmem:[%s7174_s3 + $0x398] sm:$0xf] %vm3460_vm2, %v4424_v36  ;;  %v4425_v39 = vpack.c.bf16 %v2485_v37, %v2485_v37 }
 0x299   :  { %v1728_v40 = vpop.f32.mrb[220].mxu0  ;;  %v2216_v41 = vpop.f32.mrb[220].mxu1 }
 0x29a   :  { %3570 = vst.msk [vmem:[%s7174_s3 + $0x1b4] sm:$0xf] %vm3460_vm2, %v4303_v38  ;;  %v1729_v0 = vadd.f32 %v6642_v7, %v1728_v40  ;;  %v4787_v42 = vpop.f32.mrb[221].mxu0  ;;  %3692 = vst.msk [vmem:[%s7174_s3 + $0x39c] sm:$0xf] %vm3460_vm2, %v4425_v39  ;;  %v2217_v43 = vadd.f32 %v6642_v7, %v2216_v41  ;;  %v5031_v44 = vpop.f32.mrb[221].mxu1 }
 0x29b   :  { %v1731_v45 = vpop.f32.mrb[222].mxu0  ;;  %v2219_v46 = vpop.f32.mrb[222].mxu1 }
 0x29c   :  { %v2364_v47 = vmax.f32 %v1729_v0, 0.0  ;;  %v1732_v48 = vadd.f32 %v6642_v7, %v1731_v45  ;;  %v4788_v49 = vpop.f32.mrb[223].mxu0  ;;  %v2486_v50 = vmax.f32 %v2217_v43, 0.0  ;;  %v2220_v51 = vadd.f32 %v6642_v7, %v2219_v46  ;;  %v5032_v52 = vpop.f32.mrb[223].mxu1  ;;  %v7081_v7 = vld [vmem:[%s7173_s2] ss:$0 sm:$0xff] }
 0x29e   :  { %v4304_v53 = vpack.c.bf16 %v2364_v47, %v2364_v47  ;;  %v2365_v54 = vmax.f32 %v1732_v48, 0.0  ;;  %v4426_v55 = vpack.c.bf16 %v2486_v50, %v2486_v50  ;;  %v2487_v56 = vmax.f32 %v2220_v51, 0.0 }
 0x2a0   :  { %3571 = vst.msk [vmem:[%s7174_s3 + $0x1b8] sm:$0xf] %vm3460_vm2, %v4304_v53  ;;  %v4305_v57 = vpack.c.bf16 %v2365_v54, %v2365_v54  ;;  %3693 = vst.msk [vmem:[%s7174_s3 + $0x3a0] sm:$0xf] %vm3460_vm2, %v4426_v55  ;;  %v4427_v58 = vpack.c.bf16 %v2487_v56, %v2487_v56 }
 0x2a1   :  { %v1736_v59 = vpop.f32.mrb[224].mxu0  ;;  %v2224_v60 = vpop.f32.mrb[224].mxu1 }
 0x2a2   :  { %3572 = vst.msk [vmem:[%s7174_s3 + $0x1bc] sm:$0xf] %vm3460_vm2, %v4305_v57  ;;  %v1737_v61 = vadd.f32 %v7081_v7, %v1736_v59  ;;  %v4791_v63 = vpop.f32.mrb[225].mxu0  ;;  %3694 = vst.msk [vmem:[%s7174_s3 + $0x3a4] sm:$0xf] %vm3460_vm2, %v4427_v58  ;;  %v2225_v1 = vadd.f32 %v7081_v7, %v2224_v60  ;;  %v5035_v2 = vpop.f32.mrb[225].mxu1 }
 0x2a3   :  { %v1739_v3 = vpop.f32.mrb[226].mxu0  ;;  %v2227_v4 = vpop.f32.mrb[226].mxu1 }
 0x2a4   :  { %v2366_v5 = vmax.f32 %v1737_v61, 0.0  ;;  %v1740_v6 = vadd.f32 %v7081_v7, %v1739_v3  ;;  %v4792_v8 = vpop.f32.mrb[227].mxu0  ;;  %v2488_v9 = vmax.f32 %v2225_v1, 0.0  ;;  %v2228_v10 = vadd.f32 %v7081_v7, %v2227_v4  ;;  %v5036_v11 = vpop.f32.mrb[227].mxu1 }
 0x2a6   :  { %v4306_v12 = vpack.c.bf16 %v2366_v5, %v2366_v5  ;;  %v2367_v13 = vmax.f32 %v1740_v6, 0.0  ;;  %v4428_v14 = vpack.c.bf16 %v2488_v9, %v2488_v9  ;;  %v2489_v15 = vmax.f32 %v2228_v10, 0.0 }
 0x2a8   :  { %3573 = vst.msk [vmem:[%s7174_s3 + $0x1c0] sm:$0xf] %vm3460_vm2, %v4306_v12  ;;  %v4307_v62 = vpack.c.bf16 %v2367_v13, %v2367_v13  ;;  %3695 = vst.msk [vmem:[%s7174_s3 + $0x3a8] sm:$0xf] %vm3460_vm2, %v4428_v14  ;;  %v4429_v16 = vpack.c.bf16 %v2489_v15, %v2489_v15 }
 0x2a9   :  { %v1744_v17 = vpop.f32.mrb[228].mxu0  ;;  %v2232_v18 = vpop.f32.mrb[228].mxu1 }
 0x2aa   :  { %3574 = vst.msk [vmem:[%s7174_s3 + $0x1c4] sm:$0xf] %vm3460_vm2, %v4307_v62  ;;  %v1745_v19 = vadd.f32 %v7081_v7, %v1744_v17  ;;  %v4795_v20 = vpop.f32.mrb[229].mxu0  ;;  %3696 = vst.msk [vmem:[%s7174_s3 + $0x3ac] sm:$0xf] %vm3460_vm2, %v4429_v16  ;;  %v2233_v21 = vadd.f32 %v7081_v7, %v2232_v18  ;;  %v5039_v22 = vpop.f32.mrb[229].mxu1 }
 0x2ab   :  { %v1747_v23 = vpop.f32.mrb[230].mxu0  ;;  %v2235_v24 = vpop.f32.mrb[230].mxu1 }
 0x2ac   :  { %v2368_v25 = vmax.f32 %v1745_v19, 0.0  ;;  %v1748_v26 = vadd.f32 %v7081_v7, %v1747_v23  ;;  %v4796_v27 = vpop.f32.mrb[231].mxu0  ;;  %v2490_v28 = vmax.f32 %v2233_v21, 0.0  ;;  %v2236_v29 = vadd.f32 %v7081_v7, %v2235_v24  ;;  %v5040_v30 = vpop.f32.mrb[231].mxu1 }
 0x2ae   :  { %v4308_v31 = vpack.c.bf16 %v2368_v25, %v2368_v25  ;;  %v2369_v32 = vmax.f32 %v1748_v26, 0.0  ;;  %v4430_v33 = vpack.c.bf16 %v2490_v28, %v2490_v28  ;;  %v2491_v34 = vmax.f32 %v2236_v29, 0.0 }
 0x2b0   :  { %3575 = vst.msk [vmem:[%s7174_s3 + $0x1c8] sm:$0xf] %vm3460_vm2, %v4308_v31  ;;  %v4309_v35 = vpack.c.bf16 %v2369_v32, %v2369_v32  ;;  %3697 = vst.msk [vmem:[%s7174_s3 + $0x3b0] sm:$0xf] %vm3460_vm2, %v4430_v33  ;;  %v4431_v36 = vpack.c.bf16 %v2491_v34, %v2491_v34 }
 0x2b1   :  { %v1752_v37 = vpop.f32.mrb[232].mxu0  ;;  %v2240_v38 = vpop.f32.mrb[232].mxu1 }
 0x2b2   :  { %3576 = vst.msk [vmem:[%s7174_s3 + $0x1cc] sm:$0xf] %vm3460_vm2, %v4309_v35  ;;  %v1753_v39 = vadd.f32 %v7081_v7, %v1752_v37  ;;  %v4799_v40 = vpop.f32.mrb[233].mxu0  ;;  %3698 = vst.msk [vmem:[%s7174_s3 + $0x3b4] sm:$0xf] %vm3460_vm2, %v4431_v36  ;;  %v2241_v41 = vadd.f32 %v7081_v7, %v2240_v38  ;;  %v5043_v0 = vpop.f32.mrb[233].mxu1 }
 0x2b3   :  { %v1755_v42 = vpop.f32.mrb[234].mxu0  ;;  %v2243_v43 = vpop.f32.mrb[234].mxu1 }
 0x2b4   :  { %v2370_v44 = vmax.f32 %v1753_v39, 0.0  ;;  %v1756_v45 = vadd.f32 %v7081_v7, %v1755_v42  ;;  %v4800_v46 = vpop.f32.mrb[235].mxu0  ;;  %v2492_v47 = vmax.f32 %v2241_v41, 0.0  ;;  %v2244_v48 = vadd.f32 %v7081_v7, %v2243_v43  ;;  %v5044_v49 = vpop.f32.mrb[235].mxu1 }
 0x2b6   :  { %v4310_v50 = vpack.c.bf16 %v2370_v44, %v2370_v44  ;;  %v2371_v51 = vmax.f32 %v1756_v45, 0.0  ;;  %v4432_v52 = vpack.c.bf16 %v2492_v47, %v2492_v47  ;;  %v2493_v53 = vmax.f32 %v2244_v48, 0.0 }
 0x2b8   :  { %3577 = vst.msk [vmem:[%s7174_s3 + $0x1d0] sm:$0xf] %vm3460_vm2, %v4310_v50  ;;  %v4311_v54 = vpack.c.bf16 %v2371_v51, %v2371_v51  ;;  %3699 = vst.msk [vmem:[%s7174_s3 + $0x3b8] sm:$0xf] %vm3460_vm2, %v4432_v52  ;;  %v4433_v55 = vpack.c.bf16 %v2493_v53, %v2493_v53 }
 0x2b9   :  { %v1760_v56 = vpop.f32.mrb[236].mxu0  ;;  %v2248_v57 = vpop.f32.mrb[236].mxu1 }
 0x2ba   :  { %3578 = vst.msk [vmem:[%s7174_s3 + $0x1d4] sm:$0xf] %vm3460_vm2, %v4311_v54  ;;  %v1761_v58 = vadd.f32 %v7081_v7, %v1760_v56  ;;  %v4803_v59 = vpop.f32.mrb[237].mxu0  ;;  %3700 = vst.msk [vmem:[%s7174_s3 + $0x3bc] sm:$0xf] %vm3460_vm2, %v4433_v55  ;;  %v2249_v60 = vadd.f32 %v7081_v7, %v2248_v57  ;;  %v5047_v61 = vpop.f32.mrb[237].mxu1 }
 0x2bb   :  { %v1763_v63 = vpop.f32.mrb[238].mxu0  ;;  %v2251_v1 = vpop.f32.mrb[238].mxu1 }
 0x2bc   :  { %v2372_v2 = vmax.f32 %v1761_v58, 0.0  ;;  %v1764_v3 = vadd.f32 %v7081_v7, %v1763_v63  ;;  %v4804_v4 = vpop.f32.mrb[239].mxu0  ;;  %v2494_v5 = vmax.f32 %v2249_v60, 0.0  ;;  %v5048_v6 = vpop.f32.mrb[239].mxu1 }
 0x2be   :  { %v4312_v8 = vpack.c.bf16 %v2372_v2, %v2372_v2  ;;  %v2373_v9 = vmax.f32 %v1764_v3, 0.0  ;;  %v4434_v10 = vpack.c.bf16 %v2494_v5, %v2494_v5 }
 0x2c0   :  { %3579 = vst.msk [vmem:[%s7174_s3 + $0x1d8] sm:$0xf] %vm3460_vm2, %v4312_v8  ;;  %v4313_v11 = vpack.c.bf16 %v2373_v9, %v2373_v9 }
 0x2c1   :  { %3702 = vst.msk [vmem:[%s7174_s3 + $0x3c0] sm:$0x1] %vm3701_vm3, %v4434_v10  ;;  %v1768_v12 = vpop.f32.mrb[240].mxu0 }
 0x2c2   :  { %3580 = vst.msk [vmem:[%s7174_s3 + $0x1dc] sm:$0xf] %vm3460_vm2, %v4313_v11  ;;  %v1769_v13 = vadd.f32 %v7081_v7, %v1768_v12  ;;  %v4807_v14 = vpop.f32.mrb[241].mxu0 }
 0x2c3   :  { %v1771_v15 = vpop.f32.mrb[242].mxu0 }
 0x2c4   :  { %v2374_v62 = vmax.f32 %v1769_v13, 0.0  ;;  %v1772_v16 = vadd.f32 %v7081_v7, %v1771_v15  ;;  %v4808_v17 = vpop.f32.mrb[243].mxu0 }
 0x2c6   :  { %v4314_v18 = vpack.c.bf16 %v2374_v62, %v2374_v62  ;;  %v2375_v19 = vmax.f32 %v1772_v16, 0.0 }
 0x2c8   :  { %3581 = vst.msk [vmem:[%s7174_s3 + $0x1e0] sm:$0xf] %vm3460_vm2, %v4314_v18  ;;  %v4315_v20 = vpack.c.bf16 %v2375_v19, %v2375_v19 }
 0x2ca   :  { %3582 = vst.msk [vmem:[%s7174_s3 + $0x1e4] sm:$0xf] %vm3460_vm2, %v4315_v20 }

// kernel: mymodel_forward.5
= control target key start
LH: loop header
LB: loop body
LE: loop exit
PB: predicated region body
PF: predicated region fallthrough
CT: control target
= control target key end

     0   :  { %v2144_v0 = vmov 0   ;;  %vm1580_vm0 = vcmask 519168   ;;  %s2837_s1 = inlined_call_operand.vmem [shape: bf16[512,64], index: 1, kind: input, shape index: {}]   ;;  %s2838_s0 = inlined_call_operand.vmem [shape: bf16[392,512], index: 0, kind: input, shape index: {}]   ;;  %s2839_s2 = inlined_call_operand.vmem [shape: f32[1,64], index: 2, kind: input, shape index: {}]   ;;  %s2840_s3 = inlined_call_operand.vmem [shape: bf16[392,64], index: 3, kind: output, shape index: {}]  }
   0x1   :  { %870 = vmatprep.subr.bf16.mxu1 %v2144_v0  ;;  %1102 = vmatprep.subr.bf16.mxu0 %v2144_v0  ;;  %v1964_v1 = vld [vmem:[%s2837_s1] sm:$0xff]   ;;  %v1966_v3 = vld [vmem:[%s2837_s1 + $0x8] sm:$0xff]   ;;  %v1968_v5 = vld [vmem:[%s2837_s1 + $0x10] sm:$0xff]  }
   0x2   :  { %v1965_v2 = vld [vmem:[%s2837_s1 + $0x80] sm:$0xff]   ;;  %871 = vmatpush1.bf16.msra.mxu1 %v1964_v1  ;;  %v1967_v4 = vld [vmem:[%s2837_s1 + $0x88] sm:$0xff]   ;;  %v1969_v6 = vld [vmem:[%s2837_s1 + $0x90] sm:$0xff]  }
   0x3   :  { %1103 = vmatpush1.bf16.msra.mxu0 %v1965_v2  ;;  %872 = vmatprep.subr.bf16.mxu1 %v2144_v0  ;;  %v1970_v7 = vld [vmem:[%s2837_s1 + $0x18] sm:$0xff]   ;;  %v1972_v9 = vld [vmem:[%s2837_s1 + $0x20] sm:$0xff]   ;;  %v1974_v11 = vld [vmem:[%s2837_s1 + $0x28] sm:$0xff]  }
   0x4   :  { %1104 = vmatprep.subr.bf16.mxu0 %v2144_v0  ;;  %v1971_v8 = vld [vmem:[%s2837_s1 + $0x98] sm:$0xff]   ;;  %v1973_v10 = vld [vmem:[%s2837_s1 + $0xa0] sm:$0xff]   ;;  %v1975_v12 = vld [vmem:[%s2837_s1 + $0xa8] sm:$0xff]  }
   0x5   :  { %v1976_v13 = vld [vmem:[%s2837_s1 + $0x30] sm:$0xff]   ;;  %v1978_v15 = vld [vmem:[%s2837_s1 + $0x38] sm:$0xff]   ;;  %v1980_v17 = vld [vmem:[%s2837_s1 + $0x40] sm:$0xff]  }
   0x6   :  { %873 = vmatpush1.bf16.msra.mxu1 %v1966_v3  ;;  %v1977_v14 = vld [vmem:[%s2837_s1 + $0xb0] sm:$0xff]   ;;  %v1979_v16 = vld [vmem:[%s2837_s1 + $0xb8] sm:$0xff]   ;;  %v1981_v18 = vld [vmem:[%s2837_s1 + $0xc0] sm:$0xff]  }
   0x7   :  { %1105 = vmatpush1.bf16.msra.mxu0 %v1967_v4  ;;  %874 = vmatprep.subr.bf16.mxu1 %v2144_v0  ;;  %v1998_v19 = vld [vmem:[%s2838_s0 + $0x4] ss:$16 sps:$4 sm:$0xff]   ;;  %v1982_v20 = vld [vmem:[%s2837_s1 + $0x48] sm:$0xff]   ;;  %v1986_v25 = vld [vmem:[%s2837_s1 + $0x58] sm:$0xff]  }
   0x8   :  { %1106 = vmatprep.subr.bf16.mxu0 %v2144_v0  ;;  %v2001_v21 = vld [vmem:[%s2838_s0 + $0xc] ss:$16 sps:$4 sm:$0xff]   ;;  %902 = vmatprep.mubr.bf16.mxu1 %v1998_v19  ;;  %v1984_v23 = vld [vmem:[%s2837_s1 + $0x50] sm:$0xff]   ;;  %v1988_v27 = vld [vmem:[%s2837_s1 + $0x60] sm:$0xff]  }
   0x9   :  { %v1983_v22 = vld [vmem:[%s2837_s1 + $0xc8] sm:$0xff]   ;;  %1134 = vmatprep.mubr.bf16.mxu0 %v2001_v21  ;;  %v1985_v24 = vld [vmem:[%s2837_s1 + $0xd0] sm:$0xff]   ;;  %v1987_v26 = vld [vmem:[%s2837_s1 + $0xd8] sm:$0xff]  }
   0xa   :  { %875 = vmatpush1.bf16.msra.mxu1 %v1968_v5  ;;  %v1989_v28 = vld [vmem:[%s2837_s1 + $0xe0] sm:$0xff]   ;;  %v1990_v29 = vld [vmem:[%s2837_s1 + $0x68] sm:$0xff]   ;;  %v1992_v31 = vld [vmem:[%s2837_s1 + $0x70] sm:$0xff]  }
   0xb   :  { %1107 = vmatpush1.bf16.msra.mxu0 %v1969_v6  ;;  %876 = vmatprep.subr.bf16.mxu1 %v2144_v0  ;;  %v1991_v30 = vld [vmem:[%s2837_s1 + $0xe8] sm:$0xff]   ;;  %v1993_v32 = vld [vmem:[%s2837_s1 + $0xf0] sm:$0xff]   ;;  %v1994_v33 = vld [vmem:[%s2837_s1 + $0x78] sm:$0xff]  }
   0xc   :  { %1108 = vmatprep.subr.bf16.mxu0 %v2144_v0  ;;  %v1995_v34 = vld [vmem:[%s2837_s1 + $0xf8] sm:$0xff]   ;;  %v1996_v35 = vld [vmem:[%s2838_s0] ss:$16 sps:$4 sm:$0xff]   ;;  %v2002_v37 = vld [vmem:[%s2838_s0 + $0x24] ss:$16 sps:$4 sm:$0xff]  }
   0xd   :  { %v1999_v36 = vld [vmem:[%s2838_s0 + $0x8] ss:$16 sps:$4 sm:$0xff]   ;;  %v2004_v38 = vld [vmem:[%s2838_s0 + $0x2c] ss:$16 sps:$4 sm:$0xff]   ;;  %v2006_v39 = vld [vmem:[%s2838_s0 + $0x20] ss:$16 sps:$4 sm:$0xff]  }
   0xe   :  { %877 = vmatpush1.bf16.msra.mxu1 %v1970_v7  ;;  %v2007_v40 = vld [vmem:[%s2838_s0 + $0x28] ss:$16 sps:$4 sm:$0xff]   ;;  %v2008_v41 = vld [vmem:[%s2838_s0 + $0x44] ss:$16 sps:$4 sm:$0xff]   ;;  %v2010_v42 = vld [vmem:[%s2838_s0 + $0x4c] ss:$16 sps:$4 sm:$0xff]  }
   0xf   :  { %1109 = vmatpush1.bf16.msra.mxu0 %v1971_v8  ;;  %878 = vmatprep.subr.bf16.mxu1 %v2144_v0  ;;  %v2012_v43 = vld [vmem:[%s2838_s0 + $0x40] ss:$16 sps:$4 sm:$0xff]   ;;  %v2013_v44 = vld [vmem:[%s2838_s0 + $0x48] ss:$16 sps:$4 sm:$0xff]   ;;  %v2014_v45 = vld [vmem:[%s2838_s0 + $0x64] ss:$16 sps:$4 sm:$0xff]  }
  0x10   :  { %1110 = vmatprep.subr.bf16.mxu0 %v2144_v0  ;;  %v2016_v46 = vld [vmem:[%s2838_s0 + $0x6c] ss:$16 sps:$4 sm:$0xff]   ;;  %v2018_v47 = vld [vmem:[%s2838_s0 + $0x60] ss:$16 sps:$4 sm:$0xff]   ;;  %v2019_v48 = vld [vmem:[%s2838_s0 + $0x68] ss:$16 sps:$4 sm:$0xff]  }
  0x11   :  { %v2020_v49 = vld [vmem:[%s2838_s0 + $0x84] ss:$16 sps:$4 sm:$0xff]   ;;  %v2022_v50 = vld [vmem:[%s2838_s0 + $0x8c] ss:$16 sps:$4 sm:$0xff]   ;;  %v2024_v51 = vld [vmem:[%s2838_s0 + $0x80] ss:$16 sps:$4 sm:$0xff]  }
  0x12   :  { %879 = vmatpush1.bf16.msra.mxu1 %v1972_v9  ;;  %v2025_v52 = vld [vmem:[%s2838_s0 + $0x88] ss:$16 sps:$4 sm:$0xff]   ;;  %v2026_v53 = vld [vmem:[%s2838_s0 + $0xa4] ss:$16 sps:$4 sm:$0xff]   ;;  %v2028_v54 = vld [vmem:[%s2838_s0 + $0xac] ss:$16 sps:$4 sm:$0xff]  }
  0x13   :  { %1111 = vmatpush1.bf16.msra.mxu0 %v1973_v10  ;;  %880 = vmatprep.subr.bf16.mxu1 %v2144_v0  ;;  %v2030_v55 = vld [vmem:[%s2838_s0 + $0xa0] ss:$16 sps:$4 sm:$0xff]   ;;  %v2031_v56 = vld [vmem:[%s2838_s0 + $0xa8] ss:$16 sps:$4 sm:$0xff]   ;;  %v2032_v57 = vld [vmem:[%s2838_s0 + $0xc4] ss:$16 sps:$4 sm:$0xff]  }
  0x14   :  { %1112 = vmatprep.subr.bf16.mxu0 %v2144_v0  ;;  %v2034_v58 = vld [vmem:[%s2838_s0 + $0xcc] ss:$16 sps:$4 sm:$0xff]   ;;  %v2036_v59 = vld [vmem:[%s2838_s0 + $0xc0] ss:$16 sps:$4 sm:$0xff]   ;;  %v2037_v60 = vld [vmem:[%s2838_s0 + $0xc8] ss:$16 sps:$4 sm:$0xff]  }
  0x15   :  { %v2038_v61 = vld [vmem:[%s2838_s0 + $0xe4] ss:$16 sps:$4 sm:$0xff]   ;;  %v2040_v62 = vld [vmem:[%s2838_s0 + $0xec] ss:$16 sps:$4 sm:$0xff]   ;;  %v2042_v63 = vld [vmem:[%s2838_s0 + $0xe0] ss:$16 sps:$4 sm:$0xff]  }
  0x16   :  { %881 = vmatpush1.bf16.msra.mxu1 %v1974_v11  ;;  %v2044_v1 = vld [vmem:[%s2838_s0 + $0x104] ss:$16 sps:$4 sm:$0xff]   ;;  %v2046_v2 = vld [vmem:[%s2838_s0 + $0x10c] ss:$16 sps:$4 sm:$0xff]   ;;  %v2048_v3 = vld [vmem:[%s2838_s0 + $0x100] ss:$16 sps:$4 sm:$0xff]  }
  0x17   :  { %1113 = vmatpush1.bf16.msra.mxu0 %v1975_v12  ;;  %882 = vmatprep.subr.bf16.mxu1 %v2144_v0  ;;  %v2049_v4 = vld [vmem:[%s2838_s0 + $0x108] ss:$16 sps:$4 sm:$0xff]   ;;  %v2050_v5 = vld [vmem:[%s2838_s0 + $0x124] ss:$16 sps:$4 sm:$0xff]   ;;  %v2052_v6 = vld [vmem:[%s2838_s0 + $0x12c] ss:$16 sps:$4 sm:$0xff]  }
  0x18   :  { %1114 = vmatprep.subr.bf16.mxu0 %v2144_v0  ;;  %v2054_v7 = vld [vmem:[%s2838_s0 + $0x120] ss:$16 sps:$4 sm:$0xff]   ;;  %v2055_v8 = vld [vmem:[%s2838_s0 + $0x128] ss:$16 sps:$4 sm:$0xff]   ;;  %v2056_v9 = vld [vmem:[%s2838_s0 + $0x144] ss:$16 sps:$4 sm:$0xff]  }
  0x19   :  { %v2058_v10 = vld [vmem:[%s2838_s0 + $0x14c] ss:$16 sps:$4 sm:$0xff]   ;;  %v2060_v11 = vld [vmem:[%s2838_s0 + $0x140] ss:$16 sps:$4 sm:$0xff]   ;;  %v2061_v12 = vld [vmem:[%s2838_s0 + $0x148] ss:$16 sps:$4 sm:$0xff]  }
  0x1a   :  { %883 = vmatpush1.bf16.msra.mxu1 %v1976_v13  ;;  %v2062_v13 = vld [vmem:[%s2838_s0 + $0x164] ss:$16 sps:$4 sm:$0xff]   ;;  %v2072_v19 = vld [vmem:[%s2838_s0 + $0x180] ss:$16 sps:$4 sm:$0xff]  }
  0x1b   :  { %1115 = vmatpush1.bf16.msra.mxu0 %v1977_v14  ;;  %884 = vmatprep.subr.bf16.mxu1 %v2144_v0  ;;  %v2064_v14 = vld [vmem:[%s2838_s0 + $0x16c] ss:$16 sps:$4 sm:$0xff]   ;;  %v2074_v21 = vld [vmem:[%s2838_s0 + $0x1a4] ss:$16 sps:$4 sm:$0xff]  }
  0x1c   :  { %1116 = vmatprep.subr.bf16.mxu0 %v2144_v0 }
  0x1e   :  { %885 = vmatpush1.bf16.msra.mxu1 %v1978_v15  ;;  %v2066_v15 = vld [vmem:[%s2838_s0 + $0x160] ss:$16 sps:$4 sm:$0xff]  }
  0x1f   :  { %1117 = vmatpush1.bf16.msra.mxu0 %v1979_v16  ;;  %886 = vmatprep.subr.bf16.mxu1 %v2144_v0  ;;  %v2067_v16 = vld [vmem:[%s2838_s0 + $0x168] ss:$16 sps:$4 sm:$0xff]  }
  0x20   :  { %1118 = vmatprep.subr.bf16.mxu0 %v2144_v0 }
  0x22   :  { %887 = vmatpush1.bf16.msra.mxu1 %v1980_v17  ;;  %v2068_v17 = vld [vmem:[%s2838_s0 + $0x184] ss:$16 sps:$4 sm:$0xff]  }
  0x23   :  { %1119 = vmatpush1.bf16.msra.mxu0 %v1981_v18  ;;  %888 = vmatprep.subr.bf16.mxu1 %v2144_v0  ;;  %v2070_v18 = vld [vmem:[%s2838_s0 + $0x18c] ss:$16 sps:$4 sm:$0xff]  }
  0x24   :  { %1120 = vmatprep.subr.bf16.mxu0 %v2144_v0 }
  0x26   :  { %889 = vmatpush1.bf16.msra.mxu1 %v1982_v20  ;;  %v2073_v20 = vld [vmem:[%s2838_s0 + $0x188] ss:$16 sps:$4 sm:$0xff]  }
  0x27   :  { %1121 = vmatpush1.bf16.msra.mxu0 %v1983_v22  ;;  %890 = vmatprep.subr.bf16.mxu1 %v2144_v0  ;;  %v2076_v22 = vld [vmem:[%s2838_s0 + $0x1ac] ss:$16 sps:$4 sm:$0xff]  }
  0x28   :  { %1122 = vmatprep.subr.bf16.mxu0 %v2144_v0 }
  0x2a   :  { %891 = vmatpush1.bf16.msra.mxu1 %v1984_v23  ;;  %v2078_v23 = vld [vmem:[%s2838_s0 + $0x1a0] ss:$16 sps:$4 sm:$0xff]  }
  0x2b   :  { %1123 = vmatpush1.bf16.msra.mxu0 %v1985_v24  ;;  %892 = vmatprep.subr.bf16.mxu1 %v2144_v0  ;;  %v2079_v24 = vld [vmem:[%s2838_s0 + $0x1a8] ss:$16 sps:$4 sm:$0xff]  }
  0x2c   :  { %1124 = vmatprep.subr.bf16.mxu0 %v2144_v0 }
  0x2e   :  { %893 = vmatpush1.bf16.msra.mxu1 %v1986_v25  ;;  %v2080_v25 = vld [vmem:[%s2838_s0 + $0x1c4] ss:$16 sps:$4 sm:$0xff]  }
  0x2f   :  { %1125 = vmatpush1.bf16.msra.mxu0 %v1987_v26  ;;  %894 = vmatprep.subr.bf16.mxu1 %v2144_v0  ;;  %v2082_v26 = vld [vmem:[%s2838_s0 + $0x1cc] ss:$16 sps:$4 sm:$0xff]  }
  0x30   :  { %1126 = vmatprep.subr.bf16.mxu0 %v2144_v0 }
  0x32   :  { %895 = vmatpush1.bf16.msra.mxu1 %v1988_v27  ;;  %v2084_v27 = vld [vmem:[%s2838_s0 + $0x1c0] ss:$16 sps:$4 sm:$0xff]  }
  0x33   :  { %1127 = vmatpush1.bf16.msra.mxu0 %v1989_v28  ;;  %896 = vmatprep.subr.bf16.mxu1 %v2144_v0  ;;  %v2085_v28 = vld [vmem:[%s2838_s0 + $0x1c8] ss:$16 sps:$4 sm:$0xff]  }
  0x34   :  { %1128 = vmatprep.subr.bf16.mxu0 %v2144_v0 }
  0x36   :  { %897 = vmatpush1.bf16.msra.mxu1 %v1990_v29  ;;  %v2086_v29 = vld [vmem:[%s2838_s0 + $0x1e4] ss:$16 sps:$4 sm:$0xff]  }
  0x37   :  { %1129 = vmatpush1.bf16.msra.mxu0 %v1991_v30  ;;  %898 = vmatprep.subr.bf16.mxu1 %v2144_v0  ;;  %v2088_v30 = vld [vmem:[%s2838_s0 + $0x1ec] ss:$16 sps:$4 sm:$0xff]  }
  0x38   :  { %1130 = vmatprep.subr.bf16.mxu0 %v2144_v0 }
  0x3a   :  { %899 = vmatpush1.bf16.msra.mxu1 %v1992_v31  ;;  %v2090_v31 = vld [vmem:[%s2838_s0 + $0x1e0] ss:$16 sps:$4 sm:$0xff]  }
  0x3b   :  { %1131 = vmatpush1.bf16.msra.mxu0 %v1993_v32  ;;  %900 = vmatprep.subr.bf16.mxu1 %v2144_v0  ;;  %v2091_v32 = vld [vmem:[%s2838_s0 + $0x1e8] ss:$16 sps:$4 sm:$0xff]  }
  0x3c   :  { %1132 = vmatprep.subr.bf16.mxu0 %v2144_v0  ;;  %v2043_v0 = vld [vmem:[%s2838_s0 + $0xe8] ss:$16 sps:$4 sm:$0xff]  }
  0x3e   :  { %901 = vmatpush1.bf16.msra.mxu1 %v1994_v33  ;;  %v2092_v33 = vld [vmem:[%s2838_s0 + $0x204] ss:$16 sps:$4 sm:$0xff]  }
  0x3f   :  { %1133 = vmatpush1.bf16.msra.mxu0 %v1995_v34  ;;  %v2094_v34 = vld [vmem:[%s2838_s0 + $0x20c] ss:$16 sps:$4 sm:$0xff]  }
  0x41   :  { %903 = vmatmul.mubr.bf16.vlgmr.msra.gmra.mrb[0].mxu1 %v1996_v35  ;;  %v2096_v35 = vld [vmem:[%s2838_s0 + $0x200] ss:$16 sps:$4 sm:$0xff]  }
  0x42   :  { %1135 = vmatmul.mubr.bf16.vlgmr.msra.gmra.mrb[0].mxu0 %v1999_v36  ;;  %910 = vmatprep.mubr.bf16.mxu1 %v2002_v37  ;;  %v2097_v36 = vld [vmem:[%s2838_s0 + $0x208] ss:$16 sps:$4 sm:$0xff]   ;;  %v2098_v37 = vld [vmem:[%s2838_s0 + $0x224] ss:$16 sps:$4 sm:$0xff]  }
  0x43   :  { %1142 = vmatprep.mubr.bf16.mxu0 %v2004_v38  ;;  %v2100_v38 = vld [vmem:[%s2838_s0 + $0x22c] ss:$16 sps:$4 sm:$0xff]  }
  0x49   :  { %911 = vmatmul.mubr.bf16.gmra.mrb[4].mxu1 %v2006_v39  ;;  %v2102_v39 = vld [vmem:[%s2838_s0 + $0x220] ss:$16 sps:$4 sm:$0xff]  }
  0x4a   :  { %1143 = vmatmul.mubr.bf16.gmra.mrb[4].mxu0 %v2007_v40  ;;  %918 = vmatprep.mubr.bf16.mxu1 %v2008_v41  ;;  %v2103_v40 = vld [vmem:[%s2838_s0 + $0x228] ss:$16 sps:$4 sm:$0xff]   ;;  %v2104_v41 = vld [vmem:[%s2838_s0 + $0x244] ss:$16 sps:$4 sm:$0xff]  }
  0x4b   :  { %1150 = vmatprep.mubr.bf16.mxu0 %v2010_v42  ;;  %v2106_v42 = vld [vmem:[%s2838_s0 + $0x24c] ss:$16 sps:$4 sm:$0xff]  }
  0x51   :  { %919 = vmatmul.mubr.bf16.gmra.mrb[8].mxu1 %v2012_v43  ;;  %v2108_v43 = vld [vmem:[%s2838_s0 + $0x240] ss:$16 sps:$4 sm:$0xff]  }
  0x52   :  { %1151 = vmatmul.mubr.bf16.gmra.mrb[8].mxu0 %v2013_v44  ;;  %926 = vmatprep.mubr.bf16.mxu1 %v2014_v45  ;;  %v2109_v44 = vld [vmem:[%s2838_s0 + $0x248] ss:$16 sps:$4 sm:$0xff]   ;;  %v2110_v45 = vld [vmem:[%s2838_s0 + $0x264] ss:$16 sps:$4 sm:$0xff]  }
  0x53   :  { %1158 = vmatprep.mubr.bf16.mxu0 %v2016_v46  ;;  %v2112_v46 = vld [vmem:[%s2838_s0 + $0x26c] ss:$16 sps:$4 sm:$0xff]  }
  0x59   :  { %927 = vmatmul.mubr.bf16.gmra.mrb[12].mxu1 %v2018_v47  ;;  %v2114_v47 = vld [vmem:[%s2838_s0 + $0x260] ss:$16 sps:$4 sm:$0xff]  }
  0x5a   :  { %1159 = vmatmul.mubr.bf16.gmra.mrb[12].mxu0 %v2019_v48  ;;  %934 = vmatprep.mubr.bf16.mxu1 %v2020_v49  ;;  %v2115_v48 = vld [vmem:[%s2838_s0 + $0x268] ss:$16 sps:$4 sm:$0xff]   ;;  %v2116_v49 = vld [vmem:[%s2838_s0 + $0x284] ss:$16 sps:$4 sm:$0xff]  }
  0x5b   :  { %1166 = vmatprep.mubr.bf16.mxu0 %v2022_v50  ;;  %v2118_v50 = vld [vmem:[%s2838_s0 + $0x28c] ss:$16 sps:$4 sm:$0xff]  }
  0x61   :  { %935 = vmatmul.mubr.bf16.gmra.mrb[16].mxu1 %v2024_v51  ;;  %v2120_v51 = vld [vmem:[%s2838_s0 + $0x280] ss:$16 sps:$4 sm:$0xff]  }
  0x62   :  { %1167 = vmatmul.mubr.bf16.gmra.mrb[16].mxu0 %v2025_v52  ;;  %942 = vmatprep.mubr.bf16.mxu1 %v2026_v53  ;;  %v2121_v52 = vld [vmem:[%s2838_s0 + $0x288] ss:$16 sps:$4 sm:$0xff]   ;;  %v2122_v53 = vld [vmem:[%s2838_s0 + $0x2a4] ss:$16 sps:$4 sm:$0xff]  }
  0x63   :  { %1174 = vmatprep.mubr.bf16.mxu0 %v2028_v54  ;;  %v2124_v54 = vld [vmem:[%s2838_s0 + $0x2ac] ss:$16 sps:$4 sm:$0xff]  }
  0x69   :  { %943 = vmatmul.mubr.bf16.gmra.mrb[20].mxu1 %v2030_v55  ;;  %v2126_v55 = vld [vmem:[%s2838_s0 + $0x2a0] ss:$16 sps:$4 sm:$0xff]  }
  0x6a   :  { %1175 = vmatmul.mubr.bf16.gmra.mrb[20].mxu0 %v2031_v56  ;;  %950 = vmatprep.mubr.bf16.mxu1 %v2032_v57  ;;  %v2127_v56 = vld [vmem:[%s2838_s0 + $0x2a8] ss:$16 sps:$4 sm:$0xff]   ;;  %v2128_v57 = vld [vmem:[%s2838_s0 + $0x2c4] ss:$16 sps:$4 sm:$0xff]  }
  0x6b   :  { %1182 = vmatprep.mubr.bf16.mxu0 %v2034_v58  ;;  %v2130_v58 = vld [vmem:[%s2838_s0 + $0x2cc] ss:$16 sps:$4 sm:$0xff]  }
  0x71   :  { %951 = vmatmul.mubr.bf16.gmra.mrb[24].mxu1 %v2036_v59  ;;  %v2132_v59 = vld [vmem:[%s2838_s0 + $0x2c0] ss:$16 sps:$4 sm:$0xff]  }
  0x72   :  { %1183 = vmatmul.mubr.bf16.gmra.mrb[24].mxu0 %v2037_v60  ;;  %958 = vmatprep.mubr.bf16.mxu1 %v2038_v61  ;;  %v2133_v60 = vld [vmem:[%s2838_s0 + $0x2c8] ss:$16 sps:$4 sm:$0xff]   ;;  %v2134_v61 = vld [vmem:[%s2838_s0 + $0x2e4] ss:$16 sps:$4 sm:$0xff]  }
  0x73   :  { %1190 = vmatprep.mubr.bf16.mxu0 %v2040_v62  ;;  %v2136_v62 = vld [vmem:[%s2838_s0 + $0x2ec] ss:$16 sps:$4 sm:$0xff]  }
  0x79   :  { %959 = vmatmul.mubr.bf16.gmra.mrb[28].mxu1 %v2042_v63  ;;  %v111_v63 = vld [vmem:[%s2838_s0 + $0x300] sm:$0xff] }
  0x7a   :  { %1191 = vmatmul.mubr.bf16.gmra.mrb[28].mxu0 %v2043_v0  ;;  %966 = vmatprep.mubr.bf16.mxu1 %v2044_v1  ;;  %v112_v0 = vld [vmem:[%s2838_s0 + $0x308] sm:$0xff]  ;;  %v2138_v1 = vld [vmem:[%s2838_s0 + $0x2e0] ss:$16 sps:$4 sm:$0xff]  }
  0x7b   :  { %1198 = vmatprep.mubr.bf16.mxu0 %v2046_v2  ;;  %v2139_v2 = vld [vmem:[%s2838_s0 + $0x2e8] ss:$16 sps:$4 sm:$0xff]  }
  0x81   :  { %967 = vmatmul.mubr.bf16.gmra.mrb[32].mxu1 %v2048_v3  ;;  %v1732_v3 = vcombine.high %v111_v63, %v111_v63 }
  0x82   :  { %1199 = vmatmul.mubr.bf16.gmra.mrb[32].mxu0 %v2049_v4  ;;  %974 = vmatprep.mubr.bf16.mxu1 %v2050_v5  ;;  %v1734_v4 = vcombine.high %v112_v0, %v112_v0  ;;  %v1731_v5 = vcombine.low %v111_v63, %v111_v63 }
  0x83   :  { %1206 = vmatprep.mubr.bf16.mxu0 %v2052_v6  ;;  %v1733_v6 = vcombine.low %v112_v0, %v112_v0 }
  0x89   :  { %975 = vmatmul.mubr.bf16.gmra.mrb[36].mxu1 %v2054_v7  ;;  %v2590_v7 = vld [vmem:[%s2839_s2] ss:$0 sm:$0xff] }
  0x8a   :  { %1207 = vmatmul.mubr.bf16.gmra.mrb[36].mxu0 %v2055_v8  ;;  %982 = vmatprep.mubr.bf16.mxu1 %v2056_v9 }
  0x8b   :  { %1214 = vmatprep.mubr.bf16.mxu0 %v2058_v10 }
  0x91   :  { %983 = vmatmul.mubr.bf16.gmra.mrb[40].mxu1 %v2060_v11 }
  0x92   :  { %1215 = vmatmul.mubr.bf16.gmra.mrb[40].mxu0 %v2061_v12  ;;  %990 = vmatprep.mubr.bf16.mxu1 %v2062_v13 }
  0x93   :  { %1222 = vmatprep.mubr.bf16.mxu0 %v2064_v14 }
  0x99   :  { %991 = vmatmul.mubr.bf16.gmra.mrb[44].mxu1 %v2066_v15 }
  0x9a   :  { %1223 = vmatmul.mubr.bf16.gmra.mrb[44].mxu0 %v2067_v16  ;;  %998 = vmatprep.mubr.bf16.mxu1 %v2068_v17 }
  0x9b   :  { %1230 = vmatprep.mubr.bf16.mxu0 %v2070_v18 }
  0xa1   :  { %999 = vmatmul.mubr.bf16.gmra.mrb[48].mxu1 %v2072_v19 }
  0xa2   :  { %1231 = vmatmul.mubr.bf16.gmra.mrb[48].mxu0 %v2073_v20  ;;  %1006 = vmatprep.mubr.bf16.mxu1 %v2074_v21 }
  0xa3   :  { %1238 = vmatprep.mubr.bf16.mxu0 %v2076_v22 }
  0xa9   :  { %1007 = vmatmul.mubr.bf16.gmra.mrb[52].mxu1 %v2078_v23 }
  0xaa   :  { %1239 = vmatmul.mubr.bf16.gmra.mrb[52].mxu0 %v2079_v24  ;;  %1014 = vmatprep.mubr.bf16.mxu1 %v2080_v25 }
  0xab   :  { %1246 = vmatprep.mubr.bf16.mxu0 %v2082_v26 }
  0xb1   :  { %1015 = vmatmul.mubr.bf16.gmra.mrb[56].mxu1 %v2084_v27 }
  0xb2   :  { %1247 = vmatmul.mubr.bf16.gmra.mrb[56].mxu0 %v2085_v28  ;;  %1022 = vmatprep.mubr.bf16.mxu1 %v2086_v29 }
  0xb3   :  { %1254 = vmatprep.mubr.bf16.mxu0 %v2088_v30 }
  0xb9   :  { %1023 = vmatmul.mubr.bf16.gmra.mrb[60].mxu1 %v2090_v31 }
  0xba   :  { %1255 = vmatmul.mubr.bf16.gmra.mrb[60].mxu0 %v2091_v32  ;;  %1030 = vmatprep.mubr.bf16.mxu1 %v2092_v33 }
  0xbb   :  { %1262 = vmatprep.mubr.bf16.mxu0 %v2094_v34 }
  0xc1   :  { %1031 = vmatmul.mubr.bf16.gmra.mrb[64].mxu1 %v2096_v35 }
  0xc2   :  { %1263 = vmatmul.mubr.bf16.gmra.mrb[64].mxu0 %v2097_v36  ;;  %1038 = vmatprep.mubr.bf16.mxu1 %v2098_v37 }
  0xc3   :  { %1270 = vmatprep.mubr.bf16.mxu0 %v2100_v38 }
  0xc9   :  { %1039 = vmatmul.mubr.bf16.gmra.mrb[68].mxu1 %v2102_v39 }
  0xca   :  { %1271 = vmatmul.mubr.bf16.gmra.mrb[68].mxu0 %v2103_v40  ;;  %1046 = vmatprep.mubr.bf16.mxu1 %v2104_v41 }
  0xcb   :  { %1278 = vmatprep.mubr.bf16.mxu0 %v2106_v42 }
  0xd1   :  { %1047 = vmatmul.mubr.bf16.gmra.mrb[72].mxu1 %v2108_v43 }
  0xd2   :  { %1279 = vmatmul.mubr.bf16.gmra.mrb[72].mxu0 %v2109_v44  ;;  %1054 = vmatprep.mubr.bf16.mxu1 %v2110_v45 }
  0xd3   :  { %1286 = vmatprep.mubr.bf16.mxu0 %v2112_v46 }
  0xd9   :  { %1055 = vmatmul.mubr.bf16.gmra.mrb[76].mxu1 %v2114_v47 }
  0xda   :  { %1287 = vmatmul.mubr.bf16.gmra.mrb[76].mxu0 %v2115_v48  ;;  %1062 = vmatprep.mubr.bf16.mxu1 %v2116_v49 }
  0xdb   :  { %1294 = vmatprep.mubr.bf16.mxu0 %v2118_v50 }
  0xe1   :  { %1063 = vmatmul.mubr.bf16.gmra.mrb[80].mxu1 %v2120_v51 }
  0xe2   :  { %1295 = vmatmul.mubr.bf16.gmra.mrb[80].mxu0 %v2121_v52  ;;  %1070 = vmatprep.mubr.bf16.mxu1 %v2122_v53 }
  0xe3   :  { %1302 = vmatprep.mubr.bf16.mxu0 %v2124_v54 }
  0xe9   :  { %1071 = vmatmul.mubr.bf16.gmra.mrb[84].mxu1 %v2126_v55 }
  0xea   :  { %1303 = vmatmul.mubr.bf16.gmra.mrb[84].mxu0 %v2127_v56  ;;  %1078 = vmatprep.mubr.bf16.mxu1 %v2128_v57 }
  0xeb   :  { %1310 = vmatprep.mubr.bf16.mxu0 %v2130_v58 }
  0xf1   :  { %1079 = vmatmul.mubr.bf16.gmra.mrb[88].mxu1 %v2132_v59 }
  0xf2   :  { %1311 = vmatmul.mubr.bf16.gmra.mrb[88].mxu0 %v2133_v60  ;;  %1086 = vmatprep.mubr.bf16.mxu1 %v2134_v61 }
  0xf3   :  { %1318 = vmatprep.mubr.bf16.mxu0 %v2136_v62 }
  0xf9   :  { %1087 = vmatmul.mubr.bf16.gmra.mrb[92].mxu1 %v2138_v1 }
  0xfa   :  { %1319 = vmatmul.mubr.bf16.gmra.mrb[92].mxu0 %v2139_v2  ;;  %1094 = vmatprep.mubr.bf16.mxu1 %v1732_v3 }
  0xfb   :  { %1326 = vmatprep.mubr.bf16.mxu0 %v1734_v4 }
 0x101   :  { %1095 = vmatmul.mubr.bf16.gmra.mrb[96].mxu1 %v1731_v5 }
 0x102   :  { %1327 = vmatmul.mubr.bf16.gmra.mrb[96].mxu0 %v1733_v6 }
 0x114   :  { %v904_v8 = vpop.f32.mrb[0].mxu1 }
 0x115   :  { %v905_v9 = vadd.f32 %v2590_v7, %v904_v8  ;;  %v1136_v10 = vpop.f32.mrb[0].mxu0  ;;  %v906_v11 = vpop.f32.mrb[1].mxu1 }
 0x116   :  { %v1138_v12 = vpop.f32.mrb[1].mxu0  ;;  %v907_v13 = vpop.f32.mrb[2].mxu1 }
 0x117   :  { %v1137_v14 = vadd.f32 %v1136_v10, %v905_v9  ;;  %v908_v15 = vadd.f32 %v2590_v7, %v907_v13  ;;  %v1139_v16 = vpop.f32.mrb[2].mxu0  ;;  %v909_v17 = vpop.f32.mrb[3].mxu1 }
 0x118   :  { %v1141_v18 = vpop.f32.mrb[3].mxu0 }
 0x119   :  { %v1334_v19 = vmax.f32 %v1137_v14, 0.0  ;;  %v1140_v20 = vadd.f32 %v1139_v16, %v908_v15 }
 0x11b   :  { %v1816_v21 = vpack.c.bf16 %v1334_v19, %v1334_v19  ;;  %v1335_v22 = vmax.f32 %v1140_v20, 0.0 }
 0x11c   :  { %v912_v23 = vpop.f32.mrb[4].mxu1 }
 0x11d   :  { %1581 = vst.msk [vmem:[%s2840_s3] sm:$0xf] %vm1580_vm0, %v1816_v21  ;;  %v1817_v24 = vpack.c.bf16 %v1335_v22, %v1335_v22  ;;  %v913_v25 = vadd.f32 %v2590_v7, %v912_v23  ;;  %v1144_v26 = vpop.f32.mrb[4].mxu0  ;;  %v914_v27 = vpop.f32.mrb[5].mxu1 }
 0x11e   :  { %v1146_v28 = vpop.f32.mrb[5].mxu0  ;;  %v915_v29 = vpop.f32.mrb[6].mxu1 }
 0x11f   :  { %1582 = vst.msk [vmem:[%s2840_s3 + $0x4] sm:$0xf] %vm1580_vm0, %v1817_v24  ;;  %v1145_v30 = vadd.f32 %v1144_v26, %v913_v25  ;;  %v916_v31 = vadd.f32 %v2590_v7, %v915_v29  ;;  %v1147_v32 = vpop.f32.mrb[6].mxu0  ;;  %v917_v33 = vpop.f32.mrb[7].mxu1 }
 0x120   :  { %v1149_v34 = vpop.f32.mrb[7].mxu0 }
 0x121   :  { %v1336_v35 = vmax.f32 %v1145_v30, 0.0  ;;  %v1148_v36 = vadd.f32 %v1147_v32, %v916_v31 }
 0x123   :  { %v1818_v37 = vpack.c.bf16 %v1336_v35, %v1336_v35  ;;  %v1337_v38 = vmax.f32 %v1148_v36, 0.0 }
 0x124   :  { %v920_v39 = vpop.f32.mrb[8].mxu1 }
 0x125   :  { %1583 = vst.msk [vmem:[%s2840_s3 + $0x8] sm:$0xf] %vm1580_vm0, %v1818_v37  ;;  %v1819_v40 = vpack.c.bf16 %v1337_v38, %v1337_v38  ;;  %v921_v41 = vadd.f32 %v2590_v7, %v920_v39  ;;  %v1152_v42 = vpop.f32.mrb[8].mxu0  ;;  %v922_v43 = vpop.f32.mrb[9].mxu1 }
 0x126   :  { %v1154_v44 = vpop.f32.mrb[9].mxu0  ;;  %v923_v45 = vpop.f32.mrb[10].mxu1 }
 0x127   :  { %1584 = vst.msk [vmem:[%s2840_s3 + $0xc] sm:$0xf] %vm1580_vm0, %v1819_v40  ;;  %v1153_v46 = vadd.f32 %v1152_v42, %v921_v41  ;;  %v924_v47 = vadd.f32 %v2590_v7, %v923_v45  ;;  %v1155_v48 = vpop.f32.mrb[10].mxu0  ;;  %v925_v49 = vpop.f32.mrb[11].mxu1 }
 0x128   :  { %v1157_v50 = vpop.f32.mrb[11].mxu0 }
 0x129   :  { %v1338_v51 = vmax.f32 %v1153_v46, 0.0  ;;  %v1156_v52 = vadd.f32 %v1155_v48, %v924_v47 }
 0x12b   :  { %v1820_v53 = vpack.c.bf16 %v1338_v51, %v1338_v51  ;;  %v1339_v54 = vmax.f32 %v1156_v52, 0.0 }
 0x12c   :  { %v928_v55 = vpop.f32.mrb[12].mxu1 }
 0x12d   :  { %1585 = vst.msk [vmem:[%s2840_s3 + $0x10] sm:$0xf] %vm1580_vm0, %v1820_v53  ;;  %v1821_v56 = vpack.c.bf16 %v1339_v54, %v1339_v54  ;;  %v929_v57 = vadd.f32 %v2590_v7, %v928_v55  ;;  %v1160_v58 = vpop.f32.mrb[12].mxu0  ;;  %v930_v59 = vpop.f32.mrb[13].mxu1 }
 0x12e   :  { %v1162_v60 = vpop.f32.mrb[13].mxu0  ;;  %v931_v61 = vpop.f32.mrb[14].mxu1 }
 0x12f   :  { %1586 = vst.msk [vmem:[%s2840_s3 + $0x14] sm:$0xf] %vm1580_vm0, %v1821_v56  ;;  %v1161_v62 = vadd.f32 %v1160_v58, %v929_v57  ;;  %v932_v63 = vadd.f32 %v2590_v7, %v931_v61  ;;  %v1163_v0 = vpop.f32.mrb[14].mxu0  ;;  %v933_v1 = vpop.f32.mrb[15].mxu1 }
 0x130   :  { %v1165_v2 = vpop.f32.mrb[15].mxu0 }
 0x131   :  { %v1340_v3 = vmax.f32 %v1161_v62, 0.0  ;;  %v1164_v4 = vadd.f32 %v1163_v0, %v932_v63 }
 0x133   :  { %v1822_v5 = vpack.c.bf16 %v1340_v3, %v1340_v3  ;;  %v1341_v6 = vmax.f32 %v1164_v4, 0.0 }
 0x134   :  { %v936_v8 = vpop.f32.mrb[16].mxu1 }
 0x135   :  { %1587 = vst.msk [vmem:[%s2840_s3 + $0x18] sm:$0xf] %vm1580_vm0, %v1822_v5  ;;  %v1823_v9 = vpack.c.bf16 %v1341_v6, %v1341_v6  ;;  %v937_v10 = vadd.f32 %v2590_v7, %v936_v8  ;;  %v1168_v11 = vpop.f32.mrb[16].mxu0  ;;  %v938_v12 = vpop.f32.mrb[17].mxu1 }
 0x136   :  { %v1170_v13 = vpop.f32.mrb[17].mxu0  ;;  %v939_v14 = vpop.f32.mrb[18].mxu1 }
 0x137   :  { %1588 = vst.msk [vmem:[%s2840_s3 + $0x1c] sm:$0xf] %vm1580_vm0, %v1823_v9  ;;  %v1169_v15 = vadd.f32 %v1168_v11, %v937_v10  ;;  %v940_v16 = vadd.f32 %v2590_v7, %v939_v14  ;;  %v1171_v17 = vpop.f32.mrb[18].mxu0  ;;  %v941_v18 = vpop.f32.mrb[19].mxu1 }
 0x138   :  { %v1173_v19 = vpop.f32.mrb[19].mxu0 }
 0x139   :  { %v1342_v20 = vmax.f32 %v1169_v15, 0.0  ;;  %v1172_v21 = vadd.f32 %v1171_v17, %v940_v16 }
 0x13b   :  { %v1824_v22 = vpack.c.bf16 %v1342_v20, %v1342_v20  ;;  %v1343_v23 = vmax.f32 %v1172_v21, 0.0 }
 0x13c   :  { %v944_v24 = vpop.f32.mrb[20].mxu1 }
 0x13d   :  { %1589 = vst.msk [vmem:[%s2840_s3 + $0x20] sm:$0xf] %vm1580_vm0, %v1824_v22  ;;  %v1825_v25 = vpack.c.bf16 %v1343_v23, %v1343_v23  ;;  %v945_v26 = vadd.f32 %v2590_v7, %v944_v24  ;;  %v1176_v27 = vpop.f32.mrb[20].mxu0  ;;  %v946_v28 = vpop.f32.mrb[21].mxu1 }
 0x13e   :  { %v1178_v29 = vpop.f32.mrb[21].mxu0  ;;  %v947_v30 = vpop.f32.mrb[22].mxu1 }
 0x13f   :  { %1590 = vst.msk [vmem:[%s2840_s3 + $0x24] sm:$0xf] %vm1580_vm0, %v1825_v25  ;;  %v1177_v31 = vadd.f32 %v1176_v27, %v945_v26  ;;  %v948_v32 = vadd.f32 %v2590_v7, %v947_v30  ;;  %v1179_v33 = vpop.f32.mrb[22].mxu0  ;;  %v949_v34 = vpop.f32.mrb[23].mxu1 }
 0x140   :  { %v1181_v35 = vpop.f32.mrb[23].mxu0 }
 0x141   :  { %v1344_v36 = vmax.f32 %v1177_v31, 0.0  ;;  %v1180_v37 = vadd.f32 %v1179_v33, %v948_v32 }
 0x143   :  { %v1826_v38 = vpack.c.bf16 %v1344_v36, %v1344_v36  ;;  %v1345_v39 = vmax.f32 %v1180_v37, 0.0 }
 0x144   :  { %v952_v40 = vpop.f32.mrb[24].mxu1 }
 0x145   :  { %1591 = vst.msk [vmem:[%s2840_s3 + $0x28] sm:$0xf] %vm1580_vm0, %v1826_v38  ;;  %v1827_v41 = vpack.c.bf16 %v1345_v39, %v1345_v39  ;;  %v953_v42 = vadd.f32 %v2590_v7, %v952_v40  ;;  %v1184_v43 = vpop.f32.mrb[24].mxu0  ;;  %v954_v44 = vpop.f32.mrb[25].mxu1 }
 0x146   :  { %v1186_v45 = vpop.f32.mrb[25].mxu0  ;;  %v955_v46 = vpop.f32.mrb[26].mxu1 }
 0x147   :  { %1592 = vst.msk [vmem:[%s2840_s3 + $0x2c] sm:$0xf] %vm1580_vm0, %v1827_v41  ;;  %v1185_v47 = vadd.f32 %v1184_v43, %v953_v42  ;;  %v956_v48 = vadd.f32 %v2590_v7, %v955_v46  ;;  %v1187_v49 = vpop.f32.mrb[26].mxu0  ;;  %v957_v50 = vpop.f32.mrb[27].mxu1 }
 0x148   :  { %v1189_v51 = vpop.f32.mrb[27].mxu0 }
 0x149   :  { %v1346_v52 = vmax.f32 %v1185_v47, 0.0  ;;  %v1188_v53 = vadd.f32 %v1187_v49, %v956_v48 }
 0x14b   :  { %v1828_v54 = vpack.c.bf16 %v1346_v52, %v1346_v52  ;;  %v1347_v55 = vmax.f32 %v1188_v53, 0.0 }
 0x14c   :  { %v960_v56 = vpop.f32.mrb[28].mxu1 }
 0x14d   :  { %1593 = vst.msk [vmem:[%s2840_s3 + $0x30] sm:$0xf] %vm1580_vm0, %v1828_v54  ;;  %v1829_v57 = vpack.c.bf16 %v1347_v55, %v1347_v55  ;;  %v961_v58 = vadd.f32 %v2590_v7, %v960_v56  ;;  %v1192_v59 = vpop.f32.mrb[28].mxu0  ;;  %v962_v60 = vpop.f32.mrb[29].mxu1 }
 0x14e   :  { %v1194_v61 = vpop.f32.mrb[29].mxu0  ;;  %v963_v62 = vpop.f32.mrb[30].mxu1 }
 0x14f   :  { %1594 = vst.msk [vmem:[%s2840_s3 + $0x34] sm:$0xf] %vm1580_vm0, %v1829_v57  ;;  %v1193_v63 = vadd.f32 %v1192_v59, %v961_v58  ;;  %v964_v0 = vadd.f32 %v2590_v7, %v963_v62  ;;  %v1195_v1 = vpop.f32.mrb[30].mxu0  ;;  %v965_v2 = vpop.f32.mrb[31].mxu1 }
 0x150   :  { %v1197_v3 = vpop.f32.mrb[31].mxu0 }
 0x151   :  { %v1348_v4 = vmax.f32 %v1193_v63, 0.0  ;;  %v1196_v5 = vadd.f32 %v1195_v1, %v964_v0 }
 0x153   :  { %v1830_v6 = vpack.c.bf16 %v1348_v4, %v1348_v4  ;;  %v1349_v8 = vmax.f32 %v1196_v5, 0.0 }
 0x154   :  { %v968_v9 = vpop.f32.mrb[32].mxu1 }
 0x155   :  { %1595 = vst.msk [vmem:[%s2840_s3 + $0x38] sm:$0xf] %vm1580_vm0, %v1830_v6  ;;  %v1831_v10 = vpack.c.bf16 %v1349_v8, %v1349_v8  ;;  %v969_v11 = vadd.f32 %v2590_v7, %v968_v9  ;;  %v1200_v12 = vpop.f32.mrb[32].mxu0  ;;  %v970_v13 = vpop.f32.mrb[33].mxu1 }
 0x156   :  { %v1202_v14 = vpop.f32.mrb[33].mxu0  ;;  %v971_v15 = vpop.f32.mrb[34].mxu1 }
 0x157   :  { %1596 = vst.msk [vmem:[%s2840_s3 + $0x3c] sm:$0xf] %vm1580_vm0, %v1831_v10  ;;  %v1201_v16 = vadd.f32 %v1200_v12, %v969_v11  ;;  %v972_v17 = vadd.f32 %v2590_v7, %v971_v15  ;;  %v1203_v18 = vpop.f32.mrb[34].mxu0  ;;  %v973_v19 = vpop.f32.mrb[35].mxu1 }
 0x158   :  { %v1205_v20 = vpop.f32.mrb[35].mxu0 }
 0x159   :  { %v1350_v21 = vmax.f32 %v1201_v16, 0.0  ;;  %v1204_v22 = vadd.f32 %v1203_v18, %v972_v17 }
 0x15b   :  { %v1832_v23 = vpack.c.bf16 %v1350_v21, %v1350_v21  ;;  %v1351_v24 = vmax.f32 %v1204_v22, 0.0 }
 0x15c   :  { %v976_v25 = vpop.f32.mrb[36].mxu1 }
 0x15d   :  { %1597 = vst.msk [vmem:[%s2840_s3 + $0x40] sm:$0xf] %vm1580_vm0, %v1832_v23  ;;  %v1833_v26 = vpack.c.bf16 %v1351_v24, %v1351_v24  ;;  %v977_v27 = vadd.f32 %v2590_v7, %v976_v25  ;;  %v1208_v28 = vpop.f32.mrb[36].mxu0  ;;  %v978_v29 = vpop.f32.mrb[37].mxu1 }
 0x15e   :  { %v1210_v30 = vpop.f32.mrb[37].mxu0  ;;  %v979_v31 = vpop.f32.mrb[38].mxu1 }
 0x15f   :  { %1598 = vst.msk [vmem:[%s2840_s3 + $0x44] sm:$0xf] %vm1580_vm0, %v1833_v26  ;;  %v1209_v32 = vadd.f32 %v1208_v28, %v977_v27  ;;  %v980_v33 = vadd.f32 %v2590_v7, %v979_v31  ;;  %v1211_v34 = vpop.f32.mrb[38].mxu0  ;;  %v981_v35 = vpop.f32.mrb[39].mxu1 }
 0x160   :  { %v1213_v36 = vpop.f32.mrb[39].mxu0 }
 0x161   :  { %v1352_v37 = vmax.f32 %v1209_v32, 0.0  ;;  %v1212_v38 = vadd.f32 %v1211_v34, %v980_v33 }
 0x163   :  { %v1834_v39 = vpack.c.bf16 %v1352_v37, %v1352_v37  ;;  %v1353_v40 = vmax.f32 %v1212_v38, 0.0 }
 0x164   :  { %v984_v41 = vpop.f32.mrb[40].mxu1 }
 0x165   :  { %1599 = vst.msk [vmem:[%s2840_s3 + $0x48] sm:$0xf] %vm1580_vm0, %v1834_v39  ;;  %v1835_v42 = vpack.c.bf16 %v1353_v40, %v1353_v40  ;;  %v985_v43 = vadd.f32 %v2590_v7, %v984_v41  ;;  %v1216_v44 = vpop.f32.mrb[40].mxu0  ;;  %v986_v45 = vpop.f32.mrb[41].mxu1 }
 0x166   :  { %v1218_v46 = vpop.f32.mrb[41].mxu0  ;;  %v987_v47 = vpop.f32.mrb[42].mxu1 }
 0x167   :  { %1600 = vst.msk [vmem:[%s2840_s3 + $0x4c] sm:$0xf] %vm1580_vm0, %v1835_v42  ;;  %v1217_v48 = vadd.f32 %v1216_v44, %v985_v43  ;;  %v988_v49 = vadd.f32 %v2590_v7, %v987_v47  ;;  %v1219_v50 = vpop.f32.mrb[42].mxu0  ;;  %v989_v51 = vpop.f32.mrb[43].mxu1 }
 0x168   :  { %v1221_v52 = vpop.f32.mrb[43].mxu0 }
 0x169   :  { %v1354_v53 = vmax.f32 %v1217_v48, 0.0  ;;  %v1220_v54 = vadd.f32 %v1219_v50, %v988_v49 }
 0x16b   :  { %v1836_v55 = vpack.c.bf16 %v1354_v53, %v1354_v53  ;;  %v1355_v56 = vmax.f32 %v1220_v54, 0.0 }
 0x16c   :  { %v992_v57 = vpop.f32.mrb[44].mxu1 }
 0x16d   :  { %1601 = vst.msk [vmem:[%s2840_s3 + $0x50] sm:$0xf] %vm1580_vm0, %v1836_v55  ;;  %v1837_v58 = vpack.c.bf16 %v1355_v56, %v1355_v56  ;;  %v993_v59 = vadd.f32 %v2590_v7, %v992_v57  ;;  %v1224_v60 = vpop.f32.mrb[44].mxu0  ;;  %v994_v61 = vpop.f32.mrb[45].mxu1 }
 0x16e   :  { %v1226_v62 = vpop.f32.mrb[45].mxu0  ;;  %v995_v63 = vpop.f32.mrb[46].mxu1 }
 0x16f   :  { %1602 = vst.msk [vmem:[%s2840_s3 + $0x54] sm:$0xf] %vm1580_vm0, %v1837_v58  ;;  %v1225_v0 = vadd.f32 %v1224_v60, %v993_v59  ;;  %v996_v1 = vadd.f32 %v2590_v7, %v995_v63  ;;  %v1227_v2 = vpop.f32.mrb[46].mxu0  ;;  %v997_v3 = vpop.f32.mrb[47].mxu1 }
 0x170   :  { %v1229_v4 = vpop.f32.mrb[47].mxu0 }
 0x171   :  { %v1356_v5 = vmax.f32 %v1225_v0, 0.0  ;;  %v1228_v6 = vadd.f32 %v1227_v2, %v996_v1 }
 0x173   :  { %v1838_v8 = vpack.c.bf16 %v1356_v5, %v1356_v5  ;;  %v1357_v9 = vmax.f32 %v1228_v6, 0.0 }
 0x174   :  { %v1000_v10 = vpop.f32.mrb[48].mxu1 }
 0x175   :  { %1603 = vst.msk [vmem:[%s2840_s3 + $0x58] sm:$0xf] %vm1580_vm0, %v1838_v8  ;;  %v1839_v11 = vpack.c.bf16 %v1357_v9, %v1357_v9  ;;  %v1001_v12 = vadd.f32 %v2590_v7, %v1000_v10  ;;  %v1232_v13 = vpop.f32.mrb[48].mxu0  ;;  %v1002_v14 = vpop.f32.mrb[49].mxu1 }
 0x176   :  { %v1234_v15 = vpop.f32.mrb[49].mxu0  ;;  %v1003_v16 = vpop.f32.mrb[50].mxu1 }
 0x177   :  { %1604 = vst.msk [vmem:[%s2840_s3 + $0x5c] sm:$0xf] %vm1580_vm0, %v1839_v11  ;;  %v1233_v17 = vadd.f32 %v1232_v13, %v1001_v12  ;;  %v1004_v18 = vadd.f32 %v2590_v7, %v1003_v16  ;;  %v1235_v19 = vpop.f32.mrb[50].mxu0  ;;  %v1005_v20 = vpop.f32.mrb[51].mxu1 }
 0x178   :  { %v1237_v21 = vpop.f32.mrb[51].mxu0 }
 0x179   :  { %v1358_v22 = vmax.f32 %v1233_v17, 0.0  ;;  %v1236_v23 = vadd.f32 %v1235_v19, %v1004_v18 }
 0x17b   :  { %v1840_v24 = vpack.c.bf16 %v1358_v22, %v1358_v22  ;;  %v1359_v25 = vmax.f32 %v1236_v23, 0.0 }
 0x17c   :  { %v1008_v26 = vpop.f32.mrb[52].mxu1 }
 0x17d   :  { %1605 = vst.msk [vmem:[%s2840_s3 + $0x60] sm:$0xf] %vm1580_vm0, %v1840_v24  ;;  %v1841_v27 = vpack.c.bf16 %v1359_v25, %v1359_v25  ;;  %v1009_v28 = vadd.f32 %v2590_v7, %v1008_v26  ;;  %v1240_v29 = vpop.f32.mrb[52].mxu0  ;;  %v1010_v30 = vpop.f32.mrb[53].mxu1 }
 0x17e   :  { %v1242_v31 = vpop.f32.mrb[53].mxu0  ;;  %v1011_v32 = vpop.f32.mrb[54].mxu1 }
 0x17f   :  { %1606 = vst.msk [vmem:[%s2840_s3 + $0x64] sm:$0xf] %vm1580_vm0, %v1841_v27  ;;  %v1241_v33 = vadd.f32 %v1240_v29, %v1009_v28  ;;  %v1012_v34 = vadd.f32 %v2590_v7, %v1011_v32  ;;  %v1243_v35 = vpop.f32.mrb[54].mxu0  ;;  %v1013_v36 = vpop.f32.mrb[55].mxu1 }
 0x180   :  { %v1245_v37 = vpop.f32.mrb[55].mxu0 }
 0x181   :  { %v1360_v38 = vmax.f32 %v1241_v33, 0.0  ;;  %v1244_v39 = vadd.f32 %v1243_v35, %v1012_v34 }
 0x183   :  { %v1842_v40 = vpack.c.bf16 %v1360_v38, %v1360_v38  ;;  %v1361_v41 = vmax.f32 %v1244_v39, 0.0 }
 0x184   :  { %v1016_v42 = vpop.f32.mrb[56].mxu1 }
 0x185   :  { %1607 = vst.msk [vmem:[%s2840_s3 + $0x68] sm:$0xf] %vm1580_vm0, %v1842_v40  ;;  %v1843_v43 = vpack.c.bf16 %v1361_v41, %v1361_v41  ;;  %v1017_v44 = vadd.f32 %v2590_v7, %v1016_v42  ;;  %v1248_v45 = vpop.f32.mrb[56].mxu0  ;;  %v1018_v46 = vpop.f32.mrb[57].mxu1 }
 0x186   :  { %v1250_v47 = vpop.f32.mrb[57].mxu0  ;;  %v1019_v48 = vpop.f32.mrb[58].mxu1 }
 0x187   :  { %1608 = vst.msk [vmem:[%s2840_s3 + $0x6c] sm:$0xf] %vm1580_vm0, %v1843_v43  ;;  %v1249_v49 = vadd.f32 %v1248_v45, %v1017_v44  ;;  %v1020_v50 = vadd.f32 %v2590_v7, %v1019_v48  ;;  %v1251_v51 = vpop.f32.mrb[58].mxu0  ;;  %v1021_v52 = vpop.f32.mrb[59].mxu1 }
 0x188   :  { %v1253_v53 = vpop.f32.mrb[59].mxu0 }
 0x189   :  { %v1362_v54 = vmax.f32 %v1249_v49, 0.0  ;;  %v1252_v55 = vadd.f32 %v1251_v51, %v1020_v50 }
 0x18b   :  { %v1844_v56 = vpack.c.bf16 %v1362_v54, %v1362_v54  ;;  %v1363_v57 = vmax.f32 %v1252_v55, 0.0 }
 0x18c   :  { %v1024_v58 = vpop.f32.mrb[60].mxu1 }
 0x18d   :  { %1609 = vst.msk [vmem:[%s2840_s3 + $0x70] sm:$0xf] %vm1580_vm0, %v1844_v56  ;;  %v1845_v59 = vpack.c.bf16 %v1363_v57, %v1363_v57  ;;  %v1025_v60 = vadd.f32 %v2590_v7, %v1024_v58  ;;  %v1256_v61 = vpop.f32.mrb[60].mxu0  ;;  %v1026_v62 = vpop.f32.mrb[61].mxu1 }
 0x18e   :  { %v1258_v63 = vpop.f32.mrb[61].mxu0  ;;  %v1027_v0 = vpop.f32.mrb[62].mxu1 }
 0x18f   :  { %1610 = vst.msk [vmem:[%s2840_s3 + $0x74] sm:$0xf] %vm1580_vm0, %v1845_v59  ;;  %v1257_v1 = vadd.f32 %v1256_v61, %v1025_v60  ;;  %v1028_v2 = vadd.f32 %v2590_v7, %v1027_v0  ;;  %v1259_v3 = vpop.f32.mrb[62].mxu0  ;;  %v1029_v4 = vpop.f32.mrb[63].mxu1 }
 0x190   :  { %v1261_v5 = vpop.f32.mrb[63].mxu0 }
 0x191   :  { %v1364_v6 = vmax.f32 %v1257_v1, 0.0  ;;  %v1260_v8 = vadd.f32 %v1259_v3, %v1028_v2 }
 0x193   :  { %v1846_v9 = vpack.c.bf16 %v1364_v6, %v1364_v6  ;;  %v1365_v10 = vmax.f32 %v1260_v8, 0.0 }
 0x194   :  { %v1032_v11 = vpop.f32.mrb[64].mxu1 }
 0x195   :  { %1611 = vst.msk [vmem:[%s2840_s3 + $0x78] sm:$0xf] %vm1580_vm0, %v1846_v9  ;;  %v1847_v12 = vpack.c.bf16 %v1365_v10, %v1365_v10  ;;  %v1033_v13 = vadd.f32 %v2590_v7, %v1032_v11  ;;  %v1264_v14 = vpop.f32.mrb[64].mxu0  ;;  %v1034_v15 = vpop.f32.mrb[65].mxu1 }
 0x196   :  { %v1266_v16 = vpop.f32.mrb[65].mxu0  ;;  %v1035_v17 = vpop.f32.mrb[66].mxu1 }
 0x197   :  { %1612 = vst.msk [vmem:[%s2840_s3 + $0x7c] sm:$0xf] %vm1580_vm0, %v1847_v12  ;;  %v1265_v18 = vadd.f32 %v1264_v14, %v1033_v13  ;;  %v1036_v19 = vadd.f32 %v2590_v7, %v1035_v17  ;;  %v1267_v20 = vpop.f32.mrb[66].mxu0  ;;  %v1037_v21 = vpop.f32.mrb[67].mxu1 }
 0x198   :  { %v1269_v22 = vpop.f32.mrb[67].mxu0 }
 0x199   :  { %v1366_v23 = vmax.f32 %v1265_v18, 0.0  ;;  %v1268_v24 = vadd.f32 %v1267_v20, %v1036_v19 }
 0x19b   :  { %v1848_v25 = vpack.c.bf16 %v1366_v23, %v1366_v23  ;;  %v1367_v26 = vmax.f32 %v1268_v24, 0.0 }
 0x19c   :  { %v1040_v27 = vpop.f32.mrb[68].mxu1 }
 0x19d   :  { %1613 = vst.msk [vmem:[%s2840_s3 + $0x80] sm:$0xf] %vm1580_vm0, %v1848_v25  ;;  %v1849_v28 = vpack.c.bf16 %v1367_v26, %v1367_v26  ;;  %v1041_v29 = vadd.f32 %v2590_v7, %v1040_v27  ;;  %v1272_v30 = vpop.f32.mrb[68].mxu0  ;;  %v1042_v31 = vpop.f32.mrb[69].mxu1 }
 0x19e   :  { %v1274_v32 = vpop.f32.mrb[69].mxu0  ;;  %v1043_v33 = vpop.f32.mrb[70].mxu1 }
 0x19f   :  { %1614 = vst.msk [vmem:[%s2840_s3 + $0x84] sm:$0xf] %vm1580_vm0, %v1849_v28  ;;  %v1273_v34 = vadd.f32 %v1272_v30, %v1041_v29  ;;  %v1044_v35 = vadd.f32 %v2590_v7, %v1043_v33  ;;  %v1275_v36 = vpop.f32.mrb[70].mxu0  ;;  %v1045_v37 = vpop.f32.mrb[71].mxu1 }
 0x1a0   :  { %v1277_v38 = vpop.f32.mrb[71].mxu0 }
 0x1a1   :  { %v1368_v39 = vmax.f32 %v1273_v34, 0.0  ;;  %v1276_v40 = vadd.f32 %v1275_v36, %v1044_v35 }
 0x1a3   :  { %v1850_v41 = vpack.c.bf16 %v1368_v39, %v1368_v39  ;;  %v1369_v42 = vmax.f32 %v1276_v40, 0.0 }
 0x1a4   :  { %v1048_v43 = vpop.f32.mrb[72].mxu1 }
 0x1a5   :  { %1615 = vst.msk [vmem:[%s2840_s3 + $0x88] sm:$0xf] %vm1580_vm0, %v1850_v41  ;;  %v1851_v44 = vpack.c.bf16 %v1369_v42, %v1369_v42  ;;  %v1049_v45 = vadd.f32 %v2590_v7, %v1048_v43  ;;  %v1280_v46 = vpop.f32.mrb[72].mxu0  ;;  %v1050_v47 = vpop.f32.mrb[73].mxu1 }
 0x1a6   :  { %v1282_v48 = vpop.f32.mrb[73].mxu0  ;;  %v1051_v49 = vpop.f32.mrb[74].mxu1 }
 0x1a7   :  { %1616 = vst.msk [vmem:[%s2840_s3 + $0x8c] sm:$0xf] %vm1580_vm0, %v1851_v44  ;;  %v1281_v50 = vadd.f32 %v1280_v46, %v1049_v45  ;;  %v1052_v51 = vadd.f32 %v2590_v7, %v1051_v49  ;;  %v1283_v52 = vpop.f32.mrb[74].mxu0  ;;  %v1053_v53 = vpop.f32.mrb[75].mxu1 }
 0x1a8   :  { %v1285_v54 = vpop.f32.mrb[75].mxu0 }
 0x1a9   :  { %v1370_v55 = vmax.f32 %v1281_v50, 0.0  ;;  %v1284_v56 = vadd.f32 %v1283_v52, %v1052_v51 }
 0x1ab   :  { %v1852_v57 = vpack.c.bf16 %v1370_v55, %v1370_v55  ;;  %v1371_v58 = vmax.f32 %v1284_v56, 0.0 }
 0x1ac   :  { %v1056_v59 = vpop.f32.mrb[76].mxu1 }
 0x1ad   :  { %1617 = vst.msk [vmem:[%s2840_s3 + $0x90] sm:$0xf] %vm1580_vm0, %v1852_v57  ;;  %v1853_v60 = vpack.c.bf16 %v1371_v58, %v1371_v58  ;;  %v1057_v61 = vadd.f32 %v2590_v7, %v1056_v59  ;;  %v1288_v62 = vpop.f32.mrb[76].mxu0  ;;  %v1058_v63 = vpop.f32.mrb[77].mxu1 }
 0x1ae   :  { %v1290_v0 = vpop.f32.mrb[77].mxu0  ;;  %v1059_v1 = vpop.f32.mrb[78].mxu1 }
 0x1af   :  { %1618 = vst.msk [vmem:[%s2840_s3 + $0x94] sm:$0xf] %vm1580_vm0, %v1853_v60  ;;  %v1289_v2 = vadd.f32 %v1288_v62, %v1057_v61  ;;  %v1060_v3 = vadd.f32 %v2590_v7, %v1059_v1  ;;  %v1291_v4 = vpop.f32.mrb[78].mxu0  ;;  %v1061_v5 = vpop.f32.mrb[79].mxu1 }
 0x1b0   :  { %v1293_v6 = vpop.f32.mrb[79].mxu0 }
 0x1b1   :  { %v1372_v8 = vmax.f32 %v1289_v2, 0.0  ;;  %v1292_v9 = vadd.f32 %v1291_v4, %v1060_v3 }
 0x1b3   :  { %v1854_v10 = vpack.c.bf16 %v1372_v8, %v1372_v8  ;;  %v1373_v11 = vmax.f32 %v1292_v9, 0.0 }
 0x1b4   :  { %v1064_v12 = vpop.f32.mrb[80].mxu1 }
 0x1b5   :  { %1619 = vst.msk [vmem:[%s2840_s3 + $0x98] sm:$0xf] %vm1580_vm0, %v1854_v10  ;;  %v1855_v13 = vpack.c.bf16 %v1373_v11, %v1373_v11  ;;  %v1065_v14 = vadd.f32 %v2590_v7, %v1064_v12  ;;  %v1296_v15 = vpop.f32.mrb[80].mxu0  ;;  %v1066_v16 = vpop.f32.mrb[81].mxu1 }
 0x1b6   :  { %v1298_v17 = vpop.f32.mrb[81].mxu0  ;;  %v1067_v18 = vpop.f32.mrb[82].mxu1 }
 0x1b7   :  { %1620 = vst.msk [vmem:[%s2840_s3 + $0x9c] sm:$0xf] %vm1580_vm0, %v1855_v13  ;;  %v1297_v19 = vadd.f32 %v1296_v15, %v1065_v14  ;;  %v1068_v20 = vadd.f32 %v2590_v7, %v1067_v18  ;;  %v1299_v21 = vpop.f32.mrb[82].mxu0  ;;  %v1069_v22 = vpop.f32.mrb[83].mxu1 }
 0x1b8   :  { %v1301_v23 = vpop.f32.mrb[83].mxu0 }
 0x1b9   :  { %v1374_v24 = vmax.f32 %v1297_v19, 0.0  ;;  %v1300_v25 = vadd.f32 %v1299_v21, %v1068_v20 }
 0x1bb   :  { %v1856_v26 = vpack.c.bf16 %v1374_v24, %v1374_v24  ;;  %v1375_v27 = vmax.f32 %v1300_v25, 0.0 }
 0x1bc   :  { %v1072_v28 = vpop.f32.mrb[84].mxu1 }
 0x1bd   :  { %1621 = vst.msk [vmem:[%s2840_s3 + $0xa0] sm:$0xf] %vm1580_vm0, %v1856_v26  ;;  %v1857_v29 = vpack.c.bf16 %v1375_v27, %v1375_v27  ;;  %v1073_v30 = vadd.f32 %v2590_v7, %v1072_v28  ;;  %v1304_v31 = vpop.f32.mrb[84].mxu0  ;;  %v1074_v32 = vpop.f32.mrb[85].mxu1 }
 0x1be   :  { %v1306_v33 = vpop.f32.mrb[85].mxu0  ;;  %v1075_v34 = vpop.f32.mrb[86].mxu1 }
 0x1bf   :  { %1622 = vst.msk [vmem:[%s2840_s3 + $0xa4] sm:$0xf] %vm1580_vm0, %v1857_v29  ;;  %v1305_v35 = vadd.f32 %v1304_v31, %v1073_v30  ;;  %v1076_v36 = vadd.f32 %v2590_v7, %v1075_v34  ;;  %v1307_v37 = vpop.f32.mrb[86].mxu0  ;;  %v1077_v38 = vpop.f32.mrb[87].mxu1 }
 0x1c0   :  { %v1309_v39 = vpop.f32.mrb[87].mxu0 }
 0x1c1   :  { %v1376_v40 = vmax.f32 %v1305_v35, 0.0  ;;  %v1308_v41 = vadd.f32 %v1307_v37, %v1076_v36 }
 0x1c3   :  { %v1858_v42 = vpack.c.bf16 %v1376_v40, %v1376_v40  ;;  %v1377_v43 = vmax.f32 %v1308_v41, 0.0 }
 0x1c4   :  { %v1080_v44 = vpop.f32.mrb[88].mxu1 }
 0x1c5   :  { %1623 = vst.msk [vmem:[%s2840_s3 + $0xa8] sm:$0xf] %vm1580_vm0, %v1858_v42  ;;  %v1859_v45 = vpack.c.bf16 %v1377_v43, %v1377_v43  ;;  %v1081_v46 = vadd.f32 %v2590_v7, %v1080_v44  ;;  %v1312_v47 = vpop.f32.mrb[88].mxu0  ;;  %v1082_v48 = vpop.f32.mrb[89].mxu1 }
 0x1c6   :  { %v1314_v49 = vpop.f32.mrb[89].mxu0  ;;  %v1083_v50 = vpop.f32.mrb[90].mxu1 }
 0x1c7   :  { %1624 = vst.msk [vmem:[%s2840_s3 + $0xac] sm:$0xf] %vm1580_vm0, %v1859_v45  ;;  %v1313_v51 = vadd.f32 %v1312_v47, %v1081_v46  ;;  %v1084_v52 = vadd.f32 %v2590_v7, %v1083_v50  ;;  %v1315_v53 = vpop.f32.mrb[90].mxu0  ;;  %v1085_v54 = vpop.f32.mrb[91].mxu1 }
 0x1c8   :  { %v1317_v55 = vpop.f32.mrb[91].mxu0 }
 0x1c9   :  { %v1378_v56 = vmax.f32 %v1313_v51, 0.0  ;;  %v1316_v57 = vadd.f32 %v1315_v53, %v1084_v52 }
 0x1cb   :  { %v1860_v58 = vpack.c.bf16 %v1378_v56, %v1378_v56  ;;  %v1379_v59 = vmax.f32 %v1316_v57, 0.0 }
 0x1cc   :  { %v1088_v60 = vpop.f32.mrb[92].mxu1 }
 0x1cd   :  { %1625 = vst.msk [vmem:[%s2840_s3 + $0xb0] sm:$0xf] %vm1580_vm0, %v1860_v58  ;;  %v1861_v61 = vpack.c.bf16 %v1379_v59, %v1379_v59  ;;  %v1089_v62 = vadd.f32 %v2590_v7, %v1088_v60  ;;  %v1320_v63 = vpop.f32.mrb[92].mxu0  ;;  %v1090_v0 = vpop.f32.mrb[93].mxu1 }
 0x1ce   :  { %v1322_v1 = vpop.f32.mrb[93].mxu0  ;;  %v1091_v2 = vpop.f32.mrb[94].mxu1 }
 0x1cf   :  { %1626 = vst.msk [vmem:[%s2840_s3 + $0xb4] sm:$0xf] %vm1580_vm0, %v1861_v61  ;;  %v1321_v3 = vadd.f32 %v1320_v63, %v1089_v62  ;;  %v1092_v4 = vadd.f32 %v2590_v7, %v1091_v2  ;;  %v1323_v5 = vpop.f32.mrb[94].mxu0  ;;  %v1093_v6 = vpop.f32.mrb[95].mxu1 }
 0x1d0   :  { %v1325_v8 = vpop.f32.mrb[95].mxu0 }
 0x1d1   :  { %v1380_v9 = vmax.f32 %v1321_v3, 0.0  ;;  %v1324_v10 = vadd.f32 %v1323_v5, %v1092_v4 }
 0x1d3   :  { %v1862_v11 = vpack.c.bf16 %v1380_v9, %v1380_v9  ;;  %v1381_v12 = vmax.f32 %v1324_v10, 0.0 }
 0x1d4   :  { %v1096_v13 = vpop.f32.mrb[96].mxu1 }
 0x1d5   :  { %1627 = vst.msk [vmem:[%s2840_s3 + $0xb8] sm:$0xf] %vm1580_vm0, %v1862_v11  ;;  %v1863_v14 = vpack.c.bf16 %v1381_v12, %v1381_v12  ;;  %v1097_v15 = vadd.f32 %v2590_v7, %v1096_v13  ;;  %v1328_v16 = vpop.f32.mrb[96].mxu0  ;;  %v1098_v17 = vpop.f32.mrb[97].mxu1 }
 0x1d6   :  { %v1330_v18 = vpop.f32.mrb[97].mxu0  ;;  %v1099_v19 = vpop.f32.mrb[98].mxu1 }
 0x1d7   :  { %1628 = vst.msk [vmem:[%s2840_s3 + $0xbc] sm:$0xf] %vm1580_vm0, %v1863_v14  ;;  %v1329_v20 = vadd.f32 %v1328_v16, %v1097_v15  ;;  %v1331_v21 = vpop.f32.mrb[98].mxu0  ;;  %v1100_v22 = vpop.f32.mrb[99].mxu1 }
 0x1d8   :  { %v1332_v23 = vpop.f32.mrb[99].mxu0 }
 0x1d9   :  { %v1382_v24 = vmax.f32 %v1329_v20, 0.0 }
 0x1db   :  { %v1864_v25 = vpack.c.bf16 %v1382_v24, %v1382_v24 }
 0x1dd   :  { %1629 = vst.msk [vmem:[%s2840_s3 + $0xc0] sm:$0xf] %vm1580_vm0, %v1864_v25 }

// kernel: mymodel_forward.6
= control target key start
LH: loop header
LB: loop body
LE: loop exit
PB: predicated region body
PF: predicated region fallthrough
CT: control target
= control target key end

     0   :  { %s1883_s1 = inlined_call_operand.vmem [shape: bf16[1024,128], index: 1, kind: input, shape index: {}]   ;;  %s1884_s0 = inlined_call_operand.vmem [shape: bf16[72,1024], index: 0, kind: input, shape index: {}]   ;;  %s1885_s2 = inlined_call_operand.vmem [shape: f32[1,128], index: 2, kind: input, shape index: {}]   ;;  %s1886_s3 = inlined_call_operand.vmem [shape: bf16[72,128], index: 3, kind: output, shape index: {}]  }
   0x1   :  { %v1435_v0 = vld [vmem:[%s1883_s1 + $0x40] sm:$0xff]   ;;  %v1439_v4 = vld [vmem:[%s1883_s1 + $0x48] sm:$0xff]   ;;  %v1443_v8 = vld [vmem:[%s1883_s1 + $0x50] sm:$0xff]  }
   0x2   :  { %v1436_v1 = vld [vmem:[%s1883_s1 + $0xc0] sm:$0xff]   ;;  %1251 = vmatprep.subr.bf16.mxu0 %v1435_v0  ;;  %v1440_v5 = vld [vmem:[%s1883_s1 + $0xc8] sm:$0xff]   ;;  %v1444_v9 = vld [vmem:[%s1883_s1 + $0xd0] sm:$0xff]  }
   0x3   :  { %v1437_v2 = vld [vmem:[%s1883_s1] sm:$0xff]   ;;  %1297 = vmatprep.subr.bf16.mxu1 %v1436_v1  ;;  %v1441_v6 = vld [vmem:[%s1883_s1 + $0x8] sm:$0xff]   ;;  %v1445_v10 = vld [vmem:[%s1883_s1 + $0x10] sm:$0xff]  }
   0x4   :  { %v1438_v3 = vld [vmem:[%s1883_s1 + $0x80] sm:$0xff]   ;;  %1252 = vmatpush3.bf16.msra.mxu0 %v1437_v2  ;;  %v1442_v7 = vld [vmem:[%s1883_s1 + $0x88] sm:$0xff]   ;;  %v1446_v11 = vld [vmem:[%s1883_s1 + $0x90] sm:$0xff]  }
   0x5   :  { %1298 = vmatpush3.bf16.msra.mxu1 %v1438_v3  ;;  %1253 = vmatprep.subr.bf16.mxu0 %v1439_v4  ;;  %v1447_v12 = vld [vmem:[%s1883_s1 + $0x58] sm:$0xff]   ;;  %v1451_v16 = vld [vmem:[%s1883_s1 + $0x60] sm:$0xff]   ;;  %v1455_v20 = vld [vmem:[%s1883_s1 + $0x68] sm:$0xff]  }
   0x6   :  { %1299 = vmatprep.subr.bf16.mxu1 %v1440_v5  ;;  %v1448_v13 = vld [vmem:[%s1883_s1 + $0xd8] sm:$0xff]   ;;  %v1452_v17 = vld [vmem:[%s1883_s1 + $0xe0] sm:$0xff]   ;;  %v1456_v21 = vld [vmem:[%s1883_s1 + $0xe8] sm:$0xff]  }
   0x7   :  { %v1449_v14 = vld [vmem:[%s1883_s1 + $0x18] sm:$0xff]   ;;  %v1453_v18 = vld [vmem:[%s1883_s1 + $0x20] sm:$0xff]   ;;  %v1457_v22 = vld [vmem:[%s1883_s1 + $0x28] sm:$0xff]  }
   0x8   :  { %1254 = vmatpush3.bf16.msra.mxu0 %v1441_v6  ;;  %v1450_v15 = vld [vmem:[%s1883_s1 + $0x98] sm:$0xff]   ;;  %v1454_v19 = vld [vmem:[%s1883_s1 + $0xa0] sm:$0xff]   ;;  %v1458_v23 = vld [vmem:[%s1883_s1 + $0xa8] sm:$0xff]  }
   0x9   :  { %1300 = vmatpush3.bf16.msra.mxu1 %v1442_v7  ;;  %1255 = vmatprep.subr.bf16.mxu0 %v1443_v8  ;;  %v1459_v24 = vld [vmem:[%s1883_s1 + $0x70] sm:$0xff]   ;;  %v1463_v28 = vld [vmem:[%s1883_s1 + $0x78] sm:$0xff]   ;;  %v15_v32 = vld [vmem:[%s1884_s0] sm:$0xff] }
   0xa   :  { %1301 = vmatprep.subr.bf16.mxu1 %v1444_v9  ;;  %v1460_v25 = vld [vmem:[%s1883_s1 + $0xf0] sm:$0xff]   ;;  %v1464_v29 = vld [vmem:[%s1883_s1 + $0xf8] sm:$0xff]   ;;  %v19_v33 = vld [vmem:[%s1884_s0 + $0x20] sm:$0xff] }
   0xb   :  { %v1461_v26 = vld [vmem:[%s1883_s1 + $0x30] sm:$0xff]   ;;  %v1465_v30 = vld [vmem:[%s1883_s1 + $0x38] sm:$0xff]   ;;  %v16_v34 = vld [vmem:[%s1884_s0 + $0x8] sm:$0xff]  ;;  %v1106_v35 = vcombine.low %v15_v32, %v19_v33  ;;  %v1107_v36 = vcombine.high %v15_v32, %v19_v33 }
   0xc   :  { %1256 = vmatpush3.bf16.msra.mxu0 %v1445_v10  ;;  %v1462_v27 = vld [vmem:[%s1883_s1 + $0xb0] sm:$0xff]   ;;  %v1466_v31 = vld [vmem:[%s1883_s1 + $0xb8] sm:$0xff]   ;;  %v20_v37 = vld [vmem:[%s1884_s0 + $0x28] sm:$0xff] }
   0xd   :  { %1302 = vmatpush3.bf16.msra.mxu1 %v1446_v11  ;;  %1257 = vmatprep.subr.bf16.mxu0 %v1447_v12  ;;  %v1108_v38 = vcombine.low %v16_v34, %v20_v37  ;;  %v1109_v39 = vcombine.high %v16_v34, %v20_v37  ;;  %v1467_v40 = vld [vmem:[%s1883_s1 + $0x140] sm:$0xff]   ;;  %v1471_v44 = vld [vmem:[%s1883_s1 + $0x148] sm:$0xff]   ;;  %v1475_v56 = vld [vmem:[%s1883_s1 + $0x150] sm:$0xff]  }
   0xe   :  { %1303 = vmatprep.subr.bf16.mxu1 %v1448_v13  ;;  %790 = vmatprep.mubr.bf16.mxu0 %v1107_v36  ;;  %v1468_v41 = vld [vmem:[%s1883_s1 + $0x100] sm:$0xff]   ;;  %v1472_v45 = vld [vmem:[%s1883_s1 + $0x108] sm:$0xff]   ;;  %v1476_v57 = vld [vmem:[%s1883_s1 + $0x110] sm:$0xff]  }
   0xf   :  { %862 = vmatprep.mubr.bf16.mxu1 %v1109_v39  ;;  %v1469_v42 = vld [vmem:[%s1883_s1 + $0x1c0] sm:$0xff]   ;;  %v24_v49 = vld [vmem:[%s1884_s0 + $0x48] sm:$0xff]  ;;  %v1477_v58 = vld [vmem:[%s1883_s1 + $0x1d0] sm:$0xff]  }
  0x10   :  { %1258 = vmatpush3.bf16.msra.mxu0 %v1449_v14  ;;  %v1470_v43 = vld [vmem:[%s1883_s1 + $0x180] sm:$0xff]   ;;  %v28_v50 = vld [vmem:[%s1884_s0 + $0x68] sm:$0xff]  ;;  %v1478_v59 = vld [vmem:[%s1883_s1 + $0x190] sm:$0xff]  }
  0x11   :  { %1304 = vmatpush3.bf16.msra.mxu1 %v1450_v15  ;;  %1259 = vmatprep.subr.bf16.mxu0 %v1451_v16  ;;  %v23_v46 = vld [vmem:[%s1884_s0 + $0x40] sm:$0xff]  ;;  %v1117_v52 = vcombine.high %v24_v49, %v28_v50  ;;  %v1473_v53 = vld [vmem:[%s1883_s1 + $0x1c8] sm:$0xff]   ;;  %v1116_v54 = vcombine.low %v24_v49, %v28_v50  ;;  %v1479_v2 = vld [vmem:[%s1883_s1 + $0x158] sm:$0xff]  }
  0x12   :  { %1305 = vmatprep.subr.bf16.mxu1 %v1452_v17  ;;  %v27_v47 = vld [vmem:[%s1884_s0 + $0x60] sm:$0xff]  ;;  %v1474_v55 = vld [vmem:[%s1883_s1 + $0x188] sm:$0xff]   ;;  %v1480_v5 = vld [vmem:[%s1883_s1 + $0x118] sm:$0xff]  }
  0x13   :  { %v1115_v48 = vcombine.high %v23_v46, %v27_v47  ;;  %v1114_v51 = vcombine.low %v23_v46, %v27_v47  ;;  %v31_v60 = vld [vmem:[%s1884_s0 + $0x80] sm:$0xff]  ;;  %v32_v62 = vld [vmem:[%s1884_s0 + $0x88] sm:$0xff]  ;;  %v1481_v6 = vld [vmem:[%s1883_s1 + $0x1d8] sm:$0xff]  }
  0x14   :  { %1260 = vmatpush3.bf16.msra.mxu0 %v1453_v18  ;;  %v35_v61 = vld [vmem:[%s1884_s0 + $0xa0] sm:$0xff]  ;;  %v36_v63 = vld [vmem:[%s1884_s0 + $0xa8] sm:$0xff]  ;;  %v1482_v7 = vld [vmem:[%s1883_s1 + $0x198] sm:$0xff]  }
  0x15   :  { %1306 = vmatpush3.bf16.msra.mxu1 %v1454_v19  ;;  %1261 = vmatprep.subr.bf16.mxu0 %v1455_v20  ;;  %v1123_v0 = vcombine.high %v31_v60, %v35_v61  ;;  %v1125_v1 = vcombine.high %v32_v62, %v36_v63  ;;  %v1122_v3 = vcombine.low %v31_v60, %v35_v61  ;;  %v1483_v8 = vld [vmem:[%s1883_s1 + $0x160] sm:$0xff]   ;;  %v40_v13 = vld [vmem:[%s1884_s0 + $0xc8] sm:$0xff]  ;;  %v1498_v33 = vld [vmem:[%s1883_s1 + $0x1b0] sm:$0xff]  }
  0x16   :  { %1307 = vmatprep.subr.bf16.mxu1 %v1456_v21  ;;  %v1124_v4 = vcombine.low %v32_v62, %v36_v63  ;;  %v1484_v9 = vld [vmem:[%s1883_s1 + $0x120] sm:$0xff]   ;;  %v44_v15 = vld [vmem:[%s1884_s0 + $0xe8] sm:$0xff]  ;;  %v1499_v34 = vld [vmem:[%s1883_s1 + $0x178] sm:$0xff]  }
  0x17   :  { %v1485_v10 = vld [vmem:[%s1883_s1 + $0x1e0] sm:$0xff]   ;;  %v1133_v17 = vcombine.high %v40_v13, %v44_v15  ;;  %v1132_v19 = vcombine.low %v40_v13, %v44_v15  ;;  %v1487_v20 = vld [vmem:[%s1883_s1 + $0x168] sm:$0xff]   ;;  %v1501_v36 = vld [vmem:[%s1883_s1 + $0x1f8] sm:$0xff]  }
  0x18   :  { %1262 = vmatpush3.bf16.msra.mxu0 %v1457_v22  ;;  %v39_v11 = vld [vmem:[%s1884_s0 + $0xc0] sm:$0xff]  ;;  %v1488_v21 = vld [vmem:[%s1883_s1 + $0x128] sm:$0xff]   ;;  %v1502_v37 = vld [vmem:[%s1883_s1 + $0x1b8] sm:$0xff]  }
  0x19   :  { %1308 = vmatpush3.bf16.msra.mxu1 %v1458_v23  ;;  %1263 = vmatprep.subr.bf16.mxu0 %v1459_v24  ;;  %v43_v12 = vld [vmem:[%s1884_s0 + $0xe0] sm:$0xff]  ;;  %v1489_v22 = vld [vmem:[%s1883_s1 + $0x1e8] sm:$0xff]   ;;  %v1491_v24 = vld [vmem:[%s1883_s1 + $0x170] sm:$0xff]  }
  0x1a   :  { %1309 = vmatprep.subr.bf16.mxu1 %v1460_v25  ;;  %v1131_v14 = vcombine.high %v39_v11, %v43_v12  ;;  %v1130_v16 = vcombine.low %v39_v11, %v43_v12  ;;  %v1486_v18 = vld [vmem:[%s1883_s1 + $0x1a0] sm:$0xff]   ;;  %v1490_v23 = vld [vmem:[%s1883_s1 + $0x1a8] sm:$0xff]   ;;  %v21_v39 = vld [vmem:[%s1884_s0 + $0x30] sm:$0xff] }
  0x1b   :  { %v47_v25 = vld [vmem:[%s1884_s0 + $0x100] sm:$0xff]  ;;  %v26_v47 = vld [vmem:[%s1884_s0 + $0x58] sm:$0xff]  ;;  %v41_v60 = vld [vmem:[%s1884_s0 + $0xd0] sm:$0xff] }
  0x1c   :  { %1264 = vmatpush3.bf16.msra.mxu0 %v1461_v26  ;;  %v48_v26 = vld [vmem:[%s1884_s0 + $0x108] sm:$0xff]  ;;  %v45_v61 = vld [vmem:[%s1884_s0 + $0xf0] sm:$0xff]  ;;  %v42_v62 = vld [vmem:[%s1884_s0 + $0xd8] sm:$0xff] }
  0x1d   :  { %1310 = vmatpush3.bf16.msra.mxu1 %v1462_v27  ;;  %1265 = vmatprep.subr.bf16.mxu0 %v1463_v28  ;;  %v1139_v27 = vcombine.high %v47_v25, %v47_v25  ;;  %v1141_v28 = vcombine.high %v48_v26, %v48_v26  ;;  %v1140_v32 = vcombine.low %v48_v26, %v48_v26  ;;  %v46_v63 = vld [vmem:[%s1884_s0 + $0xf8] sm:$0xff] }
  0x1e   :  { %1311 = vmatprep.subr.bf16.mxu1 %v1464_v29  ;;  %v1494_v29 = vld [vmem:[%s1883_s1 + $0x130] sm:$0xff]  }
  0x20   :  { %1266 = vmatpush3.bf16.msra.mxu0 %v1465_v30  ;;  %v1138_v30 = vcombine.low %v47_v25, %v47_v25 }
  0x21   :  { %1312 = vmatpush3.bf16.msra.mxu1 %v1466_v31  ;;  %1343 = vmatprep.subr.bf16.mxu0 %v1467_v40  ;;  %v1497_v31 = vld [vmem:[%s1883_s1 + $0x1f0] sm:$0xff]   ;;  %v18_v40 = vld [vmem:[%s1884_s0 + $0x18] sm:$0xff] }
  0x22   :  { %1389 = vmatprep.subr.bf16.mxu1 %v1469_v42  ;;  %v22_v42 = vld [vmem:[%s1884_s0 + $0x38] sm:$0xff] }
  0x23   :  { %791 = vmatmul.mubr.bf16.vlgmr.msra.gmra.mrb[0].mxu0 %v1106_v35  ;;  %v1500_v35 = vld [vmem:[%s1883_s1 + $0x138] sm:$0xff]   ;;  %v1113_v46 = vcombine.high %v18_v40, %v22_v42  ;;  %v1112_v49 = vcombine.low %v18_v40, %v22_v42 }
  0x24   :  { %863 = vmatmul.mubr.bf16.vlgmr.msra.gmra.mrb[0].mxu1 %v1108_v38  ;;  %1344 = vmatpush3.bf16.msra.mxu0 %v1468_v41  ;;  %v17_v38 = vld [vmem:[%s1884_s0 + $0x10] sm:$0xff] }
  0x25   :  { %1390 = vmatpush3.bf16.msra.mxu1 %v1470_v43  ;;  %1345 = vmatprep.subr.bf16.mxu0 %v1471_v44  ;;  %v1111_v41 = vcombine.high %v17_v38, %v21_v39  ;;  %v25_v43 = vld [vmem:[%s1884_s0 + $0x50] sm:$0xff] }
  0x26   :  { %798 = vmatprep.mubr.bf16.mxu0 %v1115_v48  ;;  %870 = vmatprep.mubr.bf16.mxu1 %v1117_v52  ;;  %v29_v44 = vld [vmem:[%s1884_s0 + $0x70] sm:$0xff]  ;;  %v30_v48 = vld [vmem:[%s1884_s0 + $0x78] sm:$0xff] }
  0x27   :  { %1391 = vmatprep.subr.bf16.mxu1 %v1473_v53  ;;  %v1119_v50 = vcombine.high %v25_v43, %v29_v44  ;;  %v33_v52 = vld [vmem:[%s1884_s0 + $0x90] sm:$0xff] }
  0x28   :  { %1346 = vmatpush3.bf16.msra.mxu0 %v1472_v45  ;;  %v1110_v45 = vcombine.low %v17_v38, %v21_v39  ;;  %v37_v53 = vld [vmem:[%s1884_s0 + $0xb0] sm:$0xff] }
  0x29   :  { %1392 = vmatpush3.bf16.msra.mxu1 %v1474_v55  ;;  %1347 = vmatprep.subr.bf16.mxu0 %v1475_v56  ;;  %v38_v55 = vld [vmem:[%s1884_s0 + $0xb8] sm:$0xff]  ;;  %v1118_v56 = vcombine.low %v25_v43, %v29_v44 }
  0x2a   :  { %1393 = vmatprep.subr.bf16.mxu1 %v1477_v58  ;;  %v1127_v58 = vcombine.high %v33_v52, %v37_v53 }
  0x2b   :  { %799 = vmatmul.mubr.bf16.gmra.mrb[4].mxu0 %v1114_v51  ;;  %v1121_v51 = vcombine.high %v26_v47, %v30_v48 }
  0x2c   :  { %871 = vmatmul.mubr.bf16.gmra.mrb[4].mxu1 %v1116_v54  ;;  %1348 = vmatpush3.bf16.msra.mxu0 %v1476_v57  ;;  %v34_v54 = vld [vmem:[%s1884_s0 + $0x98] sm:$0xff]  ;;  %v1120_v57 = vcombine.low %v26_v47, %v30_v48 }
  0x2d   :  { %1394 = vmatpush3.bf16.msra.mxu1 %v1478_v59  ;;  %806 = vmatprep.mubr.bf16.mxu0 %v1123_v0  ;;  %v1129_v59 = vcombine.high %v34_v54, %v38_v55  ;;  %v1126_v0 = vcombine.low %v33_v52, %v37_v53 }
  0x2e   :  { %878 = vmatprep.mubr.bf16.mxu1 %v1125_v1  ;;  %1349 = vmatprep.subr.bf16.mxu0 %v1479_v2  ;;  %v1128_v1 = vcombine.low %v34_v54, %v38_v55  ;;  %v1135_v2 = vcombine.high %v41_v60, %v45_v61 }
  0x2f   :  { %1395 = vmatprep.subr.bf16.mxu1 %v1481_v6  ;;  %v1134_v6 = vcombine.low %v41_v60, %v45_v61 }
  0x30   :  { %1350 = vmatpush3.bf16.msra.mxu0 %v1480_v5  ;;  %v50_v5 = vld [vmem:[%s1884_s0 + $0x118] sm:$0xff] }
  0x31   :  { %1396 = vmatpush3.bf16.msra.mxu1 %v1482_v7  ;;  %1351 = vmatprep.subr.bf16.mxu0 %v1483_v8  ;;  %v1136_v7 = vcombine.low %v42_v62, %v46_v63  ;;  %v1144_v11 = vcombine.low %v50_v5, %v50_v5 }
  0x32   :  { %1397 = vmatprep.subr.bf16.mxu1 %v1485_v10 }
  0x33   :  { %807 = vmatmul.mubr.bf16.gmra.mrb[8].mxu0 %v1122_v3  ;;  %v1137_v3 = vcombine.high %v42_v62, %v46_v63 }
  0x34   :  { %879 = vmatmul.mubr.bf16.gmra.mrb[8].mxu1 %v1124_v4  ;;  %1352 = vmatpush3.bf16.msra.mxu0 %v1484_v9  ;;  %v49_v4 = vld [vmem:[%s1884_s0 + $0x110] sm:$0xff]  ;;  %v1145_v9 = vcombine.high %v50_v5, %v50_v5 }
  0x35   :  { %814 = vmatprep.mubr.bf16.mxu0 %v1131_v14  ;;  %886 = vmatprep.mubr.bf16.mxu1 %v1133_v17  ;;  %v1143_v8 = vcombine.high %v49_v4, %v49_v4  ;;  %v1142_v10 = vcombine.low %v49_v4, %v49_v4  ;;  %v1830_v14 = vld [vmem:[%s1885_s2] ss:$0 sm:$0xff] }
  0x36   :  { %1398 = vmatpush3.bf16.msra.mxu1 %v1486_v18  ;;  %1353 = vmatprep.subr.bf16.mxu0 %v1487_v20 }
  0x37   :  { %1399 = vmatprep.subr.bf16.mxu1 %v1489_v22 }
  0x38   :  { %1354 = vmatpush3.bf16.msra.mxu0 %v1488_v21 }
  0x39   :  { %1355 = vmatprep.subr.bf16.mxu0 %v1491_v24 }
  0x3a   :  { %1400 = vmatpush3.bf16.msra.mxu1 %v1490_v23 }
  0x3b   :  { %815 = vmatmul.mubr.bf16.gmra.mrb[12].mxu0 %v1130_v16  ;;  %1401 = vmatprep.subr.bf16.mxu1 %v1497_v31 }
  0x3c   :  { %887 = vmatmul.mubr.bf16.gmra.mrb[12].mxu1 %v1132_v19  ;;  %822 = vmatprep.mubr.bf16.mxu0 %v1139_v27 }
  0x3d   :  { %894 = vmatprep.mubr.bf16.mxu1 %v1141_v28  ;;  %1356 = vmatpush3.bf16.msra.mxu0 %v1494_v29 }
  0x3e   :  { %1402 = vmatpush3.bf16.msra.mxu1 %v1498_v33  ;;  %1357 = vmatprep.subr.bf16.mxu0 %v1499_v34 }
  0x3f   :  { %1403 = vmatprep.subr.bf16.mxu1 %v1501_v36 }
  0x41   :  { %1358 = vmatpush3.bf16.msra.mxu0 %v1500_v35 }
  0x42   :  { %1404 = vmatpush3.bf16.msra.mxu1 %v1502_v37 }
  0x43   :  { %823 = vmatmul.mubr.bf16.gmra.mrb[16].mxu0 %v1138_v30 }
  0x44   :  { %895 = vmatmul.mubr.bf16.gmra.mrb[16].mxu1 %v1140_v32  ;;  %934 = vmatprep.mubr.bf16.mxu0 %v1111_v41 }
  0x45   :  { %1006 = vmatprep.mubr.bf16.mxu1 %v1113_v46 }
  0x4b   :  { %935 = vmatmul.mubr.bf16.vlgmr.msra.gmra.mrb[20].mxu0 %v1110_v45 }
  0x4c   :  { %1007 = vmatmul.mubr.bf16.vlgmr.msra.gmra.mrb[20].mxu1 %v1112_v49  ;;  %942 = vmatprep.mubr.bf16.mxu0 %v1119_v50 }
  0x4d   :  { %1014 = vmatprep.mubr.bf16.mxu1 %v1121_v51 }
  0x53   :  { %943 = vmatmul.mubr.bf16.gmra.mrb[24].mxu0 %v1118_v56 }
  0x54   :  { %1015 = vmatmul.mubr.bf16.gmra.mrb[24].mxu1 %v1120_v57  ;;  %950 = vmatprep.mubr.bf16.mxu0 %v1127_v58 }
  0x55   :  { %1022 = vmatprep.mubr.bf16.mxu1 %v1129_v59 }
  0x5b   :  { %951 = vmatmul.mubr.bf16.gmra.mrb[28].mxu0 %v1126_v0 }
  0x5c   :  { %1023 = vmatmul.mubr.bf16.gmra.mrb[28].mxu1 %v1128_v1  ;;  %958 = vmatprep.mubr.bf16.mxu0 %v1135_v2 }
  0x5d   :  { %1030 = vmatprep.mubr.bf16.mxu1 %v1137_v3 }
  0x63   :  { %959 = vmatmul.mubr.bf16.gmra.mrb[32].mxu0 %v1134_v6 }
  0x64   :  { %1031 = vmatmul.mubr.bf16.gmra.mrb[32].mxu1 %v1136_v7  ;;  %966 = vmatprep.mubr.bf16.mxu0 %v1143_v8 }
  0x65   :  { %1038 = vmatprep.mubr.bf16.mxu1 %v1145_v9 }
  0x6b   :  { %967 = vmatmul.mubr.bf16.gmra.mrb[36].mxu0 %v1142_v10 }
  0x6c   :  { %1039 = vmatmul.mubr.bf16.gmra.mrb[36].mxu1 %v1144_v11 }
  0xf6   :  { %v1267_v12 = vpop.f32.mrb[0].mxu0 }
  0xf7   :  { %v1313_v13 = vpop.f32.mrb[0].mxu1  ;;  %v1268_v15 = vpop.f32.mrb[1].mxu0 }
  0xf8   :  { %v1269_v16 = vadd.f32 %v1268_v15, %v1267_v12  ;;  %v1314_v17 = vpop.f32.mrb[1].mxu1  ;;  %v1270_v18 = vpop.f32.mrb[2].mxu0 }
  0xf9   :  { %v1315_v19 = vadd.f32 %v1314_v17, %v1313_v13  ;;  %v1316_v20 = vpop.f32.mrb[2].mxu1  ;;  %v1271_v21 = vpop.f32.mrb[3].mxu0 }
  0xfa   :  { %v793_v22 = vadd.f32 %v1269_v16, %v1830_v14  ;;  %v1272_v23 = vadd.f32 %v1271_v21, %v1270_v18  ;;  %v1317_v24 = vpop.f32.mrb[3].mxu1 }
  0xfb   :  { %v1318_v25 = vadd.f32 %v1317_v24, %v1316_v20 }
  0xfc   :  { %v1833_v26 = vadd.f32 %v1315_v19, %v793_v22  ;;  %v796_v27 = vadd.f32 %v1272_v23, %v1830_v14 }
  0xfe   :  { %v1836_v28 = vadd.f32 %v1318_v25, %v796_v27  ;;  %v1273_v29 = vpop.f32.mrb[4].mxu0 }
  0xff   :  { %v1319_v30 = vpop.f32.mrb[4].mxu1  ;;  %v1274_v31 = vpop.f32.mrb[5].mxu0 }
 0x100   :  { %v1275_v32 = vadd.f32 %v1274_v31, %v1273_v29  ;;  %v1320_v33 = vpop.f32.mrb[5].mxu1  ;;  %v1276_v34 = vpop.f32.mrb[6].mxu0 }
 0x101   :  { %v1321_v35 = vadd.f32 %v1320_v33, %v1319_v30  ;;  %v1322_v36 = vpop.f32.mrb[6].mxu1  ;;  %v1277_v37 = vpop.f32.mrb[7].mxu0 }
 0x102   :  { %v801_v38 = vadd.f32 %v1275_v32, %v1830_v14  ;;  %v1278_v39 = vadd.f32 %v1277_v37, %v1276_v34  ;;  %v1323_v40 = vpop.f32.mrb[7].mxu1 }
 0x103   :  { %v1324_v41 = vadd.f32 %v1323_v40, %v1322_v36 }
 0x104   :  { %v1839_v42 = vadd.f32 %v1321_v35, %v801_v38  ;;  %v804_v43 = vadd.f32 %v1278_v39, %v1830_v14 }
 0x106   :  { %v1842_v44 = vadd.f32 %v1324_v41, %v804_v43  ;;  %v1279_v45 = vpop.f32.mrb[8].mxu0 }
 0x107   :  { %v1325_v46 = vpop.f32.mrb[8].mxu1  ;;  %v1280_v47 = vpop.f32.mrb[9].mxu0 }
 0x108   :  { %v1281_v48 = vadd.f32 %v1280_v47, %v1279_v45  ;;  %v1326_v49 = vpop.f32.mrb[9].mxu1  ;;  %v1282_v50 = vpop.f32.mrb[10].mxu0 }
 0x109   :  { %v1327_v51 = vadd.f32 %v1326_v49, %v1325_v46  ;;  %v1328_v52 = vpop.f32.mrb[10].mxu1  ;;  %v1283_v53 = vpop.f32.mrb[11].mxu0 }
 0x10a   :  { %v809_v54 = vadd.f32 %v1281_v48, %v1830_v14  ;;  %v1284_v55 = vadd.f32 %v1283_v53, %v1282_v50  ;;  %v1329_v56 = vpop.f32.mrb[11].mxu1 }
 0x10b   :  { %v1330_v57 = vadd.f32 %v1329_v56, %v1328_v52 }
 0x10c   :  { %v1845_v58 = vadd.f32 %v1327_v51, %v809_v54  ;;  %v812_v59 = vadd.f32 %v1284_v55, %v1830_v14 }
 0x10e   :  { %v1848_v60 = vadd.f32 %v1330_v57, %v812_v59  ;;  %v1285_v61 = vpop.f32.mrb[12].mxu0 }
 0x10f   :  { %v1331_v62 = vpop.f32.mrb[12].mxu1  ;;  %v1286_v63 = vpop.f32.mrb[13].mxu0 }
 0x110   :  { %v1287_v0 = vadd.f32 %v1286_v63, %v1285_v61  ;;  %v1332_v1 = vpop.f32.mrb[13].mxu1  ;;  %v1288_v2 = vpop.f32.mrb[14].mxu0 }
 0x111   :  { %v1333_v3 = vadd.f32 %v1332_v1, %v1331_v62  ;;  %v1334_v4 = vpop.f32.mrb[14].mxu1  ;;  %v1289_v5 = vpop.f32.mrb[15].mxu0 }
 0x112   :  { %v817_v6 = vadd.f32 %v1287_v0, %v1830_v14  ;;  %v1290_v7 = vadd.f32 %v1289_v5, %v1288_v2  ;;  %v1335_v8 = vpop.f32.mrb[15].mxu1 }
 0x113   :  { %v1336_v9 = vadd.f32 %v1335_v8, %v1334_v4 }
 0x114   :  { %v1851_v10 = vadd.f32 %v1333_v3, %v817_v6  ;;  %v820_v11 = vadd.f32 %v1290_v7, %v1830_v14 }
 0x116   :  { %v1854_v12 = vadd.f32 %v1336_v9, %v820_v11  ;;  %v1291_v13 = vpop.f32.mrb[16].mxu0 }
 0x117   :  { %v1337_v15 = vpop.f32.mrb[16].mxu1  ;;  %v1292_v16 = vpop.f32.mrb[17].mxu0 }
 0x118   :  { %v1293_v17 = vadd.f32 %v1292_v16, %v1291_v13  ;;  %v1338_v18 = vpop.f32.mrb[17].mxu1  ;;  %v1294_v19 = vpop.f32.mrb[18].mxu0 }
 0x119   :  { %v1339_v20 = vadd.f32 %v1338_v18, %v1337_v15  ;;  %v1340_v21 = vpop.f32.mrb[18].mxu1  ;;  %v1295_v22 = vpop.f32.mrb[19].mxu0 }
 0x11a   :  { %v825_v23 = vadd.f32 %v1293_v17, %v1830_v14  ;;  %v1341_v24 = vpop.f32.mrb[19].mxu1 }
 0x11c   :  { %v1857_v25 = vadd.f32 %v1339_v20, %v825_v23 }
 0x11e   :  { %v1359_v27 = vpop.f32.mrb[20].mxu0 }
 0x11f   :  { %v1405_v29 = vpop.f32.mrb[20].mxu1  ;;  %v1360_v30 = vpop.f32.mrb[21].mxu0 }
 0x120   :  { %v1361_v31 = vadd.f32 %v1360_v30, %v1359_v27  ;;  %v1406_v32 = vpop.f32.mrb[21].mxu1  ;;  %v1362_v33 = vpop.f32.mrb[22].mxu0 }
 0x121   :  { %v1407_v34 = vadd.f32 %v1406_v32, %v1405_v29  ;;  %v1408_v35 = vpop.f32.mrb[22].mxu1  ;;  %v1363_v36 = vpop.f32.mrb[23].mxu0 }
 0x122   :  { %v937_v37 = vadd.f32 %v1361_v31, %v1833_v26  ;;  %v1364_v38 = vadd.f32 %v1363_v36, %v1362_v33  ;;  %v1409_v39 = vpop.f32.mrb[23].mxu1 }
 0x123   :  { %v1410_v40 = vadd.f32 %v1409_v39, %v1408_v35 }
 0x124   :  { %v1009_v41 = vadd.f32 %v1407_v34, %v937_v37  ;;  %v940_v14 = vadd.f32 %v1364_v38, %v1836_v28 }
 0x126   :  { %v1012_v43 = vadd.f32 %v1410_v40, %v940_v14  ;;  %v1365_v45 = vpop.f32.mrb[24].mxu0  ;;  %v1046_v48 = vmax.f32 %v1009_v41, 0.0 }
 0x127   :  { %v1411_v46 = vpop.f32.mrb[24].mxu1  ;;  %v1366_v47 = vpop.f32.mrb[25].mxu0 }
 0x128   :  { %v1047_v49 = vmax.f32 %v1012_v43, 0.0  ;;  %v1367_v50 = vadd.f32 %v1366_v47, %v1365_v45  ;;  %v1412_v51 = vpop.f32.mrb[25].mxu1  ;;  %v1368_v52 = vpop.f32.mrb[26].mxu0 }
 0x129   :  { %v1413_v53 = vadd.f32 %v1412_v51, %v1411_v46  ;;  %v1414_v54 = vpop.f32.mrb[26].mxu1  ;;  %v1369_v55 = vpop.f32.mrb[27].mxu0 }
 0x12a   :  { %v1231_v56 = vpack.c.bf16 %v1047_v49, %v1046_v48  ;;  %v945_v26 = vadd.f32 %v1367_v50, %v1839_v42  ;;  %v1370_v57 = vadd.f32 %v1369_v55, %v1368_v52  ;;  %v1415_v59 = vpop.f32.mrb[27].mxu1 }
 0x12b   :  { %v1416_v61 = vadd.f32 %v1415_v59, %v1414_v54 }
 0x12c   :  { %1232 = vst [vmem:[%s1886_s3] sm:$0xff] %v1231_v56   ;;  %v1017_v28 = vadd.f32 %v1413_v53, %v945_v26  ;;  %v948_v62 = vadd.f32 %v1370_v57, %v1842_v44 }
 0x12e   :  { %v1020_v63 = vadd.f32 %v1416_v61, %v948_v62  ;;  %v1371_v0 = vpop.f32.mrb[28].mxu0  ;;  %v1048_v3 = vmax.f32 %v1017_v28, 0.0 }
 0x12f   :  { %v1417_v1 = vpop.f32.mrb[28].mxu1  ;;  %v1372_v2 = vpop.f32.mrb[29].mxu0 }
 0x130   :  { %v1049_v4 = vmax.f32 %v1020_v63, 0.0  ;;  %v1373_v5 = vadd.f32 %v1372_v2, %v1371_v0  ;;  %v1418_v6 = vpop.f32.mrb[29].mxu1  ;;  %v1374_v7 = vpop.f32.mrb[30].mxu0 }
 0x131   :  { %v1419_v42 = vadd.f32 %v1418_v6, %v1417_v1  ;;  %v1420_v8 = vpop.f32.mrb[30].mxu1  ;;  %v1375_v9 = vpop.f32.mrb[31].mxu0 }
 0x132   :  { %v1236_v11 = vpack.c.bf16 %v1049_v4, %v1048_v3  ;;  %v953_v13 = vadd.f32 %v1373_v5, %v1845_v58  ;;  %v1376_v15 = vadd.f32 %v1375_v9, %v1374_v7  ;;  %v1421_v16 = vpop.f32.mrb[31].mxu1 }
 0x133   :  { %v1422_v17 = vadd.f32 %v1421_v16, %v1420_v8 }
 0x134   :  { %1248 = vst [vmem:[%s1886_s3 + $0x8] sm:$0xff] %v1236_v11   ;;  %v1025_v44 = vadd.f32 %v1419_v42, %v953_v13  ;;  %v956_v18 = vadd.f32 %v1376_v15, %v1848_v60 }
 0x136   :  { %v1028_v19 = vadd.f32 %v1422_v17, %v956_v18  ;;  %v1377_v20 = vpop.f32.mrb[32].mxu0  ;;  %v1050_v23 = vmax.f32 %v1025_v44, 0.0 }
 0x137   :  { %v1423_v21 = vpop.f32.mrb[32].mxu1  ;;  %v1378_v22 = vpop.f32.mrb[33].mxu0 }
 0x138   :  { %v1051_v24 = vmax.f32 %v1028_v19, 0.0  ;;  %v1379_v27 = vadd.f32 %v1378_v22, %v1377_v20  ;;  %v1424_v29 = vpop.f32.mrb[33].mxu1  ;;  %v1380_v30 = vpop.f32.mrb[34].mxu0 }
 0x139   :  { %v1425_v58 = vadd.f32 %v1424_v29, %v1423_v21  ;;  %v1426_v31 = vpop.f32.mrb[34].mxu1  ;;  %v1381_v32 = vpop.f32.mrb[35].mxu0 }
 0x13a   :  { %v1241_v33 = vpack.c.bf16 %v1051_v24, %v1050_v23  ;;  %v961_v34 = vadd.f32 %v1379_v27, %v1851_v10  ;;  %v1382_v35 = vadd.f32 %v1381_v32, %v1380_v30  ;;  %v1427_v36 = vpop.f32.mrb[35].mxu1 }
 0x13b   :  { %v1428_v37 = vadd.f32 %v1427_v36, %v1426_v31 }
 0x13c   :  { %1249 = vst [vmem:[%s1886_s3 + $0x10] sm:$0xff] %v1241_v33   ;;  %v1033_v60 = vadd.f32 %v1425_v58, %v961_v34  ;;  %v964_v38 = vadd.f32 %v1382_v35, %v1854_v12 }
 0x13e   :  { %v1036_v39 = vadd.f32 %v1428_v37, %v964_v38  ;;  %v1383_v40 = vpop.f32.mrb[36].mxu0  ;;  %v1052_v43 = vmax.f32 %v1033_v60, 0.0 }
 0x13f   :  { %v1429_v41 = vpop.f32.mrb[36].mxu1  ;;  %v1384_v14 = vpop.f32.mrb[37].mxu0 }
 0x140   :  { %v1053_v45 = vmax.f32 %v1036_v39, 0.0  ;;  %v1385_v46 = vadd.f32 %v1384_v14, %v1383_v40  ;;  %v1430_v47 = vpop.f32.mrb[37].mxu1  ;;  %v1386_v48 = vpop.f32.mrb[38].mxu0 }
 0x141   :  { %v1431_v10 = vadd.f32 %v1430_v47, %v1429_v41  ;;  %v1432_v49 = vpop.f32.mrb[38].mxu1  ;;  %v1387_v50 = vpop.f32.mrb[39].mxu0 }
 0x142   :  { %v1246_v51 = vpack.c.bf16 %v1053_v45, %v1052_v43  ;;  %v969_v52 = vadd.f32 %v1385_v46, %v1857_v25  ;;  %v1433_v53 = vpop.f32.mrb[39].mxu1 }
 0x144   :  { %1250 = vst [vmem:[%s1886_s3 + $0x18] sm:$0xff] %v1246_v51   ;;  %v1041_v12 = vadd.f32 %v1431_v10, %v969_v52 }
 0x146   :  { %v1054_v54 = vmax.f32 %v1041_v12, 0.0 }
 0x148   :  { %v1227_v55 = vpack.c.bf16 %v1054_v54, %v1054_v54 }
 0x14a   :  { %1100 = vst [vmem:[%s1886_s3 + $0x20] sm:$0xf] %v1227_v55 }

// kernel: mymodel_forward.7
= control target key start
LH: loop header
LB: loop body
LE: loop exit
PB: predicated region body
PF: predicated region fallthrough
CT: control target
= control target key end

     0   :  { %v316_v7 = vlaneseq  ;;  %v9370_v8 = vmov 1966171168   ;;  %vm4369_vm0 = vcmask 261120   ;;  %vm6987_vm1 = vcmask 1024   ;;  %s14442_s1 = inlined_call_operand.vmem [shape: bf16[2048,256], index: 1, kind: input, shape index: {}]   ;;  %s14443_s0 = inlined_call_operand.vmem [shape: bf16[4,2,2048], index: 0, kind: input, shape index: {}]   ;;  %s14444_s3 = inlined_call_operand.vmem [shape: bf16[4,256,32], index: 3, kind: input, shape index: {}]   ;;  %s14445_s2 = inlined_call_operand.vmem [shape: f32[1,256], index: 2, kind: input, shape index: {}]   ;;  %s14446_s4 = inlined_call_operand.vmem [shape: f32[1,32], index: 4, kind: input, shape index: {}]   ;;  %s14447_s5 = inlined_call_operand.vmem [shape: bf16[32,2048], index: 5, kind: input, shape index: {}]   ;;  %s14448_s7 = inlined_call_operand.vmem [shape: bf16[1024,256], index: 7, kind: input, shape index: {}]   ;;  %s14449_s9 = inlined_call_operand.vmem [shape: bf16[1024,256], index: 9, kind: input, shape index: {}]   ;;  %s14450_s6 = inlined_call_operand.vmem [shape: f32[1,2048], index: 6, kind: input, shape index: {}]   ;;  %s14451_s11 = inlined_call_operand.vmem [shape: bf16[256,3], index: 11, kind: input, shape index: {}]   ;;  %s14452_s13 = inlined_call_operand.vmem [shape: bf16[256,1], index: 13, kind: input, shape index: {}]   ;;  %s14453_s8 = inlined_call_operand.vmem [shape: f32[1,256], index: 8, kind: input, shape index: {}]   ;;  %s14454_s10 = inlined_call_operand.vmem [shape: f32[1,256], index: 10, kind: input, shape index: {}]   ;;  %s14455_s14 = inlined_call_operand.<no memory space> [shape: f32[1,1], index: 14, kind: input, shape index: {}]   ;;  %s14456_s12 = inlined_call_operand.vmem [shape: f32[1,3], index: 12, kind: input, shape index: {}]   ;;  %s14457_s16 = inlined_call_operand.vmem [shape: f32[2,1], index: 16, kind: output, shape index: {1}]   ;;  %s14458_s15 = inlined_call_operand.vmem [shape: f32[2,3], index: 15, kind: output, shape index: {0}]  }
   0x1   :  { %14672 = sst [smem:[#allocation207_spill]] %s14442_s1  ;;  %v330_v9 = vunpack.c.l.s4 %v9370_v8  ;;  %v9504_v19 = vld [vmem:[%s14443_s0] sm:$0xff]  ;;  %vm6985_vm2 = vcmask 17408  }
   0x2   :  { %s14673_s23 = sld [smem:[#allocation207_spill]]  ;;  %v9484_v12 = vshrl.u32 %v316_v7, 7  ;;  %v328_v7 = vcombine.high %v9504_v19, %v9504_v19 }
   0x3   :  { %v331_v13 = vunpack.c.0.s8 %v330_v9 }
   0x4   :  { %14674 = vst [vmem:[#allocation3_spill] sm:$0xff] %v9484_v12 }
   0x5   :  { %v9493_v16 = vsub.s32 %v331_v13, %v9484_v12 }
   0x7   :  { %v335_v20 = vrot.slane %v9504_v19, %v9493_v16 }
   0x8   :  { %v8033_v0 = vld [vmem:[%s14673_s23 + $0x4] ss:$8 sps:$4 sm:$0xff]   ;;  %v8035_v1 = vld [vmem:[%s14673_s23] ss:$8 sps:$4 sm:$0xff]   ;;  %v8036_v2 = vld [vmem:[%s14673_s23 + $0x14] ss:$8 sps:$4 sm:$0xff]  }
   0x9   :  { %1722 = vmatprep.subr.bf16.mxu0 %v8033_v0  ;;  %v8038_v3 = vld [vmem:[%s14673_s23 + $0x10] ss:$8 sps:$4 sm:$0xff]   ;;  %v8039_v4 = vld [vmem:[%s14673_s23 + $0x24] ss:$8 sps:$4 sm:$0xff]   ;;  %v8041_v5 = vld [vmem:[%s14673_s23 + $0x20] ss:$8 sps:$4 sm:$0xff]   ;;  %v343_v23 = vcombine.high %v335_v20, %v335_v20  ;;  %v9570_v43 = vrot.slane %v335_v20, %v9493_v16 }
   0xa   :  { %1723 = vmatpush1.bf16.msra.mxu0 %v8035_v1  ;;  %v8042_v6 = vld [vmem:[%s14673_s23 + $0x34] ss:$8 sps:$4 sm:$0xff]   ;;  %v8044_v10 = vld [vmem:[%s14673_s23 + $0x30] ss:$8 sps:$4 sm:$0xff]   ;;  %v8045_v11 = vld [vmem:[%s14673_s23 + $0x44] ss:$8 sps:$4 sm:$0xff]  }
   0xb   :  { %1724 = vmatprep.subr.bf16.mxu0 %v8036_v2  ;;  %v8047_v14 = vld [vmem:[%s14673_s23 + $0x40] ss:$8 sps:$4 sm:$0xff]   ;;  %v8048_v15 = vld [vmem:[%s14673_s23 + $0x54] ss:$8 sps:$4 sm:$0xff]   ;;  %v8050_v17 = vld [vmem:[%s14673_s23 + $0x50] ss:$8 sps:$4 sm:$0xff]   ;;  %v365_v24 = vrot.slane %v343_v23, %v9493_v16 }
   0xc   :  { %v8051_v18 = vld [vmem:[%s14673_s23 + $0x64] ss:$8 sps:$4 sm:$0xff]   ;;  %v8053_v21 = vld [vmem:[%s14673_s23 + $0x60] ss:$8 sps:$4 sm:$0xff]   ;;  %v8054_v22 = vld [vmem:[%s14673_s23 + $0x74] ss:$8 sps:$4 sm:$0xff]  }
   0xd   :  { %v8056_v25 = vld [vmem:[%s14673_s23 + $0x70] ss:$8 sps:$4 sm:$0xff]   ;;  %v8057_v26 = vld [vmem:[%s14673_s23 + $0x84] ss:$8 sps:$4 sm:$0xff]   ;;  %1754 = vmatprep.mubr.bf16.mxu0 %v365_v24  ;;  %v8059_v27 = vld [vmem:[%s14673_s23 + $0x80] ss:$8 sps:$4 sm:$0xff]   ;;  %v375_v44 = vcombine.high %v365_v24, %v365_v24 }
   0xe   :  { %1725 = vmatpush1.bf16.msra.mxu0 %v8038_v3  ;;  %v8060_v28 = vld [vmem:[%s14673_s23 + $0x94] ss:$8 sps:$4 sm:$0xff]   ;;  %v8062_v29 = vld [vmem:[%s14673_s23 + $0x90] ss:$8 sps:$4 sm:$0xff]   ;;  %v8063_v30 = vld [vmem:[%s14673_s23 + $0xa4] ss:$8 sps:$4 sm:$0xff]  }
   0xf   :  { %1726 = vmatprep.subr.bf16.mxu0 %v8039_v4  ;;  %v8065_v31 = vld [vmem:[%s14673_s23 + $0xa0] ss:$8 sps:$4 sm:$0xff]   ;;  %v8066_v32 = vld [vmem:[%s14673_s23 + $0xb4] ss:$8 sps:$4 sm:$0xff]   ;;  %v8068_v33 = vld [vmem:[%s14673_s23 + $0xb0] ss:$8 sps:$4 sm:$0xff]  }
  0x10   :  { %v8069_v34 = vld [vmem:[%s14673_s23 + $0xc4] ss:$8 sps:$4 sm:$0xff]   ;;  %v8071_v35 = vld [vmem:[%s14673_s23 + $0xc0] ss:$8 sps:$4 sm:$0xff]   ;;  %v8072_v36 = vld [vmem:[%s14673_s23 + $0xd4] ss:$8 sps:$4 sm:$0xff]  }
  0x11   :  { %v8074_v37 = vld [vmem:[%s14673_s23 + $0xd0] ss:$8 sps:$4 sm:$0xff]   ;;  %v8075_v38 = vld [vmem:[%s14673_s23 + $0xe4] ss:$8 sps:$4 sm:$0xff]   ;;  %v8077_v39 = vld [vmem:[%s14673_s23 + $0xe0] ss:$8 sps:$4 sm:$0xff]  }
  0x12   :  { %1727 = vmatpush1.bf16.msra.mxu0 %v8041_v5  ;;  %v8078_v40 = vld [vmem:[%s14673_s23 + $0xf4] ss:$8 sps:$4 sm:$0xff]   ;;  %v8080_v41 = vld [vmem:[%s14673_s23 + $0xf0] ss:$8 sps:$4 sm:$0xff]   ;;  %v8082_v42 = vld [vmem:[%s14673_s23 + $0x104] ss:$8 sps:$4 sm:$0xff]  }
  0x13   :  { %1728 = vmatprep.subr.bf16.mxu0 %v8042_v6  ;;  %v8084_v45 = vld [vmem:[%s14673_s23 + $0x100] ss:$8 sps:$4 sm:$0xff]   ;;  %v8085_v46 = vld [vmem:[%s14673_s23 + $0x114] ss:$8 sps:$4 sm:$0xff]   ;;  %v8087_v47 = vld [vmem:[%s14673_s23 + $0x110] ss:$8 sps:$4 sm:$0xff]  }
  0x14   :  { %v8088_v48 = vld [vmem:[%s14673_s23 + $0x124] ss:$8 sps:$4 sm:$0xff]   ;;  %v8090_v49 = vld [vmem:[%s14673_s23 + $0x120] ss:$8 sps:$4 sm:$0xff]   ;;  %v8091_v50 = vld [vmem:[%s14673_s23 + $0x134] ss:$8 sps:$4 sm:$0xff]  }
  0x15   :  { %v8093_v51 = vld [vmem:[%s14673_s23 + $0x130] ss:$8 sps:$4 sm:$0xff]   ;;  %v8094_v52 = vld [vmem:[%s14673_s23 + $0x144] ss:$8 sps:$4 sm:$0xff]   ;;  %v8096_v53 = vld [vmem:[%s14673_s23 + $0x140] ss:$8 sps:$4 sm:$0xff]  }
  0x16   :  { %1729 = vmatpush1.bf16.msra.mxu0 %v8044_v10  ;;  %v8097_v54 = vld [vmem:[%s14673_s23 + $0x154] ss:$8 sps:$4 sm:$0xff]   ;;  %v8099_v55 = vld [vmem:[%s14673_s23 + $0x150] ss:$8 sps:$4 sm:$0xff]   ;;  %v8100_v56 = vld [vmem:[%s14673_s23 + $0x164] ss:$8 sps:$4 sm:$0xff]  }
  0x17   :  { %1730 = vmatprep.subr.bf16.mxu0 %v8045_v11  ;;  %v8102_v57 = vld [vmem:[%s14673_s23 + $0x160] ss:$8 sps:$4 sm:$0xff]   ;;  %v8103_v58 = vld [vmem:[%s14673_s23 + $0x174] ss:$8 sps:$4 sm:$0xff]   ;;  %v8105_v59 = vld [vmem:[%s14673_s23 + $0x170] ss:$8 sps:$4 sm:$0xff]   ;;  %v9663_v11 = vrot.slane %v328_v7, %v9493_v16 }
  0x18   :  { %v8106_v60 = vld [vmem:[%s14673_s23 + $0x184] ss:$8 sps:$4 sm:$0xff]   ;;  %v8108_v61 = vld [vmem:[%s14673_s23 + $0x180] ss:$8 sps:$4 sm:$0xff]   ;;  %v8109_v62 = vld [vmem:[%s14673_s23 + $0x194] ss:$8 sps:$4 sm:$0xff]  }
  0x19   :  { %v8111_v63 = vld [vmem:[%s14673_s23 + $0x190] ss:$8 sps:$4 sm:$0xff]   ;;  %v8112_v0 = vld [vmem:[%s14673_s23 + $0x1a4] ss:$8 sps:$4 sm:$0xff]   ;;  %v8114_v1 = vld [vmem:[%s14673_s23 + $0x1a0] ss:$8 sps:$4 sm:$0xff]  }
  0x1a   :  { %1731 = vmatpush1.bf16.msra.mxu0 %v8047_v14  ;;  %v8115_v2 = vld [vmem:[%s14673_s23 + $0x1b4] ss:$8 sps:$4 sm:$0xff]   ;;  %v8117_v3 = vld [vmem:[%s14673_s23 + $0x1b0] ss:$8 sps:$4 sm:$0xff]   ;;  %v8118_v4 = vld [vmem:[%s14673_s23 + $0x1c4] ss:$8 sps:$4 sm:$0xff]  }
  0x1b   :  { %1732 = vmatprep.subr.bf16.mxu0 %v8048_v15  ;;  %v8120_v5 = vld [vmem:[%s14673_s23 + $0x1c0] ss:$8 sps:$4 sm:$0xff]   ;;  %v8121_v6 = vld [vmem:[%s14673_s23 + $0x1d4] ss:$8 sps:$4 sm:$0xff]   ;;  %v8123_v8 = vld [vmem:[%s14673_s23 + $0x1d0] ss:$8 sps:$4 sm:$0xff]   ;;  %v344_v15 = vcombine.high %v9663_v11, %v9663_v11 }
  0x1c   :  { %v8124_v9 = vld [vmem:[%s14673_s23 + $0x1e4] ss:$8 sps:$4 sm:$0xff]   ;;  %v8126_v10 = vld [vmem:[%s14673_s23 + $0x1e0] ss:$8 sps:$4 sm:$0xff]   ;;  %v8127_v13 = vld [vmem:[%s14673_s23 + $0x1f4] ss:$8 sps:$4 sm:$0xff]  }
  0x1d   :  { %v8129_v14 = vld [vmem:[%s14673_s23 + $0x1f0] ss:$8 sps:$4 sm:$0xff]   ;;  %v8132_v19 = vld [vmem:[%s14673_s23 + $0x200] ss:$8 sps:$4 sm:$0xff]   ;;  %v9682_v20 = vrot.slane %v344_v15, %v9493_v16  ;;  %v8136_v23 = vld [vmem:[%s14673_s23 + $0x224] ss:$8 sps:$4 sm:$0xff]  }
  0x1e   :  { %1733 = vmatpush1.bf16.msra.mxu0 %v8050_v17  ;;  %v8130_v17 = vld [vmem:[%s14673_s23 + $0x204] ss:$8 sps:$4 sm:$0xff]   ;;  %v8138_v24 = vld [vmem:[%s14673_s23 + $0x220] ss:$8 sps:$4 sm:$0xff]   ;;  %v8205_v7 = vld [vmem:[%s14673_s23 + $0x394] ss:$8 sps:$4 sm:$0xff]  }
  0x1f   :  { %1734 = vmatprep.subr.bf16.mxu0 %v8051_v18  ;;  %v373_v18 = vcombine.high %v9570_v43, %v9570_v43  ;;  %v8216_v15 = vld [vmem:[%s14673_s23 + $0x3c0] ss:$8 sps:$4 sm:$0xff]  }
  0x22   :  { %1735 = vmatpush1.bf16.msra.mxu0 %v8053_v21  ;;  %v8133_v21 = vld [vmem:[%s14673_s23 + $0x214] ss:$8 sps:$4 sm:$0xff]  }
  0x23   :  { %1736 = vmatprep.subr.bf16.mxu0 %v8054_v22  ;;  %v8135_v22 = vld [vmem:[%s14673_s23 + $0x210] ss:$8 sps:$4 sm:$0xff]  }
  0x26   :  { %1737 = vmatpush1.bf16.msra.mxu0 %v8056_v25  ;;  %v8139_v25 = vld [vmem:[%s14673_s23 + $0x234] ss:$8 sps:$4 sm:$0xff]  }
  0x27   :  { %1738 = vmatprep.subr.bf16.mxu0 %v8057_v26  ;;  %v8141_v26 = vld [vmem:[%s14673_s23 + $0x230] ss:$8 sps:$4 sm:$0xff]  }
  0x2a   :  { %1739 = vmatpush1.bf16.msra.mxu0 %v8059_v27  ;;  %v8142_v27 = vld [vmem:[%s14673_s23 + $0x244] ss:$8 sps:$4 sm:$0xff]  }
  0x2b   :  { %1740 = vmatprep.subr.bf16.mxu0 %v8060_v28  ;;  %v8144_v28 = vld [vmem:[%s14673_s23 + $0x240] ss:$8 sps:$4 sm:$0xff]  }
  0x2e   :  { %1741 = vmatpush1.bf16.msra.mxu0 %v8062_v29  ;;  %v8145_v29 = vld [vmem:[%s14673_s23 + $0x254] ss:$8 sps:$4 sm:$0xff]  }
  0x2f   :  { %1742 = vmatprep.subr.bf16.mxu0 %v8063_v30  ;;  %v8147_v30 = vld [vmem:[%s14673_s23 + $0x250] ss:$8 sps:$4 sm:$0xff]  }
  0x32   :  { %1743 = vmatpush1.bf16.msra.mxu0 %v8065_v31  ;;  %v8148_v31 = vld [vmem:[%s14673_s23 + $0x264] ss:$8 sps:$4 sm:$0xff]  }
  0x33   :  { %1744 = vmatprep.subr.bf16.mxu0 %v8066_v32  ;;  %v8150_v32 = vld [vmem:[%s14673_s23 + $0x260] ss:$8 sps:$4 sm:$0xff]  }
  0x36   :  { %1745 = vmatpush1.bf16.msra.mxu0 %v8068_v33  ;;  %v8151_v33 = vld [vmem:[%s14673_s23 + $0x274] ss:$8 sps:$4 sm:$0xff]  }
  0x37   :  { %1746 = vmatprep.subr.bf16.mxu0 %v8069_v34  ;;  %v8153_v34 = vld [vmem:[%s14673_s23 + $0x270] ss:$8 sps:$4 sm:$0xff]  }
  0x3a   :  { %1747 = vmatpush1.bf16.msra.mxu0 %v8071_v35  ;;  %v8154_v35 = vld [vmem:[%s14673_s23 + $0x284] ss:$8 sps:$4 sm:$0xff]  }
  0x3b   :  { %1748 = vmatprep.subr.bf16.mxu0 %v8072_v36  ;;  %v8156_v36 = vld [vmem:[%s14673_s23 + $0x280] ss:$8 sps:$4 sm:$0xff]  }
  0x3e   :  { %1749 = vmatpush1.bf16.msra.mxu0 %v8074_v37  ;;  %v8157_v37 = vld [vmem:[%s14673_s23 + $0x294] ss:$8 sps:$4 sm:$0xff]  }
  0x3f   :  { %1750 = vmatprep.subr.bf16.mxu0 %v8075_v38  ;;  %v8159_v38 = vld [vmem:[%s14673_s23 + $0x290] ss:$8 sps:$4 sm:$0xff]  }
  0x42   :  { %1751 = vmatpush1.bf16.msra.mxu0 %v8077_v39  ;;  %v8160_v39 = vld [vmem:[%s14673_s23 + $0x2a4] ss:$8 sps:$4 sm:$0xff]  }
  0x43   :  { %1752 = vmatprep.subr.bf16.mxu0 %v8078_v40  ;;  %v8162_v40 = vld [vmem:[%s14673_s23 + $0x2a0] ss:$8 sps:$4 sm:$0xff]  }
  0x46   :  { %1753 = vmatpush1.bf16.msra.mxu0 %v8080_v41  ;;  %v8163_v41 = vld [vmem:[%s14673_s23 + $0x2b4] ss:$8 sps:$4 sm:$0xff]  }
  0x47   :  { %1763 = vmatprep.subr.bf16.mxu0 %v8082_v42  ;;  %v8165_v42 = vld [vmem:[%s14673_s23 + $0x2b0] ss:$8 sps:$4 sm:$0xff]  }
  0x49   :  { %1755 = vmatmul.mubr.bf16.vlgmr.msra.gmra.mrb[0].mxu0 %v9570_v43  ;;  %v8166_v43 = vld [vmem:[%s14673_s23 + $0x2c4] ss:$8 sps:$4 sm:$0xff]  }
  0x4a   :  { %1764 = vmatpush1.bf16.msra.mxu0 %v8084_v45  ;;  %1795 = vmatprep.mubr.bf16.mxu0 %v375_v44  ;;  %v8168_v44 = vld [vmem:[%s14673_s23 + $0x2c0] ss:$8 sps:$4 sm:$0xff]   ;;  %v8169_v45 = vld [vmem:[%s14673_s23 + $0x2d4] ss:$8 sps:$4 sm:$0xff]  }
  0x4b   :  { %1765 = vmatprep.subr.bf16.mxu0 %v8085_v46  ;;  %v8171_v46 = vld [vmem:[%s14673_s23 + $0x2d0] ss:$8 sps:$4 sm:$0xff]  }
  0x4e   :  { %1766 = vmatpush1.bf16.msra.mxu0 %v8087_v47  ;;  %v8172_v47 = vld [vmem:[%s14673_s23 + $0x2e4] ss:$8 sps:$4 sm:$0xff]  }
  0x4f   :  { %1767 = vmatprep.subr.bf16.mxu0 %v8088_v48  ;;  %v8174_v48 = vld [vmem:[%s14673_s23 + $0x2e0] ss:$8 sps:$4 sm:$0xff]  }
  0x52   :  { %1768 = vmatpush1.bf16.msra.mxu0 %v8090_v49  ;;  %v8175_v49 = vld [vmem:[%s14673_s23 + $0x2f4] ss:$8 sps:$4 sm:$0xff]  }
  0x53   :  { %1769 = vmatprep.subr.bf16.mxu0 %v8091_v50  ;;  %v8177_v50 = vld [vmem:[%s14673_s23 + $0x2f0] ss:$8 sps:$4 sm:$0xff]  }
  0x56   :  { %1770 = vmatpush1.bf16.msra.mxu0 %v8093_v51  ;;  %v8178_v51 = vld [vmem:[%s14673_s23 + $0x304] ss:$8 sps:$4 sm:$0xff]  }
  0x57   :  { %1771 = vmatprep.subr.bf16.mxu0 %v8094_v52  ;;  %v9780_v52 = vrot.slane %v9663_v11, %v9493_v16  ;;  %v8211_v11 = vld [vmem:[%s14673_s23 + $0x3b4] ss:$8 sps:$4 sm:$0xff]  }
  0x5a   :  { %1772 = vmatpush1.bf16.msra.mxu0 %v8096_v53  ;;  %v8180_v53 = vld [vmem:[%s14673_s23 + $0x300] ss:$8 sps:$4 sm:$0xff]  }
  0x5b   :  { %1773 = vmatprep.subr.bf16.mxu0 %v8097_v54  ;;  %v376_v54 = vcombine.high %v9682_v20, %v9682_v20 }
  0x5e   :  { %1774 = vmatpush1.bf16.msra.mxu0 %v8099_v55  ;;  %v8181_v55 = vld [vmem:[%s14673_s23 + $0x314] ss:$8 sps:$4 sm:$0xff]  }
  0x5f   :  { %1775 = vmatprep.subr.bf16.mxu0 %v8100_v56  ;;  %v8183_v56 = vld [vmem:[%s14673_s23 + $0x310] ss:$8 sps:$4 sm:$0xff]  }
  0x62   :  { %1776 = vmatpush1.bf16.msra.mxu0 %v8102_v57  ;;  %v8184_v57 = vld [vmem:[%s14673_s23 + $0x324] ss:$8 sps:$4 sm:$0xff]  }
  0x63   :  { %1777 = vmatprep.subr.bf16.mxu0 %v8103_v58  ;;  %v8186_v58 = vld [vmem:[%s14673_s23 + $0x320] ss:$8 sps:$4 sm:$0xff]  }
  0x66   :  { %1778 = vmatpush1.bf16.msra.mxu0 %v8105_v59  ;;  %v8187_v59 = vld [vmem:[%s14673_s23 + $0x334] ss:$8 sps:$4 sm:$0xff]  }
  0x67   :  { %1779 = vmatprep.subr.bf16.mxu0 %v8106_v60  ;;  %v8189_v60 = vld [vmem:[%s14673_s23 + $0x330] ss:$8 sps:$4 sm:$0xff]  }
  0x6a   :  { %1780 = vmatpush1.bf16.msra.mxu0 %v8108_v61  ;;  %v8190_v61 = vld [vmem:[%s14673_s23 + $0x344] ss:$8 sps:$4 sm:$0xff]  }
  0x6b   :  { %1781 = vmatprep.subr.bf16.mxu0 %v8109_v62  ;;  %v8192_v62 = vld [vmem:[%s14673_s23 + $0x340] ss:$8 sps:$4 sm:$0xff]  }
  0x6e   :  { %1782 = vmatpush1.bf16.msra.mxu0 %v8111_v63  ;;  %v8193_v63 = vld [vmem:[%s14673_s23 + $0x354] ss:$8 sps:$4 sm:$0xff]  }
  0x6f   :  { %1783 = vmatprep.subr.bf16.mxu0 %v8112_v0  ;;  %v8195_v0 = vld [vmem:[%s14673_s23 + $0x350] ss:$8 sps:$4 sm:$0xff]  }
  0x72   :  { %1784 = vmatpush1.bf16.msra.mxu0 %v8114_v1  ;;  %v8196_v1 = vld [vmem:[%s14673_s23 + $0x364] ss:$8 sps:$4 sm:$0xff]  }
  0x73   :  { %1785 = vmatprep.subr.bf16.mxu0 %v8115_v2  ;;  %v8198_v2 = vld [vmem:[%s14673_s23 + $0x360] ss:$8 sps:$4 sm:$0xff]  }
  0x76   :  { %1786 = vmatpush1.bf16.msra.mxu0 %v8117_v3  ;;  %v8199_v3 = vld [vmem:[%s14673_s23 + $0x374] ss:$8 sps:$4 sm:$0xff]  }
  0x77   :  { %1787 = vmatprep.subr.bf16.mxu0 %v8118_v4  ;;  %v8201_v4 = vld [vmem:[%s14673_s23 + $0x370] ss:$8 sps:$4 sm:$0xff]  }
  0x7a   :  { %1788 = vmatpush1.bf16.msra.mxu0 %v8120_v5  ;;  %v8202_v5 = vld [vmem:[%s14673_s23 + $0x384] ss:$8 sps:$4 sm:$0xff]  }
  0x7b   :  { %1789 = vmatprep.subr.bf16.mxu0 %v8121_v6  ;;  %v8204_v6 = vld [vmem:[%s14673_s23 + $0x380] ss:$8 sps:$4 sm:$0xff]  }
  0x7e   :  { %1790 = vmatpush1.bf16.msra.mxu0 %v8123_v8  ;;  %v8207_v8 = vld [vmem:[%s14673_s23 + $0x390] ss:$8 sps:$4 sm:$0xff]  }
  0x7f   :  { %1791 = vmatprep.subr.bf16.mxu0 %v8124_v9  ;;  %v8208_v9 = vld [vmem:[%s14673_s23 + $0x3a4] ss:$8 sps:$4 sm:$0xff]  }
  0x82   :  { %1792 = vmatpush1.bf16.msra.mxu0 %v8126_v10  ;;  %v8210_v10 = vld [vmem:[%s14673_s23 + $0x3a0] ss:$8 sps:$4 sm:$0xff]  }
  0x83   :  { %1793 = vmatprep.subr.bf16.mxu0 %v8127_v13  ;;  %v8213_v13 = vld [vmem:[%s14673_s23 + $0x3b0] ss:$8 sps:$4 sm:$0xff]  }
  0x86   :  { %1794 = vmatpush1.bf16.msra.mxu0 %v8129_v14  ;;  %v8214_v14 = vld [vmem:[%s14673_s23 + $0x3c4] ss:$8 sps:$4 sm:$0xff]  }
  0x87   :  { %1804 = vmatprep.subr.bf16.mxu0 %v8130_v17  ;;  %v8217_v17 = vld [vmem:[%s14673_s23 + $0x3d4] ss:$8 sps:$4 sm:$0xff]  }
  0x89   :  { %1796 = vmatmul.mubr.bf16.vlgmr.msra.gmra.mrb[0].mxu0 %v373_v18  ;;  %v8219_v18 = vld [vmem:[%s14673_s23 + $0x3d0] ss:$8 sps:$4 sm:$0xff]  }
  0x8a   :  { %1805 = vmatpush1.bf16.msra.mxu0 %v8132_v19  ;;  %1836 = vmatprep.mubr.bf16.mxu0 %v9682_v20  ;;  %v8220_v19 = vld [vmem:[%s14673_s23 + $0x3e4] ss:$8 sps:$4 sm:$0xff]  }
  0x8b   :  { %1806 = vmatprep.subr.bf16.mxu0 %v8133_v21  ;;  %v9872_v20 = vld [vmem:[%s14443_s0 + $0x8] sm:$0xff] }
  0x8c   :  { %v8222_v21 = vld [vmem:[%s14673_s23 + $0x3e0] ss:$8 sps:$4 sm:$0xff]  }
  0x8e   :  { %1807 = vmatpush1.bf16.msra.mxu0 %v8135_v22  ;;  %v9879_v22 = vrot.slane %v9872_v20, %v9493_v16 }
  0x8f   :  { %1808 = vmatprep.subr.bf16.mxu0 %v8136_v23  ;;  %v8223_v23 = vld [vmem:[%s14673_s23 + $0x3f4] ss:$8 sps:$4 sm:$0xff]  }
  0x92   :  { %1809 = vmatpush1.bf16.msra.mxu0 %v8138_v24  ;;  %v8225_v24 = vld [vmem:[%s14673_s23 + $0x3f0] ss:$8 sps:$4 sm:$0xff]  }
  0x93   :  { %1810 = vmatprep.subr.bf16.mxu0 %v8139_v25  ;;  %v392_v25 = vcombine.high %v9879_v22, %v9879_v22 }
  0x96   :  { %1811 = vmatpush1.bf16.msra.mxu0 %v8141_v26  ;;  %v8226_v26 = vld [vmem:[%s14673_s23 + $0x404] ss:$8 sps:$4 sm:$0xff]  }
  0x97   :  { %1812 = vmatprep.subr.bf16.mxu0 %v8142_v27  ;;  %v374_v27 = vcombine.high %v9780_v52, %v9780_v52 }
  0x9a   :  { %1813 = vmatpush1.bf16.msra.mxu0 %v8144_v28  ;;  %v8228_v28 = vld [vmem:[%s14673_s23 + $0x400] ss:$8 sps:$4 sm:$0xff]  }
  0x9b   :  { %1814 = vmatprep.subr.bf16.mxu0 %v8145_v29  ;;  %v9898_v29 = vrot.slane %v392_v25, %v9493_v16  ;;  %v8310_v25 = vld [vmem:[%s14673_s23 + $0x5c4] ss:$8 sps:$4 sm:$0xff]  }
  0x9e   :  { %1815 = vmatpush1.bf16.msra.mxu0 %v8147_v30  ;;  %v8229_v30 = vld [vmem:[%s14673_s23 + $0x414] ss:$8 sps:$4 sm:$0xff]  }
  0x9f   :  { %1816 = vmatprep.subr.bf16.mxu0 %v8148_v31  ;;  %v8231_v31 = vld [vmem:[%s14673_s23 + $0x410] ss:$8 sps:$4 sm:$0xff]  }
  0xa2   :  { %1817 = vmatpush1.bf16.msra.mxu0 %v8150_v32  ;;  %v8232_v32 = vld [vmem:[%s14673_s23 + $0x424] ss:$8 sps:$4 sm:$0xff]  }
  0xa3   :  { %1818 = vmatprep.subr.bf16.mxu0 %v8151_v33  ;;  %v8234_v33 = vld [vmem:[%s14673_s23 + $0x420] ss:$8 sps:$4 sm:$0xff]  }
  0xa6   :  { %1819 = vmatpush1.bf16.msra.mxu0 %v8153_v34  ;;  %v8235_v34 = vld [vmem:[%s14673_s23 + $0x434] ss:$8 sps:$4 sm:$0xff]  }
  0xa7   :  { %1820 = vmatprep.subr.bf16.mxu0 %v8154_v35  ;;  %v8237_v35 = vld [vmem:[%s14673_s23 + $0x430] ss:$8 sps:$4 sm:$0xff]  }
  0xaa   :  { %1821 = vmatpush1.bf16.msra.mxu0 %v8156_v36  ;;  %v8238_v36 = vld [vmem:[%s14673_s23 + $0x444] ss:$8 sps:$4 sm:$0xff]  }
  0xab   :  { %1822 = vmatprep.subr.bf16.mxu0 %v8157_v37  ;;  %v8240_v37 = vld [vmem:[%s14673_s23 + $0x440] ss:$8 sps:$4 sm:$0xff]  }
  0xae   :  { %1823 = vmatpush1.bf16.msra.mxu0 %v8159_v38  ;;  %v8241_v38 = vld [vmem:[%s14673_s23 + $0x454] ss:$8 sps:$4 sm:$0xff]  }
  0xaf   :  { %1824 = vmatprep.subr.bf16.mxu0 %v8160_v39  ;;  %v8243_v39 = vld [vmem:[%s14673_s23 + $0x450] ss:$8 sps:$4 sm:$0xff]  }
  0xb2   :  { %1825 = vmatpush1.bf16.msra.mxu0 %v8162_v40  ;;  %v8244_v40 = vld [vmem:[%s14673_s23 + $0x464] ss:$8 sps:$4 sm:$0xff]  }
  0xb3   :  { %1826 = vmatprep.subr.bf16.mxu0 %v8163_v41  ;;  %v8246_v41 = vld [vmem:[%s14673_s23 + $0x460] ss:$8 sps:$4 sm:$0xff]  }
  0xb6   :  { %1827 = vmatpush1.bf16.msra.mxu0 %v8165_v42  ;;  %v8247_v42 = vld [vmem:[%s14673_s23 + $0x474] ss:$8 sps:$4 sm:$0xff]  }
  0xb7   :  { %1828 = vmatprep.subr.bf16.mxu0 %v8166_v43  ;;  %v8249_v43 = vld [vmem:[%s14673_s23 + $0x470] ss:$8 sps:$4 sm:$0xff]  }
  0xba   :  { %1829 = vmatpush1.bf16.msra.mxu0 %v8168_v44  ;;  %v8250_v44 = vld [vmem:[%s14673_s23 + $0x484] ss:$8 sps:$4 sm:$0xff]  }
  0xbb   :  { %1830 = vmatprep.subr.bf16.mxu0 %v8169_v45  ;;  %v8252_v45 = vld [vmem:[%s14673_s23 + $0x480] ss:$8 sps:$4 sm:$0xff]  }
  0xbe   :  { %1831 = vmatpush1.bf16.msra.mxu0 %v8171_v46  ;;  %v8253_v46 = vld [vmem:[%s14673_s23 + $0x494] ss:$8 sps:$4 sm:$0xff]  }
  0xbf   :  { %1832 = vmatprep.subr.bf16.mxu0 %v8172_v47  ;;  %v8255_v47 = vld [vmem:[%s14673_s23 + $0x490] ss:$8 sps:$4 sm:$0xff]  }
  0xc2   :  { %1833 = vmatpush1.bf16.msra.mxu0 %v8174_v48  ;;  %v8256_v48 = vld [vmem:[%s14673_s23 + $0x4a4] ss:$8 sps:$4 sm:$0xff]  }
  0xc3   :  { %1834 = vmatprep.subr.bf16.mxu0 %v8175_v49  ;;  %v8258_v49 = vld [vmem:[%s14673_s23 + $0x4a0] ss:$8 sps:$4 sm:$0xff]  }
  0xc6   :  { %1835 = vmatpush1.bf16.msra.mxu0 %v8177_v50  ;;  %v8259_v50 = vld [vmem:[%s14673_s23 + $0x4b4] ss:$8 sps:$4 sm:$0xff]  }
  0xc7   :  { %1845 = vmatprep.subr.bf16.mxu0 %v8178_v51  ;;  %v8261_v51 = vld [vmem:[%s14673_s23 + $0x4b0] ss:$8 sps:$4 sm:$0xff]  }
  0xc9   :  { %1837 = vmatmul.mubr.bf16.vlgmr.msra.gmra.mrb[0].mxu0 %v9780_v52  ;;  %v8262_v52 = vld [vmem:[%s14673_s23 + $0x4c4] ss:$8 sps:$4 sm:$0xff]  }
  0xca   :  { %1846 = vmatpush1.bf16.msra.mxu0 %v8180_v53  ;;  %1877 = vmatprep.mubr.bf16.mxu0 %v376_v54  ;;  %v8264_v53 = vld [vmem:[%s14673_s23 + $0x4c0] ss:$8 sps:$4 sm:$0xff]   ;;  %v8265_v54 = vld [vmem:[%s14673_s23 + $0x4d4] ss:$8 sps:$4 sm:$0xff]  }
  0xcb   :  { %1847 = vmatprep.subr.bf16.mxu0 %v8181_v55  ;;  %v8267_v55 = vld [vmem:[%s14673_s23 + $0x4d0] ss:$8 sps:$4 sm:$0xff]  }
  0xce   :  { %1848 = vmatpush1.bf16.msra.mxu0 %v8183_v56  ;;  %v8268_v56 = vld [vmem:[%s14673_s23 + $0x4e4] ss:$8 sps:$4 sm:$0xff]  }
  0xcf   :  { %1849 = vmatprep.subr.bf16.mxu0 %v8184_v57  ;;  %v8270_v57 = vld [vmem:[%s14673_s23 + $0x4e0] ss:$8 sps:$4 sm:$0xff]  }
  0xd2   :  { %1850 = vmatpush1.bf16.msra.mxu0 %v8186_v58  ;;  %v8271_v58 = vld [vmem:[%s14673_s23 + $0x4f4] ss:$8 sps:$4 sm:$0xff]  }
  0xd3   :  { %1851 = vmatprep.subr.bf16.mxu0 %v8187_v59  ;;  %v8273_v59 = vld [vmem:[%s14673_s23 + $0x4f0] ss:$8 sps:$4 sm:$0xff]  }
  0xd6   :  { %1852 = vmatpush1.bf16.msra.mxu0 %v8189_v60  ;;  %v8274_v60 = vld [vmem:[%s14673_s23 + $0x504] ss:$8 sps:$4 sm:$0xff]  }
  0xd7   :  { %1853 = vmatprep.subr.bf16.mxu0 %v8190_v61  ;;  %v9996_v61 = vrot.slane %v9879_v22, %v9493_v16  ;;  %v8306_v22 = vld [vmem:[%s14673_s23 + $0x5a0] ss:$8 sps:$4 sm:$0xff]  }
  0xda   :  { %1854 = vmatpush1.bf16.msra.mxu0 %v8192_v62  ;;  %v8276_v62 = vld [vmem:[%s14673_s23 + $0x500] ss:$8 sps:$4 sm:$0xff]  }
  0xdb   :  { %1855 = vmatprep.subr.bf16.mxu0 %v8193_v63  ;;  %v424_v63 = vcombine.high %v9898_v29, %v9898_v29 }
  0xde   :  { %1856 = vmatpush1.bf16.msra.mxu0 %v8195_v0  ;;  %v8277_v0 = vld [vmem:[%s14673_s23 + $0x514] ss:$8 sps:$4 sm:$0xff]  }
  0xdf   :  { %1857 = vmatprep.subr.bf16.mxu0 %v8196_v1  ;;  %v8279_v1 = vld [vmem:[%s14673_s23 + $0x510] ss:$8 sps:$4 sm:$0xff]  }
  0xe2   :  { %1858 = vmatpush1.bf16.msra.mxu0 %v8198_v2  ;;  %v8280_v2 = vld [vmem:[%s14673_s23 + $0x524] ss:$8 sps:$4 sm:$0xff]  }
  0xe3   :  { %1859 = vmatprep.subr.bf16.mxu0 %v8199_v3  ;;  %v8282_v3 = vld [vmem:[%s14673_s23 + $0x520] ss:$8 sps:$4 sm:$0xff]  }
  0xe6   :  { %1860 = vmatpush1.bf16.msra.mxu0 %v8201_v4  ;;  %v8283_v4 = vld [vmem:[%s14673_s23 + $0x534] ss:$8 sps:$4 sm:$0xff]  }
  0xe7   :  { %1861 = vmatprep.subr.bf16.mxu0 %v8202_v5  ;;  %v8285_v5 = vld [vmem:[%s14673_s23 + $0x530] ss:$8 sps:$4 sm:$0xff]  }
  0xea   :  { %1862 = vmatpush1.bf16.msra.mxu0 %v8204_v6  ;;  %v8286_v6 = vld [vmem:[%s14673_s23 + $0x544] ss:$8 sps:$4 sm:$0xff]  }
  0xeb   :  { %1863 = vmatprep.subr.bf16.mxu0 %v8205_v7  ;;  %v8288_v7 = vld [vmem:[%s14673_s23 + $0x540] ss:$8 sps:$4 sm:$0xff]  }
  0xee   :  { %1864 = vmatpush1.bf16.msra.mxu0 %v8207_v8  ;;  %v8289_v8 = vld [vmem:[%s14673_s23 + $0x554] ss:$8 sps:$4 sm:$0xff]  }
  0xef   :  { %1865 = vmatprep.subr.bf16.mxu0 %v8208_v9  ;;  %v8291_v9 = vld [vmem:[%s14673_s23 + $0x550] ss:$8 sps:$4 sm:$0xff]  }
  0xf2   :  { %1866 = vmatpush1.bf16.msra.mxu0 %v8210_v10  ;;  %v8292_v10 = vld [vmem:[%s14673_s23 + $0x564] ss:$8 sps:$4 sm:$0xff]  }
  0xf3   :  { %1867 = vmatprep.subr.bf16.mxu0 %v8211_v11  ;;  %v8294_v11 = vld [vmem:[%s14673_s23 + $0x560] ss:$8 sps:$4 sm:$0xff]  }
  0xf6   :  { %1868 = vmatpush1.bf16.msra.mxu0 %v8213_v13  ;;  %v8295_v13 = vld [vmem:[%s14673_s23 + $0x574] ss:$8 sps:$4 sm:$0xff]  }
  0xf7   :  { %1869 = vmatprep.subr.bf16.mxu0 %v8214_v14  ;;  %v8297_v14 = vld [vmem:[%s14673_s23 + $0x570] ss:$8 sps:$4 sm:$0xff]  }
  0xfa   :  { %1870 = vmatpush1.bf16.msra.mxu0 %v8216_v15  ;;  %v8298_v15 = vld [vmem:[%s14673_s23 + $0x584] ss:$8 sps:$4 sm:$0xff]  }
  0xfb   :  { %1871 = vmatprep.subr.bf16.mxu0 %v8217_v17  ;;  %v8300_v17 = vld [vmem:[%s14673_s23 + $0x580] ss:$8 sps:$4 sm:$0xff]  }
  0xfe   :  { %1872 = vmatpush1.bf16.msra.mxu0 %v8219_v18  ;;  %v8301_v18 = vld [vmem:[%s14673_s23 + $0x594] ss:$8 sps:$4 sm:$0xff]  }
  0xff   :  { %1873 = vmatprep.subr.bf16.mxu0 %v8220_v19  ;;  %v8303_v19 = vld [vmem:[%s14673_s23 + $0x590] ss:$8 sps:$4 sm:$0xff]  }
 0x102   :  { %1874 = vmatpush1.bf16.msra.mxu0 %v8222_v21  ;;  %v8304_v21 = vld [vmem:[%s14673_s23 + $0x5a4] ss:$8 sps:$4 sm:$0xff]  }
 0x103   :  { %1875 = vmatprep.subr.bf16.mxu0 %v8223_v23  ;;  %v8307_v23 = vld [vmem:[%s14673_s23 + $0x5b4] ss:$8 sps:$4 sm:$0xff]  }
 0x106   :  { %1876 = vmatpush1.bf16.msra.mxu0 %v8225_v24  ;;  %v8309_v24 = vld [vmem:[%s14673_s23 + $0x5b0] ss:$8 sps:$4 sm:$0xff]  }
 0x107   :  { %1886 = vmatprep.subr.bf16.mxu0 %v8226_v26  ;;  %v8312_v26 = vld [vmem:[%s14673_s23 + $0x5c0] ss:$8 sps:$4 sm:$0xff]  }
 0x109   :  { %1878 = vmatmul.mubr.bf16.vlgmr.msra.gmra.mrb[0].mxu0 %v374_v27  ;;  %v8313_v27 = vld [vmem:[%s14673_s23 + $0x5d4] ss:$8 sps:$4 sm:$0xff]  }
 0x10a   :  { %1887 = vmatpush1.bf16.msra.mxu0 %v8228_v28  ;;  %1918 = vmatprep.mubr.bf16.mxu0 %v9898_v29  ;;  %v8315_v28 = vld [vmem:[%s14673_s23 + $0x5d0] ss:$8 sps:$4 sm:$0xff]   ;;  %v377_v29 = vcombine.high %v9872_v20, %v9872_v20 }
 0x10b   :  { %1888 = vmatprep.subr.bf16.mxu0 %v8229_v30  ;;  %v8316_v30 = vld [vmem:[%s14673_s23 + $0x5e4] ss:$8 sps:$4 sm:$0xff]   ;;  %v8321_v20 = vld [vmem:[%s14673_s23 + $0x5f0] ss:$8 sps:$4 sm:$0xff]  }
 0x10e   :  { %1889 = vmatpush1.bf16.msra.mxu0 %v8231_v31  ;;  %v8318_v31 = vld [vmem:[%s14673_s23 + $0x5e0] ss:$8 sps:$4 sm:$0xff]  }
 0x10f   :  { %1890 = vmatprep.subr.bf16.mxu0 %v8232_v32  ;;  %v10091_v32 = vrot.slane %v377_v29, %v9493_v16  ;;  %v10350_v29 = vld [vmem:[%s14673_s23 + $0x730] ss:$8 sps:$4 sm:$0xff]  }
 0x112   :  { %1891 = vmatpush1.bf16.msra.mxu0 %v8234_v33  ;;  %v8319_v33 = vld [vmem:[%s14673_s23 + $0x5f4] ss:$8 sps:$4 sm:$0xff]  }
 0x113   :  { %1892 = vmatprep.subr.bf16.mxu0 %v8235_v34  ;;  %v393_v34 = vcombine.high %v10091_v32, %v10091_v32 }
 0x116   :  { %1893 = vmatpush1.bf16.msra.mxu0 %v8237_v35  ;;  %v8322_v35 = vld [vmem:[%s14673_s23 + $0x604] ss:$8 sps:$4 sm:$0xff]  }
 0x117   :  { %1894 = vmatprep.subr.bf16.mxu0 %v8238_v36  ;;  %v422_v36 = vcombine.high %v9996_v61, %v9996_v61 }
 0x11a   :  { %1895 = vmatpush1.bf16.msra.mxu0 %v8240_v37  ;;  %v8324_v37 = vld [vmem:[%s14673_s23 + $0x600] ss:$8 sps:$4 sm:$0xff]  }
 0x11b   :  { %1896 = vmatprep.subr.bf16.mxu0 %v8241_v38  ;;  %v10110_v38 = vrot.slane %v393_v34, %v9493_v16  ;;  %v10386_v34 = vld [vmem:[%s14673_s23 + $0x760] ss:$8 sps:$4 sm:$0xff]  }
 0x11e   :  { %1897 = vmatpush1.bf16.msra.mxu0 %v8243_v39  ;;  %v8325_v39 = vld [vmem:[%s14673_s23 + $0x614] ss:$8 sps:$4 sm:$0xff]  }
 0x11f   :  { %1898 = vmatprep.subr.bf16.mxu0 %v8244_v40  ;;  %v8327_v40 = vld [vmem:[%s14673_s23 + $0x610] ss:$8 sps:$4 sm:$0xff]  }
 0x122   :  { %1899 = vmatpush1.bf16.msra.mxu0 %v8246_v41  ;;  %v8328_v41 = vld [vmem:[%s14673_s23 + $0x624] ss:$8 sps:$4 sm:$0xff]  }
 0x123   :  { %1900 = vmatprep.subr.bf16.mxu0 %v8247_v42  ;;  %v8419_v42 = vld [vmem:[%s14444_s3 + $0x40] sm:$0xff]  }
 0x124   :  { %7751 = vmatprep.subr.bf16.mxu1 %v8419_v42  ;;  %v10434_v42 = vld [vmem:[%s14673_s23 + $0x7a0] ss:$8 sps:$4 sm:$0xff]  }
 0x126   :  { %1901 = vmatpush1.bf16.msra.mxu0 %v8249_v43  ;;  %v8420_v43 = vld [vmem:[%s14444_s3] sm:$0xff]  }
 0x127   :  { %1902 = vmatprep.subr.bf16.mxu0 %v8250_v44  ;;  %v8330_v44 = vld [vmem:[%s14673_s23 + $0x620] ss:$8 sps:$4 sm:$0xff]   ;;  %7752 = vmatpush3.bf16.msra.mxu1 %v8420_v43  ;;  %v10440_v43 = vld [vmem:[%s14673_s23 + $0x7b4] ss:$8 sps:$4 sm:$0xff]  }
 0x12a   :  { %1903 = vmatpush1.bf16.msra.mxu0 %v8252_v45  ;;  %v8421_v45 = vld [vmem:[%s14444_s3 + $0x48] sm:$0xff]  }
 0x12b   :  { %1904 = vmatprep.subr.bf16.mxu0 %v8253_v46  ;;  %v8422_v46 = vld [vmem:[%s14444_s3 + $0x8] sm:$0xff]   ;;  %7753 = vmatprep.subr.bf16.mxu1 %v8421_v45 }
 0x12c   :  { %7754 = vmatpush3.bf16.msra.mxu1 %v8422_v46  ;;  %v10452_v45 = vld [vmem:[%s14673_s23 + $0x7c4] ss:$8 sps:$4 sm:$0xff]   ;;  %v10458_v46 = vld [vmem:[%s14673_s23 + $0x7c0] ss:$8 sps:$4 sm:$0xff]  }
 0x12e   :  { %1905 = vmatpush1.bf16.msra.mxu0 %v8255_v47  ;;  %v8423_v47 = vld [vmem:[%s14444_s3 + $0x50] sm:$0xff]  }
 0x12f   :  { %1906 = vmatprep.subr.bf16.mxu0 %v8256_v48  ;;  %v8331_v48 = vld [vmem:[%s14673_s23 + $0x634] ss:$8 sps:$4 sm:$0xff]   ;;  %7755 = vmatprep.subr.bf16.mxu1 %v8423_v47 }
 0x130   :  { %v10464_v47 = vld [vmem:[%s14673_s23 + $0x7d4] ss:$8 sps:$4 sm:$0xff]  }
 0x132   :  { %1907 = vmatpush1.bf16.msra.mxu0 %v8258_v49  ;;  %v8333_v49 = vld [vmem:[%s14673_s23 + $0x630] ss:$8 sps:$4 sm:$0xff]  }
 0x133   :  { %1908 = vmatprep.subr.bf16.mxu0 %v8259_v50  ;;  %v8424_v50 = vld [vmem:[%s14444_s3 + $0x10] sm:$0xff]  }
 0x134   :  { %7756 = vmatpush3.bf16.msra.mxu1 %v8424_v50  ;;  %v10482_v50 = vld [vmem:[%s14673_s23 + $0x7e0] ss:$8 sps:$4 sm:$0xff]  }
 0x135   :  { %14677 = vst [vmem:[#allocation6_spill] sm:$0xff] %v10482_v50 }
 0x136   :  { %1909 = vmatpush1.bf16.msra.mxu0 %v8261_v51  ;;  %v8425_v51 = vld [vmem:[%s14444_s3 + $0x58] sm:$0xff]  }
 0x137   :  { %1910 = vmatprep.subr.bf16.mxu0 %v8262_v52  ;;  %v8334_v52 = vld [vmem:[%s14673_s23 + $0x644] ss:$8 sps:$4 sm:$0xff]   ;;  %7757 = vmatprep.subr.bf16.mxu1 %v8425_v51  ;;  %v10488_v51 = vld [vmem:[%s14673_s23 + $0x7f4] ss:$8 sps:$4 sm:$0xff]  }
 0x138   :  { %14678 = vst [vmem:[#allocation7_spill] sm:$0xff] %v10488_v51 }
 0x13a   :  { %1911 = vmatpush1.bf16.msra.mxu0 %v8264_v53  ;;  %v8336_v53 = vld [vmem:[%s14673_s23 + $0x640] ss:$8 sps:$4 sm:$0xff]  }
 0x13b   :  { %1912 = vmatprep.subr.bf16.mxu0 %v8265_v54  ;;  %v8337_v54 = vld [vmem:[%s14673_s23 + $0x654] ss:$8 sps:$4 sm:$0xff]  }
 0x13e   :  { %1913 = vmatpush1.bf16.msra.mxu0 %v8267_v55  ;;  %v8426_v55 = vld [vmem:[%s14444_s3 + $0x18] sm:$0xff]  }
 0x13f   :  { %1914 = vmatprep.subr.bf16.mxu0 %v8268_v56  ;;  %v8427_v56 = vld [vmem:[%s14444_s3 + $0x60] sm:$0xff]   ;;  %7758 = vmatpush3.bf16.msra.mxu1 %v8426_v55  ;;  %v8432_v55 = vld [vmem:[%s14444_s3 + $0x30] sm:$0xff]  }
 0x140   :  { %7759 = vmatprep.subr.bf16.mxu1 %v8427_v56  ;;  %v8433_v56 = vld [vmem:[%s14444_s3 + $0x78] sm:$0xff]  }
 0x142   :  { %1915 = vmatpush1.bf16.msra.mxu0 %v8270_v57  ;;  %v8428_v57 = vld [vmem:[%s14444_s3 + $0x20] sm:$0xff]  }
 0x143   :  { %1916 = vmatprep.subr.bf16.mxu0 %v8271_v58  ;;  %v8339_v58 = vld [vmem:[%s14673_s23 + $0x650] ss:$8 sps:$4 sm:$0xff]   ;;  %7760 = vmatpush3.bf16.msra.mxu1 %v8428_v57 }
 0x144   :  { %v8434_v57 = vld [vmem:[%s14444_s3 + $0x38] sm:$0xff]  }
 0x146   :  { %1917 = vmatpush1.bf16.msra.mxu0 %v8273_v59  ;;  %v8429_v59 = vld [vmem:[%s14444_s3 + $0x68] sm:$0xff]  }
 0x147   :  { %1927 = vmatprep.subr.bf16.mxu0 %v8274_v60  ;;  %v10179_v60 = vld [vmem:[%s14673_s23 + $0x664] ss:$8 sps:$4 sm:$0xff]   ;;  %7761 = vmatprep.subr.bf16.mxu1 %v8429_v59  ;;  %v10519_v59 = vsub.s32 0, %v9484_v12 }
 0x149   :  { %1919 = vmatmul.mubr.bf16.vlgmr.msra.gmra.mrb[0].mxu0 %v9996_v61  ;;  %v8430_v61 = vld [vmem:[%s14444_s3 + $0x28] sm:$0xff]   ;;  %14681 = vst [vmem:[#allocation10_spill] sm:$0xff] %v10519_v59 }
 0x14a   :  { %1928 = vmatpush1.bf16.msra.mxu0 %v8276_v62  ;;  %1959 = vmatprep.mubr.bf16.mxu0 %v424_v63  ;;  %v10187_v62 = vld [vmem:[%s14673_s23 + $0x660] ss:$8 sps:$4 sm:$0xff]   ;;  %v10192_v63 = vld [vmem:[%s14673_s23 + $0x674] ss:$8 sps:$4 sm:$0xff]  }
 0x14b   :  { %1929 = vmatprep.subr.bf16.mxu0 %v8277_v0  ;;  %v10198_v0 = vld [vmem:[%s14673_s23 + $0x670] ss:$8 sps:$4 sm:$0xff]   ;;  %7762 = vmatpush3.bf16.msra.mxu1 %v8430_v61  ;;  %v311_v61 = vld [vmem:[%s14445_s2] sm:$0x3] }
 0x14e   :  { %1930 = vmatpush1.bf16.msra.mxu0 %v8279_v1  ;;  %v10203_v1 = vld [vmem:[%s14673_s23 + $0x684] ss:$8 sps:$4 sm:$0xff]  }
 0x14f   :  { %1931 = vmatprep.subr.bf16.mxu0 %v8280_v2  ;;  %v10210_v2 = vld [vmem:[%s14673_s23 + $0x680] ss:$8 sps:$4 sm:$0xff]  }
 0x152   :  { %1932 = vmatpush1.bf16.msra.mxu0 %v8282_v3  ;;  %v10215_v3 = vld [vmem:[%s14673_s23 + $0x694] ss:$8 sps:$4 sm:$0xff]  }
 0x153   :  { %1933 = vmatprep.subr.bf16.mxu0 %v8283_v4  ;;  %v10222_v4 = vld [vmem:[%s14673_s23 + $0x690] ss:$8 sps:$4 sm:$0xff]  }
 0x156   :  { %1934 = vmatpush1.bf16.msra.mxu0 %v8285_v5  ;;  %v10227_v5 = vld [vmem:[%s14673_s23 + $0x6a4] ss:$8 sps:$4 sm:$0xff]  }
 0x157   :  { %1935 = vmatprep.subr.bf16.mxu0 %v8286_v6  ;;  %v10234_v6 = vld [vmem:[%s14673_s23 + $0x6a0] ss:$8 sps:$4 sm:$0xff]  }
 0x15a   :  { %1936 = vmatpush1.bf16.msra.mxu0 %v8288_v7  ;;  %v10239_v7 = vld [vmem:[%s14673_s23 + $0x6b4] ss:$8 sps:$4 sm:$0xff]  }
 0x15b   :  { %1937 = vmatprep.subr.bf16.mxu0 %v8289_v8  ;;  %v10246_v8 = vld [vmem:[%s14673_s23 + $0x6b0] ss:$8 sps:$4 sm:$0xff]  }
 0x15e   :  { %1938 = vmatpush1.bf16.msra.mxu0 %v8291_v9  ;;  %v10251_v9 = vld [vmem:[%s14673_s23 + $0x6c4] ss:$8 sps:$4 sm:$0xff]  }
 0x15f   :  { %1939 = vmatprep.subr.bf16.mxu0 %v8292_v10  ;;  %v10258_v10 = vld [vmem:[%s14673_s23 + $0x6c0] ss:$8 sps:$4 sm:$0xff]  }
 0x162   :  { %1940 = vmatpush1.bf16.msra.mxu0 %v8294_v11  ;;  %v10263_v11 = vld [vmem:[%s14673_s23 + $0x6d4] ss:$8 sps:$4 sm:$0xff]  }
 0x163   :  { %1941 = vmatprep.subr.bf16.mxu0 %v8295_v13  ;;  %v10271_v13 = vld [vmem:[%s14673_s23 + $0x6d0] ss:$8 sps:$4 sm:$0xff]  }
 0x166   :  { %1942 = vmatpush1.bf16.msra.mxu0 %v8297_v14  ;;  %v10277_v14 = vld [vmem:[%s14673_s23 + $0x6e4] ss:$8 sps:$4 sm:$0xff]  }
 0x167   :  { %1943 = vmatprep.subr.bf16.mxu0 %v8298_v15  ;;  %v10283_v15 = vld [vmem:[%s14673_s23 + $0x6e0] ss:$8 sps:$4 sm:$0xff]  }
 0x16a   :  { %1944 = vmatpush1.bf16.msra.mxu0 %v8300_v17  ;;  %v10289_v17 = vld [vmem:[%s14673_s23 + $0x6f4] ss:$8 sps:$4 sm:$0xff]  }
 0x16b   :  { %1945 = vmatprep.subr.bf16.mxu0 %v8301_v18  ;;  %v10295_v18 = vld [vmem:[%s14673_s23 + $0x6f0] ss:$8 sps:$4 sm:$0xff]  }
 0x16e   :  { %1946 = vmatpush1.bf16.msra.mxu0 %v8303_v19  ;;  %v10301_v19 = vld [vmem:[%s14673_s23 + $0x704] ss:$8 sps:$4 sm:$0xff]  }
 0x16f   :  { %1947 = vmatprep.subr.bf16.mxu0 %v8304_v21  ;;  %v10305_v21 = vrot.slane %v10091_v32, %v9493_v16  ;;  %v10368_v32 = vld [vmem:[%s14673_s23 + $0x754] ss:$8 sps:$4 sm:$0xff]  }
 0x172   :  { %1948 = vmatpush1.bf16.msra.mxu0 %v8306_v22  ;;  %v10311_v22 = vld [vmem:[%s14673_s23 + $0x700] ss:$8 sps:$4 sm:$0xff]  }
 0x173   :  { %1949 = vmatprep.subr.bf16.mxu0 %v8307_v23  ;;  %v425_v23 = vcombine.high %v10110_v38, %v10110_v38 }
 0x176   :  { %1950 = vmatpush1.bf16.msra.mxu0 %v8309_v24  ;;  %v10319_v24 = vld [vmem:[%s14673_s23 + $0x714] ss:$8 sps:$4 sm:$0xff]  }
 0x177   :  { %1951 = vmatprep.subr.bf16.mxu0 %v8310_v25  ;;  %v10326_v25 = vld [vmem:[%s14673_s23 + $0x710] ss:$8 sps:$4 sm:$0xff]  }
 0x17a   :  { %1952 = vmatpush1.bf16.msra.mxu0 %v8312_v26  ;;  %v10332_v26 = vld [vmem:[%s14673_s23 + $0x724] ss:$8 sps:$4 sm:$0xff]  }
 0x17b   :  { %1953 = vmatprep.subr.bf16.mxu0 %v8313_v27  ;;  %v10338_v27 = vld [vmem:[%s14673_s23 + $0x720] ss:$8 sps:$4 sm:$0xff]  }
 0x17e   :  { %1954 = vmatpush1.bf16.msra.mxu0 %v8315_v28  ;;  %v10344_v28 = vld [vmem:[%s14673_s23 + $0x734] ss:$8 sps:$4 sm:$0xff]  }
 0x17f   :  { %1955 = vmatprep.subr.bf16.mxu0 %v8316_v30  ;;  %v10356_v30 = vld [vmem:[%s14673_s23 + $0x744] ss:$8 sps:$4 sm:$0xff]  }
 0x182   :  { %1956 = vmatpush1.bf16.msra.mxu0 %v8318_v31  ;;  %v10362_v31 = vld [vmem:[%s14673_s23 + $0x740] ss:$8 sps:$4 sm:$0xff]  }
 0x183   :  { %1957 = vmatprep.subr.bf16.mxu0 %v8319_v33  ;;  %v10374_v33 = vld [vmem:[%s14673_s23 + $0x750] ss:$8 sps:$4 sm:$0xff]  }
 0x186   :  { %1958 = vmatpush1.bf16.msra.mxu0 %v8321_v20  ;;  %v10380_v20 = vld [vmem:[%s14673_s23 + $0x764] ss:$8 sps:$4 sm:$0xff]  }
 0x187   :  { %1968 = vmatprep.subr.bf16.mxu0 %v8322_v35  ;;  %v10392_v35 = vld [vmem:[%s14673_s23 + $0x774] ss:$8 sps:$4 sm:$0xff]  }
 0x189   :  { %1960 = vmatmul.mubr.bf16.vlgmr.msra.gmra.mrb[0].mxu0 %v422_v36  ;;  %v10398_v36 = vld [vmem:[%s14673_s23 + $0x770] ss:$8 sps:$4 sm:$0xff]  }
 0x18a   :  { %1969 = vmatpush1.bf16.msra.mxu0 %v8324_v37  ;;  %2000 = vmatprep.mubr.bf16.mxu0 %v10110_v38  ;;  %v10404_v37 = vld [vmem:[%s14673_s23 + $0x784] ss:$8 sps:$4 sm:$0xff]   ;;  %v10410_v38 = vld [vmem:[%s14673_s23 + $0x780] ss:$8 sps:$4 sm:$0xff]  }
 0x18b   :  { %1970 = vmatprep.subr.bf16.mxu0 %v8325_v39  ;;  %v10416_v39 = vld [vmem:[%s14673_s23 + $0x794] ss:$8 sps:$4 sm:$0xff]  }
 0x18e   :  { %1971 = vmatpush1.bf16.msra.mxu0 %v8327_v40  ;;  %v10422_v40 = vld [vmem:[%s14673_s23 + $0x790] ss:$8 sps:$4 sm:$0xff]  }
 0x18f   :  { %1972 = vmatprep.subr.bf16.mxu0 %v8328_v41  ;;  %v10428_v41 = vld [vmem:[%s14673_s23 + $0x7a4] ss:$8 sps:$4 sm:$0xff]  }
 0x192   :  { %1973 = vmatpush1.bf16.msra.mxu0 %v8330_v44  ;;  %v10446_v44 = vld [vmem:[%s14673_s23 + $0x7b0] ss:$8 sps:$4 sm:$0xff]  }
 0x193   :  { %1974 = vmatprep.subr.bf16.mxu0 %v8331_v48  ;;  %v10470_v48 = vld [vmem:[%s14673_s23 + $0x7d0] ss:$8 sps:$4 sm:$0xff]  }
 0x194   :  { %14675 = vst [vmem:[#allocation4_spill] sm:$0xff] %v10470_v48 }
 0x196   :  { %1975 = vmatpush1.bf16.msra.mxu0 %v8333_v49  ;;  %v10476_v49 = vld [vmem:[%s14673_s23 + $0x7e4] ss:$8 sps:$4 sm:$0xff]  }
 0x197   :  { %1976 = vmatprep.subr.bf16.mxu0 %v8334_v52  ;;  %14676 = vst [vmem:[#allocation5_spill] sm:$0xff] %v10476_v49  ;;  %v10494_v52 = vld [vmem:[%s14673_s23 + $0x7f0] ss:$8 sps:$4 sm:$0xff]  }
 0x198   :  { %14679 = vst [vmem:[#allocation8_spill] sm:$0xff] %v10494_v52 }
 0x19a   :  { %1977 = vmatpush1.bf16.msra.mxu0 %v8336_v53  ;;  %v423_v53 = vcombine.high %v10305_v21, %v10305_v21 }
 0x19b   :  { %1978 = vmatprep.subr.bf16.mxu0 %v8337_v54  ;;  %v8431_v54 = vld [vmem:[%s14444_s3 + $0x70] sm:$0xff]  }
 0x19c   :  { %7763 = vmatprep.subr.bf16.mxu1 %v8431_v54 }
 0x19d   :  { %7764 = vmatpush3.bf16.msra.mxu1 %v8432_v55 }
 0x19e   :  { %1979 = vmatpush1.bf16.msra.mxu0 %v8339_v58  ;;  %7765 = vmatprep.subr.bf16.mxu1 %v8433_v56  ;;  %v10515_v58 = vld [vmem:[%s14673_s23 + $0x4] ss:$8 sps:$4 sm:$0xff]  }
 0x19f   :  { %1980 = vmatprep.subr.bf16.mxu0 %v10179_v60  ;;  %14680 = vst [vmem:[#allocation9_spill] sm:$0xff] %v10515_v58 }
 0x1a1   :  { %7766 = vmatpush3.bf16.msra.mxu1 %v8434_v57 }
 0x1a2   :  { %1981 = vmatpush1.bf16.msra.mxu0 %v10187_v62  ;;  %2348 = vmatprep.subr.bf16.mxu1 %v10515_v58 }
 0x1a3   :  { %1982 = vmatprep.subr.bf16.mxu0 %v10192_v63 }
 0x1a6   :  { %1983 = vmatpush1.bf16.msra.mxu0 %v10198_v0 }
 0x1a7   :  { %1984 = vmatprep.subr.bf16.mxu0 %v10203_v1 }
 0x1aa   :  { %1985 = vmatpush1.bf16.msra.mxu0 %v10210_v2 }
 0x1ab   :  { %1986 = vmatprep.subr.bf16.mxu0 %v10215_v3 }
 0x1ae   :  { %1987 = vmatpush1.bf16.msra.mxu0 %v10222_v4 }
 0x1af   :  { %1988 = vmatprep.subr.bf16.mxu0 %v10227_v5 }
 0x1b2   :  { %1989 = vmatpush1.bf16.msra.mxu0 %v10234_v6 }
 0x1b3   :  { %1990 = vmatprep.subr.bf16.mxu0 %v10239_v7 }
 0x1b6   :  { %1991 = vmatpush1.bf16.msra.mxu0 %v10246_v8 }
 0x1b7   :  { %1992 = vmatprep.subr.bf16.mxu0 %v10251_v9 }
 0x1ba   :  { %1993 = vmatpush1.bf16.msra.mxu0 %v10258_v10 }
 0x1bb   :  { %1994 = vmatprep.subr.bf16.mxu0 %v10263_v11 }
 0x1be   :  { %1995 = vmatpush1.bf16.msra.mxu0 %v10271_v13 }
 0x1bf   :  { %1996 = vmatprep.subr.bf16.mxu0 %v10277_v14 }
 0x1c2   :  { %1997 = vmatpush1.bf16.msra.mxu0 %v10283_v15 }
 0x1c3   :  { %1998 = vmatprep.subr.bf16.mxu0 %v10289_v17 }
 0x1c6   :  { %1999 = vmatpush1.bf16.msra.mxu0 %v10295_v18 }
 0x1c7   :  { %2009 = vmatprep.subr.bf16.mxu0 %v10301_v19 }
 0x1c9   :  { %2001 = vmatmul.mubr.bf16.vlgmr.msra.gmra.mrb[0].mxu0 %v10305_v21  ;;  %v10525_v21 = vsub.s32 1, %v9484_v12 }
 0x1ca   :  { %2010 = vmatpush1.bf16.msra.mxu0 %v10311_v22  ;;  %2041 = vmatprep.mubr.bf16.mxu0 %v425_v23  ;;  %v10530_v23 = vld [vmem:[%s14443_s0 + $0x10] sm:$0xff] }
 0x1cb   :  { %2011 = vmatprep.subr.bf16.mxu0 %v10319_v24  ;;  %14682 = vst [vmem:[#allocation11_spill] sm:$0xff] %v10525_v21  ;;  %v10536_v54 = vrot.slane %v311_v61, %v10525_v21  ;;  %v10540_v55 = vrot.slane %v10530_v23, %v9493_v16 }
 0x1ce   :  { %2012 = vmatpush1.bf16.msra.mxu0 %v10326_v25 }
 0x1cf   :  { %2013 = vmatprep.subr.bf16.mxu0 %v10332_v26 }
 0x1d2   :  { %2014 = vmatpush1.bf16.msra.mxu0 %v10338_v27 }
 0x1d3   :  { %2015 = vmatprep.subr.bf16.mxu0 %v10344_v28 }
 0x1d6   :  { %2016 = vmatpush1.bf16.msra.mxu0 %v10350_v29 }
 0x1d7   :  { %2017 = vmatprep.subr.bf16.mxu0 %v10356_v30 }
 0x1da   :  { %2018 = vmatpush1.bf16.msra.mxu0 %v10362_v31 }
 0x1db   :  { %2019 = vmatprep.subr.bf16.mxu0 %v10368_v32 }
 0x1de   :  { %2020 = vmatpush1.bf16.msra.mxu0 %v10374_v33 }
 0x1df   :  { %2021 = vmatprep.subr.bf16.mxu0 %v10380_v20 }
 0x1e2   :  { %2022 = vmatpush1.bf16.msra.mxu0 %v10386_v34 }
 0x1e3   :  { %2023 = vmatprep.subr.bf16.mxu0 %v10392_v35 }
 0x1e6   :  { %2024 = vmatpush1.bf16.msra.mxu0 %v10398_v36 }
 0x1e7   :  { %2025 = vmatprep.subr.bf16.mxu0 %v10404_v37 }
 0x1ea   :  { %2026 = vmatpush1.bf16.msra.mxu0 %v10410_v38 }
 0x1eb   :  { %2027 = vmatprep.subr.bf16.mxu0 %v10416_v39 }
 0x1ee   :  { %2028 = vmatpush1.bf16.msra.mxu0 %v10422_v40 }
 0x1ef   :  { %2029 = vmatprep.subr.bf16.mxu0 %v10428_v41 }
 0x1f2   :  { %2030 = vmatpush1.bf16.msra.mxu0 %v10434_v42 }
 0x1f3   :  { %2031 = vmatprep.subr.bf16.mxu0 %v10440_v43 }
 0x1f6   :  { %2032 = vmatpush1.bf16.msra.mxu0 %v10446_v44 }
 0x1f7   :  { %2033 = vmatprep.subr.bf16.mxu0 %v10452_v45 }
 0x1fa   :  { %2034 = vmatpush1.bf16.msra.mxu0 %v10458_v46 }
 0x1fb   :  { %2035 = vmatprep.subr.bf16.mxu0 %v10464_v47 }
 0x1fe   :  { %2036 = vmatpush1.bf16.msra.mxu0 %v10470_v48 }
 0x1ff   :  { %2037 = vmatprep.subr.bf16.mxu0 %v10476_v49 }
 0x202   :  { %2038 = vmatpush1.bf16.msra.mxu0 %v10482_v50 }
 0x203   :  { %2039 = vmatprep.subr.bf16.mxu0 %v10488_v51  ;;  %v2249_v51 = vcombine.high %v10540_v55, %v10540_v55 }
 0x206   :  { %2040 = vmatpush1.bf16.msra.mxu0 %v10494_v52 }
 0x209   :  { %2042 = vmatmul.mubr.bf16.vlgmr.msra.gmra.mrb[0].mxu0 %v423_v53  ;;  %v10533_v53 = vrot.slane %v311_v61, %v10519_v59  ;;  %v10547_v61 = vrot.slane %v2249_v51, %v9493_v16  ;;  %v10583_v51 = vld [vmem:[%s14673_s23 + $0x34] ss:$8 sps:$4 sm:$0xff]  }
 0x20a   :  { %14683 = vst [vmem:[#allocation12_spill] sm:$0xff] %v10583_v51 }
 0x2dc   :  { %v2043_v56 = vpop.f32.mrb[0].mxu0 }
 0x2dd   :  { %v7883_v57 = vadd.f32 %v2043_v56, %v10533_v53  ;;  %v2045_v12 = vpop.f32.mrb[1].mxu0  ;;  %v10552_v56 = vld [vmem:[%s14673_s23] ss:$8 sps:$4 sm:$0xff]  }
 0x2de   :  { %v7884_v58 = vadd.f32 %v2045_v12, %v10536_v54  ;;  %v2047_v52 = vpop.f32.mrb[2].mxu0  ;;  %v10559_v12 = vld [vmem:[%s14673_s23 + $0x14] ss:$8 sps:$4 sm:$0xff]  }
 0x2df   :  { %v2050_v50 = vmax.f32 %v7883_v57, 0.0  ;;  %v2048_v59 = vpop.f32.mrb[3].mxu0  ;;  %v10589_v52 = vld [vmem:[%s14673_s23 + $0x30] ss:$8 sps:$4 sm:$0xff]  }
 0x2e0   :  { %v2051_v49 = vmax.f32 %v7884_v58, 0.0  ;;  %14684 = vst [vmem:[#allocation13_spill] sm:$0xff] %v10589_v52  ;;  %v10595_v58 = vld [vmem:[%s14673_s23 + $0x44] ss:$8 sps:$4 sm:$0xff]   ;;  %v10601_v59 = vld [vmem:[%s14673_s23 + $0x40] ss:$8 sps:$4 sm:$0xff]  }
 0x2e1   :  { %v2052_v21 = vpack.c.bf16 %v2050_v50, %v2050_v50  ;;  %v10577_v50 = vld [vmem:[%s14673_s23 + $0x20] ss:$8 sps:$4 sm:$0xff]   ;;  %14685 = vst [vmem:[#allocation14_spill] sm:$0xff] %v10595_v58  ;;  %14686 = vst [vmem:[#allocation15_spill] sm:$0xff] %v10601_v59  ;;  %v10613_v57 = vld [vmem:[%s14673_s23 + $0x50] ss:$8 sps:$4 sm:$0xff]  }
 0x2e2   :  { %v2053_v48 = vpack.c.bf16 %v2051_v49, %v2051_v49  ;;  %v10571_v49 = vld [vmem:[%s14673_s23 + $0x24] ss:$8 sps:$4 sm:$0xff]   ;;  %14688 = vst [vmem:[#allocation17_spill] sm:$0xff] %v10613_v57 }
 0x2e4   :  { %2214 = vmatprep.mubr.bf16.mxu1 %v2053_v48  ;;  %v10565_v48 = vld [vmem:[%s14673_s23 + $0x10] ss:$8 sps:$4 sm:$0xff]  }
 0x2e5   :  { %2215 = vmatmul.mubr.bf16.vlgmr.msra.gmra.mrb[0].mxu1 %v2052_v21  ;;  %v10607_v21 = vld [vmem:[%s14673_s23 + $0x54] ss:$8 sps:$4 sm:$0xff]  }
 0x2e6   :  { %2349 = vmatpush1.bf16.msra.mxu1 %v10552_v56  ;;  %2380 = vmatprep.mubr.bf16.mxu1 %v10547_v61  ;;  %14687 = vst [vmem:[#allocation16_spill] sm:$0xff] %v10607_v21 }
 0x2e7   :  { %2350 = vmatprep.subr.bf16.mxu1 %v10559_v12 }
 0x2ea   :  { %2351 = vmatpush1.bf16.msra.mxu1 %v10565_v48 }
 0x2eb   :  { %2352 = vmatprep.subr.bf16.mxu1 %v10571_v49 }
 0x2ee   :  { %2353 = vmatpush1.bf16.msra.mxu1 %v10577_v50 }
 0x2ef   :  { %2354 = vmatprep.subr.bf16.mxu1 %v10583_v51  ;;  %v11224_v51 = vld [vmem:[%s14673_s23 + $0x364] ss:$8 sps:$4 sm:$0xff]  }
 0x2f0   :  { %14786 = vst [vmem:[#allocation115_spill] sm:$0xff] %v11224_v51 }
 0x2f2   :  { %2355 = vmatpush1.bf16.msra.mxu1 %v10589_v52  ;;  %v10745_v52 = vld [vmem:[%s14673_s23 + $0x104] ss:$8 sps:$4 sm:$0xff]  }
 0x2f3   :  { %2356 = vmatprep.subr.bf16.mxu1 %v10595_v58  ;;  %v10619_v58 = vld [vmem:[%s14673_s23 + $0x64] ss:$8 sps:$4 sm:$0xff]   ;;  %14709 = vst [vmem:[#allocation38_spill] sm:$0xff] %v10745_v52 }
 0x2f4   :  { %14689 = vst [vmem:[#allocation18_spill] sm:$0xff] %v10619_v58 }
 0x2f6   :  { %2357 = vmatpush1.bf16.msra.mxu1 %v10601_v59  ;;  %v10625_v59 = vld [vmem:[%s14673_s23 + $0x60] ss:$8 sps:$4 sm:$0xff]  }
 0x2f7   :  { %2358 = vmatprep.subr.bf16.mxu1 %v10607_v21  ;;  %14690 = vst [vmem:[#allocation19_spill] sm:$0xff] %v10625_v59  ;;  %v10631_v21 = vld [vmem:[%s14673_s23 + $0x74] ss:$8 sps:$4 sm:$0xff]  }
 0x2f8   :  { %14691 = vst [vmem:[#allocation20_spill] sm:$0xff] %v10631_v21 }
 0x2fa   :  { %2359 = vmatpush1.bf16.msra.mxu1 %v10613_v57  ;;  %v10637_v57 = vld [vmem:[%s14673_s23 + $0x70] ss:$8 sps:$4 sm:$0xff]  }
 0x2fb   :  { %2360 = vmatprep.subr.bf16.mxu1 %v10619_v58  ;;  %14692 = vst [vmem:[#allocation21_spill] sm:$0xff] %v10637_v57  ;;  %v10643_v58 = vld [vmem:[%s14673_s23 + $0x84] ss:$8 sps:$4 sm:$0xff]  }
 0x2fc   :  { %14693 = vst [vmem:[#allocation22_spill] sm:$0xff] %v10643_v58 }
 0x2fe   :  { %2361 = vmatpush1.bf16.msra.mxu1 %v10625_v59  ;;  %v10649_v59 = vld [vmem:[%s14673_s23 + $0x80] ss:$8 sps:$4 sm:$0xff]  }
 0x2ff   :  { %2362 = vmatprep.subr.bf16.mxu1 %v10631_v21  ;;  %14694 = vst [vmem:[#allocation23_spill] sm:$0xff] %v10649_v59  ;;  %v10655_v21 = vld [vmem:[%s14673_s23 + $0x94] ss:$8 sps:$4 sm:$0xff]  }
 0x300   :  { %14695 = vst [vmem:[#allocation24_spill] sm:$0xff] %v10655_v21 }
 0x302   :  { %2363 = vmatpush1.bf16.msra.mxu1 %v10637_v57  ;;  %v10661_v57 = vld [vmem:[%s14673_s23 + $0x90] ss:$8 sps:$4 sm:$0xff]  }
 0x303   :  { %2364 = vmatprep.subr.bf16.mxu1 %v10643_v58  ;;  %14696 = vst [vmem:[#allocation25_spill] sm:$0xff] %v10661_v57  ;;  %v10667_v58 = vld [vmem:[%s14673_s23 + $0xa4] ss:$8 sps:$4 sm:$0xff]  }
 0x304   :  { %14697 = vst [vmem:[#allocation26_spill] sm:$0xff] %v10667_v58 }
 0x306   :  { %2365 = vmatpush1.bf16.msra.mxu1 %v10649_v59  ;;  %v10673_v59 = vld [vmem:[%s14673_s23 + $0xa0] ss:$8 sps:$4 sm:$0xff]  }
 0x307   :  { %2366 = vmatprep.subr.bf16.mxu1 %v10655_v21  ;;  %14698 = vst [vmem:[#allocation27_spill] sm:$0xff] %v10673_v59  ;;  %v10679_v21 = vld [vmem:[%s14673_s23 + $0xb4] ss:$8 sps:$4 sm:$0xff]  }
 0x308   :  { %14699 = vst [vmem:[#allocation28_spill] sm:$0xff] %v10679_v21 }
 0x30a   :  { %2367 = vmatpush1.bf16.msra.mxu1 %v10661_v57  ;;  %v10685_v57 = vld [vmem:[%s14673_s23 + $0xb0] ss:$8 sps:$4 sm:$0xff]  }
 0x30b   :  { %2368 = vmatprep.subr.bf16.mxu1 %v10667_v58  ;;  %14700 = vst [vmem:[#allocation29_spill] sm:$0xff] %v10685_v57  ;;  %v10691_v58 = vld [vmem:[%s14673_s23 + $0xc4] ss:$8 sps:$4 sm:$0xff]  }
 0x30c   :  { %14701 = vst [vmem:[#allocation30_spill] sm:$0xff] %v10691_v58 }
 0x30e   :  { %2369 = vmatpush1.bf16.msra.mxu1 %v10673_v59  ;;  %v10697_v59 = vld [vmem:[%s14673_s23 + $0xc0] ss:$8 sps:$4 sm:$0xff]  }
 0x30f   :  { %2370 = vmatprep.subr.bf16.mxu1 %v10679_v21  ;;  %14702 = vst [vmem:[#allocation31_spill] sm:$0xff] %v10697_v59  ;;  %v10703_v21 = vld [vmem:[%s14673_s23 + $0xd4] ss:$8 sps:$4 sm:$0xff]  }
 0x310   :  { %14703 = vst [vmem:[#allocation32_spill] sm:$0xff] %v10703_v21 }
 0x312   :  { %2371 = vmatpush1.bf16.msra.mxu1 %v10685_v57  ;;  %v10709_v57 = vld [vmem:[%s14673_s23 + $0xd0] ss:$8 sps:$4 sm:$0xff]  }
 0x313   :  { %2372 = vmatprep.subr.bf16.mxu1 %v10691_v58  ;;  %14704 = vst [vmem:[#allocation33_spill] sm:$0xff] %v10709_v57  ;;  %v10715_v58 = vld [vmem:[%s14673_s23 + $0xe4] ss:$8 sps:$4 sm:$0xff]  }
 0x314   :  { %14705 = vst [vmem:[#allocation34_spill] sm:$0xff] %v10715_v58 }
 0x316   :  { %2373 = vmatpush1.bf16.msra.mxu1 %v10697_v59  ;;  %v10721_v59 = vld [vmem:[%s14673_s23 + $0xe0] ss:$8 sps:$4 sm:$0xff]  }
 0x317   :  { %2374 = vmatprep.subr.bf16.mxu1 %v10703_v21  ;;  %14706 = vst [vmem:[#allocation35_spill] sm:$0xff] %v10721_v59  ;;  %v10727_v21 = vld [vmem:[%s14673_s23 + $0xf4] ss:$8 sps:$4 sm:$0xff]  }
 0x318   :  { %14707 = vst [vmem:[#allocation36_spill] sm:$0xff] %v10727_v21 }
 0x31a   :  { %2375 = vmatpush1.bf16.msra.mxu1 %v10709_v57  ;;  %v10732_v57 = vrot.slane %v10540_v55, %v9493_v16  ;;  %v10752_v55 = vld [vmem:[%s14673_s23 + $0x100] ss:$8 sps:$4 sm:$0xff]  }
 0x31b   :  { %2376 = vmatprep.subr.bf16.mxu1 %v10715_v58  ;;  %v10737_v58 = vld [vmem:[%s14673_s23 + $0xf0] ss:$8 sps:$4 sm:$0xff]   ;;  %14710 = vst [vmem:[#allocation39_spill] sm:$0xff] %v10752_v55 }
 0x31c   :  { %14708 = vst [vmem:[#allocation37_spill] sm:$0xff] %v10737_v58 }
 0x31e   :  { %2377 = vmatpush1.bf16.msra.mxu1 %v10721_v59  ;;  %v2281_v59 = vcombine.high %v10547_v61, %v10547_v61  ;;  %v10758_v61 = vld [vmem:[%s14673_s23 + $0x114] ss:$8 sps:$4 sm:$0xff]  }
 0x31f   :  { %2378 = vmatprep.subr.bf16.mxu1 %v10727_v21  ;;  %14711 = vst [vmem:[#allocation40_spill] sm:$0xff] %v10758_v61  ;;  %v10950_v21 = vld [vmem:[%s14673_s23 + $0x204] ss:$8 sps:$4 sm:$0xff]  }
 0x320   :  { %14741 = vst [vmem:[#allocation70_spill] sm:$0xff] %v10950_v21 }
 0x322   :  { %2379 = vmatpush1.bf16.msra.mxu1 %v10737_v58  ;;  %v10770_v58 = vld [vmem:[%s14673_s23 + $0x124] ss:$8 sps:$4 sm:$0xff]  }
 0x323   :  { %2389 = vmatprep.subr.bf16.mxu1 %v10745_v52  ;;  %v10764_v52 = vld [vmem:[%s14673_s23 + $0x110] ss:$8 sps:$4 sm:$0xff]   ;;  %14713 = vst [vmem:[#allocation42_spill] sm:$0xff] %v10770_v58 }
 0x324   :  { %14712 = vst [vmem:[#allocation41_spill] sm:$0xff] %v10764_v52 }
 0x325   :  { %2381 = vmatmul.mubr.bf16.vlgmr.msra.gmra.mrb[4].mxu1 %v10732_v57 }
 0x326   :  { %2390 = vmatpush1.bf16.msra.mxu1 %v10752_v55  ;;  %2421 = vmatprep.mubr.bf16.mxu1 %v2281_v59  ;;  %v10776_v59 = vld [vmem:[%s14673_s23 + $0x120] ss:$8 sps:$4 sm:$0xff]  }
 0x327   :  { %2391 = vmatprep.subr.bf16.mxu1 %v10758_v61  ;;  %14714 = vst [vmem:[#allocation43_spill] sm:$0xff] %v10776_v59  ;;  %v10782_v61 = vld [vmem:[%s14673_s23 + $0x134] ss:$8 sps:$4 sm:$0xff]  }
 0x328   :  { %14715 = vst [vmem:[#allocation44_spill] sm:$0xff] %v10782_v61 }
 0x32a   :  { %2392 = vmatpush1.bf16.msra.mxu1 %v10764_v52  ;;  %v10788_v52 = vld [vmem:[%s14673_s23 + $0x130] ss:$8 sps:$4 sm:$0xff]  }
 0x32b   :  { %2393 = vmatprep.subr.bf16.mxu1 %v10770_v58  ;;  %14716 = vst [vmem:[#allocation45_spill] sm:$0xff] %v10788_v52  ;;  %v10794_v58 = vld [vmem:[%s14673_s23 + $0x144] ss:$8 sps:$4 sm:$0xff]  }
 0x32c   :  { %14717 = vst [vmem:[#allocation46_spill] sm:$0xff] %v10794_v58 }
 0x32e   :  { %2394 = vmatpush1.bf16.msra.mxu1 %v10776_v59  ;;  %v10800_v59 = vld [vmem:[%s14673_s23 + $0x140] ss:$8 sps:$4 sm:$0xff]  }
 0x32f   :  { %2395 = vmatprep.subr.bf16.mxu1 %v10782_v61  ;;  %14718 = vst [vmem:[#allocation47_spill] sm:$0xff] %v10800_v59  ;;  %v10806_v61 = vld [vmem:[%s14673_s23 + $0x154] ss:$8 sps:$4 sm:$0xff]  }
 0x330   :  { %14719 = vst [vmem:[#allocation48_spill] sm:$0xff] %v10806_v61 }
 0x332   :  { %2396 = vmatpush1.bf16.msra.mxu1 %v10788_v52  ;;  %v10812_v52 = vld [vmem:[%s14673_s23 + $0x150] ss:$8 sps:$4 sm:$0xff]  }
 0x333   :  { %2397 = vmatprep.subr.bf16.mxu1 %v10794_v58  ;;  %14720 = vst [vmem:[#allocation49_spill] sm:$0xff] %v10812_v52  ;;  %v10818_v58 = vld [vmem:[%s14673_s23 + $0x164] ss:$8 sps:$4 sm:$0xff]  }
 0x334   :  { %14721 = vst [vmem:[#allocation50_spill] sm:$0xff] %v10818_v58 }
 0x336   :  { %2398 = vmatpush1.bf16.msra.mxu1 %v10800_v59  ;;  %v10824_v59 = vld [vmem:[%s14673_s23 + $0x160] ss:$8 sps:$4 sm:$0xff]  }
 0x337   :  { %2399 = vmatprep.subr.bf16.mxu1 %v10806_v61  ;;  %14722 = vst [vmem:[#allocation51_spill] sm:$0xff] %v10824_v59  ;;  %v10830_v61 = vld [vmem:[%s14673_s23 + $0x174] ss:$8 sps:$4 sm:$0xff]  }
 0x338   :  { %14723 = vst [vmem:[#allocation52_spill] sm:$0xff] %v10830_v61 }
 0x33a   :  { %2400 = vmatpush1.bf16.msra.mxu1 %v10812_v52  ;;  %v10836_v52 = vld [vmem:[%s14673_s23 + $0x170] ss:$8 sps:$4 sm:$0xff]  }
 0x33b   :  { %2401 = vmatprep.subr.bf16.mxu1 %v10818_v58  ;;  %14724 = vst [vmem:[#allocation53_spill] sm:$0xff] %v10836_v52  ;;  %v10842_v58 = vld [vmem:[%s14673_s23 + $0x184] ss:$8 sps:$4 sm:$0xff]  }
 0x33c   :  { %14725 = vst [vmem:[#allocation54_spill] sm:$0xff] %v10842_v58 }
 0x33e   :  { %2402 = vmatpush1.bf16.msra.mxu1 %v10824_v59  ;;  %v10848_v59 = vld [vmem:[%s14673_s23 + $0x180] ss:$8 sps:$4 sm:$0xff]  }
 0x33f   :  { %2403 = vmatprep.subr.bf16.mxu1 %v10830_v61  ;;  %14726 = vst [vmem:[#allocation55_spill] sm:$0xff] %v10848_v59  ;;  %v10854_v61 = vld [vmem:[%s14673_s23 + $0x194] ss:$8 sps:$4 sm:$0xff]  }
 0x340   :  { %14727 = vst [vmem:[#allocation56_spill] sm:$0xff] %v10854_v61 }
 0x342   :  { %2404 = vmatpush1.bf16.msra.mxu1 %v10836_v52  ;;  %v10860_v52 = vld [vmem:[%s14673_s23 + $0x190] ss:$8 sps:$4 sm:$0xff]  }
 0x343   :  { %2405 = vmatprep.subr.bf16.mxu1 %v10842_v58  ;;  %14728 = vst [vmem:[#allocation57_spill] sm:$0xff] %v10860_v52  ;;  %v10866_v58 = vld [vmem:[%s14673_s23 + $0x1a4] ss:$8 sps:$4 sm:$0xff]  }
 0x344   :  { %14729 = vst [vmem:[#allocation58_spill] sm:$0xff] %v10866_v58 }
 0x346   :  { %2406 = vmatpush1.bf16.msra.mxu1 %v10848_v59  ;;  %v10872_v59 = vld [vmem:[%s14673_s23 + $0x1a0] ss:$8 sps:$4 sm:$0xff]  }
 0x347   :  { %2407 = vmatprep.subr.bf16.mxu1 %v10854_v61  ;;  %14730 = vst [vmem:[#allocation59_spill] sm:$0xff] %v10872_v59  ;;  %v10878_v61 = vld [vmem:[%s14673_s23 + $0x1b4] ss:$8 sps:$4 sm:$0xff]  }
 0x348   :  { %14731 = vst [vmem:[#allocation60_spill] sm:$0xff] %v10878_v61 }
 0x34a   :  { %2408 = vmatpush1.bf16.msra.mxu1 %v10860_v52  ;;  %v10884_v52 = vld [vmem:[%s14673_s23 + $0x1b0] ss:$8 sps:$4 sm:$0xff]  }
 0x34b   :  { %2409 = vmatprep.subr.bf16.mxu1 %v10866_v58  ;;  %14732 = vst [vmem:[#allocation61_spill] sm:$0xff] %v10884_v52  ;;  %v10890_v58 = vld [vmem:[%s14673_s23 + $0x1c4] ss:$8 sps:$4 sm:$0xff]  }
 0x34c   :  { %14733 = vst [vmem:[#allocation62_spill] sm:$0xff] %v10890_v58 }
 0x34e   :  { %2410 = vmatpush1.bf16.msra.mxu1 %v10872_v59  ;;  %v10896_v59 = vld [vmem:[%s14673_s23 + $0x1c0] ss:$8 sps:$4 sm:$0xff]  }
 0x34f   :  { %2411 = vmatprep.subr.bf16.mxu1 %v10878_v61  ;;  %14734 = vst [vmem:[#allocation63_spill] sm:$0xff] %v10896_v59  ;;  %v2234_v61 = vcombine.high %v10530_v23, %v10530_v23  ;;  %v10919_v23 = vld [vmem:[%s14673_s23 + $0x1e4] ss:$8 sps:$4 sm:$0xff]  }
 0x350   :  { %14737 = vst [vmem:[#allocation66_spill] sm:$0xff] %v10919_v23 }
 0x351   :  { %v10914_v55 = vrot.slane %v2234_v61, %v9493_v16  ;;  %v10933_v61 = vld [vmem:[%s14673_s23 + $0x1f4] ss:$8 sps:$4 sm:$0xff]  }
 0x352   :  { %2412 = vmatpush1.bf16.msra.mxu1 %v10884_v52  ;;  %v10904_v52 = vld [vmem:[%s14673_s23 + $0x1d4] ss:$8 sps:$4 sm:$0xff]   ;;  %14739 = vst [vmem:[#allocation68_spill] sm:$0xff] %v10933_v61 }
 0x353   :  { %2413 = vmatprep.subr.bf16.mxu1 %v10890_v58  ;;  %14735 = vst [vmem:[#allocation64_spill] sm:$0xff] %v10904_v52  ;;  %v10910_v58 = vld [vmem:[%s14673_s23 + $0x1d0] ss:$8 sps:$4 sm:$0xff]  }
 0x354   :  { %14736 = vst [vmem:[#allocation65_spill] sm:$0xff] %v10910_v58 }
 0x356   :  { %2414 = vmatpush1.bf16.msra.mxu1 %v10896_v59  ;;  %v10941_v59 = vld [vmem:[%s14673_s23 + $0x1f0] ss:$8 sps:$4 sm:$0xff]  }
 0x357   :  { %2415 = vmatprep.subr.bf16.mxu1 %v10904_v52  ;;  %v10925_v52 = vld [vmem:[%s14673_s23 + $0x1e0] ss:$8 sps:$4 sm:$0xff]   ;;  %14740 = vst [vmem:[#allocation69_spill] sm:$0xff] %v10941_v59 }
 0x358   :  { %14738 = vst [vmem:[#allocation67_spill] sm:$0xff] %v10925_v52 }
 0x35a   :  { %2416 = vmatpush1.bf16.msra.mxu1 %v10910_v58  ;;  %v2250_v58 = vcombine.high %v10914_v55, %v10914_v55 }
 0x35b   :  { %2417 = vmatprep.subr.bf16.mxu1 %v10919_v23  ;;  %v2279_v23 = vcombine.high %v10732_v57, %v10732_v57  ;;  %v10956_v57 = vld [vmem:[%s14673_s23 + $0x200] ss:$8 sps:$4 sm:$0xff]  }
 0x35c   :  { %14742 = vst [vmem:[#allocation71_spill] sm:$0xff] %v10956_v57 }
 0x35e   :  { %2418 = vmatpush1.bf16.msra.mxu1 %v10925_v52  ;;  %v10945_v52 = vrot.slane %v2250_v58, %v9493_v16  ;;  %v10963_v58 = vld [vmem:[%s14673_s23 + $0x214] ss:$8 sps:$4 sm:$0xff]  }
 0x35f   :  { %2419 = vmatprep.subr.bf16.mxu1 %v10933_v61  ;;  %14743 = vst [vmem:[#allocation72_spill] sm:$0xff] %v10963_v58 }
 0x362   :  { %2420 = vmatpush1.bf16.msra.mxu1 %v10941_v59  ;;  %v11149_v59 = vld [vmem:[%s14673_s23 + $0x304] ss:$8 sps:$4 sm:$0xff]  }
 0x363   :  { %2430 = vmatprep.subr.bf16.mxu1 %v10950_v21  ;;  %v10981_v21 = vld [vmem:[%s14673_s23 + $0x220] ss:$8 sps:$4 sm:$0xff]   ;;  %14773 = vst [vmem:[#allocation102_spill] sm:$0xff] %v11149_v59 }
 0x364   :  { %14746 = vst [vmem:[#allocation75_spill] sm:$0xff] %v10981_v21 }
 0x365   :  { %2422 = vmatmul.mubr.bf16.vlgmr.msra.gmra.mrb[4].mxu1 %v2279_v23  ;;  %v10969_v23 = vld [vmem:[%s14673_s23 + $0x210] ss:$8 sps:$4 sm:$0xff]  }
 0x366   :  { %2431 = vmatpush1.bf16.msra.mxu1 %v10956_v57  ;;  %2462 = vmatprep.mubr.bf16.mxu1 %v10945_v52  ;;  %14744 = vst [vmem:[#allocation73_spill] sm:$0xff] %v10969_v23  ;;  %v10975_v57 = vld [vmem:[%s14673_s23 + $0x224] ss:$8 sps:$4 sm:$0xff]  }
 0x367   :  { %2432 = vmatprep.subr.bf16.mxu1 %v10963_v58  ;;  %14745 = vst [vmem:[#allocation74_spill] sm:$0xff] %v10975_v57  ;;  %v10987_v58 = vld [vmem:[%s14673_s23 + $0x234] ss:$8 sps:$4 sm:$0xff]  }
 0x368   :  { %14747 = vst [vmem:[#allocation76_spill] sm:$0xff] %v10987_v58 }
 0x36a   :  { %2433 = vmatpush1.bf16.msra.mxu1 %v10969_v23  ;;  %v10993_v23 = vld [vmem:[%s14673_s23 + $0x230] ss:$8 sps:$4 sm:$0xff]  }
 0x36b   :  { %2434 = vmatprep.subr.bf16.mxu1 %v10975_v57  ;;  %14748 = vst [vmem:[#allocation77_spill] sm:$0xff] %v10993_v23  ;;  %v10999_v57 = vld [vmem:[%s14673_s23 + $0x244] ss:$8 sps:$4 sm:$0xff]  }
 0x36c   :  { %14749 = vst [vmem:[#allocation78_spill] sm:$0xff] %v10999_v57 }
 0x36e   :  { %2435 = vmatpush1.bf16.msra.mxu1 %v10981_v21  ;;  %v11005_v21 = vld [vmem:[%s14673_s23 + $0x240] ss:$8 sps:$4 sm:$0xff]  }
 0x36f   :  { %2436 = vmatprep.subr.bf16.mxu1 %v10987_v58  ;;  %14750 = vst [vmem:[#allocation79_spill] sm:$0xff] %v11005_v21  ;;  %v11011_v58 = vld [vmem:[%s14673_s23 + $0x254] ss:$8 sps:$4 sm:$0xff]  }
 0x370   :  { %14751 = vst [vmem:[#allocation80_spill] sm:$0xff] %v11011_v58 }
 0x372   :  { %2437 = vmatpush1.bf16.msra.mxu1 %v10993_v23  ;;  %v11017_v23 = vld [vmem:[%s14673_s23 + $0x250] ss:$8 sps:$4 sm:$0xff]  }
 0x373   :  { %2438 = vmatprep.subr.bf16.mxu1 %v10999_v57  ;;  %14752 = vst [vmem:[#allocation81_spill] sm:$0xff] %v11017_v23  ;;  %v11023_v57 = vld [vmem:[%s14673_s23 + $0x264] ss:$8 sps:$4 sm:$0xff]  }
 0x374   :  { %14753 = vst [vmem:[#allocation82_spill] sm:$0xff] %v11023_v57 }
 0x376   :  { %2439 = vmatpush1.bf16.msra.mxu1 %v11005_v21  ;;  %v11029_v21 = vld [vmem:[%s14673_s23 + $0x260] ss:$8 sps:$4 sm:$0xff]  }
 0x377   :  { %2440 = vmatprep.subr.bf16.mxu1 %v11011_v58  ;;  %14754 = vst [vmem:[#allocation83_spill] sm:$0xff] %v11029_v21  ;;  %v11035_v58 = vld [vmem:[%s14673_s23 + $0x274] ss:$8 sps:$4 sm:$0xff]  }
 0x378   :  { %14755 = vst [vmem:[#allocation84_spill] sm:$0xff] %v11035_v58 }
 0x37a   :  { %2441 = vmatpush1.bf16.msra.mxu1 %v11017_v23  ;;  %v11041_v23 = vld [vmem:[%s14673_s23 + $0x270] ss:$8 sps:$4 sm:$0xff]  }
 0x37b   :  { %2442 = vmatprep.subr.bf16.mxu1 %v11023_v57  ;;  %14756 = vst [vmem:[#allocation85_spill] sm:$0xff] %v11041_v23  ;;  %v11047_v57 = vld [vmem:[%s14673_s23 + $0x284] ss:$8 sps:$4 sm:$0xff]  }
 0x37c   :  { %14757 = vst [vmem:[#allocation86_spill] sm:$0xff] %v11047_v57 }
 0x37e   :  { %2443 = vmatpush1.bf16.msra.mxu1 %v11029_v21  ;;  %v11053_v21 = vld [vmem:[%s14673_s23 + $0x280] ss:$8 sps:$4 sm:$0xff]  }
 0x37f   :  { %2444 = vmatprep.subr.bf16.mxu1 %v11035_v58  ;;  %14758 = vst [vmem:[#allocation87_spill] sm:$0xff] %v11053_v21  ;;  %v11059_v58 = vld [vmem:[%s14673_s23 + $0x294] ss:$8 sps:$4 sm:$0xff]  }
 0x380   :  { %14759 = vst [vmem:[#allocation88_spill] sm:$0xff] %v11059_v58 }
 0x382   :  { %2445 = vmatpush1.bf16.msra.mxu1 %v11041_v23  ;;  %v11065_v23 = vld [vmem:[%s14673_s23 + $0x290] ss:$8 sps:$4 sm:$0xff]  }
 0x383   :  { %2446 = vmatprep.subr.bf16.mxu1 %v11047_v57  ;;  %14760 = vst [vmem:[#allocation89_spill] sm:$0xff] %v11065_v23  ;;  %v11071_v57 = vld [vmem:[%s14673_s23 + $0x2a4] ss:$8 sps:$4 sm:$0xff]  }
 0x384   :  { %14761 = vst [vmem:[#allocation90_spill] sm:$0xff] %v11071_v57 }
 0x386   :  { %2447 = vmatpush1.bf16.msra.mxu1 %v11053_v21  ;;  %v11077_v21 = vld [vmem:[%s14673_s23 + $0x2a0] ss:$8 sps:$4 sm:$0xff]  }
 0x387   :  { %2448 = vmatprep.subr.bf16.mxu1 %v11059_v58  ;;  %14762 = vst [vmem:[#allocation91_spill] sm:$0xff] %v11077_v21  ;;  %v11083_v58 = vld [vmem:[%s14673_s23 + $0x2b4] ss:$8 sps:$4 sm:$0xff]  }
 0x388   :  { %14763 = vst [vmem:[#allocation92_spill] sm:$0xff] %v11083_v58 }
 0x38a   :  { %2449 = vmatpush1.bf16.msra.mxu1 %v11065_v23  ;;  %v11089_v23 = vld [vmem:[%s14673_s23 + $0x2b0] ss:$8 sps:$4 sm:$0xff]  }
 0x38b   :  { %2450 = vmatprep.subr.bf16.mxu1 %v11071_v57  ;;  %14764 = vst [vmem:[#allocation93_spill] sm:$0xff] %v11089_v23  ;;  %v11095_v57 = vld [vmem:[%s14673_s23 + $0x2c4] ss:$8 sps:$4 sm:$0xff]  }
 0x38c   :  { %14765 = vst [vmem:[#allocation94_spill] sm:$0xff] %v11095_v57 }
 0x38e   :  { %2451 = vmatpush1.bf16.msra.mxu1 %v11077_v21  ;;  %v11101_v21 = vld [vmem:[%s14673_s23 + $0x2c0] ss:$8 sps:$4 sm:$0xff]  }
 0x38f   :  { %2452 = vmatprep.subr.bf16.mxu1 %v11083_v58  ;;  %14766 = vst [vmem:[#allocation95_spill] sm:$0xff] %v11101_v21  ;;  %v11107_v58 = vld [vmem:[%s14673_s23 + $0x2d4] ss:$8 sps:$4 sm:$0xff]  }
 0x390   :  { %14767 = vst [vmem:[#allocation96_spill] sm:$0xff] %v11107_v58 }
 0x392   :  { %2453 = vmatpush1.bf16.msra.mxu1 %v11089_v23  ;;  %v11113_v23 = vld [vmem:[%s14673_s23 + $0x2d0] ss:$8 sps:$4 sm:$0xff]  }
 0x393   :  { %2454 = vmatprep.subr.bf16.mxu1 %v11095_v57  ;;  %14768 = vst [vmem:[#allocation97_spill] sm:$0xff] %v11113_v23  ;;  %v11119_v57 = vld [vmem:[%s14673_s23 + $0x2e4] ss:$8 sps:$4 sm:$0xff]  }
 0x394   :  { %14769 = vst [vmem:[#allocation98_spill] sm:$0xff] %v11119_v57 }
 0x396   :  { %2455 = vmatpush1.bf16.msra.mxu1 %v11101_v21  ;;  %v11125_v21 = vld [vmem:[%s14673_s23 + $0x2e0] ss:$8 sps:$4 sm:$0xff]  }
 0x397   :  { %2456 = vmatprep.subr.bf16.mxu1 %v11107_v58  ;;  %14770 = vst [vmem:[#allocation99_spill] sm:$0xff] %v11125_v21  ;;  %v11131_v58 = vld [vmem:[%s14673_s23 + $0x2f4] ss:$8 sps:$4 sm:$0xff]  }
 0x398   :  { %14771 = vst [vmem:[#allocation100_spill] sm:$0xff] %v11131_v58 }
 0x39a   :  { %2457 = vmatpush1.bf16.msra.mxu1 %v11113_v23  ;;  %v11136_v23 = vrot.slane %v10914_v55, %v9493_v16  ;;  %v11156_v55 = vld [vmem:[%s14673_s23 + $0x300] ss:$8 sps:$4 sm:$0xff]  }
 0x39b   :  { %2458 = vmatprep.subr.bf16.mxu1 %v11119_v57  ;;  %v11141_v57 = vld [vmem:[%s14673_s23 + $0x2f0] ss:$8 sps:$4 sm:$0xff]   ;;  %14774 = vst [vmem:[#allocation103_spill] sm:$0xff] %v11156_v55 }
 0x39c   :  { %14772 = vst [vmem:[#allocation101_spill] sm:$0xff] %v11141_v57 }
 0x39e   :  { %2459 = vmatpush1.bf16.msra.mxu1 %v11125_v21  ;;  %v2282_v21 = vcombine.high %v10945_v52, %v10945_v52  ;;  %v11162_v52 = vld [vmem:[%s14673_s23 + $0x314] ss:$8 sps:$4 sm:$0xff]  }
 0x39f   :  { %2460 = vmatprep.subr.bf16.mxu1 %v11131_v58  ;;  %14775 = vst [vmem:[#allocation104_spill] sm:$0xff] %v11162_v52 }
 0x3a2   :  { %2461 = vmatpush1.bf16.msra.mxu1 %v11141_v57  ;;  %v11174_v57 = vld [vmem:[%s14673_s23 + $0x324] ss:$8 sps:$4 sm:$0xff]  }
 0x3a3   :  { %2471 = vmatprep.subr.bf16.mxu1 %v11149_v59  ;;  %v11168_v59 = vld [vmem:[%s14673_s23 + $0x310] ss:$8 sps:$4 sm:$0xff]   ;;  %14777 = vst [vmem:[#allocation106_spill] sm:$0xff] %v11174_v57 }
 0x3a4   :  { %14776 = vst [vmem:[#allocation105_spill] sm:$0xff] %v11168_v59 }
 0x3a5   :  { %2463 = vmatmul.mubr.bf16.vlgmr.msra.gmra.mrb[4].mxu1 %v11136_v23 }
 0x3a6   :  { %2472 = vmatpush1.bf16.msra.mxu1 %v11156_v55  ;;  %2503 = vmatprep.mubr.bf16.mxu1 %v2282_v21  ;;  %v11180_v21 = vld [vmem:[%s14673_s23 + $0x320] ss:$8 sps:$4 sm:$0xff]  }
 0x3a7   :  { %2473 = vmatprep.subr.bf16.mxu1 %v11162_v52  ;;  %14778 = vst [vmem:[#allocation107_spill] sm:$0xff] %v11180_v21  ;;  %v11186_v52 = vld [vmem:[%s14673_s23 + $0x334] ss:$8 sps:$4 sm:$0xff]  }
 0x3a8   :  { %14779 = vst [vmem:[#allocation108_spill] sm:$0xff] %v11186_v52 }
 0x3aa   :  { %2474 = vmatpush1.bf16.msra.mxu1 %v11168_v59  ;;  %v11192_v59 = vld [vmem:[%s14673_s23 + $0x330] ss:$8 sps:$4 sm:$0xff]  }
 0x3ab   :  { %2475 = vmatprep.subr.bf16.mxu1 %v11174_v57  ;;  %14780 = vst [vmem:[#allocation109_spill] sm:$0xff] %v11192_v59  ;;  %v11198_v57 = vld [vmem:[%s14673_s23 + $0x344] ss:$8 sps:$4 sm:$0xff]  }
 0x3ac   :  { %14781 = vst [vmem:[#allocation110_spill] sm:$0xff] %v11198_v57 }
 0x3ae   :  { %2476 = vmatpush1.bf16.msra.mxu1 %v11180_v21  ;;  %v11204_v21 = vld [vmem:[%s14673_s23 + $0x340] ss:$8 sps:$4 sm:$0xff]  }
 0x3af   :  { %2477 = vmatprep.subr.bf16.mxu1 %v11186_v52  ;;  %14782 = vst [vmem:[#allocation111_spill] sm:$0xff] %v11204_v21  ;;  %v11210_v52 = vld [vmem:[%s14673_s23 + $0x354] ss:$8 sps:$4 sm:$0xff]  }
 0x3b0   :  { %14783 = vst [vmem:[#allocation112_spill] sm:$0xff] %v11210_v52 }
 0x3b2   :  { %2478 = vmatpush1.bf16.msra.mxu1 %v11192_v59 }
 0x3b3   :  { %2479 = vmatprep.subr.bf16.mxu1 %v11198_v57  ;;  %v11218_v57 = vld [vmem:[%s14673_s23 + $0x350] ss:$8 sps:$4 sm:$0xff]  }
 0x3b4   :  { %14785 = vst [vmem:[#allocation114_spill] sm:$0xff] %v11218_v57 }
 0x3b6   :  { %2480 = vmatpush1.bf16.msra.mxu1 %v11204_v21 }
 0x3b7   :  { %2481 = vmatprep.subr.bf16.mxu1 %v11210_v52  ;;  %v11360_v52 = vld [vmem:[%s14673_s23 + $0x404] ss:$8 sps:$4 sm:$0xff]  }
 0x3b8   :  { %v7767_v59 = vpop.f32.mrb[0].mxu1  ;;  %14806 = vst [vmem:[#allocation135_spill] sm:$0xff] %v11360_v52 }
 0x3b9   :  { %v7768_v55 = vpop.f32.mrb[1].mxu1 }
 0x3ba   :  { %v11213_v58 = vadd.f32 %v7768_v55, %v7767_v59  ;;  %2482 = vmatpush1.bf16.msra.mxu1 %v11218_v57  ;;  %v7770_v61 = vpop.f32.mrb[2].mxu1  ;;  %v11230_v59 = vld [vmem:[%s14673_s23 + $0x360] ss:$8 sps:$4 sm:$0xff]   ;;  %v11236_v55 = vld [vmem:[%s14673_s23 + $0x374] ss:$8 sps:$4 sm:$0xff]  }
 0x3bb   :  { %v7771_v21 = vpop.f32.mrb[3].mxu1  ;;  %2483 = vmatprep.subr.bf16.mxu1 %v11224_v51  ;;  %14787 = vst [vmem:[#allocation116_spill] sm:$0xff] %v11230_v59  ;;  %14788 = vst [vmem:[#allocation117_spill] sm:$0xff] %v11236_v55  ;;  %v11242_v61 = vld [vmem:[%s14673_s23 + $0x370] ss:$8 sps:$4 sm:$0xff]  }
 0x3bc   :  { %14784 = vst [vmem:[#allocation113_spill] sm:$0xff] %v11213_v58  ;;  %14789 = vst [vmem:[#allocation118_spill] sm:$0xff] %v11242_v61  ;;  %v11248_v21 = vld [vmem:[%s14673_s23 + $0x384] ss:$8 sps:$4 sm:$0xff]   ;;  %v11335_v51 = vld [vmem:[%s14673_s23 + $0x3e0] ss:$8 sps:$4 sm:$0xff]  }
 0x3bd   :  { %14790 = vst [vmem:[#allocation119_spill] sm:$0xff] %v11248_v21  ;;  %14803 = vst [vmem:[#allocation132_spill] sm:$0xff] %v11335_v51  ;;  %v11343_v57 = vld [vmem:[%s14673_s23 + $0x3f4] ss:$8 sps:$4 sm:$0xff]   ;;  %v11351_v58 = vld [vmem:[%s14673_s23 + $0x3f0] ss:$8 sps:$4 sm:$0xff]  }
 0x3be   :  { %2484 = vmatpush1.bf16.msra.mxu1 %v11230_v59  ;;  %v11254_v59 = vld [vmem:[%s14673_s23 + $0x380] ss:$8 sps:$4 sm:$0xff]   ;;  %14804 = vst [vmem:[#allocation133_spill] sm:$0xff] %v11343_v57  ;;  %14805 = vst [vmem:[#allocation134_spill] sm:$0xff] %v11351_v58 }
 0x3bf   :  { %2485 = vmatprep.subr.bf16.mxu1 %v11236_v55  ;;  %14791 = vst [vmem:[#allocation120_spill] sm:$0xff] %v11254_v59  ;;  %v11260_v55 = vld [vmem:[%s14673_s23 + $0x394] ss:$8 sps:$4 sm:$0xff]  }
 0x3c0   :  { %14792 = vst [vmem:[#allocation121_spill] sm:$0xff] %v11260_v55 }
 0x3c2   :  { %2486 = vmatpush1.bf16.msra.mxu1 %v11242_v61  ;;  %v11266_v61 = vld [vmem:[%s14673_s23 + $0x390] ss:$8 sps:$4 sm:$0xff]  }
 0x3c3   :  { %2487 = vmatprep.subr.bf16.mxu1 %v11248_v21  ;;  %14793 = vst [vmem:[#allocation122_spill] sm:$0xff] %v11266_v61  ;;  %v11272_v21 = vld [vmem:[%s14673_s23 + $0x3a4] ss:$8 sps:$4 sm:$0xff]  }
 0x3c4   :  { %14794 = vst [vmem:[#allocation123_spill] sm:$0xff] %v11272_v21 }
 0x3c6   :  { %2488 = vmatpush1.bf16.msra.mxu1 %v11254_v59  ;;  %v11278_v59 = vld [vmem:[%s14673_s23 + $0x3a0] ss:$8 sps:$4 sm:$0xff]  }
 0x3c7   :  { %2489 = vmatprep.subr.bf16.mxu1 %v11260_v55  ;;  %14795 = vst [vmem:[#allocation124_spill] sm:$0xff] %v11278_v59  ;;  %v11284_v55 = vld [vmem:[%s14673_s23 + $0x3b4] ss:$8 sps:$4 sm:$0xff]  }
 0x3c8   :  { %14796 = vst [vmem:[#allocation125_spill] sm:$0xff] %v11284_v55 }
 0x3ca   :  { %2490 = vmatpush1.bf16.msra.mxu1 %v11266_v61  ;;  %v11290_v61 = vld [vmem:[%s14673_s23 + $0x3b0] ss:$8 sps:$4 sm:$0xff]  }
 0x3cb   :  { %2491 = vmatprep.subr.bf16.mxu1 %v11272_v21  ;;  %14797 = vst [vmem:[#allocation126_spill] sm:$0xff] %v11290_v61  ;;  %v11296_v21 = vld [vmem:[%s14673_s23 + $0x3c4] ss:$8 sps:$4 sm:$0xff]  }
 0x3cc   :  { %14798 = vst [vmem:[#allocation127_spill] sm:$0xff] %v11296_v21 }
 0x3ce   :  { %2492 = vmatpush1.bf16.msra.mxu1 %v11278_v59  ;;  %v11302_v59 = vld [vmem:[%s14673_s23 + $0x3c0] ss:$8 sps:$4 sm:$0xff]  }
 0x3cf   :  { %2493 = vmatprep.subr.bf16.mxu1 %v11284_v55  ;;  %14799 = vst [vmem:[#allocation128_spill] sm:$0xff] %v11302_v59  ;;  %v11308_v55 = vld [vmem:[%s14673_s23 + $0x3d4] ss:$8 sps:$4 sm:$0xff]  }
 0x3d0   :  { %14800 = vst [vmem:[#allocation129_spill] sm:$0xff] %v11308_v55 }
 0x3d2   :  { %2494 = vmatpush1.bf16.msra.mxu1 %v11290_v61  ;;  %v11314_v61 = vld [vmem:[%s14443_s0 + $0x18] sm:$0xff] }
 0x3d3   :  { %2495 = vmatprep.subr.bf16.mxu1 %v11296_v21  ;;  %v11319_v21 = vld [vmem:[%s14673_s23 + $0x3d0] ss:$8 sps:$4 sm:$0xff]  }
 0x3d4   :  { %14801 = vst [vmem:[#allocation130_spill] sm:$0xff] %v11319_v21 }
 0x3d6   :  { %2496 = vmatpush1.bf16.msra.mxu1 %v11302_v59  ;;  %v11324_v59 = vrot.slane %v11314_v61, %v9493_v16 }
 0x3d7   :  { %2497 = vmatprep.subr.bf16.mxu1 %v11308_v55  ;;  %v11329_v55 = vld [vmem:[%s14673_s23 + $0x3e4] ss:$8 sps:$4 sm:$0xff]  }
 0x3d8   :  { %14802 = vst [vmem:[#allocation131_spill] sm:$0xff] %v11329_v55 }
 0x3da   :  { %2498 = vmatpush1.bf16.msra.mxu1 %v11319_v21  ;;  %v2298_v21 = vcombine.high %v11324_v59, %v11324_v59 }
 0x3db   :  { %2499 = vmatprep.subr.bf16.mxu1 %v11329_v55  ;;  %v2280_v55 = vcombine.high %v11136_v23, %v11136_v23  ;;  %v11366_v23 = vld [vmem:[%s14673_s23 + $0x400] ss:$8 sps:$4 sm:$0xff]  }
 0x3dc   :  { %14807 = vst [vmem:[#allocation136_spill] sm:$0xff] %v11366_v23 }
 0x3de   :  { %2500 = vmatpush1.bf16.msra.mxu1 %v11335_v51  ;;  %v11355_v51 = vrot.slane %v2298_v21, %v9493_v16  ;;  %v11373_v21 = vld [vmem:[%s14673_s23 + $0x414] ss:$8 sps:$4 sm:$0xff]  }
 0x3df   :  { %2501 = vmatprep.subr.bf16.mxu1 %v11343_v57  ;;  %14808 = vst [vmem:[#allocation137_spill] sm:$0xff] %v11373_v21  ;;  %v11798_v57 = vld [vmem:[%s14673_s23 + $0x610] ss:$8 sps:$4 sm:$0xff]  }
 0x3e0   :  { %14872 = vst [vmem:[#allocation201_spill] sm:$0xff] %v11798_v57 }
 0x3e2   :  { %2502 = vmatpush1.bf16.msra.mxu1 %v11351_v58  ;;  %v11559_v58 = vld [vmem:[%s14673_s23 + $0x504] ss:$8 sps:$4 sm:$0xff]  }
 0x3e3   :  { %2512 = vmatprep.subr.bf16.mxu1 %v11360_v52  ;;  %v11391_v52 = vld [vmem:[%s14673_s23 + $0x420] ss:$8 sps:$4 sm:$0xff]   ;;  %14838 = vst [vmem:[#allocation167_spill] sm:$0xff] %v11559_v58 }
 0x3e4   :  { %14811 = vst [vmem:[#allocation140_spill] sm:$0xff] %v11391_v52 }
 0x3e5   :  { %2504 = vmatmul.mubr.bf16.vlgmr.msra.gmra.mrb[4].mxu1 %v2280_v55  ;;  %v11379_v55 = vld [vmem:[%s14673_s23 + $0x410] ss:$8 sps:$4 sm:$0xff]  }
 0x3e6   :  { %2513 = vmatpush1.bf16.msra.mxu1 %v11366_v23  ;;  %2544 = vmatprep.mubr.bf16.mxu1 %v11355_v51  ;;  %14809 = vst [vmem:[#allocation138_spill] sm:$0xff] %v11379_v55  ;;  %v11385_v23 = vld [vmem:[%s14673_s23 + $0x424] ss:$8 sps:$4 sm:$0xff]  }
 0x3e7   :  { %2514 = vmatprep.subr.bf16.mxu1 %v11373_v21  ;;  %14810 = vst [vmem:[#allocation139_spill] sm:$0xff] %v11385_v23  ;;  %v11397_v21 = vld [vmem:[%s14673_s23 + $0x434] ss:$8 sps:$4 sm:$0xff]  }
 0x3e8   :  { %14812 = vst [vmem:[#allocation141_spill] sm:$0xff] %v11397_v21 }
 0x3ea   :  { %2515 = vmatpush1.bf16.msra.mxu1 %v11379_v55  ;;  %v11403_v55 = vld [vmem:[%s14673_s23 + $0x430] ss:$8 sps:$4 sm:$0xff]  }
 0x3eb   :  { %2516 = vmatprep.subr.bf16.mxu1 %v11385_v23  ;;  %14813 = vst [vmem:[#allocation142_spill] sm:$0xff] %v11403_v55  ;;  %v11409_v23 = vld [vmem:[%s14673_s23 + $0x444] ss:$8 sps:$4 sm:$0xff]  }
 0x3ec   :  { %14814 = vst [vmem:[#allocation143_spill] sm:$0xff] %v11409_v23 }
 0x3ee   :  { %2517 = vmatpush1.bf16.msra.mxu1 %v11391_v52  ;;  %v11415_v52 = vld [vmem:[%s14673_s23 + $0x440] ss:$8 sps:$4 sm:$0xff]  }
 0x3ef   :  { %2518 = vmatprep.subr.bf16.mxu1 %v11397_v21  ;;  %14815 = vst [vmem:[#allocation144_spill] sm:$0xff] %v11415_v52  ;;  %v11421_v21 = vld [vmem:[%s14673_s23 + $0x454] ss:$8 sps:$4 sm:$0xff]  }
 0x3f0   :  { %14816 = vst [vmem:[#allocation145_spill] sm:$0xff] %v11421_v21 }
 0x3f2   :  { %2519 = vmatpush1.bf16.msra.mxu1 %v11403_v55  ;;  %v11427_v55 = vld [vmem:[%s14673_s23 + $0x450] ss:$8 sps:$4 sm:$0xff]  }
 0x3f3   :  { %2520 = vmatprep.subr.bf16.mxu1 %v11409_v23  ;;  %14817 = vst [vmem:[#allocation146_spill] sm:$0xff] %v11427_v55  ;;  %v11433_v23 = vld [vmem:[%s14673_s23 + $0x464] ss:$8 sps:$4 sm:$0xff]  }
 0x3f4   :  { %14818 = vst [vmem:[#allocation147_spill] sm:$0xff] %v11433_v23 }
 0x3f6   :  { %2521 = vmatpush1.bf16.msra.mxu1 %v11415_v52  ;;  %v11439_v52 = vld [vmem:[%s14673_s23 + $0x460] ss:$8 sps:$4 sm:$0xff]  }
 0x3f7   :  { %2522 = vmatprep.subr.bf16.mxu1 %v11421_v21  ;;  %14819 = vst [vmem:[#allocation148_spill] sm:$0xff] %v11439_v52  ;;  %v11445_v21 = vld [vmem:[%s14673_s23 + $0x474] ss:$8 sps:$4 sm:$0xff]  }
 0x3f8   :  { %14820 = vst [vmem:[#allocation149_spill] sm:$0xff] %v11445_v21 }
 0x3fa   :  { %2523 = vmatpush1.bf16.msra.mxu1 %v11427_v55  ;;  %v11451_v55 = vld [vmem:[%s14673_s23 + $0x470] ss:$8 sps:$4 sm:$0xff]  }
 0x3fb   :  { %2524 = vmatprep.subr.bf16.mxu1 %v11433_v23  ;;  %14821 = vst [vmem:[#allocation150_spill] sm:$0xff] %v11451_v55  ;;  %v11457_v23 = vld [vmem:[%s14673_s23 + $0x484] ss:$8 sps:$4 sm:$0xff]  }
 0x3fc   :  { %14822 = vst [vmem:[#allocation151_spill] sm:$0xff] %v11457_v23 }
 0x3fe   :  { %2525 = vmatpush1.bf16.msra.mxu1 %v11439_v52  ;;  %v11463_v52 = vld [vmem:[%s14673_s23 + $0x480] ss:$8 sps:$4 sm:$0xff]  }
 0x3ff   :  { %2526 = vmatprep.subr.bf16.mxu1 %v11445_v21  ;;  %14823 = vst [vmem:[#allocation152_spill] sm:$0xff] %v11463_v52  ;;  %v11469_v21 = vld [vmem:[%s14673_s23 + $0x494] ss:$8 sps:$4 sm:$0xff]  }
 0x400   :  { %14824 = vst [vmem:[#allocation153_spill] sm:$0xff] %v11469_v21 }
 0x402   :  { %2527 = vmatpush1.bf16.msra.mxu1 %v11451_v55  ;;  %v11475_v55 = vld [vmem:[%s14673_s23 + $0x490] ss:$8 sps:$4 sm:$0xff]  }
 0x403   :  { %2528 = vmatprep.subr.bf16.mxu1 %v11457_v23  ;;  %14825 = vst [vmem:[#allocation154_spill] sm:$0xff] %v11475_v55  ;;  %v11481_v23 = vld [vmem:[%s14673_s23 + $0x4a4] ss:$8 sps:$4 sm:$0xff]  }
 0x404   :  { %14826 = vst [vmem:[#allocation155_spill] sm:$0xff] %v11481_v23 }
 0x406   :  { %2529 = vmatpush1.bf16.msra.mxu1 %v11463_v52  ;;  %v11487_v52 = vld [vmem:[%s14673_s23 + $0x4a0] ss:$8 sps:$4 sm:$0xff]  }
 0x407   :  { %2530 = vmatprep.subr.bf16.mxu1 %v11469_v21  ;;  %14827 = vst [vmem:[#allocation156_spill] sm:$0xff] %v11487_v52  ;;  %v11493_v21 = vld [vmem:[%s14673_s23 + $0x4b4] ss:$8 sps:$4 sm:$0xff]  }
 0x408   :  { %14828 = vst [vmem:[#allocation157_spill] sm:$0xff] %v11493_v21 }
 0x40a   :  { %2531 = vmatpush1.bf16.msra.mxu1 %v11475_v55  ;;  %v11499_v55 = vld [vmem:[%s14673_s23 + $0x4b0] ss:$8 sps:$4 sm:$0xff]  }
 0x40b   :  { %2532 = vmatprep.subr.bf16.mxu1 %v11481_v23  ;;  %14829 = vst [vmem:[#allocation158_spill] sm:$0xff] %v11499_v55  ;;  %v11505_v23 = vld [vmem:[%s14673_s23 + $0x4c4] ss:$8 sps:$4 sm:$0xff]  }
 0x40c   :  { %14830 = vst [vmem:[#allocation159_spill] sm:$0xff] %v11505_v23 }
 0x40e   :  { %2533 = vmatpush1.bf16.msra.mxu1 %v11487_v52  ;;  %v11511_v52 = vld [vmem:[%s14673_s23 + $0x4c0] ss:$8 sps:$4 sm:$0xff]  }
 0x40f   :  { %2534 = vmatprep.subr.bf16.mxu1 %v11493_v21  ;;  %14831 = vst [vmem:[#allocation160_spill] sm:$0xff] %v11511_v52  ;;  %v11517_v21 = vld [vmem:[%s14673_s23 + $0x4d4] ss:$8 sps:$4 sm:$0xff]  }
 0x410   :  { %14832 = vst [vmem:[#allocation161_spill] sm:$0xff] %v11517_v21 }
 0x412   :  { %2535 = vmatpush1.bf16.msra.mxu1 %v11499_v55  ;;  %v11523_v55 = vld [vmem:[%s14673_s23 + $0x4d0] ss:$8 sps:$4 sm:$0xff]  }
 0x413   :  { %2536 = vmatprep.subr.bf16.mxu1 %v11505_v23  ;;  %14833 = vst [vmem:[#allocation162_spill] sm:$0xff] %v11523_v55  ;;  %v11529_v23 = vld [vmem:[%s14673_s23 + $0x4e4] ss:$8 sps:$4 sm:$0xff]  }
 0x414   :  { %14834 = vst [vmem:[#allocation163_spill] sm:$0xff] %v11529_v23 }
 0x416   :  { %2537 = vmatpush1.bf16.msra.mxu1 %v11511_v52  ;;  %v11535_v52 = vld [vmem:[%s14673_s23 + $0x4e0] ss:$8 sps:$4 sm:$0xff]  }
 0x417   :  { %2538 = vmatprep.subr.bf16.mxu1 %v11517_v21  ;;  %14835 = vst [vmem:[#allocation164_spill] sm:$0xff] %v11535_v52  ;;  %v11541_v21 = vld [vmem:[%s14673_s23 + $0x4f4] ss:$8 sps:$4 sm:$0xff]  }
 0x418   :  { %14836 = vst [vmem:[#allocation165_spill] sm:$0xff] %v11541_v21 }
 0x41a   :  { %2539 = vmatpush1.bf16.msra.mxu1 %v11523_v55  ;;  %v11546_v55 = vrot.slane %v11324_v59, %v9493_v16  ;;  %v11566_v59 = vld [vmem:[%s14673_s23 + $0x500] ss:$8 sps:$4 sm:$0xff]  }
 0x41b   :  { %2540 = vmatprep.subr.bf16.mxu1 %v11529_v23  ;;  %v11551_v23 = vld [vmem:[%s14673_s23 + $0x4f0] ss:$8 sps:$4 sm:$0xff]   ;;  %14839 = vst [vmem:[#allocation168_spill] sm:$0xff] %v11566_v59 }
 0x41c   :  { %14837 = vst [vmem:[#allocation166_spill] sm:$0xff] %v11551_v23 }
 0x41e   :  { %2541 = vmatpush1.bf16.msra.mxu1 %v11535_v52  ;;  %v2330_v52 = vcombine.high %v11355_v51, %v11355_v51  ;;  %v11572_v51 = vld [vmem:[%s14673_s23 + $0x514] ss:$8 sps:$4 sm:$0xff]  }
 0x41f   :  { %2542 = vmatprep.subr.bf16.mxu1 %v11541_v21  ;;  %14840 = vst [vmem:[#allocation169_spill] sm:$0xff] %v11572_v51  ;;  %v11764_v21 = vld [vmem:[%s14673_s23 + $0x604] ss:$8 sps:$4 sm:$0xff]  }
 0x420   :  { %14870 = vst [vmem:[#allocation199_spill] sm:$0xff] %v11764_v21 }
 0x422   :  { %2543 = vmatpush1.bf16.msra.mxu1 %v11551_v23  ;;  %v11584_v23 = vld [vmem:[%s14673_s23 + $0x524] ss:$8 sps:$4 sm:$0xff]  }
 0x423   :  { %2553 = vmatprep.subr.bf16.mxu1 %v11559_v58  ;;  %v11578_v58 = vld [vmem:[%s14673_s23 + $0x510] ss:$8 sps:$4 sm:$0xff]   ;;  %14842 = vst [vmem:[#allocation171_spill] sm:$0xff] %v11584_v23 }
 0x424   :  { %14841 = vst [vmem:[#allocation170_spill] sm:$0xff] %v11578_v58 }
 0x425   :  { %2545 = vmatmul.mubr.bf16.vlgmr.msra.gmra.mrb[4].mxu1 %v11546_v55 }
 0x426   :  { %2554 = vmatpush1.bf16.msra.mxu1 %v11566_v59  ;;  %2585 = vmatprep.mubr.bf16.mxu1 %v2330_v52  ;;  %v11590_v52 = vld [vmem:[%s14673_s23 + $0x520] ss:$8 sps:$4 sm:$0xff]  }
 0x427   :  { %2555 = vmatprep.subr.bf16.mxu1 %v11572_v51  ;;  %14843 = vst [vmem:[#allocation172_spill] sm:$0xff] %v11590_v52  ;;  %v11596_v51 = vld [vmem:[%s14673_s23 + $0x534] ss:$8 sps:$4 sm:$0xff]  }
 0x428   :  { %14844 = vst [vmem:[#allocation173_spill] sm:$0xff] %v11596_v51 }
 0x42a   :  { %2556 = vmatpush1.bf16.msra.mxu1 %v11578_v58  ;;  %v11602_v58 = vld [vmem:[%s14673_s23 + $0x530] ss:$8 sps:$4 sm:$0xff]  }
 0x42b   :  { %2557 = vmatprep.subr.bf16.mxu1 %v11584_v23  ;;  %14845 = vst [vmem:[#allocation174_spill] sm:$0xff] %v11602_v58  ;;  %v11608_v23 = vld [vmem:[%s14673_s23 + $0x544] ss:$8 sps:$4 sm:$0xff]  }
 0x42c   :  { %14846 = vst [vmem:[#allocation175_spill] sm:$0xff] %v11608_v23 }
 0x42e   :  { %2558 = vmatpush1.bf16.msra.mxu1 %v11590_v52  ;;  %v11614_v52 = vld [vmem:[%s14673_s23 + $0x540] ss:$8 sps:$4 sm:$0xff]  }
 0x42f   :  { %2559 = vmatprep.subr.bf16.mxu1 %v11596_v51  ;;  %14847 = vst [vmem:[#allocation176_spill] sm:$0xff] %v11614_v52  ;;  %v11620_v51 = vld [vmem:[%s14673_s23 + $0x554] ss:$8 sps:$4 sm:$0xff]  }
 0x430   :  { %14848 = vst [vmem:[#allocation177_spill] sm:$0xff] %v11620_v51 }
 0x432   :  { %2560 = vmatpush1.bf16.msra.mxu1 %v11602_v58  ;;  %v11626_v58 = vld [vmem:[%s14673_s23 + $0x550] ss:$8 sps:$4 sm:$0xff]  }
 0x433   :  { %2561 = vmatprep.subr.bf16.mxu1 %v11608_v23  ;;  %14849 = vst [vmem:[#allocation178_spill] sm:$0xff] %v11626_v58  ;;  %v11632_v23 = vld [vmem:[%s14673_s23 + $0x564] ss:$8 sps:$4 sm:$0xff]  }
 0x434   :  { %14850 = vst [vmem:[#allocation179_spill] sm:$0xff] %v11632_v23 }
 0x436   :  { %2562 = vmatpush1.bf16.msra.mxu1 %v11614_v52  ;;  %v11638_v52 = vld [vmem:[%s14673_s23 + $0x560] ss:$8 sps:$4 sm:$0xff]  }
 0x437   :  { %2563 = vmatprep.subr.bf16.mxu1 %v11620_v51  ;;  %14851 = vst [vmem:[#allocation180_spill] sm:$0xff] %v11638_v52  ;;  %v11644_v51 = vld [vmem:[%s14673_s23 + $0x574] ss:$8 sps:$4 sm:$0xff]  }
 0x438   :  { %14852 = vst [vmem:[#allocation181_spill] sm:$0xff] %v11644_v51 }
 0x43a   :  { %2564 = vmatpush1.bf16.msra.mxu1 %v11626_v58  ;;  %v11650_v58 = vld [vmem:[%s14673_s23 + $0x570] ss:$8 sps:$4 sm:$0xff]  }
 0x43b   :  { %2565 = vmatprep.subr.bf16.mxu1 %v11632_v23  ;;  %14853 = vst [vmem:[#allocation182_spill] sm:$0xff] %v11650_v58  ;;  %v11656_v23 = vld [vmem:[%s14673_s23 + $0x584] ss:$8 sps:$4 sm:$0xff]  }
 0x43c   :  { %14854 = vst [vmem:[#allocation183_spill] sm:$0xff] %v11656_v23 }
 0x43e   :  { %2566 = vmatpush1.bf16.msra.mxu1 %v11638_v52  ;;  %v11662_v52 = vld [vmem:[%s14673_s23 + $0x580] ss:$8 sps:$4 sm:$0xff]  }
 0x43f   :  { %2567 = vmatprep.subr.bf16.mxu1 %v11644_v51  ;;  %14855 = vst [vmem:[#allocation184_spill] sm:$0xff] %v11662_v52  ;;  %v11668_v51 = vld [vmem:[%s14673_s23 + $0x594] ss:$8 sps:$4 sm:$0xff]  }
 0x440   :  { %14856 = vst [vmem:[#allocation185_spill] sm:$0xff] %v11668_v51 }
 0x442   :  { %2568 = vmatpush1.bf16.msra.mxu1 %v11650_v58  ;;  %v11674_v58 = vld [vmem:[%s14673_s23 + $0x590] ss:$8 sps:$4 sm:$0xff]  }
 0x443   :  { %2569 = vmatprep.subr.bf16.mxu1 %v11656_v23  ;;  %14857 = vst [vmem:[#allocation186_spill] sm:$0xff] %v11674_v58  ;;  %v11680_v23 = vld [vmem:[%s14673_s23 + $0x5a4] ss:$8 sps:$4 sm:$0xff]  }
 0x444   :  { %14858 = vst [vmem:[#allocation187_spill] sm:$0xff] %v11680_v23 }
 0x446   :  { %2570 = vmatpush1.bf16.msra.mxu1 %v11662_v52  ;;  %v11686_v52 = vld [vmem:[%s14673_s23 + $0x5a0] ss:$8 sps:$4 sm:$0xff]  }
 0x447   :  { %2571 = vmatprep.subr.bf16.mxu1 %v11668_v51  ;;  %14859 = vst [vmem:[#allocation188_spill] sm:$0xff] %v11686_v52  ;;  %v11692_v51 = vld [vmem:[%s14673_s23 + $0x5b4] ss:$8 sps:$4 sm:$0xff]  }
 0x448   :  { %14860 = vst [vmem:[#allocation189_spill] sm:$0xff] %v11692_v51 }
 0x44a   :  { %2572 = vmatpush1.bf16.msra.mxu1 %v11674_v58  ;;  %v11698_v58 = vld [vmem:[%s14673_s23 + $0x5b0] ss:$8 sps:$4 sm:$0xff]  }
 0x44b   :  { %2573 = vmatprep.subr.bf16.mxu1 %v11680_v23  ;;  %14861 = vst [vmem:[#allocation190_spill] sm:$0xff] %v11698_v58  ;;  %v11704_v23 = vld [vmem:[%s14673_s23 + $0x5c4] ss:$8 sps:$4 sm:$0xff]  }
 0x44c   :  { %14862 = vst [vmem:[#allocation191_spill] sm:$0xff] %v11704_v23 }
 0x44e   :  { %2574 = vmatpush1.bf16.msra.mxu1 %v11686_v52  ;;  %v11710_v52 = vld [vmem:[%s14673_s23 + $0x5c0] ss:$8 sps:$4 sm:$0xff]  }
 0x44f   :  { %2575 = vmatprep.subr.bf16.mxu1 %v11692_v51  ;;  %14863 = vst [vmem:[#allocation192_spill] sm:$0xff] %v11710_v52  ;;  %v2283_v51 = vcombine.high %v11314_v61, %v11314_v61  ;;  %v11733_v61 = vld [vmem:[%s14673_s23 + $0x5e4] ss:$8 sps:$4 sm:$0xff]  }
 0x450   :  { %14866 = vst [vmem:[#allocation195_spill] sm:$0xff] %v11733_v61 }
 0x451   :  { %v11728_v59 = vrot.slane %v2283_v51, %v9493_v16  ;;  %v11747_v51 = vld [vmem:[%s14673_s23 + $0x5f4] ss:$8 sps:$4 sm:$0xff]  }
 0x452   :  { %2576 = vmatpush1.bf16.msra.mxu1 %v11698_v58  ;;  %v11718_v58 = vld [vmem:[%s14673_s23 + $0x5d4] ss:$8 sps:$4 sm:$0xff]   ;;  %14868 = vst [vmem:[#allocation197_spill] sm:$0xff] %v11747_v51 }
 0x453   :  { %2577 = vmatprep.subr.bf16.mxu1 %v11704_v23  ;;  %14864 = vst [vmem:[#allocation193_spill] sm:$0xff] %v11718_v58  ;;  %v11724_v23 = vld [vmem:[%s14673_s23 + $0x5d0] ss:$8 sps:$4 sm:$0xff]  }
 0x454   :  { %14865 = vst [vmem:[#allocation194_spill] sm:$0xff] %v11724_v23 }
 0x456   :  { %2578 = vmatpush1.bf16.msra.mxu1 %v11710_v52  ;;  %v11755_v52 = vld [vmem:[%s14673_s23 + $0x5f0] ss:$8 sps:$4 sm:$0xff]  }
 0x457   :  { %2579 = vmatprep.subr.bf16.mxu1 %v11718_v58  ;;  %v11739_v58 = vld [vmem:[%s14673_s23 + $0x5e0] ss:$8 sps:$4 sm:$0xff]   ;;  %14869 = vst [vmem:[#allocation198_spill] sm:$0xff] %v11755_v52 }
 0x458   :  { %14867 = vst [vmem:[#allocation196_spill] sm:$0xff] %v11739_v58 }
 0x45a   :  { %2580 = vmatpush1.bf16.msra.mxu1 %v11724_v23  ;;  %v2299_v23 = vcombine.high %v11728_v59, %v11728_v59 }
 0x45b   :  { %2581 = vmatprep.subr.bf16.mxu1 %v11733_v61  ;;  %v2328_v61 = vcombine.high %v11546_v55, %v11546_v55  ;;  %v8437_v55 = vld [vmem:[%s14444_s3 + $0xc0] sm:$0xff]  }
 0x45c   :  { %7773 = vmatprep.subr.bf16.mxu0 %v8437_v55  ;;  %v8442_v55 = vld [vmem:[%s14444_s3 + $0x90] sm:$0xff]  }
 0x45e   :  { %2582 = vmatpush1.bf16.msra.mxu1 %v11739_v58  ;;  %v11759_v58 = vrot.slane %v2299_v23, %v9493_v16  ;;  %v8439_v23 = vld [vmem:[%s14444_s3 + $0xc8] sm:$0xff]  }
 0x45f   :  { %2583 = vmatprep.subr.bf16.mxu1 %v11747_v51  ;;  %v8438_v51 = vld [vmem:[%s14444_s3 + $0x80] sm:$0xff]  }
 0x460   :  { %7774 = vmatpush3.bf16.msra.mxu0 %v8438_v51  ;;  %v11804_v51 = vld [vmem:[%s14673_s23 + $0x624] ss:$8 sps:$4 sm:$0xff]  }
 0x461   :  { %7775 = vmatprep.subr.bf16.mxu0 %v8439_v23  ;;  %14873 = vst [vmem:[#allocation202_spill] sm:$0xff] %v11804_v51  ;;  %v8443_v23 = vld [vmem:[%s14444_s3 + $0xd8] sm:$0xff]  }
 0x462   :  { %2584 = vmatpush1.bf16.msra.mxu1 %v11755_v52  ;;  %v11779_v52 = vld [vmem:[%s14673_s23 + $0x600] ss:$8 sps:$4 sm:$0xff]  }
 0x463   :  { %2594 = vmatprep.subr.bf16.mxu1 %v11764_v21  ;;  %14871 = vst [vmem:[#allocation200_spill] sm:$0xff] %v11779_v52  ;;  %v8440_v21 = vld [vmem:[%s14444_s3 + $0x88] sm:$0xff]  }
 0x464   :  { %7776 = vmatpush3.bf16.msra.mxu0 %v8440_v21  ;;  %v11822_v21 = vld [vmem:[%s14673_s23 + $0x634] ss:$8 sps:$4 sm:$0xff]  }
 0x465   :  { %2586 = vmatmul.mubr.bf16.vlgmr.msra.gmra.mrb[4].mxu1 %v2328_v61  ;;  %v11786_v61 = vld [vmem:[%s14673_s23 + $0x614] ss:$8 sps:$4 sm:$0xff]   ;;  %14875 = vst [vmem:[#allocation204_spill] sm:$0xff] %v11822_v21 }
 0x466   :  { %2595 = vmatpush1.bf16.msra.mxu1 %v11779_v52  ;;  %2626 = vmatprep.mubr.bf16.mxu1 %v11759_v58  ;;  %v8441_v52 = vld [vmem:[%s14444_s3 + $0xd0] sm:$0xff]  }
 0x467   :  { %2596 = vmatprep.subr.bf16.mxu1 %v11786_v61  ;;  %7777 = vmatprep.subr.bf16.mxu0 %v8441_v52  ;;  %v8444_v52 = vld [vmem:[%s14444_s3 + $0x98] sm:$0xff]  }
 0x468   :  { %7778 = vmatpush3.bf16.msra.mxu0 %v8442_v55  ;;  %v11840_v55 = vld [vmem:[%s14673_s23 + $0x644] ss:$8 sps:$4 sm:$0xff]  }
 0x469   :  { %7779 = vmatprep.subr.bf16.mxu0 %v8443_v23  ;;  %14877 = vst [vmem:[#allocation206_spill] sm:$0xff] %v11840_v55  ;;  %v8446_v23 = vld [vmem:[%s14444_s3 + $0xa0] sm:$0xff]  }
 0x46a   :  { %2597 = vmatpush1.bf16.msra.mxu1 %v11798_v57  ;;  %v11816_v57 = vld [vmem:[%s14673_s23 + $0x620] ss:$8 sps:$4 sm:$0xff]  }
 0x46b   :  { %2598 = vmatprep.subr.bf16.mxu1 %v11804_v51  ;;  %14874 = vst [vmem:[#allocation203_spill] sm:$0xff] %v11816_v57  ;;  %v8445_v51 = vld [vmem:[%s14444_s3 + $0xe0] sm:$0xff]  }
 0x46c   :  { %7780 = vmatpush3.bf16.msra.mxu0 %v8444_v52  ;;  %v11858_v52 = vld [vmem:[%s14673_s23 + $0x654] ss:$8 sps:$4 sm:$0xff]  }
 0x46d   :  { %7781 = vmatprep.subr.bf16.mxu0 %v8445_v51  ;;  %v8448_v51 = vld [vmem:[%s14444_s3 + $0xa8] sm:$0xff]  }
 0x46e   :  { %2599 = vmatpush1.bf16.msra.mxu1 %v11816_v57  ;;  %v11834_v57 = vld [vmem:[%s14673_s23 + $0x630] ss:$8 sps:$4 sm:$0xff]  }
 0x46f   :  { %2600 = vmatprep.subr.bf16.mxu1 %v11822_v21  ;;  %14876 = vst [vmem:[#allocation205_spill] sm:$0xff] %v11834_v57  ;;  %v8447_v21 = vld [vmem:[%s14444_s3 + $0xe8] sm:$0xff]  }
 0x470   :  { %7782 = vmatpush3.bf16.msra.mxu0 %v8446_v23  ;;  %v14910_v23 = vld [vmem:[#allocation38_spill] sm:$0xff] }
 0x471   :  { %7783 = vmatprep.subr.bf16.mxu0 %v8447_v21 }
 0x472   :  { %2601 = vmatpush1.bf16.msra.mxu1 %v11834_v57  ;;  %v11852_v57 = vld [vmem:[%s14673_s23 + $0x640] ss:$8 sps:$4 sm:$0xff]  }
 0x473   :  { %2602 = vmatprep.subr.bf16.mxu1 %v11840_v55  ;;  %v11867_v55 = vld [vmem:[%s14673_s23 + $0x650] ss:$8 sps:$4 sm:$0xff]  }
 0x474   :  { %7784 = vmatpush3.bf16.msra.mxu0 %v8448_v51  ;;  %v14911_v51 = vld [vmem:[#allocation39_spill] sm:$0xff] }
 0x476   :  { %2603 = vmatpush1.bf16.msra.mxu1 %v11852_v57 }
 0x477   :  { %2604 = vmatprep.subr.bf16.mxu1 %v11858_v52 }
 0x47a   :  { %2605 = vmatpush1.bf16.msra.mxu1 %v11867_v55 }
 0x47b   :  { %2606 = vmatprep.subr.bf16.mxu1 %v10179_v60  ;;  %v2313_v60 = vrot.slane %v11728_v59, %v9493_v16  ;;  %v14909_v59 = vld [vmem:[#allocation37_spill] sm:$0xff] }
 0x47e   :  { %2607 = vmatpush1.bf16.msra.mxu1 %v10187_v62  ;;  %v2331_v62 = vcombine.high %v11759_v58, %v11759_v58 }
 0x47f   :  { %2608 = vmatprep.subr.bf16.mxu1 %v10192_v63  ;;  %v14878_v63 = vld [vmem:[#allocation4_spill] sm:$0xff] }
 0x482   :  { %2609 = vmatpush1.bf16.msra.mxu1 %v10198_v0  ;;  %v14879_v0 = vld [vmem:[#allocation5_spill] sm:$0xff] }
 0x483   :  { %2610 = vmatprep.subr.bf16.mxu1 %v10203_v1  ;;  %v14880_v1 = vld [vmem:[#allocation6_spill] sm:$0xff] }
 0x486   :  { %2611 = vmatpush1.bf16.msra.mxu1 %v10210_v2  ;;  %v14881_v2 = vld [vmem:[#allocation7_spill] sm:$0xff] }
 0x487   :  { %2612 = vmatprep.subr.bf16.mxu1 %v10215_v3  ;;  %v2329_v3 = vcombine.high %v2313_v60, %v2313_v60 }
 0x48a   :  { %2613 = vmatpush1.bf16.msra.mxu1 %v10222_v4  ;;  %v14882_v4 = vld [vmem:[#allocation8_spill] sm:$0xff] }
 0x48b   :  { %2614 = vmatprep.subr.bf16.mxu1 %v10227_v5  ;;  %v8449_v5 = vld [vmem:[%s14444_s3 + $0xf0] sm:$0xff]  }
 0x48c   :  { %7785 = vmatprep.subr.bf16.mxu0 %v8449_v5  ;;  %v14920_v5 = vld [vmem:[#allocation48_spill] sm:$0xff] }
 0x48e   :  { %2615 = vmatpush1.bf16.msra.mxu1 %v10234_v6  ;;  %v8450_v6 = vld [vmem:[%s14444_s3 + $0xb0] sm:$0xff]  }
 0x48f   :  { %2616 = vmatprep.subr.bf16.mxu1 %v10239_v7  ;;  %7786 = vmatpush3.bf16.msra.mxu0 %v8450_v6  ;;  %v8451_v7 = vld [vmem:[%s14444_s3 + $0xf8] sm:$0xff]  }
 0x490   :  { %7787 = vmatprep.subr.bf16.mxu0 %v8451_v7  ;;  %v14921_v6 = vld [vmem:[#allocation49_spill] sm:$0xff]  ;;  %v14922_v7 = vld [vmem:[#allocation50_spill] sm:$0xff] }
 0x492   :  { %2617 = vmatpush1.bf16.msra.mxu1 %v10246_v8  ;;  %v8452_v8 = vld [vmem:[%s14444_s3 + $0xb8] sm:$0xff]  }
 0x493   :  { %2618 = vmatprep.subr.bf16.mxu1 %v10251_v9  ;;  %7788 = vmatpush3.bf16.msra.mxu0 %v8452_v8  ;;  %v14883_v9 = vld [vmem:[#allocation9_spill] sm:$0xff]  ;;  %v14923_v8 = vld [vmem:[#allocation51_spill] sm:$0xff] }
 0x494   :  { %2969 = vmatprep.subr.bf16.mxu0 %v14883_v9  ;;  %v14924_v9 = vld [vmem:[#allocation52_spill] sm:$0xff] }
 0x496   :  { %2619 = vmatpush1.bf16.msra.mxu1 %v10258_v10  ;;  %v11942_v10 = vld [vmem:[%s14443_s0 + $0x20] sm:$0xff] }
 0x497   :  { %2620 = vmatprep.subr.bf16.mxu1 %v10263_v11  ;;  %v2862_v11 = vrot.slane %v11942_v10, %v9493_v16 }
 0x499   :  { %v2878_v58 = vrot.slane %v2862_v11, %v9493_v16 }
 0x49a   :  { %2621 = vmatpush1.bf16.msra.mxu1 %v10271_v13 }
 0x49b   :  { %2622 = vmatprep.subr.bf16.mxu1 %v10277_v14 }
 0x49e   :  { %2623 = vmatpush1.bf16.msra.mxu1 %v10283_v15 }
 0x49f   :  { %2624 = vmatprep.subr.bf16.mxu1 %v10289_v17 }
 0x4a2   :  { %2625 = vmatpush1.bf16.msra.mxu1 %v10295_v18 }
 0x4a3   :  { %2635 = vmatprep.subr.bf16.mxu1 %v10301_v19  ;;  %v2870_v19 = vcombine.high %v2862_v11, %v2862_v11  ;;  %v14925_v11 = vld [vmem:[#allocation53_spill] sm:$0xff] }
 0x4a5   :  { %2627 = vmatmul.mubr.bf16.vlgmr.msra.gmra.mrb[4].mxu1 %v2313_v60  ;;  %v14912_v60 = vld [vmem:[#allocation40_spill] sm:$0xff] }
 0x4a6   :  { %2636 = vmatpush1.bf16.msra.mxu1 %v10311_v22  ;;  %2667 = vmatprep.mubr.bf16.mxu1 %v2331_v62  ;;  %v14913_v62 = vld [vmem:[#allocation41_spill] sm:$0xff] }
 0x4a7   :  { %2637 = vmatprep.subr.bf16.mxu1 %v10319_v24 }
 0x4aa   :  { %2638 = vmatpush1.bf16.msra.mxu1 %v10326_v25 }
 0x4ab   :  { %2639 = vmatprep.subr.bf16.mxu1 %v10332_v26 }
 0x4ae   :  { %2640 = vmatpush1.bf16.msra.mxu1 %v10338_v27  ;;  %v2892_v27 = vrot.slane %v2870_v19, %v9493_v16  ;;  %v14931_v19 = vld [vmem:[#allocation59_spill] sm:$0xff] }
 0x4af   :  { %2641 = vmatprep.subr.bf16.mxu1 %v10344_v28 }
 0x4b0   :  { %v2902_v21 = vcombine.high %v2892_v27, %v2892_v27 }
 0x4b2   :  { %2642 = vmatpush1.bf16.msra.mxu1 %v10350_v29  ;;  %v14884_v29 = vld [vmem:[#allocation12_spill] sm:$0xff] }
 0x4b3   :  { %2643 = vmatprep.subr.bf16.mxu1 %v10356_v30  ;;  %v14885_v30 = vld [vmem:[#allocation13_spill] sm:$0xff] }
 0x4b6   :  { %2644 = vmatpush1.bf16.msra.mxu1 %v10362_v31  ;;  %v14886_v31 = vld [vmem:[#allocation14_spill] sm:$0xff] }
 0x4b7   :  { %2645 = vmatprep.subr.bf16.mxu1 %v10368_v32  ;;  %v14887_v32 = vld [vmem:[#allocation15_spill] sm:$0xff] }
 0x4ba   :  { %2646 = vmatpush1.bf16.msra.mxu1 %v10374_v33  ;;  %v14888_v33 = vld [vmem:[#allocation16_spill] sm:$0xff] }
 0x4bb   :  { %2647 = vmatprep.subr.bf16.mxu1 %v10380_v20  ;;  %v14889_v20 = vld [vmem:[#allocation17_spill] sm:$0xff] }
 0x4be   :  { %2648 = vmatpush1.bf16.msra.mxu1 %v10386_v34  ;;  %v14890_v34 = vld [vmem:[#allocation18_spill] sm:$0xff] }
 0x4bf   :  { %2649 = vmatprep.subr.bf16.mxu1 %v10392_v35  ;;  %v14891_v35 = vld [vmem:[#allocation19_spill] sm:$0xff] }
 0x4c2   :  { %2650 = vmatpush1.bf16.msra.mxu1 %v10398_v36  ;;  %v14892_v36 = vld [vmem:[#allocation20_spill] sm:$0xff] }
 0x4c3   :  { %2651 = vmatprep.subr.bf16.mxu1 %v10404_v37  ;;  %v14893_v37 = vld [vmem:[#allocation21_spill] sm:$0xff] }
 0x4c6   :  { %2652 = vmatpush1.bf16.msra.mxu1 %v10410_v38  ;;  %v14894_v38 = vld [vmem:[#allocation22_spill] sm:$0xff] }
 0x4c7   :  { %2653 = vmatprep.subr.bf16.mxu1 %v10416_v39  ;;  %v14895_v39 = vld [vmem:[#allocation23_spill] sm:$0xff] }
 0x4ca   :  { %2654 = vmatpush1.bf16.msra.mxu1 %v10422_v40  ;;  %v14896_v40 = vld [vmem:[#allocation24_spill] sm:$0xff] }
 0x4cb   :  { %2655 = vmatprep.subr.bf16.mxu1 %v10428_v41  ;;  %v14897_v41 = vld [vmem:[#allocation25_spill] sm:$0xff] }
 0x4ce   :  { %2656 = vmatpush1.bf16.msra.mxu1 %v10434_v42  ;;  %v14898_v42 = vld [vmem:[#allocation26_spill] sm:$0xff] }
 0x4cf   :  { %2657 = vmatprep.subr.bf16.mxu1 %v10440_v43  ;;  %v14899_v43 = vld [vmem:[#allocation27_spill] sm:$0xff] }
 0x4d2   :  { %2658 = vmatpush1.bf16.msra.mxu1 %v10446_v44  ;;  %v14900_v44 = vld [vmem:[#allocation28_spill] sm:$0xff] }
 0x4d3   :  { %2659 = vmatprep.subr.bf16.mxu1 %v10452_v45  ;;  %v14901_v45 = vld [vmem:[#allocation29_spill] sm:$0xff] }
 0x4d6   :  { %2660 = vmatpush1.bf16.msra.mxu1 %v10458_v46  ;;  %v14902_v46 = vld [vmem:[#allocation30_spill] sm:$0xff] }
 0x4d7   :  { %2661 = vmatprep.subr.bf16.mxu1 %v10464_v47  ;;  %v14903_v47 = vld [vmem:[#allocation31_spill] sm:$0xff] }
 0x4da   :  { %2662 = vmatpush1.bf16.msra.mxu1 %v14878_v63  ;;  %v14914_v63 = vld [vmem:[#allocation42_spill] sm:$0xff] }
 0x4db   :  { %2663 = vmatprep.subr.bf16.mxu1 %v14879_v0  ;;  %v14915_v0 = vld [vmem:[#allocation43_spill] sm:$0xff] }
 0x4de   :  { %2664 = vmatpush1.bf16.msra.mxu1 %v14880_v1  ;;  %v14916_v1 = vld [vmem:[#allocation44_spill] sm:$0xff] }
 0x4df   :  { %2665 = vmatprep.subr.bf16.mxu1 %v14881_v2  ;;  %v14917_v2 = vld [vmem:[#allocation45_spill] sm:$0xff] }
 0x4e2   :  { %2666 = vmatpush1.bf16.msra.mxu1 %v14882_v4  ;;  %v14919_v4 = vld [vmem:[#allocation47_spill] sm:$0xff] }
 0x4e5   :  { %2668 = vmatmul.mubr.bf16.vlgmr.msra.gmra.mrb[4].mxu1 %v2329_v3  ;;  %v14918_v3 = vld [vmem:[#allocation46_spill] sm:$0xff] }
 0x5b8   :  { %v2669_v13 = vpop.f32.mrb[4].mxu1 }
 0x5b9   :  { %v7885_v14 = vadd.f32 %v2669_v13, %v10533_v53  ;;  %v2671_v15 = vpop.f32.mrb[5].mxu1  ;;  %v14926_v13 = vld [vmem:[#allocation54_spill] sm:$0xff] }
 0x5ba   :  { %v7886_v17 = vadd.f32 %v2671_v15, %v10536_v54  ;;  %v2673_v18 = vpop.f32.mrb[6].mxu1  ;;  %v14928_v15 = vld [vmem:[#allocation56_spill] sm:$0xff] }
 0x5bb   :  { %v2676_v22 = vmax.f32 %v7885_v14, 0.0  ;;  %v2674_v24 = vpop.f32.mrb[7].mxu1  ;;  %v14927_v14 = vld [vmem:[#allocation55_spill] sm:$0xff]  ;;  %v14930_v18 = vld [vmem:[#allocation58_spill] sm:$0xff] }
 0x5bc   :  { %v2677_v25 = vmax.f32 %v7886_v17, 0.0  ;;  %v14929_v17 = vld [vmem:[#allocation57_spill] sm:$0xff] }
 0x5bd   :  { %v2678_v28 = vpack.c.bf16 %v2676_v22, %v2676_v22  ;;  %v14932_v22 = vld [vmem:[#allocation60_spill] sm:$0xff]  ;;  %v14933_v24 = vld [vmem:[#allocation61_spill] sm:$0xff] }
 0x5be   :  { %v2679_v26 = vpack.c.bf16 %v2677_v25, %v2677_v25  ;;  %v14934_v25 = vld [vmem:[#allocation62_spill] sm:$0xff] }
 0x5c0   :  { %2841 = vmatprep.mubr.bf16.mxu0 %v2679_v26  ;;  %v14935_v26 = vld [vmem:[#allocation63_spill] sm:$0xff] }
 0x5c1   :  { %2842 = vmatmul.mubr.bf16.vlgmr.msra.gmra.mrb[4].mxu0 %v2678_v28  ;;  %v14936_v28 = vld [vmem:[#allocation64_spill] sm:$0xff] }
 0x5c2   :  { %2970 = vmatpush1.bf16.msra.mxu0 %v10552_v56  ;;  %3001 = vmatprep.mubr.bf16.mxu0 %v2892_v27  ;;  %v14904_v56 = vld [vmem:[#allocation32_spill] sm:$0xff]  ;;  %v2855_v27 = vcombine.high %v11942_v10, %v11942_v10  ;;  %v14943_v10 = vld [vmem:[#allocation71_spill] sm:$0xff] }
 0x5c3   :  { %2971 = vmatprep.subr.bf16.mxu0 %v10559_v12  ;;  %v14905_v12 = vld [vmem:[#allocation33_spill] sm:$0xff] }
 0x5c6   :  { %2972 = vmatpush1.bf16.msra.mxu0 %v10565_v48  ;;  %v14906_v48 = vld [vmem:[#allocation34_spill] sm:$0xff] }
 0x5c7   :  { %2973 = vmatprep.subr.bf16.mxu0 %v10571_v49  ;;  %v14907_v49 = vld [vmem:[#allocation35_spill] sm:$0xff] }
 0x5ca   :  { %2974 = vmatpush1.bf16.msra.mxu0 %v10577_v50  ;;  %v14908_v50 = vld [vmem:[#allocation36_spill] sm:$0xff] }
 0x5cb   :  { %2975 = vmatprep.subr.bf16.mxu0 %v14884_v29  ;;  %v14937_v29 = vld [vmem:[#allocation65_spill] sm:$0xff] }
 0x5ce   :  { %2976 = vmatpush1.bf16.msra.mxu0 %v14885_v30  ;;  %v2869_v30 = vrot.slane %v2855_v27, %v9493_v16 }
 0x5cf   :  { %2977 = vmatprep.subr.bf16.mxu0 %v14886_v31  ;;  %v14938_v31 = vld [vmem:[#allocation66_spill] sm:$0xff] }
 0x5d2   :  { %2978 = vmatpush1.bf16.msra.mxu0 %v14887_v32  ;;  %v14939_v32 = vld [vmem:[#allocation67_spill] sm:$0xff] }
 0x5d3   :  { %2979 = vmatprep.subr.bf16.mxu0 %v14888_v33  ;;  %v2871_v33 = vcombine.high %v2869_v30, %v2869_v30 }
 0x5d6   :  { %2980 = vmatpush1.bf16.msra.mxu0 %v14889_v20  ;;  %v14940_v20 = vld [vmem:[#allocation68_spill] sm:$0xff] }
 0x5d7   :  { %2981 = vmatprep.subr.bf16.mxu0 %v14890_v34  ;;  %v2900_v34 = vcombine.high %v2878_v58, %v2878_v58 }
 0x5da   :  { %2982 = vmatpush1.bf16.msra.mxu0 %v14891_v35  ;;  %v14941_v35 = vld [vmem:[#allocation69_spill] sm:$0xff] }
 0x5db   :  { %2983 = vmatprep.subr.bf16.mxu0 %v14892_v36  ;;  %v2899_v36 = vrot.slane %v2871_v33, %v9493_v16 }
 0x5de   :  { %2984 = vmatpush1.bf16.msra.mxu0 %v14893_v37  ;;  %v14942_v37 = vld [vmem:[#allocation70_spill] sm:$0xff] }
 0x5df   :  { %2985 = vmatprep.subr.bf16.mxu0 %v14894_v38  ;;  %v14944_v38 = vld [vmem:[#allocation72_spill] sm:$0xff] }
 0x5e2   :  { %2986 = vmatpush1.bf16.msra.mxu0 %v14895_v39  ;;  %v14945_v39 = vld [vmem:[#allocation73_spill] sm:$0xff] }
 0x5e3   :  { %2987 = vmatprep.subr.bf16.mxu0 %v14896_v40  ;;  %v14946_v40 = vld [vmem:[#allocation74_spill] sm:$0xff] }
 0x5e6   :  { %2988 = vmatpush1.bf16.msra.mxu0 %v14897_v41  ;;  %v14947_v41 = vld [vmem:[#allocation75_spill] sm:$0xff] }
 0x5e7   :  { %2989 = vmatprep.subr.bf16.mxu0 %v14898_v42  ;;  %v14948_v42 = vld [vmem:[#allocation76_spill] sm:$0xff] }
 0x5ea   :  { %2990 = vmatpush1.bf16.msra.mxu0 %v14899_v43  ;;  %v14949_v43 = vld [vmem:[#allocation77_spill] sm:$0xff] }
 0x5eb   :  { %2991 = vmatprep.subr.bf16.mxu0 %v14900_v44  ;;  %v14950_v44 = vld [vmem:[#allocation78_spill] sm:$0xff] }
 0x5ee   :  { %2992 = vmatpush1.bf16.msra.mxu0 %v14901_v45  ;;  %v14951_v45 = vld [vmem:[#allocation79_spill] sm:$0xff] }
 0x5ef   :  { %2993 = vmatprep.subr.bf16.mxu0 %v14902_v46  ;;  %v14952_v46 = vld [vmem:[#allocation80_spill] sm:$0xff] }
 0x5f2   :  { %2994 = vmatpush1.bf16.msra.mxu0 %v14903_v47  ;;  %v14953_v47 = vld [vmem:[#allocation81_spill] sm:$0xff] }
 0x5f3   :  { %2995 = vmatprep.subr.bf16.mxu0 %v14904_v56  ;;  %v14954_v56 = vld [vmem:[#allocation82_spill] sm:$0xff] }
 0x5f6   :  { %2996 = vmatpush1.bf16.msra.mxu0 %v14905_v12  ;;  %v14955_v12 = vld [vmem:[#allocation83_spill] sm:$0xff] }
 0x5f7   :  { %2997 = vmatprep.subr.bf16.mxu0 %v14906_v48  ;;  %v14956_v48 = vld [vmem:[#allocation84_spill] sm:$0xff] }
 0x5fa   :  { %2998 = vmatpush1.bf16.msra.mxu0 %v14907_v49  ;;  %v14957_v49 = vld [vmem:[#allocation85_spill] sm:$0xff] }
 0x5fb   :  { %2999 = vmatprep.subr.bf16.mxu0 %v14908_v50  ;;  %v14958_v50 = vld [vmem:[#allocation86_spill] sm:$0xff] }
 0x5fe   :  { %3000 = vmatpush1.bf16.msra.mxu0 %v14909_v59  ;;  %v14960_v59 = vld [vmem:[#allocation88_spill] sm:$0xff] }
 0x5ff   :  { %3010 = vmatprep.subr.bf16.mxu0 %v14910_v23  ;;  %v14962_v23 = vld [vmem:[#allocation90_spill] sm:$0xff] }
 0x601   :  { %3002 = vmatmul.mubr.bf16.vlgmr.msra.gmra.mrb[8].mxu0 %v2878_v58  ;;  %v14959_v58 = vld [vmem:[#allocation87_spill] sm:$0xff] }
 0x602   :  { %3011 = vmatpush1.bf16.msra.mxu0 %v14911_v51  ;;  %3042 = vmatprep.mubr.bf16.mxu0 %v2902_v21  ;;  %v14961_v21 = vld [vmem:[#allocation89_spill] sm:$0xff]  ;;  %v14963_v51 = vld [vmem:[#allocation91_spill] sm:$0xff] }
 0x603   :  { %3012 = vmatprep.subr.bf16.mxu0 %v14912_v60  ;;  %v14964_v60 = vld [vmem:[#allocation92_spill] sm:$0xff] }
 0x606   :  { %3013 = vmatpush1.bf16.msra.mxu0 %v14913_v62  ;;  %v14965_v62 = vld [vmem:[#allocation93_spill] sm:$0xff] }
 0x607   :  { %3014 = vmatprep.subr.bf16.mxu0 %v14914_v63  ;;  %v14966_v63 = vld [vmem:[#allocation94_spill] sm:$0xff] }
 0x60a   :  { %3015 = vmatpush1.bf16.msra.mxu0 %v14915_v0  ;;  %v14967_v0 = vld [vmem:[#allocation95_spill] sm:$0xff] }
 0x60b   :  { %3016 = vmatprep.subr.bf16.mxu0 %v14916_v1  ;;  %v14968_v1 = vld [vmem:[#allocation96_spill] sm:$0xff] }
 0x60e   :  { %3017 = vmatpush1.bf16.msra.mxu0 %v14917_v2  ;;  %v14969_v2 = vld [vmem:[#allocation97_spill] sm:$0xff] }
 0x60f   :  { %3018 = vmatprep.subr.bf16.mxu0 %v14918_v3  ;;  %v14970_v3 = vld [vmem:[#allocation98_spill] sm:$0xff] }
 0x612   :  { %3019 = vmatpush1.bf16.msra.mxu0 %v14919_v4  ;;  %v14971_v4 = vld [vmem:[#allocation99_spill] sm:$0xff] }
 0x613   :  { %3020 = vmatprep.subr.bf16.mxu0 %v14920_v5  ;;  %v14972_v5 = vld [vmem:[#allocation100_spill] sm:$0xff] }
 0x616   :  { %3021 = vmatpush1.bf16.msra.mxu0 %v14921_v6  ;;  %v2885_v6 = vrot.slane %v2869_v30, %v9493_v16 }
 0x617   :  { %3022 = vmatprep.subr.bf16.mxu0 %v14922_v7  ;;  %v14973_v7 = vld [vmem:[#allocation101_spill] sm:$0xff] }
 0x61a   :  { %3023 = vmatpush1.bf16.msra.mxu0 %v14923_v8  ;;  %v2903_v8 = vcombine.high %v2899_v36, %v2899_v36 }
 0x61b   :  { %3024 = vmatprep.subr.bf16.mxu0 %v14924_v9  ;;  %v14974_v9 = vld [vmem:[#allocation102_spill] sm:$0xff] }
 0x61e   :  { %3025 = vmatpush1.bf16.msra.mxu0 %v14925_v11  ;;  %v14975_v11 = vld [vmem:[#allocation103_spill] sm:$0xff] }
 0x61f   :  { %3026 = vmatprep.subr.bf16.mxu0 %v14926_v13  ;;  %v14976_v13 = vld [vmem:[#allocation104_spill] sm:$0xff] }
 0x622   :  { %3027 = vmatpush1.bf16.msra.mxu0 %v14927_v14  ;;  %v14977_v14 = vld [vmem:[#allocation105_spill] sm:$0xff] }
 0x623   :  { %3028 = vmatprep.subr.bf16.mxu0 %v14928_v15  ;;  %v14978_v15 = vld [vmem:[#allocation106_spill] sm:$0xff] }
 0x626   :  { %3029 = vmatpush1.bf16.msra.mxu0 %v14929_v17  ;;  %v14979_v17 = vld [vmem:[#allocation107_spill] sm:$0xff] }
 0x627   :  { %3030 = vmatprep.subr.bf16.mxu0 %v14930_v18  ;;  %v14980_v18 = vld [vmem:[#allocation108_spill] sm:$0xff] }
 0x62a   :  { %3031 = vmatpush1.bf16.msra.mxu0 %v14931_v19  ;;  %v14981_v19 = vld [vmem:[#allocation109_spill] sm:$0xff] }
 0x62b   :  { %3032 = vmatprep.subr.bf16.mxu0 %v14932_v22  ;;  %v14982_v22 = vld [vmem:[#allocation110_spill] sm:$0xff] }
 0x62e   :  { %3033 = vmatpush1.bf16.msra.mxu0 %v14933_v24  ;;  %v14983_v24 = vld [vmem:[#allocation111_spill] sm:$0xff] }
 0x62f   :  { %3034 = vmatprep.subr.bf16.mxu0 %v14934_v25  ;;  %v7269_v25 = vld [vmem:[%s14446_s4] ss:$0 sm:$0xff] }
 0x632   :  { %3035 = vmatpush1.bf16.msra.mxu0 %v14935_v26  ;;  %v14984_v26 = vld [vmem:[#allocation112_spill] sm:$0xff] }
 0x633   :  { %3036 = vmatprep.subr.bf16.mxu0 %v14936_v28 }
 0x636   :  { %3037 = vmatpush1.bf16.msra.mxu0 %v14937_v29  ;;  %v14985_v29 = vld [vmem:[#allocation113_spill] sm:$0xff] }
 0x637   :  { %3038 = vmatprep.subr.bf16.mxu0 %v14938_v31  ;;  %v2228_v30 = vadd.f32 %v14985_v29, %v7269_v25  ;;  %v15028_v25 = vld [vmem:[#allocation156_spill] sm:$0xff] }
 0x638   :  { %v15032_v29 = vld [vmem:[#allocation160_spill] sm:$0xff] }
 0x63a   :  { %3039 = vmatpush1.bf16.msra.mxu0 %v14939_v32  ;;  %v14986_v32 = vld [vmem:[#allocation114_spill] sm:$0xff] }
 0x63b   :  { %3040 = vmatprep.subr.bf16.mxu0 %v14940_v20 }
 0x63e   :  { %3041 = vmatpush1.bf16.msra.mxu0 %v14941_v35 }
 0x63f   :  { %3051 = vmatprep.subr.bf16.mxu0 %v14942_v37  ;;  %v14989_v37 = vld [vmem:[#allocation117_spill] sm:$0xff] }
 0x641   :  { %3043 = vmatmul.mubr.bf16.vlgmr.msra.gmra.mrb[8].mxu0 %v2900_v34  ;;  %v14987_v34 = vld [vmem:[#allocation115_spill] sm:$0xff] }
 0x642   :  { %3052 = vmatpush1.bf16.msra.mxu0 %v14943_v10  ;;  %3083 = vmatprep.mubr.bf16.mxu0 %v2899_v36  ;;  %v14988_v36 = vld [vmem:[#allocation116_spill] sm:$0xff]  ;;  %v14990_v10 = vld [vmem:[#allocation118_spill] sm:$0xff] }
 0x643   :  { %3053 = vmatprep.subr.bf16.mxu0 %v14944_v38  ;;  %v14991_v38 = vld [vmem:[#allocation119_spill] sm:$0xff] }
 0x646   :  { %3054 = vmatpush1.bf16.msra.mxu0 %v14945_v39  ;;  %v14992_v39 = vld [vmem:[#allocation120_spill] sm:$0xff] }
 0x647   :  { %3055 = vmatprep.subr.bf16.mxu0 %v14946_v40  ;;  %v14993_v40 = vld [vmem:[#allocation121_spill] sm:$0xff] }
 0x64a   :  { %3056 = vmatpush1.bf16.msra.mxu0 %v14947_v41  ;;  %v14994_v41 = vld [vmem:[#allocation122_spill] sm:$0xff] }
 0x64b   :  { %3057 = vmatprep.subr.bf16.mxu0 %v14948_v42  ;;  %v14995_v42 = vld [vmem:[#allocation123_spill] sm:$0xff] }
 0x64e   :  { %3058 = vmatpush1.bf16.msra.mxu0 %v14949_v43  ;;  %v14996_v43 = vld [vmem:[#allocation124_spill] sm:$0xff] }
 0x64f   :  { %3059 = vmatprep.subr.bf16.mxu0 %v14950_v44  ;;  %v14997_v44 = vld [vmem:[#allocation125_spill] sm:$0xff] }
 0x652   :  { %3060 = vmatpush1.bf16.msra.mxu0 %v14951_v45  ;;  %v14998_v45 = vld [vmem:[#allocation126_spill] sm:$0xff] }
 0x653   :  { %3061 = vmatprep.subr.bf16.mxu0 %v14952_v46  ;;  %v14999_v46 = vld [vmem:[#allocation127_spill] sm:$0xff] }
 0x656   :  { %3062 = vmatpush1.bf16.msra.mxu0 %v14953_v47  ;;  %v15000_v47 = vld [vmem:[#allocation128_spill] sm:$0xff] }
 0x657   :  { %3063 = vmatprep.subr.bf16.mxu0 %v14954_v56  ;;  %v15001_v56 = vld [vmem:[#allocation129_spill] sm:$0xff] }
 0x65a   :  { %3064 = vmatpush1.bf16.msra.mxu0 %v14955_v12  ;;  %v12086_v12 = vld [vmem:[%s14443_s0 + $0x28] sm:$0xff] }
 0x65b   :  { %3065 = vmatprep.subr.bf16.mxu0 %v14956_v48  ;;  %v15002_v48 = vld [vmem:[#allocation130_spill] sm:$0xff] }
 0x65e   :  { %3066 = vmatpush1.bf16.msra.mxu0 %v14957_v49  ;;  %v2911_v49 = vrot.slane %v12086_v12, %v9493_v16 }
 0x65f   :  { %3067 = vmatprep.subr.bf16.mxu0 %v14958_v50  ;;  %v15003_v50 = vld [vmem:[#allocation131_spill] sm:$0xff] }
 0x662   :  { %3068 = vmatpush1.bf16.msra.mxu0 %v14959_v58  ;;  %v15004_v58 = vld [vmem:[#allocation132_spill] sm:$0xff] }
 0x663   :  { %3069 = vmatprep.subr.bf16.mxu0 %v14960_v59  ;;  %v2919_v59 = vcombine.high %v2911_v49, %v2911_v49 }
 0x666   :  { %3070 = vmatpush1.bf16.msra.mxu0 %v14961_v21  ;;  %v15005_v21 = vld [vmem:[#allocation133_spill] sm:$0xff] }
 0x667   :  { %3071 = vmatprep.subr.bf16.mxu0 %v14962_v23  ;;  %v2901_v23 = vcombine.high %v2885_v6, %v2885_v6 }
 0x66a   :  { %3072 = vmatpush1.bf16.msra.mxu0 %v14963_v51  ;;  %v15006_v51 = vld [vmem:[#allocation134_spill] sm:$0xff] }
 0x66b   :  { %3073 = vmatprep.subr.bf16.mxu0 %v14964_v60  ;;  %v2941_v60 = vrot.slane %v2919_v59, %v9493_v16  ;;  %v15055_v59 = vld [vmem:[#allocation183_spill] sm:$0xff] }
 0x66e   :  { %3074 = vmatpush1.bf16.msra.mxu0 %v14965_v62  ;;  %v15007_v62 = vld [vmem:[#allocation135_spill] sm:$0xff] }
 0x66f   :  { %3075 = vmatprep.subr.bf16.mxu0 %v14966_v63  ;;  %v15008_v63 = vld [vmem:[#allocation136_spill] sm:$0xff] }
 0x672   :  { %3076 = vmatpush1.bf16.msra.mxu0 %v14967_v0  ;;  %v15009_v0 = vld [vmem:[#allocation137_spill] sm:$0xff] }
 0x673   :  { %3077 = vmatprep.subr.bf16.mxu0 %v14968_v1  ;;  %v15010_v1 = vld [vmem:[#allocation138_spill] sm:$0xff] }
 0x676   :  { %3078 = vmatpush1.bf16.msra.mxu0 %v14969_v2  ;;  %v15011_v2 = vld [vmem:[#allocation139_spill] sm:$0xff] }
 0x677   :  { %3079 = vmatprep.subr.bf16.mxu0 %v14970_v3  ;;  %v15012_v3 = vld [vmem:[#allocation140_spill] sm:$0xff] }
 0x67a   :  { %3080 = vmatpush1.bf16.msra.mxu0 %v14971_v4  ;;  %v15013_v4 = vld [vmem:[#allocation141_spill] sm:$0xff] }
 0x67b   :  { %3081 = vmatprep.subr.bf16.mxu0 %v14972_v5  ;;  %v15014_v5 = vld [vmem:[#allocation142_spill] sm:$0xff] }
 0x67e   :  { %3082 = vmatpush1.bf16.msra.mxu0 %v14973_v7  ;;  %v15016_v7 = vld [vmem:[#allocation144_spill] sm:$0xff] }
 0x67f   :  { %3092 = vmatprep.subr.bf16.mxu0 %v14974_v9  ;;  %v15018_v9 = vld [vmem:[#allocation146_spill] sm:$0xff] }
 0x681   :  { %3084 = vmatmul.mubr.bf16.vlgmr.msra.gmra.mrb[8].mxu0 %v2885_v6  ;;  %v15015_v6 = vld [vmem:[#allocation143_spill] sm:$0xff] }
 0x682   :  { %3093 = vmatpush1.bf16.msra.mxu0 %v14975_v11  ;;  %3124 = vmatprep.mubr.bf16.mxu0 %v2903_v8  ;;  %v15017_v8 = vld [vmem:[#allocation145_spill] sm:$0xff]  ;;  %v15019_v11 = vld [vmem:[#allocation147_spill] sm:$0xff] }
 0x683   :  { %3094 = vmatprep.subr.bf16.mxu0 %v14976_v13  ;;  %v15020_v13 = vld [vmem:[#allocation148_spill] sm:$0xff] }
 0x686   :  { %3095 = vmatpush1.bf16.msra.mxu0 %v14977_v14  ;;  %v15021_v14 = vld [vmem:[#allocation149_spill] sm:$0xff] }
 0x687   :  { %3096 = vmatprep.subr.bf16.mxu0 %v14978_v15  ;;  %v15022_v15 = vld [vmem:[#allocation150_spill] sm:$0xff] }
 0x68a   :  { %3097 = vmatpush1.bf16.msra.mxu0 %v14979_v17  ;;  %v15023_v17 = vld [vmem:[#allocation151_spill] sm:$0xff] }
 0x68b   :  { %3098 = vmatprep.subr.bf16.mxu0 %v14980_v18  ;;  %v15024_v18 = vld [vmem:[#allocation152_spill] sm:$0xff] }
 0x68e   :  { %3099 = vmatpush1.bf16.msra.mxu0 %v14981_v19  ;;  %v15025_v19 = vld [vmem:[#allocation153_spill] sm:$0xff] }
 0x68f   :  { %3100 = vmatprep.subr.bf16.mxu0 %v14982_v22  ;;  %v15026_v22 = vld [vmem:[#allocation154_spill] sm:$0xff] }
 0x692   :  { %3101 = vmatpush1.bf16.msra.mxu0 %v14983_v24  ;;  %v15027_v24 = vld [vmem:[#allocation155_spill] sm:$0xff] }
 0x693   :  { %3102 = vmatprep.subr.bf16.mxu0 %v14984_v26  ;;  %v15029_v26 = vld [vmem:[#allocation157_spill] sm:$0xff] }
 0x694   :  { %v7789_v27 = vpop.f32.mrb[4].mxu0 }
 0x695   :  { %v7790_v28 = vpop.f32.mrb[5].mxu0 }
 0x696   :  { %v7791_v31 = vadd.f32 %v7790_v28, %v7789_v27  ;;  %3103 = vmatpush1.bf16.msra.mxu0 %v14986_v32  ;;  %v7792_v33 = vpop.f32.mrb[6].mxu0  ;;  %v15030_v27 = vld [vmem:[#allocation158_spill] sm:$0xff]  ;;  %v15031_v28 = vld [vmem:[#allocation159_spill] sm:$0xff] }
 0x697   :  { %v7793_v20 = vpop.f32.mrb[7].mxu0  ;;  %3104 = vmatprep.subr.bf16.mxu0 %v14987_v34  ;;  %v15035_v32 = vld [vmem:[#allocation163_spill] sm:$0xff]  ;;  %v15036_v33 = vld [vmem:[#allocation164_spill] sm:$0xff]  ;;  %v2927_v34 = vrot.slane %v2911_v49, %v9493_v16 }
 0x698   :  { %v12067_v35 = vadd.f32 %v7791_v31, %v2228_v30  ;;  %v15033_v30 = vld [vmem:[#allocation161_spill] sm:$0xff]  ;;  %v15034_v31 = vld [vmem:[#allocation162_spill] sm:$0xff]  ;;  %v15052_v49 = vld [vmem:[#allocation180_spill] sm:$0xff] }
 0x699   :  { %v15037_v20 = vld [vmem:[#allocation165_spill] sm:$0xff] }
 0x69a   :  { %3105 = vmatpush1.bf16.msra.mxu0 %v14988_v36  ;;  %v15038_v36 = vld [vmem:[#allocation166_spill] sm:$0xff] }
 0x69b   :  { %3106 = vmatprep.subr.bf16.mxu0 %v14989_v37  ;;  %v2951_v37 = vcombine.high %v2941_v60, %v2941_v60 }
 0x69e   :  { %3107 = vmatpush1.bf16.msra.mxu0 %v14990_v10  ;;  %v15039_v10 = vld [vmem:[#allocation167_spill] sm:$0xff] }
 0x69f   :  { %3108 = vmatprep.subr.bf16.mxu0 %v14991_v38  ;;  %v15040_v38 = vld [vmem:[#allocation168_spill] sm:$0xff] }
 0x6a2   :  { %3109 = vmatpush1.bf16.msra.mxu0 %v14992_v39  ;;  %v15041_v39 = vld [vmem:[#allocation169_spill] sm:$0xff] }
 0x6a3   :  { %3110 = vmatprep.subr.bf16.mxu0 %v14993_v40  ;;  %v15042_v40 = vld [vmem:[#allocation170_spill] sm:$0xff] }
 0x6a6   :  { %3111 = vmatpush1.bf16.msra.mxu0 %v14994_v41  ;;  %v15043_v41 = vld [vmem:[#allocation171_spill] sm:$0xff] }
 0x6a7   :  { %3112 = vmatprep.subr.bf16.mxu0 %v14995_v42  ;;  %v15044_v42 = vld [vmem:[#allocation172_spill] sm:$0xff] }
 0x6aa   :  { %3113 = vmatpush1.bf16.msra.mxu0 %v14996_v43  ;;  %v15045_v43 = vld [vmem:[#allocation173_spill] sm:$0xff] }
 0x6ab   :  { %3114 = vmatprep.subr.bf16.mxu0 %v14997_v44  ;;  %v15046_v44 = vld [vmem:[#allocation174_spill] sm:$0xff] }
 0x6ae   :  { %3115 = vmatpush1.bf16.msra.mxu0 %v14998_v45  ;;  %v15047_v45 = vld [vmem:[#allocation175_spill] sm:$0xff] }
 0x6af   :  { %3116 = vmatprep.subr.bf16.mxu0 %v14999_v46  ;;  %v15048_v46 = vld [vmem:[#allocation176_spill] sm:$0xff] }
 0x6b2   :  { %3117 = vmatpush1.bf16.msra.mxu0 %v15000_v47  ;;  %v15049_v47 = vld [vmem:[#allocation177_spill] sm:$0xff] }
 0x6b3   :  { %3118 = vmatprep.subr.bf16.mxu0 %v15001_v56  ;;  %v15050_v56 = vld [vmem:[#allocation178_spill] sm:$0xff] }
 0x6b6   :  { %3119 = vmatpush1.bf16.msra.mxu0 %v15002_v48  ;;  %v15051_v48 = vld [vmem:[#allocation179_spill] sm:$0xff] }
 0x6b7   :  { %3120 = vmatprep.subr.bf16.mxu0 %v15003_v50  ;;  %v15053_v50 = vld [vmem:[#allocation181_spill] sm:$0xff] }
 0x6ba   :  { %3121 = vmatpush1.bf16.msra.mxu0 %v15004_v58  ;;  %v15054_v58 = vld [vmem:[#allocation182_spill] sm:$0xff] }
 0x6bb   :  { %3122 = vmatprep.subr.bf16.mxu0 %v15005_v21  ;;  %v15056_v21 = vld [vmem:[#allocation184_spill] sm:$0xff] }
 0x6be   :  { %3123 = vmatpush1.bf16.msra.mxu0 %v15006_v51  ;;  %v15058_v51 = vld [vmem:[#allocation186_spill] sm:$0xff] }
 0x6bf   :  { %3133 = vmatprep.subr.bf16.mxu0 %v15007_v62  ;;  %v15060_v62 = vld [vmem:[#allocation188_spill] sm:$0xff] }
 0x6c1   :  { %3125 = vmatmul.mubr.bf16.vlgmr.msra.gmra.mrb[8].mxu0 %v2901_v23  ;;  %v15057_v23 = vld [vmem:[#allocation185_spill] sm:$0xff] }
 0x6c2   :  { %3134 = vmatpush1.bf16.msra.mxu0 %v15008_v63  ;;  %3165 = vmatprep.mubr.bf16.mxu0 %v2941_v60  ;;  %v15059_v60 = vld [vmem:[#allocation187_spill] sm:$0xff]  ;;  %v15061_v63 = vld [vmem:[#allocation189_spill] sm:$0xff] }
 0x6c3   :  { %3135 = vmatprep.subr.bf16.mxu0 %v15009_v0  ;;  %v15062_v0 = vld [vmem:[#allocation190_spill] sm:$0xff] }
 0x6c6   :  { %3136 = vmatpush1.bf16.msra.mxu0 %v15010_v1  ;;  %v15063_v1 = vld [vmem:[#allocation191_spill] sm:$0xff] }
 0x6c7   :  { %3137 = vmatprep.subr.bf16.mxu0 %v15011_v2  ;;  %v15064_v2 = vld [vmem:[#allocation192_spill] sm:$0xff] }
 0x6ca   :  { %3138 = vmatpush1.bf16.msra.mxu0 %v15012_v3  ;;  %v2904_v3 = vcombine.high %v12086_v12, %v12086_v12 }
 0x6cb   :  { %3139 = vmatprep.subr.bf16.mxu0 %v15013_v4  ;;  %v15065_v4 = vld [vmem:[#allocation193_spill] sm:$0xff] }
 0x6ce   :  { %3140 = vmatpush1.bf16.msra.mxu0 %v15014_v5  ;;  %v15066_v5 = vld [vmem:[#allocation194_spill] sm:$0xff] }
 0x6cf   :  { %3141 = vmatprep.subr.bf16.mxu0 %v15015_v6  ;;  %v12160_v6 = vrot.slane %v2904_v3, %v9493_v16  ;;  %v12392_v3 = vld [vmem:[%s14673_s23 + $0x730] ss:$8 sps:$4 sm:$0xff]  }
 0x6d2   :  { %3142 = vmatpush1.bf16.msra.mxu0 %v15016_v7  ;;  %v15067_v7 = vld [vmem:[#allocation195_spill] sm:$0xff] }
 0x6d3   :  { %3143 = vmatprep.subr.bf16.mxu0 %v15017_v8  ;;  %v15068_v8 = vld [vmem:[#allocation196_spill] sm:$0xff] }
 0x6d6   :  { %3144 = vmatpush1.bf16.msra.mxu0 %v15018_v9  ;;  %v2920_v9 = vcombine.high %v12160_v6, %v12160_v6 }
 0x6d7   :  { %3145 = vmatprep.subr.bf16.mxu0 %v15019_v11  ;;  %v15069_v11 = vld [vmem:[#allocation197_spill] sm:$0xff] }
 0x6d8   :  { %v12169_v12 = vrot.slane %v2920_v9, %v9493_v16  ;;  %v12428_v9 = vld [vmem:[%s14673_s23 + $0x760] ss:$8 sps:$4 sm:$0xff]  }
 0x6da   :  { %3146 = vmatpush1.bf16.msra.mxu0 %v15020_v13  ;;  %v2949_v13 = vcombine.high %v2927_v34, %v2927_v34 }
 0x6db   :  { %3147 = vmatprep.subr.bf16.mxu0 %v15021_v14  ;;  %v15070_v14 = vld [vmem:[#allocation198_spill] sm:$0xff] }
 0x6de   :  { %3148 = vmatpush1.bf16.msra.mxu0 %v15022_v15  ;;  %v15071_v15 = vld [vmem:[#allocation199_spill] sm:$0xff] }
 0x6df   :  { %3149 = vmatprep.subr.bf16.mxu0 %v15023_v17  ;;  %v8455_v17 = vld [vmem:[%s14444_s3 + $0x140] sm:$0xff]  }
 0x6e0   :  { %7795 = vmatprep.subr.bf16.mxu1 %v8455_v17  ;;  %v12464_v17 = vld [vmem:[%s14673_s23 + $0x790] ss:$8 sps:$4 sm:$0xff]  }
 0x6e2   :  { %3150 = vmatpush1.bf16.msra.mxu0 %v15024_v18  ;;  %v8456_v18 = vld [vmem:[%s14444_s3 + $0x100] sm:$0xff]  }
 0x6e3   :  { %3151 = vmatprep.subr.bf16.mxu0 %v15025_v19  ;;  %v8457_v19 = vld [vmem:[%s14444_s3 + $0x148] sm:$0xff]   ;;  %7796 = vmatpush3.bf16.msra.mxu1 %v8456_v18 }
 0x6e4   :  { %7797 = vmatprep.subr.bf16.mxu1 %v8457_v19  ;;  %v12470_v18 = vld [vmem:[%s14673_s23 + $0x7a4] ss:$8 sps:$4 sm:$0xff]   ;;  %v12476_v19 = vld [vmem:[%s14673_s23 + $0x7a0] ss:$8 sps:$4 sm:$0xff]  }
 0x6e6   :  { %3152 = vmatpush1.bf16.msra.mxu0 %v15026_v22  ;;  %v15072_v22 = vld [vmem:[#allocation200_spill] sm:$0xff] }
 0x6e7   :  { %3153 = vmatprep.subr.bf16.mxu0 %v15027_v24  ;;  %v8458_v24 = vld [vmem:[%s14444_s3 + $0x108] sm:$0xff]  }
 0x6e8   :  { %7798 = vmatpush3.bf16.msra.mxu1 %v8458_v24  ;;  %v12488_v24 = vld [vmem:[%s14673_s23 + $0x7b0] ss:$8 sps:$4 sm:$0xff]  }
 0x6ea   :  { %3154 = vmatpush1.bf16.msra.mxu0 %v15028_v25  ;;  %v8459_v25 = vld [vmem:[%s14444_s3 + $0x150] sm:$0xff]  }
 0x6eb   :  { %3155 = vmatprep.subr.bf16.mxu0 %v15029_v26  ;;  %v15073_v26 = vld [vmem:[#allocation201_spill] sm:$0xff]  ;;  %7799 = vmatprep.subr.bf16.mxu1 %v8459_v25  ;;  %v12494_v25 = vld [vmem:[%s14673_s23 + $0x7c4] ss:$8 sps:$4 sm:$0xff]  }
 0x6ee   :  { %3156 = vmatpush1.bf16.msra.mxu0 %v15030_v27  ;;  %v15074_v27 = vld [vmem:[#allocation202_spill] sm:$0xff] }
 0x6ef   :  { %3157 = vmatprep.subr.bf16.mxu0 %v15031_v28  ;;  %v8461_v28 = vld [vmem:[%s14444_s3 + $0x158] sm:$0xff]  }
 0x6f2   :  { %3158 = vmatpush1.bf16.msra.mxu0 %v15032_v29  ;;  %v15075_v29 = vld [vmem:[#allocation203_spill] sm:$0xff] }
 0x6f3   :  { %3159 = vmatprep.subr.bf16.mxu0 %v15033_v30  ;;  %v15076_v30 = vld [vmem:[#allocation204_spill] sm:$0xff] }
 0x6f6   :  { %3160 = vmatpush1.bf16.msra.mxu0 %v15034_v31  ;;  %v8462_v31 = vld [vmem:[%s14444_s3 + $0x118] sm:$0xff]  }
 0x6f7   :  { %3161 = vmatprep.subr.bf16.mxu0 %v15035_v32  ;;  %v8463_v32 = vld [vmem:[%s14444_s3 + $0x160] sm:$0xff]  }
 0x6fa   :  { %3162 = vmatpush1.bf16.msra.mxu0 %v15036_v33  ;;  %v15077_v33 = vld [vmem:[#allocation205_spill] sm:$0xff] }
 0x6fb   :  { %3163 = vmatprep.subr.bf16.mxu0 %v15037_v20  ;;  %v15078_v20 = vld [vmem:[#allocation206_spill] sm:$0xff] }
 0x6fe   :  { %3164 = vmatpush1.bf16.msra.mxu0 %v15038_v36  ;;  %v8465_v36 = vld [vmem:[%s14444_s3 + $0x168] sm:$0xff]  }
 0x6ff   :  { %3174 = vmatprep.subr.bf16.mxu0 %v15039_v10  ;;  %v12223_v10 = vld [vmem:[%s14673_s23 + $0x664] ss:$8 sps:$4 sm:$0xff]  }
 0x701   :  { %3166 = vmatmul.mubr.bf16.vlgmr.msra.gmra.mrb[8].mxu0 %v2927_v34  ;;  %v8464_v34 = vld [vmem:[%s14444_s3 + $0x120] sm:$0xff]  }
 0x702   :  { %3175 = vmatpush1.bf16.msra.mxu0 %v15040_v38  ;;  %3206 = vmatprep.mubr.bf16.mxu0 %v2951_v37  ;;  %v8466_v37 = vld [vmem:[%s14444_s3 + $0x128] sm:$0xff]  }
 0x703   :  { %3176 = vmatprep.subr.bf16.mxu0 %v15041_v39  ;;  %v12247_v38 = vld [vmem:[%s14673_s23 + $0x684] ss:$8 sps:$4 sm:$0xff]   ;;  %v12253_v39 = vld [vmem:[%s14673_s23 + $0x680] ss:$8 sps:$4 sm:$0xff]  }
 0x706   :  { %3177 = vmatpush1.bf16.msra.mxu0 %v15042_v40  ;;  %v12259_v40 = vld [vmem:[%s14673_s23 + $0x694] ss:$8 sps:$4 sm:$0xff]  }
 0x707   :  { %3178 = vmatprep.subr.bf16.mxu0 %v15043_v41  ;;  %v12265_v41 = vld [vmem:[%s14673_s23 + $0x690] ss:$8 sps:$4 sm:$0xff]  }
 0x70a   :  { %3179 = vmatpush1.bf16.msra.mxu0 %v15044_v42  ;;  %v12271_v42 = vld [vmem:[%s14673_s23 + $0x6a4] ss:$8 sps:$4 sm:$0xff]  }
 0x70b   :  { %3180 = vmatprep.subr.bf16.mxu0 %v15045_v43  ;;  %v12277_v43 = vld [vmem:[%s14673_s23 + $0x6a0] ss:$8 sps:$4 sm:$0xff]  }
 0x70e   :  { %3181 = vmatpush1.bf16.msra.mxu0 %v15046_v44  ;;  %v12283_v44 = vld [vmem:[%s14673_s23 + $0x6b4] ss:$8 sps:$4 sm:$0xff]  }
 0x70f   :  { %3182 = vmatprep.subr.bf16.mxu0 %v15047_v45  ;;  %v12289_v45 = vld [vmem:[%s14673_s23 + $0x6b0] ss:$8 sps:$4 sm:$0xff]  }
 0x712   :  { %3183 = vmatpush1.bf16.msra.mxu0 %v15048_v46  ;;  %v12295_v46 = vld [vmem:[%s14673_s23 + $0x6c4] ss:$8 sps:$4 sm:$0xff]  }
 0x713   :  { %3184 = vmatprep.subr.bf16.mxu0 %v15049_v47  ;;  %v12301_v47 = vld [vmem:[%s14673_s23 + $0x6c0] ss:$8 sps:$4 sm:$0xff]  }
 0x716   :  { %3185 = vmatpush1.bf16.msra.mxu0 %v15050_v56  ;;  %v12307_v56 = vld [vmem:[%s14673_s23 + $0x6d4] ss:$8 sps:$4 sm:$0xff]  }
 0x717   :  { %3186 = vmatprep.subr.bf16.mxu0 %v15051_v48  ;;  %v12313_v48 = vld [vmem:[%s14673_s23 + $0x6d0] ss:$8 sps:$4 sm:$0xff]  }
 0x71a   :  { %3187 = vmatpush1.bf16.msra.mxu0 %v15052_v49  ;;  %v12319_v49 = vld [vmem:[%s14673_s23 + $0x6e4] ss:$8 sps:$4 sm:$0xff]  }
 0x71b   :  { %3188 = vmatprep.subr.bf16.mxu0 %v15053_v50  ;;  %v12325_v50 = vld [vmem:[%s14673_s23 + $0x6e0] ss:$8 sps:$4 sm:$0xff]  }
 0x71e   :  { %3189 = vmatpush1.bf16.msra.mxu0 %v15054_v58  ;;  %v12331_v58 = vld [vmem:[%s14673_s23 + $0x6f4] ss:$8 sps:$4 sm:$0xff]  }
 0x71f   :  { %3190 = vmatprep.subr.bf16.mxu0 %v15055_v59  ;;  %v12336_v59 = vrot.slane %v12160_v6, %v9493_v16  ;;  %v12410_v6 = vld [vmem:[%s14673_s23 + $0x754] ss:$8 sps:$4 sm:$0xff]  }
 0x722   :  { %3191 = vmatpush1.bf16.msra.mxu0 %v15056_v21  ;;  %v12341_v21 = vld [vmem:[%s14673_s23 + $0x6f0] ss:$8 sps:$4 sm:$0xff]  }
 0x723   :  { %3192 = vmatprep.subr.bf16.mxu0 %v15057_v23  ;;  %v2952_v23 = vcombine.high %v12169_v12, %v12169_v12 }
 0x726   :  { %3193 = vmatpush1.bf16.msra.mxu0 %v15058_v51  ;;  %v12349_v51 = vld [vmem:[%s14673_s23 + $0x704] ss:$8 sps:$4 sm:$0xff]  }
 0x727   :  { %3194 = vmatprep.subr.bf16.mxu0 %v15059_v60  ;;  %v12356_v60 = vld [vmem:[%s14673_s23 + $0x700] ss:$8 sps:$4 sm:$0xff]  }
 0x72a   :  { %3195 = vmatpush1.bf16.msra.mxu0 %v15060_v62  ;;  %v12362_v62 = vld [vmem:[%s14673_s23 + $0x714] ss:$8 sps:$4 sm:$0xff]  }
 0x72b   :  { %3196 = vmatprep.subr.bf16.mxu0 %v15061_v63  ;;  %v12368_v63 = vld [vmem:[%s14673_s23 + $0x710] ss:$8 sps:$4 sm:$0xff]  }
 0x72e   :  { %3197 = vmatpush1.bf16.msra.mxu0 %v15062_v0  ;;  %v12374_v0 = vld [vmem:[%s14673_s23 + $0x724] ss:$8 sps:$4 sm:$0xff]  }
 0x72f   :  { %3198 = vmatprep.subr.bf16.mxu0 %v15063_v1  ;;  %v12380_v1 = vld [vmem:[%s14673_s23 + $0x720] ss:$8 sps:$4 sm:$0xff]  }
 0x732   :  { %3199 = vmatpush1.bf16.msra.mxu0 %v15064_v2  ;;  %v12386_v2 = vld [vmem:[%s14673_s23 + $0x734] ss:$8 sps:$4 sm:$0xff]  }
 0x733   :  { %3200 = vmatprep.subr.bf16.mxu0 %v15065_v4  ;;  %v12398_v4 = vld [vmem:[%s14673_s23 + $0x744] ss:$8 sps:$4 sm:$0xff]  }
 0x736   :  { %3201 = vmatpush1.bf16.msra.mxu0 %v15066_v5  ;;  %v12404_v5 = vld [vmem:[%s14673_s23 + $0x740] ss:$8 sps:$4 sm:$0xff]  }
 0x737   :  { %3202 = vmatprep.subr.bf16.mxu0 %v15067_v7  ;;  %v12416_v7 = vld [vmem:[%s14673_s23 + $0x750] ss:$8 sps:$4 sm:$0xff]  }
 0x73a   :  { %3203 = vmatpush1.bf16.msra.mxu0 %v15068_v8  ;;  %v12422_v8 = vld [vmem:[%s14673_s23 + $0x764] ss:$8 sps:$4 sm:$0xff]  }
 0x73b   :  { %3204 = vmatprep.subr.bf16.mxu0 %v15069_v11  ;;  %v12434_v11 = vld [vmem:[%s14673_s23 + $0x774] ss:$8 sps:$4 sm:$0xff]  }
 0x73e   :  { %3205 = vmatpush1.bf16.msra.mxu0 %v15070_v14  ;;  %v12446_v14 = vld [vmem:[%s14673_s23 + $0x784] ss:$8 sps:$4 sm:$0xff]  }
 0x73f   :  { %3215 = vmatprep.subr.bf16.mxu0 %v15071_v15  ;;  %v12458_v15 = vld [vmem:[%s14673_s23 + $0x794] ss:$8 sps:$4 sm:$0xff]  }
 0x741   :  { %3207 = vmatmul.mubr.bf16.vlgmr.msra.gmra.mrb[8].mxu0 %v2949_v13  ;;  %v12440_v13 = vld [vmem:[%s14673_s23 + $0x770] ss:$8 sps:$4 sm:$0xff]  }
 0x742   :  { %3216 = vmatpush1.bf16.msra.mxu0 %v15072_v22  ;;  %3247 = vmatprep.mubr.bf16.mxu0 %v12169_v12  ;;  %v12452_v12 = vld [vmem:[%s14673_s23 + $0x780] ss:$8 sps:$4 sm:$0xff]   ;;  %v12482_v22 = vld [vmem:[%s14673_s23 + $0x7b4] ss:$8 sps:$4 sm:$0xff]  }
 0x743   :  { %3217 = vmatprep.subr.bf16.mxu0 %v11786_v61  ;;  %v8460_v61 = vld [vmem:[%s14444_s3 + $0x110] sm:$0xff]  }
 0x744   :  { %7800 = vmatpush3.bf16.msra.mxu1 %v8460_v61  ;;  %v12512_v61 = vld [vmem:[%s14673_s23 + $0x7d0] ss:$8 sps:$4 sm:$0xff]  }
 0x745   :  { %7801 = vmatprep.subr.bf16.mxu1 %v8461_v28  ;;  %15080 = vst [vmem:[#allocation5_spill] sm:$0xff] %v12512_v61  ;;  %v12518_v28 = vld [vmem:[%s14673_s23 + $0x7e4] ss:$8 sps:$4 sm:$0xff]  }
 0x746   :  { %3218 = vmatpush1.bf16.msra.mxu0 %v15073_v26  ;;  %v12500_v26 = vld [vmem:[%s14673_s23 + $0x7c0] ss:$8 sps:$4 sm:$0xff]   ;;  %15081 = vst [vmem:[#allocation6_spill] sm:$0xff] %v12518_v28 }
 0x747   :  { %3219 = vmatprep.subr.bf16.mxu0 %v15074_v27  ;;  %v12506_v27 = vld [vmem:[%s14673_s23 + $0x7d4] ss:$8 sps:$4 sm:$0xff]  }
 0x748   :  { %7802 = vmatpush3.bf16.msra.mxu1 %v8462_v31  ;;  %15079 = vst [vmem:[#allocation4_spill] sm:$0xff] %v12506_v27  ;;  %v2950_v31 = vcombine.high %v12336_v59, %v12336_v59 }
 0x749   :  { %7803 = vmatprep.subr.bf16.mxu1 %v8463_v32  ;;  %v12538_v32 = vld [vmem:[%s14673_s23 + $0x7f0] ss:$8 sps:$4 sm:$0xff]  }
 0x74a   :  { %3220 = vmatpush1.bf16.msra.mxu0 %v15075_v29  ;;  %v12524_v29 = vld [vmem:[%s14673_s23 + $0x7e0] ss:$8 sps:$4 sm:$0xff]   ;;  %15084 = vst [vmem:[#allocation9_spill] sm:$0xff] %v12538_v32 }
 0x74b   :  { %3221 = vmatprep.subr.bf16.mxu0 %v15076_v30  ;;  %15082 = vst [vmem:[#allocation7_spill] sm:$0xff] %v12524_v29  ;;  %v12530_v30 = vld [vmem:[%s14673_s23 + $0x7f4] ss:$8 sps:$4 sm:$0xff]  }
 0x74c   :  { %7804 = vmatpush3.bf16.msra.mxu1 %v8464_v34  ;;  %15083 = vst [vmem:[#allocation8_spill] sm:$0xff] %v12530_v30  ;;  %v8469_v34 = vld [vmem:[%s14444_s3 + $0x178] sm:$0xff]  }
 0x74d   :  { %7805 = vmatprep.subr.bf16.mxu1 %v8465_v36  ;;  %v8470_v36 = vld [vmem:[%s14444_s3 + $0x138] sm:$0xff]  }
 0x74e   :  { %3222 = vmatpush1.bf16.msra.mxu0 %v15077_v33  ;;  %v8467_v33 = vld [vmem:[%s14444_s3 + $0x170] sm:$0xff]  }
 0x74f   :  { %3223 = vmatprep.subr.bf16.mxu0 %v15078_v20  ;;  %v8468_v20 = vld [vmem:[%s14444_s3 + $0x130] sm:$0xff]  }
 0x750   :  { %7806 = vmatpush3.bf16.msra.mxu1 %v8466_v37  ;;  %v9165_v37 = vld [vmem:[%s14673_s23 + $0x4] ss:$8 sps:$4 sm:$0xff]  }
 0x751   :  { %7807 = vmatprep.subr.bf16.mxu1 %v8467_v33 }
 0x752   :  { %3224 = vmatpush1.bf16.msra.mxu0 %v11852_v57  ;;  %v12229_v57 = vld [vmem:[%s14673_s23 + $0x660] ss:$8 sps:$4 sm:$0xff]  }
 0x753   :  { %3225 = vmatprep.subr.bf16.mxu0 %v11858_v52  ;;  %v12235_v52 = vld [vmem:[%s14673_s23 + $0x674] ss:$8 sps:$4 sm:$0xff]  }
 0x754   :  { %7808 = vmatpush3.bf16.msra.mxu1 %v8468_v20 }
 0x755   :  { %7809 = vmatprep.subr.bf16.mxu1 %v8469_v34 }
 0x756   :  { %3226 = vmatpush1.bf16.msra.mxu0 %v11867_v55  ;;  %v12241_v55 = vld [vmem:[%s14673_s23 + $0x670] ss:$8 sps:$4 sm:$0xff]  }
 0x757   :  { %3227 = vmatprep.subr.bf16.mxu0 %v12223_v10 }
 0x758   :  { %7810 = vmatpush3.bf16.msra.mxu1 %v8470_v36 }
 0x759   :  { %3590 = vmatprep.subr.bf16.mxu1 %v9165_v37 }
 0x75a   :  { %3228 = vmatpush1.bf16.msra.mxu0 %v12229_v57 }
 0x75b   :  { %3229 = vmatprep.subr.bf16.mxu0 %v12235_v52 }
 0x75e   :  { %3230 = vmatpush1.bf16.msra.mxu0 %v12241_v55 }
 0x75f   :  { %3231 = vmatprep.subr.bf16.mxu0 %v12247_v38 }
 0x762   :  { %3232 = vmatpush1.bf16.msra.mxu0 %v12253_v39 }
 0x763   :  { %3233 = vmatprep.subr.bf16.mxu0 %v12259_v40 }
 0x766   :  { %3234 = vmatpush1.bf16.msra.mxu0 %v12265_v41 }
 0x767   :  { %3235 = vmatprep.subr.bf16.mxu0 %v12271_v42 }
 0x76a   :  { %3236 = vmatpush1.bf16.msra.mxu0 %v12277_v43 }
 0x76b   :  { %3237 = vmatprep.subr.bf16.mxu0 %v12283_v44 }
 0x76e   :  { %3238 = vmatpush1.bf16.msra.mxu0 %v12289_v45 }
 0x76f   :  { %3239 = vmatprep.subr.bf16.mxu0 %v12295_v46 }
 0x772   :  { %3240 = vmatpush1.bf16.msra.mxu0 %v12301_v47 }
 0x773   :  { %3241 = vmatprep.subr.bf16.mxu0 %v12307_v56 }
 0x776   :  { %3242 = vmatpush1.bf16.msra.mxu0 %v12313_v48 }
 0x777   :  { %3243 = vmatprep.subr.bf16.mxu0 %v12319_v49 }
 0x77a   :  { %3244 = vmatpush1.bf16.msra.mxu0 %v12325_v50 }
 0x77b   :  { %3245 = vmatprep.subr.bf16.mxu0 %v12331_v58 }
 0x77e   :  { %3246 = vmatpush1.bf16.msra.mxu0 %v12341_v21 }
 0x77f   :  { %3256 = vmatprep.subr.bf16.mxu0 %v12349_v51 }
 0x781   :  { %3248 = vmatmul.mubr.bf16.vlgmr.msra.gmra.mrb[8].mxu0 %v12336_v59  ;;  %v12559_v59 = vld [vmem:[%s14443_s0 + $0x30] sm:$0xff] }
 0x782   :  { %3257 = vmatpush1.bf16.msra.mxu0 %v12356_v60  ;;  %3288 = vmatprep.mubr.bf16.mxu0 %v2952_v23  ;;  %v12563_v23 = vrot.slane %v12559_v59, %v9493_v16 }
 0x783   :  { %3258 = vmatprep.subr.bf16.mxu0 %v12362_v62 }
 0x786   :  { %3259 = vmatpush1.bf16.msra.mxu0 %v12368_v63 }
 0x787   :  { %3260 = vmatprep.subr.bf16.mxu0 %v12374_v0 }
 0x78a   :  { %3261 = vmatpush1.bf16.msra.mxu0 %v12380_v1 }
 0x78b   :  { %3262 = vmatprep.subr.bf16.mxu0 %v12386_v2 }
 0x78e   :  { %3263 = vmatpush1.bf16.msra.mxu0 %v12392_v3 }
 0x78f   :  { %3264 = vmatprep.subr.bf16.mxu0 %v12398_v4 }
 0x792   :  { %3265 = vmatpush1.bf16.msra.mxu0 %v12404_v5 }
 0x793   :  { %3266 = vmatprep.subr.bf16.mxu0 %v12410_v6 }
 0x796   :  { %3267 = vmatpush1.bf16.msra.mxu0 %v12416_v7 }
 0x797   :  { %3268 = vmatprep.subr.bf16.mxu0 %v12422_v8 }
 0x79a   :  { %3269 = vmatpush1.bf16.msra.mxu0 %v12428_v9 }
 0x79b   :  { %3270 = vmatprep.subr.bf16.mxu0 %v12434_v11 }
 0x79e   :  { %3271 = vmatpush1.bf16.msra.mxu0 %v12440_v13 }
 0x79f   :  { %3272 = vmatprep.subr.bf16.mxu0 %v12446_v14 }
 0x7a2   :  { %3273 = vmatpush1.bf16.msra.mxu0 %v12452_v12 }
 0x7a3   :  { %3274 = vmatprep.subr.bf16.mxu0 %v12458_v15 }
 0x7a6   :  { %3275 = vmatpush1.bf16.msra.mxu0 %v12464_v17 }
 0x7a7   :  { %3276 = vmatprep.subr.bf16.mxu0 %v12470_v18 }
 0x7aa   :  { %3277 = vmatpush1.bf16.msra.mxu0 %v12476_v19 }
 0x7ab   :  { %3278 = vmatprep.subr.bf16.mxu0 %v12482_v22 }
 0x7ae   :  { %3279 = vmatpush1.bf16.msra.mxu0 %v12488_v24 }
 0x7af   :  { %3280 = vmatprep.subr.bf16.mxu0 %v12494_v25 }
 0x7b2   :  { %3281 = vmatpush1.bf16.msra.mxu0 %v12500_v26 }
 0x7b3   :  { %3282 = vmatprep.subr.bf16.mxu0 %v12506_v27 }
 0x7b6   :  { %3283 = vmatpush1.bf16.msra.mxu0 %v12512_v61 }
 0x7b7   :  { %3284 = vmatprep.subr.bf16.mxu0 %v12518_v28 }
 0x7ba   :  { %3285 = vmatpush1.bf16.msra.mxu0 %v12524_v29 }
 0x7bb   :  { %3286 = vmatprep.subr.bf16.mxu0 %v12530_v30 }
 0x7be   :  { %3287 = vmatpush1.bf16.msra.mxu0 %v12538_v32  ;;  %v3491_v32 = vcombine.high %v12563_v23, %v12563_v23 }
 0x7c0   :  { %v12570_v61 = vrot.slane %v3491_v32, %v9493_v16  ;;  %v9172_v32 = vld [vmem:[%s14673_s23 + $0x30] ss:$8 sps:$4 sm:$0xff]  }
 0x7c1   :  { %3289 = vmatmul.mubr.bf16.vlgmr.msra.gmra.mrb[8].mxu0 %v2950_v31 }
 0x894   :  { %v3290_v31 = vpop.f32.mrb[8].mxu0 }
 0x895   :  { %v7887_v33 = vadd.f32 %v3290_v31, %v10533_v53  ;;  %v3292_v20 = vpop.f32.mrb[9].mxu0  ;;  %v9166_v31 = vld [vmem:[%s14673_s23] ss:$8 sps:$4 sm:$0xff]  }
 0x896   :  { %v7888_v34 = vadd.f32 %v3292_v20, %v10536_v54  ;;  %v3294_v36 = vpop.f32.mrb[10].mxu0  ;;  %v9173_v20 = vld [vmem:[%s14673_s23 + $0x44] ss:$8 sps:$4 sm:$0xff]  }
 0x897   :  { %v3297_v37 = vmax.f32 %v7887_v33, 0.0  ;;  %v3295_v30 = vpop.f32.mrb[11].mxu0  ;;  %v9167_v33 = vld [vmem:[%s14673_s23 + $0x14] ss:$8 sps:$4 sm:$0xff]  }
 0x898   :  { %v3298_v29 = vmax.f32 %v7888_v34, 0.0  ;;  %v9171_v30 = vld [vmem:[%s14673_s23 + $0x34] ss:$8 sps:$4 sm:$0xff]   ;;  %v9174_v34 = vld [vmem:[%s14673_s23 + $0x40] ss:$8 sps:$4 sm:$0xff]  }
 0x899   :  { %v3299_v27 = vpack.c.bf16 %v3297_v37, %v3297_v37  ;;  %v9175_v36 = vld [vmem:[%s14673_s23 + $0x54] ss:$8 sps:$4 sm:$0xff]   ;;  %v9176_v37 = vld [vmem:[%s14673_s23 + $0x50] ss:$8 sps:$4 sm:$0xff]  }
 0x89a   :  { %v3300_v28 = vpack.c.bf16 %v3298_v29, %v3298_v29  ;;  %v9168_v29 = vld [vmem:[%s14673_s23 + $0x10] ss:$8 sps:$4 sm:$0xff]  }
 0x89c   :  { %3462 = vmatprep.mubr.bf16.mxu1 %v3300_v28  ;;  %v9170_v28 = vld [vmem:[%s14673_s23 + $0x20] ss:$8 sps:$4 sm:$0xff]  }
 0x89d   :  { %3463 = vmatmul.mubr.bf16.vlgmr.msra.gmra.mrb[8].mxu1 %v3299_v27  ;;  %v9169_v27 = vld [vmem:[%s14673_s23 + $0x24] ss:$8 sps:$4 sm:$0xff]  }
 0x89e   :  { %3591 = vmatpush1.bf16.msra.mxu1 %v9166_v31  ;;  %3622 = vmatprep.mubr.bf16.mxu1 %v12570_v61  ;;  %v9177_v31 = vld [vmem:[%s14673_s23 + $0x64] ss:$8 sps:$4 sm:$0xff]  }
 0x89f   :  { %3592 = vmatprep.subr.bf16.mxu1 %v9167_v33  ;;  %v9178_v33 = vld [vmem:[%s14673_s23 + $0x60] ss:$8 sps:$4 sm:$0xff]  }
 0x8a2   :  { %3593 = vmatpush1.bf16.msra.mxu1 %v9168_v29  ;;  %v9179_v29 = vld [vmem:[%s14673_s23 + $0x74] ss:$8 sps:$4 sm:$0xff]  }
 0x8a3   :  { %3594 = vmatprep.subr.bf16.mxu1 %v9169_v27  ;;  %v9180_v27 = vld [vmem:[%s14673_s23 + $0x70] ss:$8 sps:$4 sm:$0xff]  }
 0x8a6   :  { %3595 = vmatpush1.bf16.msra.mxu1 %v9170_v28  ;;  %v9181_v28 = vld [vmem:[%s14673_s23 + $0x84] ss:$8 sps:$4 sm:$0xff]  }
 0x8a7   :  { %3596 = vmatprep.subr.bf16.mxu1 %v9171_v30  ;;  %v9182_v30 = vld [vmem:[%s14673_s23 + $0x80] ss:$8 sps:$4 sm:$0xff]  }
 0x8aa   :  { %3597 = vmatpush1.bf16.msra.mxu1 %v9172_v32  ;;  %v9183_v32 = vld [vmem:[%s14673_s23 + $0x94] ss:$8 sps:$4 sm:$0xff]  }
 0x8ab   :  { %3598 = vmatprep.subr.bf16.mxu1 %v9173_v20  ;;  %v9184_v20 = vld [vmem:[%s14673_s23 + $0x90] ss:$8 sps:$4 sm:$0xff]  }
 0x8ae   :  { %3599 = vmatpush1.bf16.msra.mxu1 %v9174_v34  ;;  %v9185_v34 = vld [vmem:[%s14673_s23 + $0xa4] ss:$8 sps:$4 sm:$0xff]  }
 0x8af   :  { %3600 = vmatprep.subr.bf16.mxu1 %v9175_v36  ;;  %v9186_v36 = vld [vmem:[%s14673_s23 + $0xa0] ss:$8 sps:$4 sm:$0xff]  }
 0x8b2   :  { %3601 = vmatpush1.bf16.msra.mxu1 %v9176_v37  ;;  %v9187_v37 = vld [vmem:[%s14673_s23 + $0xb4] ss:$8 sps:$4 sm:$0xff]  }
 0x8b3   :  { %3602 = vmatprep.subr.bf16.mxu1 %v9177_v31  ;;  %v9188_v31 = vld [vmem:[%s14673_s23 + $0xb0] ss:$8 sps:$4 sm:$0xff]  }
 0x8b6   :  { %3603 = vmatpush1.bf16.msra.mxu1 %v9178_v33  ;;  %v9189_v33 = vld [vmem:[%s14673_s23 + $0xc4] ss:$8 sps:$4 sm:$0xff]  }
 0x8b7   :  { %3604 = vmatprep.subr.bf16.mxu1 %v9179_v29  ;;  %v9190_v29 = vld [vmem:[%s14673_s23 + $0xc0] ss:$8 sps:$4 sm:$0xff]  }
 0x8ba   :  { %3605 = vmatpush1.bf16.msra.mxu1 %v9180_v27  ;;  %v9191_v27 = vld [vmem:[%s14673_s23 + $0xd4] ss:$8 sps:$4 sm:$0xff]  }
 0x8bb   :  { %3606 = vmatprep.subr.bf16.mxu1 %v9181_v28  ;;  %v9192_v28 = vld [vmem:[%s14673_s23 + $0xd0] ss:$8 sps:$4 sm:$0xff]  }
 0x8be   :  { %3607 = vmatpush1.bf16.msra.mxu1 %v9182_v30  ;;  %v9193_v30 = vld [vmem:[%s14673_s23 + $0xe4] ss:$8 sps:$4 sm:$0xff]  }
 0x8bf   :  { %3608 = vmatprep.subr.bf16.mxu1 %v9183_v32  ;;  %v9194_v32 = vld [vmem:[%s14673_s23 + $0xe0] ss:$8 sps:$4 sm:$0xff]  }
 0x8c2   :  { %3609 = vmatpush1.bf16.msra.mxu1 %v9184_v20  ;;  %v9195_v20 = vld [vmem:[%s14673_s23 + $0xf4] ss:$8 sps:$4 sm:$0xff]  }
 0x8c3   :  { %3610 = vmatprep.subr.bf16.mxu1 %v9185_v34  ;;  %v12665_v34 = vrot.slane %v12563_v23, %v9493_v16  ;;  %v9198_v23 = vld [vmem:[%s14673_s23 + $0x100] ss:$8 sps:$4 sm:$0xff]  }
 0x8c6   :  { %3611 = vmatpush1.bf16.msra.mxu1 %v9186_v36  ;;  %v9196_v36 = vld [vmem:[%s14673_s23 + $0xf0] ss:$8 sps:$4 sm:$0xff]  }
 0x8c7   :  { %3612 = vmatprep.subr.bf16.mxu1 %v9187_v37  ;;  %v3523_v37 = vcombine.high %v12570_v61, %v12570_v61  ;;  %v9200_v61 = vld [vmem:[%s14673_s23 + $0x110] ss:$8 sps:$4 sm:$0xff]  }
 0x8ca   :  { %3613 = vmatpush1.bf16.msra.mxu1 %v9188_v31  ;;  %v9197_v31 = vld [vmem:[%s14673_s23 + $0x104] ss:$8 sps:$4 sm:$0xff]  }
 0x8cb   :  { %3614 = vmatprep.subr.bf16.mxu1 %v9189_v33  ;;  %v9199_v33 = vld [vmem:[%s14673_s23 + $0x114] ss:$8 sps:$4 sm:$0xff]  }
 0x8ce   :  { %3615 = vmatpush1.bf16.msra.mxu1 %v9190_v29  ;;  %v9201_v29 = vld [vmem:[%s14673_s23 + $0x124] ss:$8 sps:$4 sm:$0xff]  }
 0x8cf   :  { %3616 = vmatprep.subr.bf16.mxu1 %v9191_v27  ;;  %v9202_v27 = vld [vmem:[%s14673_s23 + $0x120] ss:$8 sps:$4 sm:$0xff]  }
 0x8d2   :  { %3617 = vmatpush1.bf16.msra.mxu1 %v9192_v28  ;;  %v9203_v28 = vld [vmem:[%s14673_s23 + $0x134] ss:$8 sps:$4 sm:$0xff]  }
 0x8d3   :  { %3618 = vmatprep.subr.bf16.mxu1 %v9193_v30  ;;  %v9204_v30 = vld [vmem:[%s14673_s23 + $0x130] ss:$8 sps:$4 sm:$0xff]  }
 0x8d6   :  { %3619 = vmatpush1.bf16.msra.mxu1 %v9194_v32  ;;  %v9205_v32 = vld [vmem:[%s14673_s23 + $0x144] ss:$8 sps:$4 sm:$0xff]  }
 0x8d7   :  { %3620 = vmatprep.subr.bf16.mxu1 %v9195_v20  ;;  %v9206_v20 = vld [vmem:[%s14673_s23 + $0x140] ss:$8 sps:$4 sm:$0xff]  }
 0x8da   :  { %3621 = vmatpush1.bf16.msra.mxu1 %v9196_v36  ;;  %v9207_v36 = vld [vmem:[%s14673_s23 + $0x154] ss:$8 sps:$4 sm:$0xff]  }
 0x8db   :  { %3631 = vmatprep.subr.bf16.mxu1 %v9197_v31  ;;  %v9209_v31 = vld [vmem:[%s14673_s23 + $0x164] ss:$8 sps:$4 sm:$0xff]  }
 0x8dd   :  { %3623 = vmatmul.mubr.bf16.vlgmr.msra.gmra.mrb[12].mxu1 %v12665_v34 }
 0x8de   :  { %3632 = vmatpush1.bf16.msra.mxu1 %v9198_v23  ;;  %3663 = vmatprep.mubr.bf16.mxu1 %v3523_v37  ;;  %v9208_v37 = vld [vmem:[%s14673_s23 + $0x150] ss:$8 sps:$4 sm:$0xff]   ;;  %v9210_v23 = vld [vmem:[%s14673_s23 + $0x160] ss:$8 sps:$4 sm:$0xff]  }
 0x8df   :  { %3633 = vmatprep.subr.bf16.mxu1 %v9199_v33  ;;  %v9211_v33 = vld [vmem:[%s14673_s23 + $0x174] ss:$8 sps:$4 sm:$0xff]  }
 0x8e2   :  { %3634 = vmatpush1.bf16.msra.mxu1 %v9200_v61  ;;  %v9212_v61 = vld [vmem:[%s14673_s23 + $0x170] ss:$8 sps:$4 sm:$0xff]  }
 0x8e3   :  { %3635 = vmatprep.subr.bf16.mxu1 %v9201_v29  ;;  %v9213_v29 = vld [vmem:[%s14673_s23 + $0x184] ss:$8 sps:$4 sm:$0xff]  }
 0x8e6   :  { %3636 = vmatpush1.bf16.msra.mxu1 %v9202_v27  ;;  %v9214_v27 = vld [vmem:[%s14673_s23 + $0x180] ss:$8 sps:$4 sm:$0xff]  }
 0x8e7   :  { %3637 = vmatprep.subr.bf16.mxu1 %v9203_v28  ;;  %v9215_v28 = vld [vmem:[%s14673_s23 + $0x194] ss:$8 sps:$4 sm:$0xff]  }
 0x8ea   :  { %3638 = vmatpush1.bf16.msra.mxu1 %v9204_v30  ;;  %v9216_v30 = vld [vmem:[%s14673_s23 + $0x190] ss:$8 sps:$4 sm:$0xff]  }
 0x8eb   :  { %3639 = vmatprep.subr.bf16.mxu1 %v9205_v32  ;;  %v9217_v32 = vld [vmem:[%s14673_s23 + $0x1a4] ss:$8 sps:$4 sm:$0xff]  }
 0x8ee   :  { %3640 = vmatpush1.bf16.msra.mxu1 %v9206_v20  ;;  %v9218_v20 = vld [vmem:[%s14673_s23 + $0x1a0] ss:$8 sps:$4 sm:$0xff]  }
 0x8ef   :  { %3641 = vmatprep.subr.bf16.mxu1 %v9207_v36  ;;  %v9219_v36 = vld [vmem:[%s14673_s23 + $0x1b4] ss:$8 sps:$4 sm:$0xff]  }
 0x8f2   :  { %3642 = vmatpush1.bf16.msra.mxu1 %v9208_v37  ;;  %v9220_v37 = vld [vmem:[%s14673_s23 + $0x1b0] ss:$8 sps:$4 sm:$0xff]  }
 0x8f3   :  { %3643 = vmatprep.subr.bf16.mxu1 %v9209_v31  ;;  %v9221_v31 = vld [vmem:[%s14673_s23 + $0x1c4] ss:$8 sps:$4 sm:$0xff]  }
 0x8f6   :  { %3644 = vmatpush1.bf16.msra.mxu1 %v9210_v23  ;;  %v9222_v23 = vld [vmem:[%s14673_s23 + $0x1c0] ss:$8 sps:$4 sm:$0xff]  }
 0x8f7   :  { %3645 = vmatprep.subr.bf16.mxu1 %v9211_v33  ;;  %v3476_v33 = vcombine.high %v12559_v59, %v12559_v59  ;;  %v9226_v59 = vld [vmem:[%s14673_s23 + $0x1e0] ss:$8 sps:$4 sm:$0xff]  }
 0x8fa   :  { %3646 = vmatpush1.bf16.msra.mxu1 %v9212_v61  ;;  %v9223_v61 = vld [vmem:[%s14673_s23 + $0x1d4] ss:$8 sps:$4 sm:$0xff]  }
 0x8fb   :  { %3647 = vmatprep.subr.bf16.mxu1 %v9213_v29  ;;  %v9224_v29 = vld [vmem:[%s14673_s23 + $0x1d0] ss:$8 sps:$4 sm:$0xff]  }
 0x8fe   :  { %3648 = vmatpush1.bf16.msra.mxu1 %v9214_v27  ;;  %v12760_v27 = vrot.slane %v3476_v33, %v9493_v16  ;;  %v9232_v33 = vld [vmem:[%s14673_s23 + $0x210] ss:$8 sps:$4 sm:$0xff]  }
 0x8ff   :  { %3649 = vmatprep.subr.bf16.mxu1 %v9215_v28  ;;  %v9225_v28 = vld [vmem:[%s14673_s23 + $0x1e4] ss:$8 sps:$4 sm:$0xff]  }
 0x902   :  { %3650 = vmatpush1.bf16.msra.mxu1 %v9216_v30  ;;  %v3492_v30 = vcombine.high %v12760_v27, %v12760_v27 }
 0x903   :  { %3651 = vmatprep.subr.bf16.mxu1 %v9217_v32  ;;  %v9227_v32 = vld [vmem:[%s14673_s23 + $0x1f4] ss:$8 sps:$4 sm:$0xff]  }
 0x906   :  { %3652 = vmatpush1.bf16.msra.mxu1 %v9218_v20  ;;  %v3521_v20 = vcombine.high %v12665_v34, %v12665_v34  ;;  %v9231_v34 = vld [vmem:[%s14673_s23 + $0x214] ss:$8 sps:$4 sm:$0xff]  }
 0x907   :  { %3653 = vmatprep.subr.bf16.mxu1 %v9219_v36  ;;  %v9228_v36 = vld [vmem:[%s14673_s23 + $0x1f0] ss:$8 sps:$4 sm:$0xff]  }
 0x90a   :  { %3654 = vmatpush1.bf16.msra.mxu1 %v9220_v37  ;;  %v12779_v37 = vrot.slane %v3492_v30, %v9493_v16  ;;  %v9237_v30 = vld [vmem:[%s14673_s23 + $0x244] ss:$8 sps:$4 sm:$0xff]  }
 0x90b   :  { %3655 = vmatprep.subr.bf16.mxu1 %v9221_v31  ;;  %v9229_v31 = vld [vmem:[%s14673_s23 + $0x204] ss:$8 sps:$4 sm:$0xff]  }
 0x90e   :  { %3656 = vmatpush1.bf16.msra.mxu1 %v9222_v23  ;;  %v9230_v23 = vld [vmem:[%s14673_s23 + $0x200] ss:$8 sps:$4 sm:$0xff]  }
 0x90f   :  { %3657 = vmatprep.subr.bf16.mxu1 %v9223_v61  ;;  %v9233_v61 = vld [vmem:[%s14673_s23 + $0x224] ss:$8 sps:$4 sm:$0xff]  }
 0x912   :  { %3658 = vmatpush1.bf16.msra.mxu1 %v9224_v29  ;;  %v9234_v29 = vld [vmem:[%s14673_s23 + $0x220] ss:$8 sps:$4 sm:$0xff]  }
 0x913   :  { %3659 = vmatprep.subr.bf16.mxu1 %v9225_v28  ;;  %v9235_v28 = vld [vmem:[%s14673_s23 + $0x234] ss:$8 sps:$4 sm:$0xff]  }
 0x916   :  { %3660 = vmatpush1.bf16.msra.mxu1 %v9226_v59  ;;  %v9236_v59 = vld [vmem:[%s14673_s23 + $0x230] ss:$8 sps:$4 sm:$0xff]  }
 0x917   :  { %3661 = vmatprep.subr.bf16.mxu1 %v9227_v32  ;;  %v9238_v32 = vld [vmem:[%s14673_s23 + $0x240] ss:$8 sps:$4 sm:$0xff]  }
 0x91a   :  { %3662 = vmatpush1.bf16.msra.mxu1 %v9228_v36  ;;  %v9240_v36 = vld [vmem:[%s14673_s23 + $0x250] ss:$8 sps:$4 sm:$0xff]  }
 0x91b   :  { %3672 = vmatprep.subr.bf16.mxu1 %v9229_v31  ;;  %v9241_v31 = vld [vmem:[%s14673_s23 + $0x264] ss:$8 sps:$4 sm:$0xff]  }
 0x91d   :  { %3664 = vmatmul.mubr.bf16.vlgmr.msra.gmra.mrb[12].mxu1 %v3521_v20  ;;  %v9239_v20 = vld [vmem:[%s14673_s23 + $0x254] ss:$8 sps:$4 sm:$0xff]  }
 0x91e   :  { %3673 = vmatpush1.bf16.msra.mxu1 %v9230_v23  ;;  %3704 = vmatprep.mubr.bf16.mxu1 %v12779_v37  ;;  %v9242_v23 = vld [vmem:[%s14673_s23 + $0x260] ss:$8 sps:$4 sm:$0xff]  }
 0x91f   :  { %3674 = vmatprep.subr.bf16.mxu1 %v9231_v34  ;;  %v9243_v34 = vld [vmem:[%s14673_s23 + $0x274] ss:$8 sps:$4 sm:$0xff]  }
 0x922   :  { %3675 = vmatpush1.bf16.msra.mxu1 %v9232_v33  ;;  %v9244_v33 = vld [vmem:[%s14673_s23 + $0x270] ss:$8 sps:$4 sm:$0xff]  }
 0x923   :  { %3676 = vmatprep.subr.bf16.mxu1 %v9233_v61  ;;  %v9245_v61 = vld [vmem:[%s14673_s23 + $0x284] ss:$8 sps:$4 sm:$0xff]  }
 0x926   :  { %3677 = vmatpush1.bf16.msra.mxu1 %v9234_v29  ;;  %v9246_v29 = vld [vmem:[%s14673_s23 + $0x280] ss:$8 sps:$4 sm:$0xff]  }
 0x927   :  { %3678 = vmatprep.subr.bf16.mxu1 %v9235_v28  ;;  %v9247_v28 = vld [vmem:[%s14673_s23 + $0x294] ss:$8 sps:$4 sm:$0xff]  }
 0x92a   :  { %3679 = vmatpush1.bf16.msra.mxu1 %v9236_v59  ;;  %v9248_v59 = vld [vmem:[%s14673_s23 + $0x290] ss:$8 sps:$4 sm:$0xff]  }
 0x92b   :  { %3680 = vmatprep.subr.bf16.mxu1 %v9237_v30  ;;  %v9249_v30 = vld [vmem:[%s14673_s23 + $0x2a4] ss:$8 sps:$4 sm:$0xff]  }
 0x92e   :  { %3681 = vmatpush1.bf16.msra.mxu1 %v9238_v32  ;;  %v9250_v32 = vld [vmem:[%s14673_s23 + $0x2a0] ss:$8 sps:$4 sm:$0xff]  }
 0x92f   :  { %3682 = vmatprep.subr.bf16.mxu1 %v9239_v20  ;;  %v9251_v20 = vld [vmem:[%s14673_s23 + $0x2b4] ss:$8 sps:$4 sm:$0xff]  }
 0x932   :  { %3683 = vmatpush1.bf16.msra.mxu1 %v9240_v36  ;;  %v9252_v36 = vld [vmem:[%s14673_s23 + $0x2b0] ss:$8 sps:$4 sm:$0xff]  }
 0x933   :  { %3684 = vmatprep.subr.bf16.mxu1 %v9241_v31  ;;  %v9253_v31 = vld [vmem:[%s14673_s23 + $0x2c4] ss:$8 sps:$4 sm:$0xff]  }
 0x936   :  { %3685 = vmatpush1.bf16.msra.mxu1 %v9242_v23  ;;  %v9254_v23 = vld [vmem:[%s14673_s23 + $0x2c0] ss:$8 sps:$4 sm:$0xff]  }
 0x937   :  { %3686 = vmatprep.subr.bf16.mxu1 %v9243_v34  ;;  %v9255_v34 = vld [vmem:[%s14673_s23 + $0x2d4] ss:$8 sps:$4 sm:$0xff]  }
 0x93a   :  { %3687 = vmatpush1.bf16.msra.mxu1 %v9244_v33  ;;  %v9256_v33 = vld [vmem:[%s14673_s23 + $0x2d0] ss:$8 sps:$4 sm:$0xff]  }
 0x93b   :  { %3688 = vmatprep.subr.bf16.mxu1 %v9245_v61  ;;  %v9257_v61 = vld [vmem:[%s14673_s23 + $0x2e4] ss:$8 sps:$4 sm:$0xff]  }
 0x93e   :  { %3689 = vmatpush1.bf16.msra.mxu1 %v9246_v29  ;;  %v9258_v29 = vld [vmem:[%s14673_s23 + $0x2e0] ss:$8 sps:$4 sm:$0xff]  }
 0x93f   :  { %3690 = vmatprep.subr.bf16.mxu1 %v9247_v28  ;;  %v9259_v28 = vld [vmem:[%s14673_s23 + $0x2f4] ss:$8 sps:$4 sm:$0xff]  }
 0x942   :  { %3691 = vmatpush1.bf16.msra.mxu1 %v9248_v59  ;;  %v12877_v59 = vrot.slane %v12760_v27, %v9493_v16  ;;  %v9262_v27 = vld [vmem:[%s14673_s23 + $0x300] ss:$8 sps:$4 sm:$0xff]  }
 0x943   :  { %3692 = vmatprep.subr.bf16.mxu1 %v9249_v30  ;;  %v9260_v30 = vld [vmem:[%s14673_s23 + $0x2f0] ss:$8 sps:$4 sm:$0xff]  }
 0x946   :  { %3693 = vmatpush1.bf16.msra.mxu1 %v9250_v32  ;;  %v3524_v32 = vcombine.high %v12779_v37, %v12779_v37  ;;  %v9264_v37 = vld [vmem:[%s14673_s23 + $0x310] ss:$8 sps:$4 sm:$0xff]  }
 0x947   :  { %3694 = vmatprep.subr.bf16.mxu1 %v9251_v20  ;;  %v9261_v20 = vld [vmem:[%s14673_s23 + $0x304] ss:$8 sps:$4 sm:$0xff]  }
 0x94a   :  { %3695 = vmatpush1.bf16.msra.mxu1 %v9252_v36  ;;  %v9263_v36 = vld [vmem:[%s14673_s23 + $0x314] ss:$8 sps:$4 sm:$0xff]  }
 0x94b   :  { %3696 = vmatprep.subr.bf16.mxu1 %v9253_v31  ;;  %v9265_v31 = vld [vmem:[%s14673_s23 + $0x324] ss:$8 sps:$4 sm:$0xff]  }
 0x94e   :  { %3697 = vmatpush1.bf16.msra.mxu1 %v9254_v23  ;;  %v9266_v23 = vld [vmem:[%s14673_s23 + $0x320] ss:$8 sps:$4 sm:$0xff]  }
 0x94f   :  { %3698 = vmatprep.subr.bf16.mxu1 %v9255_v34  ;;  %v9267_v34 = vld [vmem:[%s14673_s23 + $0x334] ss:$8 sps:$4 sm:$0xff]  }
 0x952   :  { %3699 = vmatpush1.bf16.msra.mxu1 %v9256_v33  ;;  %v9268_v33 = vld [vmem:[%s14673_s23 + $0x330] ss:$8 sps:$4 sm:$0xff]  }
 0x953   :  { %3700 = vmatprep.subr.bf16.mxu1 %v9257_v61  ;;  %v9269_v61 = vld [vmem:[%s14673_s23 + $0x344] ss:$8 sps:$4 sm:$0xff]  }
 0x956   :  { %3701 = vmatpush1.bf16.msra.mxu1 %v9258_v29  ;;  %v9270_v29 = vld [vmem:[%s14673_s23 + $0x340] ss:$8 sps:$4 sm:$0xff]  }
 0x957   :  { %3702 = vmatprep.subr.bf16.mxu1 %v9259_v28  ;;  %v9271_v28 = vld [vmem:[%s14673_s23 + $0x354] ss:$8 sps:$4 sm:$0xff]  }
 0x95a   :  { %3703 = vmatpush1.bf16.msra.mxu1 %v9260_v30 }
 0x95b   :  { %3713 = vmatprep.subr.bf16.mxu1 %v9261_v20 }
 0x95d   :  { %3705 = vmatmul.mubr.bf16.vlgmr.msra.gmra.mrb[12].mxu1 %v12877_v59 }
 0x95e   :  { %3714 = vmatpush1.bf16.msra.mxu1 %v9262_v27  ;;  %3745 = vmatprep.mubr.bf16.mxu1 %v3524_v32  ;;  %v9272_v27 = vld [vmem:[%s14673_s23 + $0x350] ss:$8 sps:$4 sm:$0xff]  }
 0x95f   :  { %3715 = vmatprep.subr.bf16.mxu1 %v9263_v36 }
 0x962   :  { %3716 = vmatpush1.bf16.msra.mxu1 %v9264_v37 }
 0x963   :  { %3717 = vmatprep.subr.bf16.mxu1 %v9265_v31  ;;  %v9273_v31 = vld [vmem:[%s14673_s23 + $0x364] ss:$8 sps:$4 sm:$0xff]  }
 0x966   :  { %3718 = vmatpush1.bf16.msra.mxu1 %v9266_v23 }
 0x967   :  { %3719 = vmatprep.subr.bf16.mxu1 %v9267_v34  ;;  %v9274_v34 = vld [vmem:[%s14673_s23 + $0x360] ss:$8 sps:$4 sm:$0xff]  }
 0x96a   :  { %3720 = vmatpush1.bf16.msra.mxu1 %v9268_v33  ;;  %v9275_v33 = vld [vmem:[%s14673_s23 + $0x374] ss:$8 sps:$4 sm:$0xff]  }
 0x96b   :  { %3721 = vmatprep.subr.bf16.mxu1 %v9269_v61  ;;  %v9276_v61 = vld [vmem:[%s14673_s23 + $0x370] ss:$8 sps:$4 sm:$0xff]  }
 0x96e   :  { %3722 = vmatpush1.bf16.msra.mxu1 %v9270_v29  ;;  %v9278_v29 = vld [vmem:[%s14673_s23 + $0x380] ss:$8 sps:$4 sm:$0xff]  }
 0x96f   :  { %3723 = vmatprep.subr.bf16.mxu1 %v9271_v28  ;;  %v9279_v28 = vld [vmem:[%s14673_s23 + $0x394] ss:$8 sps:$4 sm:$0xff]  }
 0x970   :  { %v7811_v30 = vpop.f32.mrb[8].mxu1 }
 0x971   :  { %v7812_v32 = vpop.f32.mrb[9].mxu1 }
 0x972   :  { %v7813_v20 = vadd.f32 %v7812_v32, %v7811_v30  ;;  %3724 = vmatpush1.bf16.msra.mxu1 %v9272_v27  ;;  %v7814_v36 = vpop.f32.mrb[10].mxu1  ;;  %v9280_v30 = vld [vmem:[%s14673_s23 + $0x390] ss:$8 sps:$4 sm:$0xff]   ;;  %v9281_v32 = vld [vmem:[%s14673_s23 + $0x3a4] ss:$8 sps:$4 sm:$0xff]  }
 0x973   :  { %v7815_v37 = vpop.f32.mrb[11].mxu1  ;;  %3725 = vmatprep.subr.bf16.mxu1 %v9273_v31  ;;  %v9283_v27 = vld [vmem:[%s14673_s23 + $0x3b4] ss:$8 sps:$4 sm:$0xff]   ;;  %v9284_v36 = vld [vmem:[%s14673_s23 + $0x3b0] ss:$8 sps:$4 sm:$0xff]  }
 0x974   :  { %v12925_v23 = vadd.f32 %v7813_v20, %v12067_v35  ;;  %v9277_v35 = vld [vmem:[%s14673_s23 + $0x384] ss:$8 sps:$4 sm:$0xff]   ;;  %v9282_v20 = vld [vmem:[%s14673_s23 + $0x3a0] ss:$8 sps:$4 sm:$0xff]  }
 0x975   :  { %v9285_v37 = vld [vmem:[%s14673_s23 + $0x3c4] ss:$8 sps:$4 sm:$0xff]   ;;  %v9286_v31 = vld [vmem:[%s14673_s23 + $0x3c0] ss:$8 sps:$4 sm:$0xff]  }
 0x976   :  { %3726 = vmatpush1.bf16.msra.mxu1 %v9274_v34  ;;  %v9287_v34 = vld [vmem:[%s14673_s23 + $0x3d4] ss:$8 sps:$4 sm:$0xff]  }
 0x977   :  { %3727 = vmatprep.subr.bf16.mxu1 %v9275_v33  ;;  %v12972_v33 = vld [vmem:[%s14443_s0 + $0x38] sm:$0xff] }
 0x97a   :  { %3728 = vmatpush1.bf16.msra.mxu1 %v9276_v61  ;;  %v9288_v61 = vld [vmem:[%s14673_s23 + $0x3d0] ss:$8 sps:$4 sm:$0xff]  }
 0x97b   :  { %3729 = vmatprep.subr.bf16.mxu1 %v9277_v35  ;;  %v12979_v35 = vrot.slane %v12972_v33, %v9493_v16 }
 0x97e   :  { %3730 = vmatpush1.bf16.msra.mxu1 %v9278_v29  ;;  %v9289_v29 = vld [vmem:[%s14673_s23 + $0x3e4] ss:$8 sps:$4 sm:$0xff]  }
 0x97f   :  { %3731 = vmatprep.subr.bf16.mxu1 %v9279_v28  ;;  %v9290_v28 = vld [vmem:[%s14673_s23 + $0x3e0] ss:$8 sps:$4 sm:$0xff]  }
 0x982   :  { %3732 = vmatpush1.bf16.msra.mxu1 %v9280_v30  ;;  %v3540_v30 = vcombine.high %v12979_v35, %v12979_v35 }
 0x983   :  { %3733 = vmatprep.subr.bf16.mxu1 %v9281_v32  ;;  %v9291_v32 = vld [vmem:[%s14673_s23 + $0x3f4] ss:$8 sps:$4 sm:$0xff]  }
 0x986   :  { %3734 = vmatpush1.bf16.msra.mxu1 %v9282_v20  ;;  %v3522_v20 = vcombine.high %v12877_v59, %v12877_v59  ;;  %v9295_v59 = vld [vmem:[%s14673_s23 + $0x414] ss:$8 sps:$4 sm:$0xff]  }
 0x987   :  { %3735 = vmatprep.subr.bf16.mxu1 %v9283_v27  ;;  %v9292_v27 = vld [vmem:[%s14673_s23 + $0x3f0] ss:$8 sps:$4 sm:$0xff]  }
 0x98a   :  { %3736 = vmatpush1.bf16.msra.mxu1 %v9284_v36  ;;  %v12998_v36 = vrot.slane %v3540_v30, %v9493_v16  ;;  %v9300_v30 = vld [vmem:[%s14673_s23 + $0x430] ss:$8 sps:$4 sm:$0xff]  }
 0x98b   :  { %3737 = vmatprep.subr.bf16.mxu1 %v9285_v37  ;;  %v9293_v37 = vld [vmem:[%s14673_s23 + $0x404] ss:$8 sps:$4 sm:$0xff]  }
 0x98e   :  { %3738 = vmatpush1.bf16.msra.mxu1 %v9286_v31  ;;  %v9294_v31 = vld [vmem:[%s14673_s23 + $0x400] ss:$8 sps:$4 sm:$0xff]  }
 0x98f   :  { %3739 = vmatprep.subr.bf16.mxu1 %v9287_v34  ;;  %v9296_v34 = vld [vmem:[%s14673_s23 + $0x410] ss:$8 sps:$4 sm:$0xff]  }
 0x992   :  { %3740 = vmatpush1.bf16.msra.mxu1 %v9288_v61  ;;  %v9297_v61 = vld [vmem:[%s14673_s23 + $0x424] ss:$8 sps:$4 sm:$0xff]  }
 0x993   :  { %3741 = vmatprep.subr.bf16.mxu1 %v9289_v29  ;;  %v9298_v29 = vld [vmem:[%s14673_s23 + $0x420] ss:$8 sps:$4 sm:$0xff]  }
 0x996   :  { %3742 = vmatpush1.bf16.msra.mxu1 %v9290_v28  ;;  %v9299_v28 = vld [vmem:[%s14673_s23 + $0x434] ss:$8 sps:$4 sm:$0xff]  }
 0x997   :  { %3743 = vmatprep.subr.bf16.mxu1 %v9291_v32  ;;  %v9301_v32 = vld [vmem:[%s14673_s23 + $0x444] ss:$8 sps:$4 sm:$0xff]  }
 0x99a   :  { %3744 = vmatpush1.bf16.msra.mxu1 %v9292_v27  ;;  %v9303_v27 = vld [vmem:[%s14673_s23 + $0x454] ss:$8 sps:$4 sm:$0xff]  }
 0x99b   :  { %3754 = vmatprep.subr.bf16.mxu1 %v9293_v37  ;;  %v9304_v37 = vld [vmem:[%s14673_s23 + $0x450] ss:$8 sps:$4 sm:$0xff]  }
 0x99d   :  { %3746 = vmatmul.mubr.bf16.vlgmr.msra.gmra.mrb[12].mxu1 %v3522_v20  ;;  %v9302_v20 = vld [vmem:[%s14673_s23 + $0x440] ss:$8 sps:$4 sm:$0xff]  }
 0x99e   :  { %3755 = vmatpush1.bf16.msra.mxu1 %v9294_v31  ;;  %3786 = vmatprep.mubr.bf16.mxu1 %v12998_v36  ;;  %v9305_v31 = vld [vmem:[%s14673_s23 + $0x464] ss:$8 sps:$4 sm:$0xff]  }
 0x99f   :  { %3756 = vmatprep.subr.bf16.mxu1 %v9295_v59  ;;  %v9306_v59 = vld [vmem:[%s14673_s23 + $0x460] ss:$8 sps:$4 sm:$0xff]  }
 0x9a2   :  { %3757 = vmatpush1.bf16.msra.mxu1 %v9296_v34  ;;  %v9307_v34 = vld [vmem:[%s14673_s23 + $0x474] ss:$8 sps:$4 sm:$0xff]  }
 0x9a3   :  { %3758 = vmatprep.subr.bf16.mxu1 %v9297_v61  ;;  %v9308_v61 = vld [vmem:[%s14673_s23 + $0x470] ss:$8 sps:$4 sm:$0xff]  }
 0x9a6   :  { %3759 = vmatpush1.bf16.msra.mxu1 %v9298_v29  ;;  %v9309_v29 = vld [vmem:[%s14673_s23 + $0x484] ss:$8 sps:$4 sm:$0xff]  }
 0x9a7   :  { %3760 = vmatprep.subr.bf16.mxu1 %v9299_v28  ;;  %v9310_v28 = vld [vmem:[%s14673_s23 + $0x480] ss:$8 sps:$4 sm:$0xff]  }
 0x9aa   :  { %3761 = vmatpush1.bf16.msra.mxu1 %v9300_v30  ;;  %v9311_v30 = vld [vmem:[%s14673_s23 + $0x494] ss:$8 sps:$4 sm:$0xff]  }
 0x9ab   :  { %3762 = vmatprep.subr.bf16.mxu1 %v9301_v32  ;;  %v9312_v32 = vld [vmem:[%s14673_s23 + $0x490] ss:$8 sps:$4 sm:$0xff]  }
 0x9ae   :  { %3763 = vmatpush1.bf16.msra.mxu1 %v9302_v20  ;;  %v9313_v20 = vld [vmem:[%s14673_s23 + $0x4a4] ss:$8 sps:$4 sm:$0xff]  }
 0x9af   :  { %3764 = vmatprep.subr.bf16.mxu1 %v9303_v27  ;;  %v9314_v27 = vld [vmem:[%s14673_s23 + $0x4a0] ss:$8 sps:$4 sm:$0xff]  }
 0x9b2   :  { %3765 = vmatpush1.bf16.msra.mxu1 %v9304_v37  ;;  %v9315_v37 = vld [vmem:[%s14673_s23 + $0x4b4] ss:$8 sps:$4 sm:$0xff]  }
 0x9b3   :  { %3766 = vmatprep.subr.bf16.mxu1 %v9305_v31  ;;  %v9316_v31 = vld [vmem:[%s14673_s23 + $0x4b0] ss:$8 sps:$4 sm:$0xff]  }
 0x9b6   :  { %3767 = vmatpush1.bf16.msra.mxu1 %v9306_v59  ;;  %v9317_v59 = vld [vmem:[%s14673_s23 + $0x4c4] ss:$8 sps:$4 sm:$0xff]  }
 0x9b7   :  { %3768 = vmatprep.subr.bf16.mxu1 %v9307_v34  ;;  %v9318_v34 = vld [vmem:[%s14673_s23 + $0x4c0] ss:$8 sps:$4 sm:$0xff]  }
 0x9ba   :  { %3769 = vmatpush1.bf16.msra.mxu1 %v9308_v61  ;;  %v9319_v61 = vld [vmem:[%s14673_s23 + $0x4d4] ss:$8 sps:$4 sm:$0xff]  }
 0x9bb   :  { %3770 = vmatprep.subr.bf16.mxu1 %v9309_v29  ;;  %v9320_v29 = vld [vmem:[%s14673_s23 + $0x4d0] ss:$8 sps:$4 sm:$0xff]  }
 0x9be   :  { %3771 = vmatpush1.bf16.msra.mxu1 %v9310_v28  ;;  %v9321_v28 = vld [vmem:[%s14673_s23 + $0x4e4] ss:$8 sps:$4 sm:$0xff]  }
 0x9bf   :  { %3772 = vmatprep.subr.bf16.mxu1 %v9311_v30  ;;  %v9322_v30 = vld [vmem:[%s14673_s23 + $0x4e0] ss:$8 sps:$4 sm:$0xff]  }
 0x9c2   :  { %3773 = vmatpush1.bf16.msra.mxu1 %v9312_v32  ;;  %v9323_v32 = vld [vmem:[%s14673_s23 + $0x4f4] ss:$8 sps:$4 sm:$0xff]  }
 0x9c3   :  { %3774 = vmatprep.subr.bf16.mxu1 %v9313_v20  ;;  %v13096_v20 = vrot.slane %v12979_v35, %v9493_v16  ;;  %v9326_v35 = vld [vmem:[%s14673_s23 + $0x500] ss:$8 sps:$4 sm:$0xff]  }
 0x9c6   :  { %3775 = vmatpush1.bf16.msra.mxu1 %v9314_v27  ;;  %v9324_v27 = vld [vmem:[%s14673_s23 + $0x4f0] ss:$8 sps:$4 sm:$0xff]  }
 0x9c7   :  { %3776 = vmatprep.subr.bf16.mxu1 %v9315_v37  ;;  %v3572_v37 = vcombine.high %v12998_v36, %v12998_v36  ;;  %v9328_v36 = vld [vmem:[%s14673_s23 + $0x510] ss:$8 sps:$4 sm:$0xff]  }
 0x9ca   :  { %3777 = vmatpush1.bf16.msra.mxu1 %v9316_v31  ;;  %v9325_v31 = vld [vmem:[%s14673_s23 + $0x504] ss:$8 sps:$4 sm:$0xff]  }
 0x9cb   :  { %3778 = vmatprep.subr.bf16.mxu1 %v9317_v59  ;;  %v9327_v59 = vld [vmem:[%s14673_s23 + $0x514] ss:$8 sps:$4 sm:$0xff]  }
 0x9ce   :  { %3779 = vmatpush1.bf16.msra.mxu1 %v9318_v34  ;;  %v9329_v34 = vld [vmem:[%s14673_s23 + $0x524] ss:$8 sps:$4 sm:$0xff]  }
 0x9cf   :  { %3780 = vmatprep.subr.bf16.mxu1 %v9319_v61  ;;  %v9330_v61 = vld [vmem:[%s14673_s23 + $0x520] ss:$8 sps:$4 sm:$0xff]  }
 0x9d2   :  { %3781 = vmatpush1.bf16.msra.mxu1 %v9320_v29  ;;  %v9331_v29 = vld [vmem:[%s14673_s23 + $0x534] ss:$8 sps:$4 sm:$0xff]  }
 0x9d3   :  { %3782 = vmatprep.subr.bf16.mxu1 %v9321_v28  ;;  %v9332_v28 = vld [vmem:[%s14673_s23 + $0x530] ss:$8 sps:$4 sm:$0xff]  }
 0x9d6   :  { %3783 = vmatpush1.bf16.msra.mxu1 %v9322_v30  ;;  %v9333_v30 = vld [vmem:[%s14673_s23 + $0x544] ss:$8 sps:$4 sm:$0xff]  }
 0x9d7   :  { %3784 = vmatprep.subr.bf16.mxu1 %v9323_v32  ;;  %v9334_v32 = vld [vmem:[%s14673_s23 + $0x540] ss:$8 sps:$4 sm:$0xff]  }
 0x9da   :  { %3785 = vmatpush1.bf16.msra.mxu1 %v9324_v27  ;;  %v9335_v27 = vld [vmem:[%s14673_s23 + $0x554] ss:$8 sps:$4 sm:$0xff]  }
 0x9db   :  { %3795 = vmatprep.subr.bf16.mxu1 %v9325_v31  ;;  %v9337_v31 = vld [vmem:[%s14673_s23 + $0x564] ss:$8 sps:$4 sm:$0xff]  }
 0x9dd   :  { %3787 = vmatmul.mubr.bf16.vlgmr.msra.gmra.mrb[12].mxu1 %v13096_v20 }
 0x9de   :  { %3796 = vmatpush1.bf16.msra.mxu1 %v9326_v35  ;;  %3827 = vmatprep.mubr.bf16.mxu1 %v3572_v37  ;;  %v9336_v37 = vld [vmem:[%s14673_s23 + $0x550] ss:$8 sps:$4 sm:$0xff]   ;;  %v9338_v35 = vld [vmem:[%s14673_s23 + $0x560] ss:$8 sps:$4 sm:$0xff]  }
 0x9df   :  { %3797 = vmatprep.subr.bf16.mxu1 %v9327_v59  ;;  %v9339_v59 = vld [vmem:[%s14673_s23 + $0x574] ss:$8 sps:$4 sm:$0xff]  }
 0x9e2   :  { %3798 = vmatpush1.bf16.msra.mxu1 %v9328_v36  ;;  %v9340_v36 = vld [vmem:[%s14673_s23 + $0x570] ss:$8 sps:$4 sm:$0xff]  }
 0x9e3   :  { %3799 = vmatprep.subr.bf16.mxu1 %v9329_v34  ;;  %v9341_v34 = vld [vmem:[%s14673_s23 + $0x584] ss:$8 sps:$4 sm:$0xff]  }
 0x9e6   :  { %3800 = vmatpush1.bf16.msra.mxu1 %v9330_v61  ;;  %v9342_v61 = vld [vmem:[%s14673_s23 + $0x580] ss:$8 sps:$4 sm:$0xff]  }
 0x9e7   :  { %3801 = vmatprep.subr.bf16.mxu1 %v9331_v29  ;;  %v9343_v29 = vld [vmem:[%s14673_s23 + $0x594] ss:$8 sps:$4 sm:$0xff]  }
 0x9ea   :  { %3802 = vmatpush1.bf16.msra.mxu1 %v9332_v28  ;;  %v9344_v28 = vld [vmem:[%s14673_s23 + $0x590] ss:$8 sps:$4 sm:$0xff]  }
 0x9eb   :  { %3803 = vmatprep.subr.bf16.mxu1 %v9333_v30  ;;  %v9345_v30 = vld [vmem:[%s14673_s23 + $0x5a4] ss:$8 sps:$4 sm:$0xff]  }
 0x9ee   :  { %3804 = vmatpush1.bf16.msra.mxu1 %v9334_v32  ;;  %v9346_v32 = vld [vmem:[%s14673_s23 + $0x5a0] ss:$8 sps:$4 sm:$0xff]  }
 0x9ef   :  { %3805 = vmatprep.subr.bf16.mxu1 %v9335_v27  ;;  %v9347_v27 = vld [vmem:[%s14673_s23 + $0x5b4] ss:$8 sps:$4 sm:$0xff]  }
 0x9f2   :  { %3806 = vmatpush1.bf16.msra.mxu1 %v9336_v37  ;;  %v9348_v37 = vld [vmem:[%s14673_s23 + $0x5b0] ss:$8 sps:$4 sm:$0xff]  }
 0x9f3   :  { %3807 = vmatprep.subr.bf16.mxu1 %v9337_v31  ;;  %v9349_v31 = vld [vmem:[%s14673_s23 + $0x5c4] ss:$8 sps:$4 sm:$0xff]  }
 0x9f6   :  { %3808 = vmatpush1.bf16.msra.mxu1 %v9338_v35  ;;  %v9350_v35 = vld [vmem:[%s14673_s23 + $0x5c0] ss:$8 sps:$4 sm:$0xff]  }
 0x9f7   :  { %3809 = vmatprep.subr.bf16.mxu1 %v9339_v59  ;;  %v3525_v59 = vcombine.high %v12972_v33, %v12972_v33  ;;  %v9354_v33 = vld [vmem:[%s14673_s23 + $0x5e0] ss:$8 sps:$4 sm:$0xff]  }
 0x9fa   :  { %3810 = vmatpush1.bf16.msra.mxu1 %v9340_v36  ;;  %v9351_v36 = vld [vmem:[%s14673_s23 + $0x5d4] ss:$8 sps:$4 sm:$0xff]  }
 0x9fb   :  { %3811 = vmatprep.subr.bf16.mxu1 %v9341_v34  ;;  %v9352_v34 = vld [vmem:[%s14673_s23 + $0x5d0] ss:$8 sps:$4 sm:$0xff]  }
 0x9fe   :  { %3812 = vmatpush1.bf16.msra.mxu1 %v9342_v61  ;;  %v13191_v61 = vrot.slane %v3525_v59, %v9493_v16  ;;  %v8475_v59 = vld [vmem:[%s14444_s3 + $0x1c8] sm:$0xff]  }
 0x9ff   :  { %3813 = vmatprep.subr.bf16.mxu1 %v9343_v29  ;;  %v9353_v29 = vld [vmem:[%s14673_s23 + $0x5e4] ss:$8 sps:$4 sm:$0xff]  }
 0xa02   :  { %3814 = vmatpush1.bf16.msra.mxu1 %v9344_v28  ;;  %v3541_v28 = vcombine.high %v13191_v61, %v13191_v61 }
 0xa03   :  { %3815 = vmatprep.subr.bf16.mxu1 %v9345_v30  ;;  %v9355_v30 = vld [vmem:[%s14673_s23 + $0x5f4] ss:$8 sps:$4 sm:$0xff]  }
 0xa06   :  { %3816 = vmatpush1.bf16.msra.mxu1 %v9346_v32  ;;  %v3570_v32 = vcombine.high %v13096_v20, %v13096_v20  ;;  %v8474_v20 = vld [vmem:[%s14444_s3 + $0x180] sm:$0xff]  }
 0xa07   :  { %3817 = vmatprep.subr.bf16.mxu1 %v9347_v27  ;;  %v9356_v27 = vld [vmem:[%s14673_s23 + $0x5f0] ss:$8 sps:$4 sm:$0xff]  }
 0xa0a   :  { %3818 = vmatpush1.bf16.msra.mxu1 %v9348_v37  ;;  %v13210_v37 = vrot.slane %v3541_v28, %v9493_v16  ;;  %v9360_v28 = vld [vmem:[%s14673_s23 + $0x610] ss:$8 sps:$4 sm:$0xff]  }
 0xa0b   :  { %3819 = vmatprep.subr.bf16.mxu1 %v9349_v31  ;;  %v9357_v31 = vld [vmem:[%s14673_s23 + $0x604] ss:$8 sps:$4 sm:$0xff]  }
 0xa0e   :  { %3820 = vmatpush1.bf16.msra.mxu1 %v9350_v35  ;;  %v8473_v35 = vld [vmem:[%s14444_s3 + $0x1c0] sm:$0xff]  }
 0xa0f   :  { %3821 = vmatprep.subr.bf16.mxu1 %v9351_v36  ;;  %v9358_v36 = vld [vmem:[%s14673_s23 + $0x600] ss:$8 sps:$4 sm:$0xff]   ;;  %7817 = vmatprep.subr.bf16.mxu0 %v8473_v35  ;;  %v9363_v35 = vld [vmem:[%s14673_s23 + $0x634] ss:$8 sps:$4 sm:$0xff]  }
 0xa10   :  { %7818 = vmatpush3.bf16.msra.mxu0 %v8474_v20  ;;  %v8480_v20 = vld [vmem:[%s14444_s3 + $0x198] sm:$0xff]  }
 0xa11   :  { %7819 = vmatprep.subr.bf16.mxu0 %v8475_v59  ;;  %v8481_v59 = vld [vmem:[%s14444_s3 + $0x1e0] sm:$0xff]  }
 0xa12   :  { %3822 = vmatpush1.bf16.msra.mxu1 %v9352_v34  ;;  %v9359_v34 = vld [vmem:[%s14673_s23 + $0x614] ss:$8 sps:$4 sm:$0xff]  }
 0xa13   :  { %3823 = vmatprep.subr.bf16.mxu1 %v9353_v29  ;;  %v8476_v29 = vld [vmem:[%s14444_s3 + $0x188] sm:$0xff]  }
 0xa14   :  { %7820 = vmatpush3.bf16.msra.mxu0 %v8476_v29  ;;  %v8482_v29 = vld [vmem:[%s14444_s3 + $0x1a0] sm:$0xff]  }
 0xa16   :  { %3824 = vmatpush1.bf16.msra.mxu1 %v9354_v33  ;;  %v8477_v33 = vld [vmem:[%s14444_s3 + $0x1d0] sm:$0xff]  }
 0xa17   :  { %3825 = vmatprep.subr.bf16.mxu1 %v9355_v30  ;;  %v9361_v30 = vld [vmem:[%s14673_s23 + $0x624] ss:$8 sps:$4 sm:$0xff]   ;;  %7821 = vmatprep.subr.bf16.mxu0 %v8477_v33 }
 0xa18   :  { %v8483_v33 = vld [vmem:[%s14444_s3 + $0x1e8] sm:$0xff]  }
 0xa1a   :  { %3826 = vmatpush1.bf16.msra.mxu1 %v9356_v27  ;;  %v8479_v27 = vld [vmem:[%s14444_s3 + $0x1d8] sm:$0xff]  }
 0xa1b   :  { %3836 = vmatprep.subr.bf16.mxu1 %v9357_v31  ;;  %v9362_v31 = vld [vmem:[%s14673_s23 + $0x620] ss:$8 sps:$4 sm:$0xff]  }
 0xa1d   :  { %3828 = vmatmul.mubr.bf16.vlgmr.msra.gmra.mrb[12].mxu1 %v3570_v32  ;;  %v8478_v32 = vld [vmem:[%s14444_s3 + $0x190] sm:$0xff]  }
 0xa1e   :  { %3837 = vmatpush1.bf16.msra.mxu1 %v9358_v36  ;;  %3868 = vmatprep.mubr.bf16.mxu1 %v13210_v37  ;;  %v9364_v36 = vld [vmem:[%s14673_s23 + $0x630] ss:$8 sps:$4 sm:$0xff]  }
 0xa1f   :  { %3838 = vmatprep.subr.bf16.mxu1 %v9359_v34  ;;  %7822 = vmatpush3.bf16.msra.mxu0 %v8478_v32  ;;  %v9365_v34 = vld [vmem:[%s14673_s23 + $0x644] ss:$8 sps:$4 sm:$0xff]  }
 0xa20   :  { %7823 = vmatprep.subr.bf16.mxu0 %v8479_v27  ;;  %v8484_v32 = vld [vmem:[%s14444_s3 + $0x1a8] sm:$0xff]   ;;  %v9368_v27 = vld [vmem:[%s14673_s23 + $0x650] ss:$8 sps:$4 sm:$0xff]  }
 0xa22   :  { %3839 = vmatpush1.bf16.msra.mxu1 %v9360_v28  ;;  %v9366_v28 = vld [vmem:[%s14673_s23 + $0x640] ss:$8 sps:$4 sm:$0xff]  }
 0xa23   :  { %3840 = vmatprep.subr.bf16.mxu1 %v9361_v30  ;;  %7824 = vmatpush3.bf16.msra.mxu0 %v8480_v20  ;;  %v9367_v30 = vld [vmem:[%s14673_s23 + $0x654] ss:$8 sps:$4 sm:$0xff]  }
 0xa24   :  { %7825 = vmatprep.subr.bf16.mxu0 %v8481_v59  ;;  %v4120_v20 = vld [vmem:[%s14447_s5 + $0xd8] sm:$0xff] }
 0xa26   :  { %3841 = vmatpush1.bf16.msra.mxu1 %v9362_v31  ;;  %v4119_v31 = vld [vmem:[%s14447_s5 + $0xd0] sm:$0xff] }
 0xa27   :  { %3842 = vmatprep.subr.bf16.mxu1 %v9363_v35  ;;  %7826 = vmatpush3.bf16.msra.mxu0 %v8482_v29  ;;  %v4112_v35 = vld [vmem:[%s14447_s5 + $0x98] sm:$0xff] }
 0xa28   :  { %7827 = vmatprep.subr.bf16.mxu0 %v8483_v33 }
 0xa2a   :  { %3843 = vmatpush1.bf16.msra.mxu1 %v9364_v36 }
 0xa2b   :  { %3844 = vmatprep.subr.bf16.mxu1 %v9365_v34  ;;  %7828 = vmatpush3.bf16.msra.mxu0 %v8484_v32  ;;  %v4097_v32 = vld [vmem:[%s14447_s5 + $0x20] sm:$0xff] }
 0xa2e   :  { %3845 = vmatpush1.bf16.msra.mxu1 %v9366_v28 }
 0xa2f   :  { %3846 = vmatprep.subr.bf16.mxu1 %v9367_v30  ;;  %v7443_v30 = vcombine.high %v4112_v35, %v4120_v20 }
 0xa32   :  { %3847 = vmatpush1.bf16.msra.mxu1 %v9368_v27  ;;  %v4105_v27 = vld [vmem:[%s14447_s5 + $0x60] sm:$0xff] }
 0xa33   :  { %3848 = vmatprep.subr.bf16.mxu1 %v12223_v10  ;;  %v3555_v10 = vrot.slane %v13191_v61, %v9493_v16  ;;  %v15085_v16 = vld [vmem:[#allocation4_spill] sm:$0xff] }
 0xa36   :  { %3849 = vmatpush1.bf16.msra.mxu1 %v12229_v57  ;;  %v3573_v57 = vcombine.high %v13210_v37, %v13210_v37  ;;  %v4111_v37 = vld [vmem:[%s14447_s5 + $0x90] sm:$0xff] }
 0xa37   :  { %3850 = vmatprep.subr.bf16.mxu1 %v12235_v52  ;;  %v15086_v52 = vld [vmem:[#allocation5_spill] sm:$0xff]  ;;  %v7441_v28 = vcombine.high %v4111_v37, %v4119_v31 }
 0xa3a   :  { %3851 = vmatpush1.bf16.msra.mxu1 %v12241_v55  ;;  %v15087_v55 = vld [vmem:[#allocation6_spill] sm:$0xff] }
 0xa3b   :  { %3852 = vmatprep.subr.bf16.mxu1 %v12247_v38  ;;  %v15088_v38 = vld [vmem:[#allocation7_spill] sm:$0xff] }
 0xa3e   :  { %3853 = vmatpush1.bf16.msra.mxu1 %v12253_v39  ;;  %v15089_v39 = vld [vmem:[#allocation8_spill] sm:$0xff] }
 0xa3f   :  { %3854 = vmatprep.subr.bf16.mxu1 %v12259_v40  ;;  %v3571_v40 = vcombine.high %v3555_v10, %v3555_v10 }
 0xa42   :  { %3855 = vmatpush1.bf16.msra.mxu1 %v12265_v41  ;;  %v15090_v41 = vld [vmem:[#allocation9_spill] sm:$0xff] }
 0xa43   :  { %3856 = vmatprep.subr.bf16.mxu1 %v12271_v42  ;;  %v8485_v42 = vld [vmem:[%s14444_s3 + $0x1f0] sm:$0xff]  }
 0xa44   :  { %7829 = vmatprep.subr.bf16.mxu0 %v8485_v42  ;;  %v7428_v42 = vcombine.low %v4097_v32, %v4105_v27 }
 0xa46   :  { %3857 = vmatpush1.bf16.msra.mxu1 %v12277_v43  ;;  %v8486_v43 = vld [vmem:[%s14444_s3 + $0x1b0] sm:$0xff]  }
 0xa47   :  { %3858 = vmatprep.subr.bf16.mxu1 %v12283_v44  ;;  %7830 = vmatpush3.bf16.msra.mxu0 %v8486_v43  ;;  %v8487_v44 = vld [vmem:[%s14444_s3 + $0x1f8] sm:$0xff]  }
 0xa48   :  { %7831 = vmatprep.subr.bf16.mxu0 %v8487_v44 }
 0xa4a   :  { %3859 = vmatpush1.bf16.msra.mxu1 %v12289_v45  ;;  %v8488_v45 = vld [vmem:[%s14444_s3 + $0x1b8] sm:$0xff]  }
 0xa4b   :  { %3860 = vmatprep.subr.bf16.mxu1 %v12295_v46  ;;  %7832 = vmatpush3.bf16.msra.mxu0 %v8488_v45  ;;  %v4093_v46 = vld [vmem:[%s14447_s5] sm:$0xff] }
 0xa4e   :  { %3861 = vmatpush1.bf16.msra.mxu1 %v12301_v47  ;;  %v4101_v47 = vld [vmem:[%s14447_s5 + $0x40] sm:$0xff] }
 0xa4f   :  { %3862 = vmatprep.subr.bf16.mxu1 %v12307_v56  ;;  %v7420_v56 = vcombine.low %v4093_v46, %v4101_v47 }
 0xa52   :  { %3863 = vmatpush1.bf16.msra.mxu1 %v12313_v48  ;;  %v7421_v48 = vcombine.high %v4093_v46, %v4101_v47  ;;  %v4099_v46 = vld [vmem:[%s14447_s5 + $0x30] sm:$0xff] }
 0xa53   :  { %3864 = vmatprep.subr.bf16.mxu1 %v12319_v49  ;;  %v4107_v47 = vld [vmem:[%s14447_s5 + $0x70] sm:$0xff] }
 0xa54   :  { %4373 = vmatprep.subr.bf16.mxu0 %v7421_v48  ;;  %v4108_v48 = vld [vmem:[%s14447_s5 + $0x78] sm:$0xff] }
 0xa56   :  { %3865 = vmatpush1.bf16.msra.mxu1 %v12325_v50 }
 0xa57   :  { %3866 = vmatprep.subr.bf16.mxu1 %v12331_v58 }
 0xa5a   :  { %3867 = vmatpush1.bf16.msra.mxu1 %v12341_v21 }
 0xa5b   :  { %3877 = vmatprep.subr.bf16.mxu1 %v12349_v51 }
 0xa5d   :  { %3869 = vmatmul.mubr.bf16.vlgmr.msra.gmra.mrb[12].mxu1 %v3555_v10  ;;  %v4098_v10 = vld [vmem:[%s14447_s5 + $0x28] sm:$0xff] }
 0xa5e   :  { %3878 = vmatpush1.bf16.msra.mxu1 %v12356_v60  ;;  %3909 = vmatprep.mubr.bf16.mxu1 %v3573_v57  ;;  %v7440_v57 = vcombine.low %v4111_v37, %v4119_v31  ;;  %v8528_v37 = vld [vmem:[%s14449_s9 + $0x40] ss:$8 sps:$4 sm:$0xff]   ;;  %v8509_v31 = vld [vmem:[%s14448_s7 + $0x54] ss:$8 sps:$4 sm:$0xff]  }
 0xa5f   :  { %3879 = vmatprep.subr.bf16.mxu1 %v12362_v62 }
 0xa62   :  { %3880 = vmatpush1.bf16.msra.mxu1 %v12368_v63 }
 0xa63   :  { %3881 = vmatprep.subr.bf16.mxu1 %v12374_v0 }
 0xa66   :  { %3882 = vmatpush1.bf16.msra.mxu1 %v12380_v1 }
 0xa67   :  { %3883 = vmatprep.subr.bf16.mxu1 %v12386_v2  ;;  %v4094_v2 = vld [vmem:[%s14447_s5 + $0x8] sm:$0xff] }
 0xa6a   :  { %3884 = vmatpush1.bf16.msra.mxu1 %v12392_v3 }
 0xa6b   :  { %3885 = vmatprep.subr.bf16.mxu1 %v12398_v4 }
 0xa6e   :  { %3886 = vmatpush1.bf16.msra.mxu1 %v12404_v5  ;;  %v4117_v5 = vld [vmem:[%s14447_s5 + $0xc0] sm:$0xff] }
 0xa6f   :  { %3887 = vmatprep.subr.bf16.mxu1 %v12410_v6  ;;  %v4110_v6 = vld [vmem:[%s14447_s5 + $0x88] sm:$0xff] }
 0xa72   :  { %3888 = vmatpush1.bf16.msra.mxu1 %v12416_v7 }
 0xa73   :  { %3889 = vmatprep.subr.bf16.mxu1 %v12422_v8  ;;  %v4118_v8 = vld [vmem:[%s14447_s5 + $0xc8] sm:$0xff] }
 0xa76   :  { %3890 = vmatpush1.bf16.msra.mxu1 %v12428_v9 }
 0xa77   :  { %3891 = vmatprep.subr.bf16.mxu1 %v12434_v11  ;;  %v7438_v11 = vcombine.low %v4110_v6, %v4118_v8 }
 0xa7a   :  { %3892 = vmatpush1.bf16.msra.mxu1 %v12440_v13  ;;  %v7439_v13 = vcombine.high %v4110_v6, %v4118_v8  ;;  %v8489_v6 = vld [vmem:[%s14448_s7] ss:$8 sps:$4 sm:$0xff]   ;;  %v8494_v8 = vld [vmem:[%s14448_s7 + $0x14] ss:$8 sps:$4 sm:$0xff]  }
 0xa7b   :  { %3893 = vmatprep.subr.bf16.mxu1 %v12446_v14  ;;  %v4095_v14 = vld [vmem:[%s14447_s5 + $0x10] sm:$0xff] }
 0xa7e   :  { %3894 = vmatpush1.bf16.msra.mxu1 %v12452_v12  ;;  %v4103_v12 = vld [vmem:[%s14447_s5 + $0x50] sm:$0xff] }
 0xa7f   :  { %3895 = vmatprep.subr.bf16.mxu1 %v12458_v15  ;;  %v4096_v15 = vld [vmem:[%s14447_s5 + $0x18] sm:$0xff] }
 0xa82   :  { %3896 = vmatpush1.bf16.msra.mxu1 %v12464_v17  ;;  %v7425_v17 = vcombine.high %v4095_v14, %v4103_v12 }
 0xa83   :  { %3897 = vmatprep.subr.bf16.mxu1 %v12470_v18  ;;  %v4104_v18 = vld [vmem:[%s14447_s5 + $0x58] sm:$0xff] }
 0xa86   :  { %3898 = vmatpush1.bf16.msra.mxu1 %v12476_v19  ;;  %v9371_v19 = vmov 0  }
 0xa87   :  { %3899 = vmatprep.subr.bf16.mxu1 %v12482_v22  ;;  %v7424_v22 = vcombine.low %v4095_v14, %v4103_v12  ;;  %v8497_v14 = vld [vmem:[%s14448_s7 + $0x24] ss:$8 sps:$4 sm:$0xff]  }
 0xa88   :  { %v8518_v12 = vld [vmem:[%s14449_s9 + $0x24] ss:$8 sps:$4 sm:$0xff]  }
 0xa8a   :  { %3900 = vmatpush1.bf16.msra.mxu1 %v12488_v24  ;;  %v7426_v24 = vcombine.low %v4096_v15, %v4104_v18 }
 0xa8b   :  { %3901 = vmatprep.subr.bf16.mxu1 %v12494_v25  ;;  %v7427_v25 = vcombine.high %v4096_v15, %v4104_v18  ;;  %v8495_v15 = vld [vmem:[%s14448_s7 + $0x20] ss:$8 sps:$4 sm:$0xff]   ;;  %v8500_v18 = vld [vmem:[%s14448_s7 + $0x34] ss:$8 sps:$4 sm:$0xff]  }
 0xa8e   :  { %3902 = vmatpush1.bf16.msra.mxu1 %v12500_v26 }
 0xa8f   :  { %3903 = vmatprep.subr.bf16.mxu1 %v15085_v16  ;;  %v7442_v16 = vcombine.low %v4112_v35, %v4120_v20  ;;  %v8536_v35 = vld [vmem:[%s14449_s9 + $0x54] ss:$8 sps:$4 sm:$0xff]   ;;  %v8507_v20 = vld [vmem:[%s14448_s7 + $0x50] ss:$8 sps:$4 sm:$0xff]  }
 0xa92   :  { %3904 = vmatpush1.bf16.msra.mxu1 %v15086_v52  ;;  %v7429_v52 = vcombine.high %v4097_v32, %v4105_v27  ;;  %v8519_v32 = vld [vmem:[%s14448_s7 + $0x70] ss:$8 sps:$4 sm:$0xff]  }
 0xa93   :  { %3905 = vmatprep.subr.bf16.mxu1 %v15087_v55  ;;  %v8546_v27 = vld [vmem:[%s14449_s9 + $0x70] ss:$8 sps:$4 sm:$0xff]  }
 0xa96   :  { %3906 = vmatpush1.bf16.msra.mxu1 %v15088_v38  ;;  %v4113_v38 = vld [vmem:[%s14447_s5 + $0xa0] sm:$0xff] }
 0xa97   :  { %3907 = vmatprep.subr.bf16.mxu1 %v15089_v39  ;;  %v4121_v39 = vld [vmem:[%s14447_s5 + $0xe0] sm:$0xff] }
 0xa98   :  { %v7445_v44 = vcombine.high %v4113_v38, %v4121_v39 }
 0xa9a   :  { %3908 = vmatpush1.bf16.msra.mxu1 %v15090_v41  ;;  %v4122_v41 = vld [vmem:[%s14447_s5 + $0xe8] sm:$0xff] }
 0xa9d   :  { %3910 = vmatmul.mubr.bf16.vlgmr.msra.gmra.mrb[12].mxu1 %v3571_v40  ;;  %v4114_v40 = vld [vmem:[%s14447_s5 + $0xa8] sm:$0xff] }
 0xa9e   :  { %4446 = vmatprep.mubr.bf16.mxu1 %v9371_v19  ;;  %v7447_v45 = vcombine.high %v4114_v40, %v4122_v41 }
 0xb70   :  { %v3911_v49 = vpop.f32.mrb[12].mxu1 }
 0xb71   :  { %v7889_v50 = vadd.f32 %v3911_v49, %v10533_v53  ;;  %v3913_v58 = vpop.f32.mrb[13].mxu1  ;;  %v4102_v53 = vld [vmem:[%s14447_s5 + $0x48] sm:$0xff]  ;;  %v7444_v49 = vcombine.low %v4113_v38, %v4121_v39  ;;  %v8531_v38 = vld [vmem:[%s14448_s7 + $0x90] ss:$8 sps:$4 sm:$0xff]  }
 0xb72   :  { %v7890_v21 = vadd.f32 %v3913_v58, %v10536_v54  ;;  %v3915_v51 = vpop.f32.mrb[14].mxu1  ;;  %v7423_v3 = vcombine.high %v4094_v2, %v4102_v53  ;;  %v7422_v4 = vcombine.low %v4094_v2, %v4102_v53  ;;  %v4109_v54 = vld [vmem:[%s14447_s5 + $0x80] sm:$0xff]  ;;  %v7433_v58 = vcombine.high %v4099_v46, %v4107_v47  ;;  %v8558_v39 = vld [vmem:[%s14449_s9 + $0x90] ss:$8 sps:$4 sm:$0xff]  }
 0xb73   :  { %v3918_v60 = vmax.f32 %v7889_v50, 0.0  ;;  %v3916_v62 = vpop.f32.mrb[15].mxu1  ;;  %v7437_v7 = vcombine.high %v4109_v54, %v4117_v5  ;;  %v7436_v9 = vcombine.low %v4109_v54, %v4117_v5  ;;  %v7446_v50 = vcombine.low %v4114_v40, %v4122_v41  ;;  %v4115_v51 = vld [vmem:[%s14447_s5 + $0xb0] sm:$0xff]  ;;  %v8491_v54 = vld [vmem:[%s14448_s7 + $0x4] ss:$8 sps:$4 sm:$0xff]  }
 0xb74   :  { %v3919_v63 = vmax.f32 %v7890_v21, 0.0  ;;  %4414 = vmatprep.subr.bf16.mxu1 %v7423_v3  ;;  %v4116_v62 = vld [vmem:[%s14447_s5 + $0xb8] sm:$0xff]  ;;  %v8506_v5 = vld [vmem:[%s14449_s9 + $0x4] ss:$8 sps:$4 sm:$0xff]   ;;  %v8537_v41 = vld [vmem:[%s14448_s7 + $0xa0] ss:$8 sps:$4 sm:$0xff]  }
 0xb75   :  { %v3920_v1 = vpack.c.bf16 %v3918_v60, %v3918_v60  ;;  %4415 = vmatpush1.bf16.msra.mxu1 %v7422_v4  ;;  %v4123_v60 = vld [vmem:[%s14447_s5 + $0xf0] sm:$0xff]  ;;  %v8539_v40 = vld [vmem:[%s14448_s7 + $0xa4] ss:$8 sps:$4 sm:$0xff]  }
 0xb76   :  { %v3921_v0 = vpack.c.bf16 %v3919_v63, %v3919_v63  ;;  %4416 = vmatprep.subr.bf16.mxu1 %v7439_v13  ;;  %v4124_v63 = vld [vmem:[%s14447_s5 + $0xf8] sm:$0xff]  ;;  %v7449_v2 = vcombine.high %v4115_v51, %v4123_v60  ;;  %v7448_v3 = vcombine.low %v4115_v51, %v4123_v60 }
 0xb77   :  { %v7451_v53 = vcombine.high %v4116_v62, %v4124_v63  ;;  %v7450_v4 = vcombine.low %v4116_v62, %v4124_v63  ;;  %v8510_v13 = vld [vmem:[%s14449_s9 + $0x10] ss:$8 sps:$4 sm:$0xff]   ;;  %v8575_v62 = vld [vmem:[%s14448_s7 + $0x104] ss:$8 sps:$4 sm:$0xff]  }
 0xb78   :  { %4083 = vmatprep.mubr.bf16.mxu0 %v3921_v0  ;;  %v7432_v0 = vcombine.low %v4099_v46, %v4107_v47  ;;  %v8557_v46 = vld [vmem:[%s14448_s7 + $0xd4] ss:$8 sps:$4 sm:$0xff]   ;;  %v8555_v47 = vld [vmem:[%s14448_s7 + $0xd0] ss:$8 sps:$4 sm:$0xff]   ;;  %v8578_v63 = vld [vmem:[%s14449_s9 + $0xc4] ss:$8 sps:$4 sm:$0xff]  }
 0xb79   :  { %4084 = vmatmul.mubr.bf16.vlgmr.msra.gmra.mrb[12].mxu0 %v3920_v1  ;;  %4417 = vmatpush1.bf16.msra.mxu1 %v7438_v11  ;;  %v8492_v11 = vld [vmem:[%s14448_s7 + $0x10] ss:$8 sps:$4 sm:$0xff]  }
 0xb7a   :  { %4374 = vmatpush1.bf16.msra.mxu0 %v7420_v56  ;;  %4405 = vmatprep.mubr.bf16.mxu0 %v9371_v19  ;;  %v4100_v56 = vld [vmem:[%s14447_s5 + $0x38] sm:$0xff] }
 0xb7b   :  { %4375 = vmatprep.subr.bf16.mxu0 %v7437_v7  ;;  %4496 = vmatprep.subr.bf16.mxu1 %v7427_v25  ;;  %v7435_v21 = vcombine.high %v4100_v56, %v4108_v48  ;;  %v7434_v1 = vcombine.low %v4100_v56, %v4108_v48  ;;  %v8504_v7 = vld [vmem:[%s14449_s9] ss:$8 sps:$4 sm:$0xff]   ;;  %v8503_v25 = vld [vmem:[%s14448_s7 + $0x44] ss:$8 sps:$4 sm:$0xff]   ;;  %v8567_v51 = vld [vmem:[%s14448_s7 + $0xf0] ss:$8 sps:$4 sm:$0xff]  }
 0xb7c   :  { %v8563_v56 = vld [vmem:[%s14448_s7 + $0xe4] ss:$8 sps:$4 sm:$0xff]   ;;  %v8570_v60 = vld [vmem:[%s14449_s9 + $0xb0] ss:$8 sps:$4 sm:$0xff]  }
 0xb7d   :  { %v8566_v48 = vld [vmem:[%s14449_s9 + $0xa4] ss:$8 sps:$4 sm:$0xff]  }
 0xb7e   :  { %4376 = vmatpush1.bf16.msra.mxu0 %v7436_v9  ;;  %v8512_v9 = vld [vmem:[%s14449_s9 + $0x14] ss:$8 sps:$4 sm:$0xff]  }
 0xb7f   :  { %4455 = vmatprep.subr.bf16.mxu0 %v7425_v17  ;;  %v8516_v17 = vld [vmem:[%s14449_s9 + $0x20] ss:$8 sps:$4 sm:$0xff]  }
 0xc4c   :  { %v7833_v26 = vpop.f32.mrb[12].mxu0 }
 0xc4d   :  { %v7834_v61 = vpop.f32.mrb[13].mxu0 }
 0xc4e   :  { %v7835_v59 = vadd.f32 %v7834_v61, %v7833_v26  ;;  %v7836_v36 = vpop.f32.mrb[14].mxu0  ;;  %v8530_v26 = vld [vmem:[%s14449_s9 + $0x44] ss:$8 sps:$4 sm:$0xff]   ;;  %v8501_v61 = vld [vmem:[%s14448_s7 + $0x40] ss:$8 sps:$4 sm:$0xff]  }
 0xc4f   :  { %v7837_v34 = vpop.f32.mrb[15].mxu0  ;;  %v8515_v36 = vld [vmem:[%s14448_s7 + $0x64] ss:$8 sps:$4 sm:$0xff]  }
 0xc50   :  { %v4091_v29 = vadd.f32 %v7835_v59, %v12925_v23  ;;  %v4106_v23 = vld [vmem:[%s14447_s5 + $0x68] sm:$0xff]  ;;  %v8534_v59 = vld [vmem:[%s14449_s9 + $0x50] ss:$8 sps:$4 sm:$0xff]  }
 0xc51   :  { %v7431_v55 = vcombine.high %v4098_v10, %v4106_v23  ;;  %v7430_v43 = vcombine.low %v4098_v10, %v4106_v23  ;;  %v8542_v34 = vld [vmem:[%s14449_s9 + $0x64] ss:$8 sps:$4 sm:$0xff]  }
 0xc52   :  { %v13406_v33 = vpack.c.bf16 %v4091_v29, %v4091_v29  ;;  %v8513_v29 = vld [vmem:[%s14448_s7 + $0x60] ss:$8 sps:$4 sm:$0xff]   ;;  %v8527_v10 = vld [vmem:[%s14448_s7 + $0x84] ss:$8 sps:$4 sm:$0xff]  }
 0xc53   :  { %v8554_v23 = vld [vmem:[%s14449_s9 + $0x84] ss:$8 sps:$4 sm:$0xff]  }
 0xc54   :  { %7452 = vmatmul.mubr.msk.bf16.vlgmr.msra.gmra.mrb[16].mxu0 %vm4369_vm0, %v13406_v33  ;;  %7453 = vmatmul.mubr.msk.bf16.vlgmr.msra.gmra.mrb[16].mxu1 %vm4369_vm0, %v13406_v33 }
 0xc55   :  { %4456 = vmatpush1.bf16.msra.mxu0 %v7424_v22  ;;  %4497 = vmatpush1.bf16.msra.mxu1 %v7426_v24  ;;  %v8498_v22 = vld [vmem:[%s14448_s7 + $0x30] ss:$8 sps:$4 sm:$0xff]  }
 0xc56   :  { %4457 = vmatprep.subr.bf16.mxu0 %v7441_v28  ;;  %4498 = vmatprep.subr.bf16.mxu1 %v7443_v30  ;;  %v8522_v24 = vld [vmem:[%s14449_s9 + $0x30] ss:$8 sps:$4 sm:$0xff]   ;;  %v8521_v28 = vld [vmem:[%s14448_s7 + $0x74] ss:$8 sps:$4 sm:$0xff]  }
 0xc57   :  { %4487 = vmatprep.mubr.bf16.mxu0 %v9371_v19  ;;  %4528 = vmatprep.mubr.bf16.mxu1 %v9371_v19  ;;  %v8548_v30 = vld [vmem:[%s14449_s9 + $0x74] ss:$8 sps:$4 sm:$0xff]  }
 0xc59   :  { %4458 = vmatpush1.bf16.msra.mxu0 %v7440_v57  ;;  %4499 = vmatpush1.bf16.msra.mxu1 %v7442_v16  ;;  %v8525_v57 = vld [vmem:[%s14448_s7 + $0x80] ss:$8 sps:$4 sm:$0xff]  }
 0xc5a   :  { %4537 = vmatprep.subr.bf16.mxu0 %v7429_v52  ;;  %4578 = vmatprep.subr.bf16.mxu1 %v7431_v55  ;;  %v8552_v16 = vld [vmem:[%s14449_s9 + $0x80] ss:$8 sps:$4 sm:$0xff]   ;;  %v8533_v52 = vld [vmem:[%s14448_s7 + $0x94] ss:$8 sps:$4 sm:$0xff]  }
 0xc5b   :  { %v8560_v55 = vld [vmem:[%s14449_s9 + $0x94] ss:$8 sps:$4 sm:$0xff]  }
 0xc5c   :  { %7454 = vmatmul.mubr.msk.bf16.vlgmr.msra.gmra.mrb[20].mxu0 %vm4369_vm0, %v13406_v33  ;;  %7455 = vmatmul.mubr.msk.bf16.vlgmr.msra.gmra.mrb[20].mxu1 %vm4369_vm0, %v13406_v33 }
 0xc5d   :  { %4538 = vmatpush1.bf16.msra.mxu0 %v7428_v42  ;;  %4579 = vmatpush1.bf16.msra.mxu1 %v7430_v43  ;;  %v8545_v42 = vld [vmem:[%s14448_s7 + $0xb4] ss:$8 sps:$4 sm:$0xff]   ;;  %v8543_v43 = vld [vmem:[%s14448_s7 + $0xb0] ss:$8 sps:$4 sm:$0xff]  }
 0xc5e   :  { %4539 = vmatprep.subr.bf16.mxu0 %v7445_v44  ;;  %4580 = vmatprep.subr.bf16.mxu1 %v7447_v45  ;;  %v8551_v44 = vld [vmem:[%s14448_s7 + $0xc4] ss:$8 sps:$4 sm:$0xff]   ;;  %v8549_v45 = vld [vmem:[%s14448_s7 + $0xc0] ss:$8 sps:$4 sm:$0xff]  }
 0xc5f   :  { %4569 = vmatprep.mubr.bf16.mxu0 %v9371_v19  ;;  %4610 = vmatprep.mubr.bf16.mxu1 %v9371_v19 }
 0xc61   :  { %4540 = vmatpush1.bf16.msra.mxu0 %v7444_v49  ;;  %4581 = vmatpush1.bf16.msra.mxu1 %v7446_v50  ;;  %v8561_v49 = vld [vmem:[%s14448_s7 + $0xe0] ss:$8 sps:$4 sm:$0xff]  }
 0xc62   :  { %4619 = vmatprep.subr.bf16.mxu0 %v7433_v58  ;;  %4660 = vmatprep.subr.bf16.mxu1 %v7435_v21  ;;  %v8564_v50 = vld [vmem:[%s14449_s9 + $0xa0] ss:$8 sps:$4 sm:$0xff]   ;;  %v8569_v58 = vld [vmem:[%s14448_s7 + $0xf4] ss:$8 sps:$4 sm:$0xff]  }
 0xc63   :  { %v8572_v21 = vld [vmem:[%s14449_s9 + $0xb4] ss:$8 sps:$4 sm:$0xff]  }
 0xc64   :  { %7456 = vmatmul.mubr.msk.bf16.vlgmr.msra.gmra.mrb[24].mxu0 %vm4369_vm0, %v13406_v33  ;;  %7457 = vmatmul.mubr.msk.bf16.vlgmr.msra.gmra.mrb[24].mxu1 %vm4369_vm0, %v13406_v33 }
 0xc65   :  { %4620 = vmatpush1.bf16.msra.mxu0 %v7432_v0  ;;  %4661 = vmatpush1.bf16.msra.mxu1 %v7434_v1  ;;  %v8576_v0 = vld [vmem:[%s14449_s9 + $0xc0] ss:$8 sps:$4 sm:$0xff]   ;;  %v8584_v1 = vld [vmem:[%s14449_s9 + $0xd4] ss:$8 sps:$4 sm:$0xff]  }
 0xc66   :  { %4621 = vmatprep.subr.bf16.mxu0 %v7449_v2  ;;  %4662 = vmatprep.subr.bf16.mxu1 %v7451_v53  ;;  %v8582_v2 = vld [vmem:[%s14449_s9 + $0xd0] ss:$8 sps:$4 sm:$0xff]   ;;  %v8590_v53 = vld [vmem:[%s14449_s9 + $0xe4] ss:$8 sps:$4 sm:$0xff]  }
 0xc67   :  { %4651 = vmatprep.mubr.bf16.mxu0 %v9371_v19  ;;  %4692 = vmatprep.mubr.bf16.mxu1 %v9371_v19  ;;  %v8524_v19 = vld [vmem:[%s14449_s9 + $0x34] ss:$8 sps:$4 sm:$0xff]  }
 0xc69   :  { %4622 = vmatpush1.bf16.msra.mxu0 %v7448_v3  ;;  %4663 = vmatpush1.bf16.msra.mxu1 %v7450_v4  ;;  %v8588_v3 = vld [vmem:[%s14449_s9 + $0xe0] ss:$8 sps:$4 sm:$0xff]   ;;  %v8596_v4 = vld [vmem:[%s14449_s9 + $0xf4] ss:$8 sps:$4 sm:$0xff]  }
 0xc6a   :  { %5513 = vmatprep.subr.bf16.mxu0 %v8491_v54  ;;  %6461 = vmatprep.subr.bf16.mxu1 %v8506_v5  ;;  %v8594_v54 = vld [vmem:[%s14449_s9 + $0xf0] ss:$8 sps:$4 sm:$0xff]   ;;  %v8602_v5 = vld [vmem:[%s14449_s9 + $0x104] ss:$8 sps:$4 sm:$0xff]  }
 0xc6c   :  { %7458 = vmatmul.mubr.msk.bf16.vlgmr.msra.gmra.mrb[28].mxu0 %vm4369_vm0, %v13406_v33  ;;  %7459 = vmatmul.mubr.msk.bf16.vlgmr.msra.gmra.mrb[28].mxu1 %vm4369_vm0, %v13406_v33  ;;  %v8540_v33 = vld [vmem:[%s14449_s9 + $0x60] ss:$8 sps:$4 sm:$0xff]  }
 0xc6d   :  { %5514 = vmatpush1.bf16.msra.mxu0 %v8489_v6  ;;  %6462 = vmatpush1.bf16.msra.mxu1 %v8504_v7  ;;  %v13679_v6 = vld [vmem:[%s14450_s6] sm:$0xff] }
 0xc6e   :  { %5515 = vmatprep.subr.bf16.mxu0 %v8494_v8  ;;  %6463 = vmatprep.subr.bf16.mxu1 %v8512_v9  ;;  %v15091_v7 = vld [vmem:[#allocation3_spill] sm:$0xff]  ;;  %v15092_v9 = vld [vmem:[#allocation10_spill] sm:$0xff] }
 0xc6f   :  { %v4143_v8 = vsub.s32 3, %v15091_v7 }
 0xc71   :  { %5516 = vmatpush1.bf16.msra.mxu0 %v8492_v11  ;;  %6464 = vmatpush1.bf16.msra.mxu1 %v8510_v13  ;;  %v4132_v11 = vrot.slane %v13679_v6, %v15092_v9  ;;  %v15093_v13 = vld [vmem:[#allocation11_spill] sm:$0xff] }
 0xc72   :  { %5517 = vmatprep.subr.bf16.mxu0 %v8497_v14  ;;  %6465 = vmatprep.subr.bf16.mxu1 %v8518_v12  ;;  %v4136_v14 = vrot.slane %v13679_v6, %v15093_v13  ;;  %v4144_v12 = vrot.slane %v13679_v6, %v4143_v8 }
 0xc75   :  { %5518 = vmatpush1.bf16.msra.mxu0 %v8495_v15  ;;  %6466 = vmatpush1.bf16.msra.mxu1 %v8516_v17 }
 0xc76   :  { %5519 = vmatprep.subr.bf16.mxu0 %v8500_v18  ;;  %6467 = vmatprep.subr.bf16.mxu1 %v8524_v19 }
 0xc79   :  { %5520 = vmatpush1.bf16.msra.mxu0 %v8498_v22  ;;  %6468 = vmatpush1.bf16.msra.mxu1 %v8522_v24 }
 0xc7a   :  { %5521 = vmatprep.subr.bf16.mxu0 %v8503_v25  ;;  %6469 = vmatprep.subr.bf16.mxu1 %v8530_v26 }
 0xc7d   :  { %5522 = vmatpush1.bf16.msra.mxu0 %v8501_v61  ;;  %6470 = vmatpush1.bf16.msra.mxu1 %v8528_v37 }
 0xc7e   :  { %5523 = vmatprep.subr.bf16.mxu0 %v8509_v31  ;;  %6471 = vmatprep.subr.bf16.mxu1 %v8536_v35 }
 0xc81   :  { %5524 = vmatpush1.bf16.msra.mxu0 %v8507_v20  ;;  %6472 = vmatpush1.bf16.msra.mxu1 %v8534_v59 }
 0xc82   :  { %5525 = vmatprep.subr.bf16.mxu0 %v8515_v36  ;;  %6473 = vmatprep.subr.bf16.mxu1 %v8542_v34  ;;  %v8573_v34 = vld [vmem:[%s14448_s7 + $0x100] ss:$8 sps:$4 sm:$0xff]  }
 0xc85   :  { %5526 = vmatpush1.bf16.msra.mxu0 %v8513_v29  ;;  %6474 = vmatpush1.bf16.msra.mxu1 %v8540_v33  ;;  %v8581_v33 = vld [vmem:[%s14448_s7 + $0x114] ss:$8 sps:$4 sm:$0xff]  }
 0xc86   :  { %5527 = vmatprep.subr.bf16.mxu0 %v8521_v28  ;;  %6475 = vmatprep.subr.bf16.mxu1 %v8548_v30 }
 0xc89   :  { %5528 = vmatpush1.bf16.msra.mxu0 %v8519_v32  ;;  %6476 = vmatpush1.bf16.msra.mxu1 %v8546_v27 }
 0xc8a   :  { %5529 = vmatprep.subr.bf16.mxu0 %v8527_v10  ;;  %6477 = vmatprep.subr.bf16.mxu1 %v8554_v23 }
 0xc8d   :  { %5530 = vmatpush1.bf16.msra.mxu0 %v8525_v57  ;;  %6478 = vmatpush1.bf16.msra.mxu1 %v8552_v16  ;;  %v8579_v16 = vld [vmem:[%s14448_s7 + $0x110] ss:$8 sps:$4 sm:$0xff]  }
 0xc8e   :  { %5531 = vmatprep.subr.bf16.mxu0 %v8533_v52  ;;  %6479 = vmatprep.subr.bf16.mxu1 %v8560_v55  ;;  %v4126_v52 = vld [vmem:[%s14450_s6 + $0x8] sm:$0xff]  ;;  %v4139_v55 = vsub.s32 2, %v15091_v7 }
 0xc91   :  { %5532 = vmatpush1.bf16.msra.mxu0 %v8531_v38  ;;  %6480 = vmatpush1.bf16.msra.mxu1 %v8558_v39 }
 0xc92   :  { %5533 = vmatprep.subr.bf16.mxu0 %v8539_v40  ;;  %6481 = vmatprep.subr.bf16.mxu1 %v8566_v48  ;;  %v8587_v40 = vld [vmem:[%s14448_s7 + $0x124] ss:$8 sps:$4 sm:$0xff]  }
 0xc95   :  { %5534 = vmatpush1.bf16.msra.mxu0 %v8537_v41  ;;  %6482 = vmatpush1.bf16.msra.mxu1 %v8564_v50  ;;  %v4164_v41 = vrot.slane %v4126_v52, %v15092_v9 }
 0xc96   :  { %5535 = vmatprep.subr.bf16.mxu0 %v8545_v42  ;;  %6483 = vmatprep.subr.bf16.mxu1 %v8572_v21  ;;  %v4172_v42 = vrot.slane %v4126_v52, %v4139_v55  ;;  %v4147_v21 = vsub.s32 4, %v15091_v7 }
 0xc99   :  { %5536 = vmatpush1.bf16.msra.mxu0 %v8543_v43  ;;  %6484 = vmatpush1.bf16.msra.mxu1 %v8570_v60  ;;  %v8585_v43 = vld [vmem:[%s14448_s7 + $0x120] ss:$8 sps:$4 sm:$0xff]  }
 0xc9a   :  { %5537 = vmatprep.subr.bf16.mxu0 %v8551_v44  ;;  %6485 = vmatprep.subr.bf16.mxu1 %v8578_v63  ;;  %v4168_v44 = vrot.slane %v4126_v52, %v15093_v13 }
 0xc9d   :  { %5538 = vmatpush1.bf16.msra.mxu0 %v8549_v45  ;;  %6486 = vmatpush1.bf16.msra.mxu1 %v8576_v0  ;;  %v4176_v45 = vrot.slane %v4126_v52, %v4143_v8  ;;  %v8591_v0 = vld [vmem:[%s14448_s7 + $0x130] ss:$8 sps:$4 sm:$0xff]  }
 0xc9e   :  { %5539 = vmatprep.subr.bf16.mxu0 %v8557_v46  ;;  %6487 = vmatprep.subr.bf16.mxu1 %v8584_v1  ;;  %v8593_v46 = vld [vmem:[%s14448_s7 + $0x134] ss:$8 sps:$4 sm:$0xff]   ;;  %v4155_v1 = vsub.s32 6, %v15091_v7 }
 0xca1   :  { %5540 = vmatpush1.bf16.msra.mxu0 %v8555_v47  ;;  %6488 = vmatpush1.bf16.msra.mxu1 %v8582_v2 }
 0xca2   :  { %5541 = vmatprep.subr.bf16.mxu0 %v8563_v56  ;;  %6489 = vmatprep.subr.bf16.mxu1 %v8590_v53 }
 0xca5   :  { %5542 = vmatpush1.bf16.msra.mxu0 %v8561_v49  ;;  %6490 = vmatpush1.bf16.msra.mxu1 %v8588_v3 }
 0xca6   :  { %5543 = vmatprep.subr.bf16.mxu0 %v8569_v58  ;;  %6491 = vmatprep.subr.bf16.mxu1 %v8596_v4  ;;  %v8599_v4 = vld [vmem:[%s14448_s7 + $0x144] ss:$8 sps:$4 sm:$0xff]  }
 0xca9   :  { %5544 = vmatpush1.bf16.msra.mxu0 %v8567_v51  ;;  %6492 = vmatpush1.bf16.msra.mxu1 %v8594_v54  ;;  %v4151_v54 = vsub.s32 5, %v15091_v7 }
 0xcaa   :  { %5554 = vmatprep.subr.bf16.mxu0 %v8575_v62  ;;  %6502 = vmatprep.subr.bf16.mxu1 %v8602_v5  ;;  %v4159_v5 = vsub.s32 7, %v15091_v7  ;;  %v8849_v7 = vld [vmem:[%s14448_s7 + $0x3e0] ss:$8 sps:$4 sm:$0xff]  }
 0xd27   :  { %v4407_v15 = vpop.f32.mrb[16].mxu0  ;;  %v13687_v17 = vpop.f32.mrb[16].mxu1 }
 0xd28   :  { %v4408_v18 = vadd.f32 %v4407_v15, %v4132_v11  ;;  %v4409_v19 = vpop.f32.mrb[17].mxu0  ;;  %v4450_v22 = vpop.f32.mrb[17].mxu1 }
 0xd29   :  { %v4410_v24 = vadd.f32 %v4409_v19, %v4136_v14  ;;  %v4451_v25 = vadd.f32 %v4450_v22, %v4144_v12  ;;  %v4411_v26 = vpop.f32.mrb[18].mxu0  ;;  %v4452_v61 = vpop.f32.mrb[18].mxu1  ;;  %v4180_v14 = vrot.slane %v4126_v52, %v4147_v21  ;;  %v4188_v12 = vrot.slane %v4126_v52, %v4155_v1  ;;  %v8600_v19 = vld [vmem:[%s14449_s9 + $0x100] ss:$8 sps:$4 sm:$0xff]  }
 0xd2a   :  { %v4701_v37 = vmax.f32 %v4408_v18, 0.0  ;;  %v4412_v31 = vpop.f32.mrb[19].mxu0  ;;  %v4453_v35 = vpop.f32.mrb[19].mxu1  ;;  %v8597_v18 = vld [vmem:[%s14448_s7 + $0x140] ss:$8 sps:$4 sm:$0xff]   ;;  %v4184_v22 = vrot.slane %v4126_v52, %v4151_v54 }
 0xd2b   :  { %v4702_v20 = vmax.f32 %v4410_v24, 0.0  ;;  %v4704_v59 = vmax.f32 %v4451_v25, 0.0  ;;  %v4192_v24 = vrot.slane %v4126_v52, %v4159_v5  ;;  %v8605_v26 = vld [vmem:[%s14448_s7 + $0x154] ss:$8 sps:$4 sm:$0xff]  }
 0xd2c   :  { %v4717_v29 = vpack.c.bf16 %v4701_v37, %v4701_v37  ;;  %v8608_v31 = vld [vmem:[%s14449_s9 + $0x114] ss:$8 sps:$4 sm:$0xff]  }
 0xd2d   :  { %v4718_v36 = vpack.c.bf16 %v4702_v20, %v4702_v20  ;;  %v4720_v28 = vpack.c.bf16 %v4704_v59, %v4704_v59 }
 0xd2f   :  { %v13695_v30 = vpop.f32.mrb[20].mxu0  ;;  %v13697_v32 = vpop.f32.mrb[20].mxu1  ;;  %5545 = vmatprep.mubr.bf16.mxu0 %v4718_v36 }
 0xd30   :  { %v13699_v27 = vpop.f32.mrb[21].mxu0  ;;  %v13701_v10 = vpop.f32.mrb[21].mxu1  ;;  %5546 = vmatmul.mubr.bf16.vlgmr.msra.gmra.mrb[32].mxu0 %v4717_v29 }
 0xd31   :  { %5555 = vmatpush1.bf16.msra.mxu0 %v8573_v34  ;;  %v4493_v23 = vpop.f32.mrb[22].mxu0  ;;  %v4534_v57 = vpop.f32.mrb[22].mxu1  ;;  %5586 = vmatprep.mubr.bf16.mxu0 %v4720_v28 }
 0xd32   :  { %v4494_v38 = vpop.f32.mrb[23].mxu0  ;;  %v4535_v39 = vpop.f32.mrb[23].mxu1  ;;  %5556 = vmatprep.subr.bf16.mxu0 %v8581_v33  ;;  %v8603_v57 = vld [vmem:[%s14448_s7 + $0x150] ss:$8 sps:$4 sm:$0xff]  }
 0xd33   :  { %v8611_v39 = vld [vmem:[%s14448_s7 + $0x164] ss:$8 sps:$4 sm:$0xff]  }
 0xd35   :  { %5557 = vmatpush1.bf16.msra.mxu0 %v8579_v16  ;;  %v8606_v16 = vld [vmem:[%s14449_s9 + $0x110] ss:$8 sps:$4 sm:$0xff]  }
 0xd36   :  { %5558 = vmatprep.subr.bf16.mxu0 %v8587_v40  ;;  %v8614_v40 = vld [vmem:[%s14449_s9 + $0x124] ss:$8 sps:$4 sm:$0xff]  }
 0xd37   :  { %v4571_v47 = vpop.f32.mrb[24].mxu0  ;;  %v4612_v56 = vpop.f32.mrb[24].mxu1 }
 0xd38   :  { %v4572_v48 = vadd.f32 %v4571_v47, %v4164_v41  ;;  %v13723_v49 = vadd.f32 %v4612_v56, %v4172_v42  ;;  %v4573_v50 = vpop.f32.mrb[25].mxu0  ;;  %v4614_v58 = vpop.f32.mrb[25].mxu1  ;;  %v8609_v41 = vld [vmem:[%s14448_s7 + $0x160] ss:$8 sps:$4 sm:$0xff]   ;;  %v8623_v47 = vld [vmem:[%s14448_s7 + $0x184] ss:$8 sps:$4 sm:$0xff]  }
 0xd39   :  { %v4574_v51 = vadd.f32 %v4573_v50, %v4168_v44  ;;  %v4615_v60 = vadd.f32 %v4614_v58, %v4176_v45  ;;  %5559 = vmatpush1.bf16.msra.mxu0 %v8585_v43  ;;  %v4575_v62 = vpop.f32.mrb[26].mxu0  ;;  %v4616_v63 = vpop.f32.mrb[26].mxu1  ;;  %v8612_v42 = vld [vmem:[%s14449_s9 + $0x120] ss:$8 sps:$4 sm:$0xff]   ;;  %v8617_v43 = vld [vmem:[%s14448_s7 + $0x174] ss:$8 sps:$4 sm:$0xff]  }
 0xd3a   :  { %v4709_v2 = vmax.f32 %v4572_v48, 0.0  ;;  %v4576_v53 = vpop.f32.mrb[27].mxu0  ;;  %v4617_v3 = vpop.f32.mrb[27].mxu1  ;;  %5560 = vmatprep.subr.bf16.mxu0 %v8593_v46  ;;  %v8620_v44 = vld [vmem:[%s14449_s9 + $0x134] ss:$8 sps:$4 sm:$0xff]  }
 0xd3b   :  { %v4710_v8 = vmax.f32 %v4574_v51, 0.0  ;;  %v4712_v11 = vmax.f32 %v4615_v60, 0.0  ;;  %v8615_v45 = vld [vmem:[%s14448_s7 + $0x170] ss:$8 sps:$4 sm:$0xff]   ;;  %v8626_v56 = vld [vmem:[%s14449_s9 + $0x144] ss:$8 sps:$4 sm:$0xff]  }
 0xd3c   :  { %v4725_v25 = vpack.c.bf16 %v4709_v2, %v4709_v2  ;;  %v8618_v46 = vld [vmem:[%s14449_s9 + $0x130] ss:$8 sps:$4 sm:$0xff]   ;;  %v8621_v48 = vld [vmem:[%s14448_s7 + $0x180] ss:$8 sps:$4 sm:$0xff]   ;;  %v8629_v58 = vld [vmem:[%s14448_s7 + $0x194] ss:$8 sps:$4 sm:$0xff]  }
 0xd3d   :  { %v4726_v15 = vpack.c.bf16 %v4710_v8, %v4710_v8  ;;  %5561 = vmatpush1.bf16.msra.mxu0 %v8591_v0  ;;  %v4728_v35 = vpack.c.bf16 %v4712_v11, %v4712_v11  ;;  %v8624_v50 = vld [vmem:[%s14449_s9 + $0x140] ss:$8 sps:$4 sm:$0xff]   ;;  %v8632_v51 = vld [vmem:[%s14449_s9 + $0x154] ss:$8 sps:$4 sm:$0xff]   ;;  %v8627_v60 = vld [vmem:[%s14448_s7 + $0x190] ss:$8 sps:$4 sm:$0xff]  }
 0xd3e   :  { %5562 = vmatprep.subr.bf16.mxu0 %v8599_v4  ;;  %v8630_v62 = vld [vmem:[%s14449_s9 + $0x150] ss:$8 sps:$4 sm:$0xff]   ;;  %v8635_v63 = vld [vmem:[%s14448_s7 + $0x1a4] ss:$8 sps:$4 sm:$0xff]   ;;  %v8633_v2 = vld [vmem:[%s14448_s7 + $0x1a0] ss:$8 sps:$4 sm:$0xff]  }
 0xd3f   :  { %v4653_v61 = vpop.f32.mrb[28].mxu0  ;;  %v4694_v37 = vpop.f32.mrb[28].mxu1  ;;  %6493 = vmatprep.mubr.bf16.mxu1 %v4726_v15  ;;  %v8638_v0 = vld [vmem:[%s14449_s9 + $0x164] ss:$8 sps:$4 sm:$0xff]   ;;  %v8636_v53 = vld [vmem:[%s14449_s9 + $0x160] ss:$8 sps:$4 sm:$0xff]  }
 0xd40   :  { %v13755_v20 = vadd.f32 %v4653_v61, %v4180_v14  ;;  %v13757_v59 = vadd.f32 %v4694_v37, %v4188_v12  ;;  %v4655_v36 = vpop.f32.mrb[29].mxu0  ;;  %v4696_v34 = vpop.f32.mrb[29].mxu1  ;;  %6494 = vmatmul.mubr.bf16.vlgmr.msra.gmra.mrb[32].mxu1 %v4725_v25  ;;  %v8641_v3 = vld [vmem:[%s14448_s7 + $0x1b4] ss:$8 sps:$4 sm:$0xff]   ;;  %v8639_v8 = vld [vmem:[%s14448_s7 + $0x1b0] ss:$8 sps:$4 sm:$0xff]  }
 0xd41   :  { %v13759_v29 = vadd.f32 %v4655_v36, %v4184_v22  ;;  %v13761_v33 = vadd.f32 %v4696_v34, %v4192_v24  ;;  %5563 = vmatpush1.bf16.msra.mxu0 %v8597_v18  ;;  %6503 = vmatpush1.bf16.msra.mxu1 %v8600_v19  ;;  %v4657_v28 = vpop.f32.mrb[30].mxu0  ;;  %v4698_v23 = vpop.f32.mrb[30].mxu1  ;;  %v8644_v4 = vld [vmem:[%s14449_s9 + $0x174] ss:$8 sps:$4 sm:$0xff]   ;;  %v8642_v11 = vld [vmem:[%s14449_s9 + $0x170] ss:$8 sps:$4 sm:$0xff]  }
 0xd42   :  { %6534 = vmatprep.mubr.bf16.mxu1 %v4728_v35  ;;  %v4658_v52 = vpop.f32.mrb[31].mxu0  ;;  %v4699_v38 = vpop.f32.mrb[31].mxu1  ;;  %5564 = vmatprep.subr.bf16.mxu0 %v8605_v26  ;;  %v8647_v14 = vld [vmem:[%s14448_s7 + $0x1c4] ss:$8 sps:$4 sm:$0xff]   ;;  %v8645_v15 = vld [vmem:[%s14448_s7 + $0x1c0] ss:$8 sps:$4 sm:$0xff]   ;;  %v4140_v26 = vrot.slane %v13679_v6, %v4139_v55 }
 0xd43   :  { %6504 = vmatprep.subr.bf16.mxu1 %v8608_v31  ;;  %v8650_v12 = vld [vmem:[%s14449_s9 + $0x184] ss:$8 sps:$4 sm:$0xff]   ;;  %v8648_v18 = vld [vmem:[%s14449_s9 + $0x180] ss:$8 sps:$4 sm:$0xff]   ;;  %v8653_v19 = vld [vmem:[%s14448_s7 + $0x1d4] ss:$8 sps:$4 sm:$0xff]   ;;  %v4152_v31 = vrot.slane %v13679_v6, %v4151_v54 }
 0xd44   :  { %v8656_v22 = vld [vmem:[%s14449_s9 + $0x194] ss:$8 sps:$4 sm:$0xff]   ;;  %v8651_v24 = vld [vmem:[%s14448_s7 + $0x1d0] ss:$8 sps:$4 sm:$0xff]   ;;  %v8659_v61 = vld [vmem:[%s14448_s7 + $0x1e4] ss:$8 sps:$4 sm:$0xff]   ;;  %v4449_v36 = vadd.f32 %v13687_v17, %v4140_v26 }
 0xd45   :  { %5565 = vmatpush1.bf16.msra.mxu0 %v8603_v57  ;;  %6505 = vmatpush1.bf16.msra.mxu1 %v8606_v16  ;;  %v8654_v25 = vld [vmem:[%s14449_s9 + $0x190] ss:$8 sps:$4 sm:$0xff]   ;;  %v8662_v37 = vld [vmem:[%s14449_s9 + $0x1a4] ss:$8 sps:$4 sm:$0xff]   ;;  %v8657_v55 = vld [vmem:[%s14448_s7 + $0x1e0] ss:$8 sps:$4 sm:$0xff]   ;;  %v4492_v28 = vadd.f32 %v13699_v27, %v4152_v31 }
 0xd46   :  { %5566 = vmatprep.subr.bf16.mxu0 %v8611_v39  ;;  %6506 = vmatprep.subr.bf16.mxu1 %v8614_v40  ;;  %v8660_v35 = vld [vmem:[%s14449_s9 + $0x1a0] ss:$8 sps:$4 sm:$0xff]   ;;  %v8665_v34 = vld [vmem:[%s14448_s7 + $0x1f4] ss:$8 sps:$4 sm:$0xff]   ;;  %v8663_v23 = vld [vmem:[%s14448_s7 + $0x1f0] ss:$8 sps:$4 sm:$0xff]  }
 0xd47   :  { %v8668_v54 = vld [vmem:[%s14449_s9 + $0x1b4] ss:$8 sps:$4 sm:$0xff]   ;;  %v8666_v17 = vld [vmem:[%s14449_s9 + $0x1b0] ss:$8 sps:$4 sm:$0xff]   ;;  %v4703_v57 = vmax.f32 %v4449_v36, 0.0  ;;  %v4706_v52 = vmax.f32 %v4492_v28, 0.0 }
 0xd48   :  { %v8671_v16 = vld [vmem:[%s14448_s7 + $0x204] ss:$8 sps:$4 sm:$0xff]   ;;  %v8669_v38 = vld [vmem:[%s14448_s7 + $0x200] ss:$8 sps:$4 sm:$0xff]   ;;  %v8714_v26 = vld [vmem:[%s14449_s9 + $0x230] ss:$8 sps:$4 sm:$0xff]  }
 0xd49   :  { %5567 = vmatpush1.bf16.msra.mxu0 %v8609_v41  ;;  %6507 = vmatpush1.bf16.msra.mxu1 %v8612_v42  ;;  %v8674_v27 = vld [vmem:[%s14449_s9 + $0x1c4] ss:$8 sps:$4 sm:$0xff]   ;;  %v4719_v39 = vpack.c.bf16 %v4703_v57, %v4703_v57  ;;  %v8672_v40 = vld [vmem:[%s14449_s9 + $0x1c0] ss:$8 sps:$4 sm:$0xff]   ;;  %v8677_v41 = vld [vmem:[%s14448_s7 + $0x214] ss:$8 sps:$4 sm:$0xff]   ;;  %v4722_v42 = vpack.c.bf16 %v4706_v52, %v4706_v52 }
 0xd4a   :  { %5568 = vmatprep.subr.bf16.mxu0 %v8617_v43  ;;  %6508 = vmatprep.subr.bf16.mxu1 %v8620_v44  ;;  %v8680_v43 = vld [vmem:[%s14449_s9 + $0x1d4] ss:$8 sps:$4 sm:$0xff]   ;;  %v8675_v44 = vld [vmem:[%s14448_s7 + $0x210] ss:$8 sps:$4 sm:$0xff]   ;;  %v8717_v31 = vld [vmem:[%s14448_s7 + $0x280] ss:$8 sps:$4 sm:$0xff]  }
 0xd4b   :  { %v8723_v36 = vld [vmem:[%s14448_s7 + $0x290] ss:$8 sps:$4 sm:$0xff]   ;;  %v8731_v28 = vld [vmem:[%s14448_s7 + $0x2a4] ss:$8 sps:$4 sm:$0xff]   ;;  %v8732_v57 = vld [vmem:[%s14449_s9 + $0x260] ss:$8 sps:$4 sm:$0xff]  }
 0xd4c   :  { %v8735_v52 = vld [vmem:[%s14448_s7 + $0x2b0] ss:$8 sps:$4 sm:$0xff]  }
 0xd4d   :  { %5569 = vmatpush1.bf16.msra.mxu0 %v8615_v45  ;;  %6509 = vmatpush1.bf16.msra.mxu1 %v8618_v46  ;;  %v8678_v45 = vld [vmem:[%s14449_s9 + $0x1d0] ss:$8 sps:$4 sm:$0xff]   ;;  %v8683_v46 = vld [vmem:[%s14448_s7 + $0x224] ss:$8 sps:$4 sm:$0xff]  }
 0xd4e   :  { %5570 = vmatprep.subr.bf16.mxu0 %v8623_v47  ;;  %6510 = vmatprep.subr.bf16.mxu1 %v8626_v56  ;;  %v8686_v47 = vld [vmem:[%s14449_s9 + $0x1e4] ss:$8 sps:$4 sm:$0xff]   ;;  %v8681_v56 = vld [vmem:[%s14448_s7 + $0x220] ss:$8 sps:$4 sm:$0xff]  }
 0xd51   :  { %5571 = vmatpush1.bf16.msra.mxu0 %v8621_v48  ;;  %6511 = vmatpush1.bf16.msra.mxu1 %v8624_v50  ;;  %v8684_v48 = vld [vmem:[%s14449_s9 + $0x1e0] ss:$8 sps:$4 sm:$0xff]   ;;  %v8689_v50 = vld [vmem:[%s14448_s7 + $0x234] ss:$8 sps:$4 sm:$0xff]  }
 0xd52   :  { %5572 = vmatprep.subr.bf16.mxu0 %v8629_v58  ;;  %6512 = vmatprep.subr.bf16.mxu1 %v8632_v51  ;;  %v8692_v58 = vld [vmem:[%s14449_s9 + $0x1f4] ss:$8 sps:$4 sm:$0xff]   ;;  %v8687_v51 = vld [vmem:[%s14448_s7 + $0x230] ss:$8 sps:$4 sm:$0xff]  }
 0xd55   :  { %5573 = vmatpush1.bf16.msra.mxu0 %v8627_v60  ;;  %6513 = vmatpush1.bf16.msra.mxu1 %v8630_v62  ;;  %v8690_v60 = vld [vmem:[%s14449_s9 + $0x1f0] ss:$8 sps:$4 sm:$0xff]   ;;  %v8695_v62 = vld [vmem:[%s14448_s7 + $0x244] ss:$8 sps:$4 sm:$0xff]  }
 0xd56   :  { %5574 = vmatprep.subr.bf16.mxu0 %v8635_v63  ;;  %6514 = vmatprep.subr.bf16.mxu1 %v8638_v0  ;;  %v4711_v63 = vmax.f32 %v13723_v49, 0.0  ;;  %v8698_v0 = vld [vmem:[%s14449_s9 + $0x204] ss:$8 sps:$4 sm:$0xff]   ;;  %v8701_v49 = vld [vmem:[%s14448_s7 + $0x254] ss:$8 sps:$4 sm:$0xff]  }
 0xd59   :  { %5575 = vmatpush1.bf16.msra.mxu0 %v8633_v2  ;;  %6515 = vmatpush1.bf16.msra.mxu1 %v8636_v53  ;;  %v4714_v2 = vmax.f32 %v13759_v29, 0.0  ;;  %v8693_v53 = vld [vmem:[%s14448_s7 + $0x240] ss:$8 sps:$4 sm:$0xff]   ;;  %v8704_v29 = vld [vmem:[%s14449_s9 + $0x214] ss:$8 sps:$4 sm:$0xff]  }
 0xd5a   :  { %5576 = vmatprep.subr.bf16.mxu0 %v8641_v3  ;;  %6516 = vmatprep.subr.bf16.mxu1 %v8644_v4  ;;  %v8696_v3 = vld [vmem:[%s14449_s9 + $0x200] ss:$8 sps:$4 sm:$0xff]   ;;  %v4727_v4 = vpack.c.bf16 %v4711_v63, %v4711_v63  ;;  %v8762_v63 = vld [vmem:[%s14449_s9 + $0x2b0] ss:$8 sps:$4 sm:$0xff]  }
 0xd5d   :  { %5577 = vmatpush1.bf16.msra.mxu0 %v8639_v8  ;;  %6517 = vmatpush1.bf16.msra.mxu1 %v8642_v11  ;;  %v4730_v8 = vpack.c.bf16 %v4714_v2, %v4714_v2  ;;  %v8699_v11 = vld [vmem:[%s14448_s7 + $0x250] ss:$8 sps:$4 sm:$0xff]   ;;  %v8770_v2 = vld [vmem:[%s14449_s9 + $0x2c4] ss:$8 sps:$4 sm:$0xff]  }
 0xd5e   :  { %5578 = vmatprep.subr.bf16.mxu0 %v8647_v14  ;;  %6518 = vmatprep.subr.bf16.mxu1 %v8650_v12  ;;  %v8702_v14 = vld [vmem:[%s14449_s9 + $0x210] ss:$8 sps:$4 sm:$0xff]   ;;  %v8707_v12 = vld [vmem:[%s14448_s7 + $0x264] ss:$8 sps:$4 sm:$0xff]  }
 0xd61   :  { %5579 = vmatpush1.bf16.msra.mxu0 %v8645_v15  ;;  %6519 = vmatpush1.bf16.msra.mxu1 %v8648_v18  ;;  %v8710_v15 = vld [vmem:[%s14449_s9 + $0x224] ss:$8 sps:$4 sm:$0xff]   ;;  %v8705_v18 = vld [vmem:[%s14448_s7 + $0x260] ss:$8 sps:$4 sm:$0xff]  }
 0xd62   :  { %5580 = vmatprep.subr.bf16.mxu0 %v8653_v19  ;;  %6520 = vmatprep.subr.bf16.mxu1 %v8656_v22  ;;  %v8708_v19 = vld [vmem:[%s14449_s9 + $0x220] ss:$8 sps:$4 sm:$0xff]   ;;  %v8713_v22 = vld [vmem:[%s14448_s7 + $0x274] ss:$8 sps:$4 sm:$0xff]  }
 0xd65   :  { %5581 = vmatpush1.bf16.msra.mxu0 %v8651_v24  ;;  %6521 = vmatpush1.bf16.msra.mxu1 %v8654_v25  ;;  %v8716_v24 = vld [vmem:[%s14449_s9 + $0x234] ss:$8 sps:$4 sm:$0xff]   ;;  %v8711_v25 = vld [vmem:[%s14448_s7 + $0x270] ss:$8 sps:$4 sm:$0xff]  }
 0xd66   :  { %5582 = vmatprep.subr.bf16.mxu0 %v8659_v61  ;;  %6522 = vmatprep.subr.bf16.mxu1 %v8662_v37  ;;  %v8719_v61 = vld [vmem:[%s14448_s7 + $0x284] ss:$8 sps:$4 sm:$0xff]  }
 0xd67   :  { %v8722_v37 = vld [vmem:[%s14449_s9 + $0x244] ss:$8 sps:$4 sm:$0xff]  }
 0xd69   :  { %5583 = vmatpush1.bf16.msra.mxu0 %v8657_v55  ;;  %6523 = vmatpush1.bf16.msra.mxu1 %v8660_v35  ;;  %v8720_v55 = vld [vmem:[%s14449_s9 + $0x240] ss:$8 sps:$4 sm:$0xff]   ;;  %v8725_v35 = vld [vmem:[%s14448_s7 + $0x294] ss:$8 sps:$4 sm:$0xff]  }
 0xd6a   :  { %5584 = vmatprep.subr.bf16.mxu0 %v8665_v34  ;;  %6524 = vmatprep.subr.bf16.mxu1 %v8668_v54  ;;  %v8728_v34 = vld [vmem:[%s14449_s9 + $0x254] ss:$8 sps:$4 sm:$0xff]   ;;  %v8726_v54 = vld [vmem:[%s14449_s9 + $0x250] ss:$8 sps:$4 sm:$0xff]  }
 0xd6d   :  { %5585 = vmatpush1.bf16.msra.mxu0 %v8663_v23  ;;  %6525 = vmatpush1.bf16.msra.mxu1 %v8666_v17  ;;  %v8734_v23 = vld [vmem:[%s14449_s9 + $0x264] ss:$8 sps:$4 sm:$0xff]   ;;  %v8729_v17 = vld [vmem:[%s14448_s7 + $0x2a0] ss:$8 sps:$4 sm:$0xff]  }
 0xd6e   :  { %5595 = vmatprep.subr.bf16.mxu0 %v8671_v16  ;;  %6526 = vmatprep.subr.bf16.mxu1 %v8674_v27  ;;  %v8737_v16 = vld [vmem:[%s14448_s7 + $0x2b4] ss:$8 sps:$4 sm:$0xff]  }
 0xd6f   :  { %v8740_v27 = vld [vmem:[%s14449_s9 + $0x274] ss:$8 sps:$4 sm:$0xff]  }
 0xd70   :  { %5587 = vmatmul.mubr.bf16.vlgmr.msra.gmra.mrb[32].mxu0 %v4719_v39  ;;  %v8743_v39 = vld [vmem:[%s14448_s7 + $0x2c4] ss:$8 sps:$4 sm:$0xff]  }
 0xd71   :  { %5596 = vmatpush1.bf16.msra.mxu0 %v8669_v38  ;;  %5627 = vmatprep.mubr.bf16.mxu0 %v4722_v42  ;;  %v8738_v38 = vld [vmem:[%s14449_s9 + $0x270] ss:$8 sps:$4 sm:$0xff]   ;;  %v8744_v42 = vld [vmem:[%s14449_s9 + $0x280] ss:$8 sps:$4 sm:$0xff]  }
 0xd72   :  { %6527 = vmatpush1.bf16.msra.mxu1 %v8672_v40  ;;  %5597 = vmatprep.subr.bf16.mxu0 %v8677_v41  ;;  %v8746_v40 = vld [vmem:[%s14449_s9 + $0x284] ss:$8 sps:$4 sm:$0xff]   ;;  %v8741_v41 = vld [vmem:[%s14448_s7 + $0x2c0] ss:$8 sps:$4 sm:$0xff]  }
 0xd73   :  { %6528 = vmatprep.subr.bf16.mxu1 %v8680_v43  ;;  %v8749_v43 = vld [vmem:[%s14448_s7 + $0x2d4] ss:$8 sps:$4 sm:$0xff]  }
 0xd75   :  { %5598 = vmatpush1.bf16.msra.mxu0 %v8675_v44  ;;  %v8752_v44 = vld [vmem:[%s14449_s9 + $0x294] ss:$8 sps:$4 sm:$0xff]  }
 0xd76   :  { %6529 = vmatpush1.bf16.msra.mxu1 %v8678_v45  ;;  %5599 = vmatprep.subr.bf16.mxu0 %v8683_v46  ;;  %v8747_v45 = vld [vmem:[%s14448_s7 + $0x2d0] ss:$8 sps:$4 sm:$0xff]   ;;  %v4148_v46 = vrot.slane %v13679_v6, %v4147_v21  ;;  %v8753_v21 = vld [vmem:[%s14448_s7 + $0x2e0] ss:$8 sps:$4 sm:$0xff]  }
 0xd77   :  { %6530 = vmatprep.subr.bf16.mxu1 %v8686_v47  ;;  %v8750_v47 = vld [vmem:[%s14449_s9 + $0x290] ss:$8 sps:$4 sm:$0xff]  }
 0xd79   :  { %5600 = vmatpush1.bf16.msra.mxu0 %v8681_v56  ;;  %v8755_v56 = vld [vmem:[%s14448_s7 + $0x2e4] ss:$8 sps:$4 sm:$0xff]  }
 0xd7a   :  { %6531 = vmatpush1.bf16.msra.mxu1 %v8684_v48  ;;  %5601 = vmatprep.subr.bf16.mxu0 %v8689_v50  ;;  %v4160_v48 = vrot.slane %v13679_v6, %v4159_v5  ;;  %v8758_v50 = vld [vmem:[%s14449_s9 + $0x2a4] ss:$8 sps:$4 sm:$0xff]   ;;  %v8761_v6 = vld [vmem:[%s14448_s7 + $0x2f4] ss:$8 sps:$4 sm:$0xff]  }
 0xd7b   :  { %6532 = vmatprep.subr.bf16.mxu1 %v8692_v58  ;;  %v4490_v58 = vadd.f32 %v13695_v30, %v4148_v46  ;;  %v8759_v30 = vld [vmem:[%s14448_s7 + $0x2f0] ss:$8 sps:$4 sm:$0xff]   ;;  %v8824_v46 = vld [vmem:[%s14449_s9 + $0x354] ss:$8 sps:$4 sm:$0xff]  }
 0xd7c   :  { %v4533_v5 = vadd.f32 %v13701_v10, %v4160_v48  ;;  %v8767_v10 = vld [vmem:[%s14448_s7 + $0x304] ss:$8 sps:$4 sm:$0xff]  }
 0xd7d   :  { %5602 = vmatpush1.bf16.msra.mxu0 %v8687_v51  ;;  %v8756_v51 = vld [vmem:[%s14449_s9 + $0x2a0] ss:$8 sps:$4 sm:$0xff]   ;;  %v8827_v48 = vld [vmem:[%s14448_s7 + $0x3a4] ss:$8 sps:$4 sm:$0xff]  }
 0xd7e   :  { %6533 = vmatpush1.bf16.msra.mxu1 %v8690_v60  ;;  %5603 = vmatprep.subr.bf16.mxu0 %v8695_v62  ;;  %v8764_v60 = vld [vmem:[%s14449_s9 + $0x2b4] ss:$8 sps:$4 sm:$0xff]   ;;  %v4705_v62 = vmax.f32 %v4490_v58, 0.0  ;;  %v8828_v58 = vld [vmem:[%s14449_s9 + $0x360] ss:$8 sps:$4 sm:$0xff]  }
 0xd7f   :  { %6543 = vmatprep.subr.bf16.mxu1 %v8698_v0  ;;  %v4708_v0 = vmax.f32 %v4533_v5, 0.0  ;;  %v8831_v5 = vld [vmem:[%s14448_s7 + $0x3b0] ss:$8 sps:$4 sm:$0xff]  }
 0xd81   :  { %6535 = vmatmul.mubr.bf16.vlgmr.msra.gmra.mrb[32].mxu1 %v4727_v4  ;;  %5604 = vmatpush1.bf16.msra.mxu0 %v8693_v53  ;;  %v8765_v53 = vld [vmem:[%s14448_s7 + $0x300] ss:$8 sps:$4 sm:$0xff]  }
 0xd82   :  { %6544 = vmatpush1.bf16.msra.mxu1 %v8696_v3  ;;  %6575 = vmatprep.mubr.bf16.mxu1 %v4730_v8  ;;  %v4721_v3 = vpack.c.bf16 %v4705_v62, %v4705_v62  ;;  %v8768_v4 = vld [vmem:[%s14449_s9 + $0x2c0] ss:$8 sps:$4 sm:$0xff]   ;;  %v8776_v8 = vld [vmem:[%s14449_s9 + $0x2d4] ss:$8 sps:$4 sm:$0xff]   ;;  %v8842_v62 = vld [vmem:[%s14449_s9 + $0x384] ss:$8 sps:$4 sm:$0xff]  }
 0xd83   :  { %5605 = vmatprep.subr.bf16.mxu0 %v8701_v49  ;;  %6545 = vmatprep.subr.bf16.mxu1 %v8704_v29  ;;  %v8773_v49 = vld [vmem:[%s14448_s7 + $0x314] ss:$8 sps:$4 sm:$0xff]   ;;  %v4724_v29 = vpack.c.bf16 %v4708_v0, %v4708_v0 }
 0xd84   :  { %v8845_v0 = vld [vmem:[%s14448_s7 + $0x3d4] ss:$8 sps:$4 sm:$0xff]  }
 0xd85   :  { %5606 = vmatpush1.bf16.msra.mxu0 %v8699_v11  ;;  %v8771_v11 = vld [vmem:[%s14448_s7 + $0x310] ss:$8 sps:$4 sm:$0xff]  }
 0xd86   :  { %6546 = vmatpush1.bf16.msra.mxu1 %v8702_v14  ;;  %5607 = vmatprep.subr.bf16.mxu0 %v8707_v12  ;;  %v8774_v14 = vld [vmem:[%s14449_s9 + $0x2d0] ss:$8 sps:$4 sm:$0xff]   ;;  %v8779_v12 = vld [vmem:[%s14448_s7 + $0x324] ss:$8 sps:$4 sm:$0xff]  }
 0xd87   :  { %6547 = vmatprep.subr.bf16.mxu1 %v8710_v15  ;;  %v8782_v15 = vld [vmem:[%s14449_s9 + $0x2e4] ss:$8 sps:$4 sm:$0xff]  }
 0xd89   :  { %5608 = vmatpush1.bf16.msra.mxu0 %v8705_v18  ;;  %v8777_v18 = vld [vmem:[%s14448_s7 + $0x320] ss:$8 sps:$4 sm:$0xff]  }
 0xd8a   :  { %6548 = vmatpush1.bf16.msra.mxu1 %v8708_v19  ;;  %5609 = vmatprep.subr.bf16.mxu0 %v8713_v22  ;;  %v8780_v19 = vld [vmem:[%s14449_s9 + $0x2e0] ss:$8 sps:$4 sm:$0xff]   ;;  %v8785_v22 = vld [vmem:[%s14448_s7 + $0x334] ss:$8 sps:$4 sm:$0xff]  }
 0xd8b   :  { %6549 = vmatprep.subr.bf16.mxu1 %v8716_v24  ;;  %v8788_v24 = vld [vmem:[%s14449_s9 + $0x2f4] ss:$8 sps:$4 sm:$0xff]  }
 0xd8d   :  { %5610 = vmatpush1.bf16.msra.mxu0 %v8711_v25  ;;  %v8783_v25 = vld [vmem:[%s14448_s7 + $0x330] ss:$8 sps:$4 sm:$0xff]  }
 0xd8e   :  { %6550 = vmatpush1.bf16.msra.mxu1 %v8714_v26  ;;  %5611 = vmatprep.subr.bf16.mxu0 %v8719_v61  ;;  %v8786_v26 = vld [vmem:[%s14449_s9 + $0x2f0] ss:$8 sps:$4 sm:$0xff]   ;;  %v8791_v61 = vld [vmem:[%s14448_s7 + $0x344] ss:$8 sps:$4 sm:$0xff]  }
 0xd8f   :  { %6551 = vmatprep.subr.bf16.mxu1 %v8722_v37  ;;  %v4713_v37 = vmax.f32 %v13755_v20, 0.0  ;;  %v8797_v20 = vld [vmem:[%s14448_s7 + $0x354] ss:$8 sps:$4 sm:$0xff]  }
 0xd91   :  { %5612 = vmatpush1.bf16.msra.mxu0 %v8717_v31  ;;  %v8794_v31 = vld [vmem:[%s14449_s9 + $0x304] ss:$8 sps:$4 sm:$0xff]  }
 0xd92   :  { %6552 = vmatpush1.bf16.msra.mxu1 %v8720_v55  ;;  %5613 = vmatprep.subr.bf16.mxu0 %v8725_v35  ;;  %v4716_v55 = vmax.f32 %v13761_v33, 0.0  ;;  %v8789_v35 = vld [vmem:[%s14448_s7 + $0x340] ss:$8 sps:$4 sm:$0xff]   ;;  %v8800_v33 = vld [vmem:[%s14449_s9 + $0x314] ss:$8 sps:$4 sm:$0xff]  }
 0xd93   :  { %6553 = vmatprep.subr.bf16.mxu1 %v8728_v34  ;;  %v4729_v34 = vpack.c.bf16 %v4713_v37, %v4713_v37  ;;  %v8866_v37 = vld [vmem:[%s14449_s9 + $0x3d4] ss:$8 sps:$4 sm:$0xff]  }
 0xd95   :  { %5614 = vmatpush1.bf16.msra.mxu0 %v8723_v36  ;;  %v8792_v36 = vld [vmem:[%s14449_s9 + $0x300] ss:$8 sps:$4 sm:$0xff]  }
 0xd96   :  { %6554 = vmatpush1.bf16.msra.mxu1 %v8726_v54  ;;  %5615 = vmatprep.subr.bf16.mxu0 %v8731_v28  ;;  %v4732_v54 = vpack.c.bf16 %v4716_v55, %v4716_v55  ;;  %v8795_v28 = vld [vmem:[%s14448_s7 + $0x350] ss:$8 sps:$4 sm:$0xff]  }
 0xd97   :  { %6555 = vmatprep.subr.bf16.mxu1 %v8734_v23  ;;  %v8798_v23 = vld [vmem:[%s14449_s9 + $0x310] ss:$8 sps:$4 sm:$0xff]  }
 0xd98   :  { %v8864_v55 = vld [vmem:[%s14449_s9 + $0x3d0] ss:$8 sps:$4 sm:$0xff]  }
 0xd99   :  { %5616 = vmatpush1.bf16.msra.mxu0 %v8729_v17  ;;  %v8803_v17 = vld [vmem:[%s14448_s7 + $0x364] ss:$8 sps:$4 sm:$0xff]  }
 0xd9a   :  { %6556 = vmatpush1.bf16.msra.mxu1 %v8732_v57  ;;  %5617 = vmatprep.subr.bf16.mxu0 %v8737_v16  ;;  %v8806_v57 = vld [vmem:[%s14449_s9 + $0x324] ss:$8 sps:$4 sm:$0xff]   ;;  %v8801_v16 = vld [vmem:[%s14448_s7 + $0x360] ss:$8 sps:$4 sm:$0xff]  }
 0xd9b   :  { %6557 = vmatprep.subr.bf16.mxu1 %v8740_v27  ;;  %v8804_v27 = vld [vmem:[%s14449_s9 + $0x320] ss:$8 sps:$4 sm:$0xff]  }
 0xd9d   :  { %5618 = vmatpush1.bf16.msra.mxu0 %v8735_v52  ;;  %v8809_v52 = vld [vmem:[%s14448_s7 + $0x374] ss:$8 sps:$4 sm:$0xff]  }
 0xd9e   :  { %6558 = vmatpush1.bf16.msra.mxu1 %v8738_v38  ;;  %5619 = vmatprep.subr.bf16.mxu0 %v8743_v39  ;;  %v8812_v38 = vld [vmem:[%s14449_s9 + $0x334] ss:$8 sps:$4 sm:$0xff]   ;;  %v8807_v39 = vld [vmem:[%s14448_s7 + $0x370] ss:$8 sps:$4 sm:$0xff]  }
 0xd9f   :  { %6559 = vmatprep.subr.bf16.mxu1 %v8746_v40  ;;  %v8810_v40 = vld [vmem:[%s14449_s9 + $0x330] ss:$8 sps:$4 sm:$0xff]  }
 0xda1   :  { %5620 = vmatpush1.bf16.msra.mxu0 %v8741_v41  ;;  %v8815_v41 = vld [vmem:[%s14448_s7 + $0x384] ss:$8 sps:$4 sm:$0xff]  }
 0xda2   :  { %6560 = vmatpush1.bf16.msra.mxu1 %v8744_v42  ;;  %5621 = vmatprep.subr.bf16.mxu0 %v8749_v43  ;;  %v8818_v42 = vld [vmem:[%s14449_s9 + $0x344] ss:$8 sps:$4 sm:$0xff]   ;;  %v8813_v43 = vld [vmem:[%s14448_s7 + $0x380] ss:$8 sps:$4 sm:$0xff]  }
 0xda3   :  { %6561 = vmatprep.subr.bf16.mxu1 %v8752_v44  ;;  %v8816_v44 = vld [vmem:[%s14449_s9 + $0x340] ss:$8 sps:$4 sm:$0xff]  }
 0xda5   :  { %5622 = vmatpush1.bf16.msra.mxu0 %v8747_v45  ;;  %v8821_v45 = vld [vmem:[%s14448_s7 + $0x394] ss:$8 sps:$4 sm:$0xff]  }
 0xda6   :  { %6562 = vmatpush1.bf16.msra.mxu1 %v8750_v47  ;;  %5623 = vmatprep.subr.bf16.mxu0 %v8755_v56  ;;  %v8819_v47 = vld [vmem:[%s14448_s7 + $0x390] ss:$8 sps:$4 sm:$0xff]  }
 0xda7   :  { %6563 = vmatprep.subr.bf16.mxu1 %v8758_v50  ;;  %v8822_v56 = vld [vmem:[%s14449_s9 + $0x350] ss:$8 sps:$4 sm:$0xff]   ;;  %v8830_v50 = vld [vmem:[%s14449_s9 + $0x364] ss:$8 sps:$4 sm:$0xff]  }
 0xda9   :  { %5624 = vmatpush1.bf16.msra.mxu0 %v8753_v21  ;;  %v8825_v21 = vld [vmem:[%s14448_s7 + $0x3a0] ss:$8 sps:$4 sm:$0xff]  }
 0xdaa   :  { %6564 = vmatpush1.bf16.msra.mxu1 %v8756_v51  ;;  %5625 = vmatprep.subr.bf16.mxu0 %v8761_v6  ;;  %v8833_v51 = vld [vmem:[%s14448_s7 + $0x3b4] ss:$8 sps:$4 sm:$0xff]  }
 0xdab   :  { %6565 = vmatprep.subr.bf16.mxu1 %v8764_v60  ;;  %v8836_v6 = vld [vmem:[%s14449_s9 + $0x374] ss:$8 sps:$4 sm:$0xff]   ;;  %v8834_v60 = vld [vmem:[%s14449_s9 + $0x370] ss:$8 sps:$4 sm:$0xff]  }
 0xdad   :  { %5626 = vmatpush1.bf16.msra.mxu0 %v8759_v30  ;;  %v8839_v30 = vld [vmem:[%s14448_s7 + $0x3c4] ss:$8 sps:$4 sm:$0xff]  }
 0xdae   :  { %6566 = vmatpush1.bf16.msra.mxu1 %v8762_v63  ;;  %5636 = vmatprep.subr.bf16.mxu0 %v8767_v10  ;;  %v8837_v63 = vld [vmem:[%s14448_s7 + $0x3c0] ss:$8 sps:$4 sm:$0xff]  }
 0xdaf   :  { %6567 = vmatprep.subr.bf16.mxu1 %v8770_v2  ;;  %v8840_v10 = vld [vmem:[%s14449_s9 + $0x380] ss:$8 sps:$4 sm:$0xff]   ;;  %v8848_v2 = vld [vmem:[%s14449_s9 + $0x394] ss:$8 sps:$4 sm:$0xff]  }
 0xdb0   :  { %5628 = vmatmul.mubr.bf16.vlgmr.msra.gmra.mrb[32].mxu0 %v4721_v3  ;;  %v9369_v3 = vld [vmem:[%s14450_s6] sm:$0xff] }
 0xdb1   :  { %5637 = vmatpush1.bf16.msra.mxu0 %v8765_v53  ;;  %5668 = vmatprep.mubr.bf16.mxu0 %v4724_v29  ;;  %v8843_v53 = vld [vmem:[%s14448_s7 + $0x3d0] ss:$8 sps:$4 sm:$0xff]   ;;  %v8851_v29 = vld [vmem:[%s14448_s7 + $0x3e4] ss:$8 sps:$4 sm:$0xff]  }
 0xdb2   :  { %6568 = vmatpush1.bf16.msra.mxu1 %v8768_v4  ;;  %5638 = vmatprep.subr.bf16.mxu0 %v8773_v49  ;;  %v4156_v4 = vrot.slane %v9369_v3, %v4155_v1  ;;  %v8846_v49 = vld [vmem:[%s14449_s9 + $0x390] ss:$8 sps:$4 sm:$0xff]  }
 0xdb3   :  { %6569 = vmatprep.subr.bf16.mxu1 %v8776_v8  ;;  %v8854_v8 = vld [vmem:[%s14449_s9 + $0x3a4] ss:$8 sps:$4 sm:$0xff]  }
 0xdb4   :  { %v4531_v1 = vadd.f32 %v13697_v32, %v4156_v4  ;;  %v8855_v32 = vld [vmem:[%s14448_s7 + $0x3f0] ss:$8 sps:$4 sm:$0xff]  }
 0xdb5   :  { %5639 = vmatpush1.bf16.msra.mxu0 %v8771_v11  ;;  %v8852_v11 = vld [vmem:[%s14449_s9 + $0x3a0] ss:$8 sps:$4 sm:$0xff]  }
 0xdb6   :  { %6570 = vmatpush1.bf16.msra.mxu1 %v8774_v14  ;;  %5640 = vmatprep.subr.bf16.mxu0 %v8779_v12  ;;  %v8857_v14 = vld [vmem:[%s14448_s7 + $0x3f4] ss:$8 sps:$4 sm:$0xff]  }
 0xdb7   :  { %6571 = vmatprep.subr.bf16.mxu1 %v8782_v15  ;;  %v8860_v12 = vld [vmem:[%s14449_s9 + $0x3b4] ss:$8 sps:$4 sm:$0xff]   ;;  %v4707_v15 = vmax.f32 %v4531_v1, 0.0 }
 0xdb9   :  { %5641 = vmatpush1.bf16.msra.mxu0 %v8777_v18  ;;  %v8858_v18 = vld [vmem:[%s14449_s9 + $0x3b0] ss:$8 sps:$4 sm:$0xff]  }
 0xdba   :  { %6572 = vmatpush1.bf16.msra.mxu1 %v8780_v19  ;;  %5642 = vmatprep.subr.bf16.mxu0 %v8785_v22  ;;  %v8873_v19 = vld [vmem:[%s14451_s11 + $0x40] sm:$0xff]  }
 0xdbb   :  { %6573 = vmatprep.subr.bf16.mxu1 %v8788_v24  ;;  %v8863_v22 = vld [vmem:[%s14449_s9 + $0x3c4] ss:$8 sps:$4 sm:$0xff]  }
 0xdbc   :  { %v8874_v24 = vld [vmem:[%s14451_s11] sm:$0xff]  }
 0xdbd   :  { %5643 = vmatpush1.bf16.msra.mxu0 %v8783_v25  ;;  %v4723_v25 = vpack.c.bf16 %v4707_v15, %v4707_v15 }
 0xdbe   :  { %6574 = vmatpush1.bf16.msra.mxu1 %v8786_v26  ;;  %5644 = vmatprep.subr.bf16.mxu0 %v8791_v61  ;;  %v8861_v26 = vld [vmem:[%s14449_s9 + $0x3c0] ss:$8 sps:$4 sm:$0xff]  }
 0xdbf   :  { %6584 = vmatprep.subr.bf16.mxu1 %v8794_v31  ;;  %v8875_v61 = vld [vmem:[%s14451_s11 + $0x48] sm:$0xff]  }
 0xdc0   :  { %v8876_v31 = vld [vmem:[%s14451_s11 + $0x8] sm:$0xff]  }
 0xdc1   :  { %6576 = vmatmul.mubr.bf16.vlgmr.msra.gmra.mrb[32].mxu1 %v4729_v34  ;;  %5645 = vmatpush1.bf16.msra.mxu0 %v8789_v35  ;;  %v8877_v35 = vld [vmem:[%s14451_s11 + $0x50] sm:$0xff]  }
 0xdc2   :  { %6585 = vmatpush1.bf16.msra.mxu1 %v8792_v36  ;;  %6616 = vmatprep.mubr.bf16.mxu1 %v4732_v54  ;;  %v8869_v36 = vld [vmem:[%s14449_s9 + $0x3e4] ss:$8 sps:$4 sm:$0xff]   ;;  %v8878_v34 = vld [vmem:[%s14451_s11 + $0x10] sm:$0xff]  }
 0xdc3   :  { %5646 = vmatprep.subr.bf16.mxu0 %v8797_v20  ;;  %6586 = vmatprep.subr.bf16.mxu1 %v8800_v33  ;;  %v8867_v20 = vld [vmem:[%s14449_s9 + $0x3e0] ss:$8 sps:$4 sm:$0xff]   ;;  %v8879_v33 = vld [vmem:[%s14451_s11 + $0x58] sm:$0xff]  }
 0xdc4   :  { %v8872_v54 = vld [vmem:[%s14449_s9 + $0x3f4] ss:$8 sps:$4 sm:$0xff]  }
 0xdc5   :  { %5647 = vmatpush1.bf16.msra.mxu0 %v8795_v28  ;;  %v8880_v28 = vld [vmem:[%s14451_s11 + $0x18] sm:$0xff]  }
 0xdc6   :  { %6587 = vmatpush1.bf16.msra.mxu1 %v8798_v23  ;;  %5648 = vmatprep.subr.bf16.mxu0 %v8803_v17  ;;  %v8870_v23 = vld [vmem:[%s14449_s9 + $0x3f0] ss:$8 sps:$4 sm:$0xff]   ;;  %v8881_v17 = vld [vmem:[%s14451_s11 + $0x60] sm:$0xff]  }
 0xdc7   :  { %6588 = vmatprep.subr.bf16.mxu1 %v8806_v57  ;;  %v4715_v57 = vmax.f32 %v13757_v59, 0.0  ;;  %v8885_v59 = vld [vmem:[%s14451_s11 + $0x68] sm:$0xff]  }
 0xdc9   :  { %5649 = vmatpush1.bf16.msra.mxu0 %v8801_v16  ;;  %v8882_v16 = vld [vmem:[%s14452_s13 + $0x40] sm:$0xff]  }
 0xdca   :  { %6589 = vmatpush1.bf16.msra.mxu1 %v8804_v27  ;;  %5650 = vmatprep.subr.bf16.mxu0 %v8809_v52  ;;  %v8883_v27 = vld [vmem:[%s14451_s11 + $0x20] sm:$0xff]  }
 0xdcb   :  { %6590 = vmatprep.subr.bf16.mxu1 %v8812_v38  ;;  %v8884_v52 = vld [vmem:[%s14452_s13] sm:$0xff]   ;;  %v4731_v38 = vpack.c.bf16 %v4715_v57, %v4715_v57 }
 0xdcd   :  { %5651 = vmatpush1.bf16.msra.mxu0 %v8807_v39  ;;  %v8886_v39 = vld [vmem:[%s14452_s13 + $0x48] sm:$0xff]  }
 0xdce   :  { %6591 = vmatpush1.bf16.msra.mxu1 %v8810_v40  ;;  %5652 = vmatprep.subr.bf16.mxu0 %v8815_v41  ;;  %v8887_v40 = vld [vmem:[%s14451_s11 + $0x28] sm:$0xff]  }
 0xdcf   :  { %6592 = vmatprep.subr.bf16.mxu1 %v8818_v42  ;;  %v8888_v41 = vld [vmem:[%s14452_s13 + $0x8] sm:$0xff]   ;;  %v8889_v42 = vld [vmem:[%s14451_s11 + $0x70] sm:$0xff]  }
 0xdd1   :  { %5653 = vmatpush1.bf16.msra.mxu0 %v8813_v43  ;;  %v8890_v43 = vld [vmem:[%s14452_s13 + $0x50] sm:$0xff]  }
 0xdd2   :  { %6593 = vmatpush1.bf16.msra.mxu1 %v8816_v44  ;;  %5654 = vmatprep.subr.bf16.mxu0 %v8821_v45  ;;  %v8891_v44 = vld [vmem:[%s14451_s11 + $0x30] sm:$0xff]  }
 0xdd3   :  { %6594 = vmatprep.subr.bf16.mxu1 %v8824_v46  ;;  %v8892_v45 = vld [vmem:[%s14452_s13 + $0x10] sm:$0xff]   ;;  %v8893_v46 = vld [vmem:[%s14451_s11 + $0x78] sm:$0xff]  }
 0xdd5   :  { %5655 = vmatpush1.bf16.msra.mxu0 %v8819_v47  ;;  %v8894_v47 = vld [vmem:[%s14452_s13 + $0x58] sm:$0xff]  }
 0xdd6   :  { %6595 = vmatpush1.bf16.msra.mxu1 %v8822_v56  ;;  %5656 = vmatprep.subr.bf16.mxu0 %v8827_v48  ;;  %v8895_v56 = vld [vmem:[%s14451_s11 + $0x38] sm:$0xff]  }
 0xdd7   :  { %6596 = vmatprep.subr.bf16.mxu1 %v8830_v50  ;;  %v8896_v48 = vld [vmem:[%s14452_s13 + $0x18] sm:$0xff]   ;;  %v8897_v50 = vld [vmem:[%s14452_s13 + $0x60] sm:$0xff]  }
 0xdd9   :  { %5657 = vmatpush1.bf16.msra.mxu0 %v8825_v21  ;;  %v8898_v21 = vld [vmem:[%s14452_s13 + $0x20] sm:$0xff]  }
 0xdda   :  { %6597 = vmatpush1.bf16.msra.mxu1 %v8828_v58  ;;  %5658 = vmatprep.subr.bf16.mxu0 %v8833_v51  ;;  %v8899_v58 = vld [vmem:[%s14452_s13 + $0x68] sm:$0xff]  }
 0xddb   :  { %6598 = vmatprep.subr.bf16.mxu1 %v8836_v6  ;;  %v8900_v51 = vld [vmem:[%s14452_s13 + $0x28] sm:$0xff]   ;;  %v8901_v6 = vld [vmem:[%s14452_s13 + $0x70] sm:$0xff]  }
 0xddd   :  { %5659 = vmatpush1.bf16.msra.mxu0 %v8831_v5  ;;  %v8902_v5 = vld [vmem:[%s14452_s13 + $0x30] sm:$0xff]  }
 0xdde   :  { %6599 = vmatpush1.bf16.msra.mxu1 %v8834_v60  ;;  %5660 = vmatprep.subr.bf16.mxu0 %v8839_v30  ;;  %v8903_v60 = vld [vmem:[%s14452_s13 + $0x78] sm:$0xff]  }
 0xddf   :  { %6600 = vmatprep.subr.bf16.mxu1 %v8842_v62  ;;  %v8904_v30 = vld [vmem:[%s14452_s13 + $0x38] sm:$0xff]   ;;  %v4861_v62 = vld [vmem:[%s14453_s8] sm:$0x3] }
 0xde1   :  { %5661 = vmatpush1.bf16.msra.mxu0 %v8837_v63  ;;  %v4866_v63 = vrot.slane %v4861_v62, %v15092_v9 }
 0xde2   :  { %6601 = vmatpush1.bf16.msra.mxu1 %v8840_v10  ;;  %5662 = vmatprep.subr.bf16.mxu0 %v8845_v0  ;;  %v4870_v10 = vrot.slane %v4861_v62, %v15093_v13 }
 0xde3   :  { %6602 = vmatprep.subr.bf16.mxu1 %v8848_v2 }
 0xde5   :  { %5663 = vmatpush1.bf16.msra.mxu0 %v8843_v53 }
 0xde6   :  { %6603 = vmatpush1.bf16.msra.mxu1 %v8846_v49  ;;  %5664 = vmatprep.subr.bf16.mxu0 %v8851_v29 }
 0xde7   :  { %6604 = vmatprep.subr.bf16.mxu1 %v8854_v8 }
 0xde9   :  { %5665 = vmatpush1.bf16.msra.mxu0 %v8849_v7 }
 0xdea   :  { %6605 = vmatpush1.bf16.msra.mxu1 %v8852_v11  ;;  %5666 = vmatprep.subr.bf16.mxu0 %v8857_v14  ;;  %v5809_v11 = vld [vmem:[%s14454_s10] sm:$0x3] }
 0xdeb   :  { %6606 = vmatprep.subr.bf16.mxu1 %v8860_v12  ;;  %v5814_v14 = vrot.slane %v5809_v11, %v15092_v9  ;;  %v5818_v12 = vrot.slane %v5809_v11, %v15093_v13  ;;  %v7716_v13 = vld [vmem:[%s14456_s12] ss:$0 sm:$0xff] }
 0xded   :  { %5667 = vmatpush1.bf16.msra.mxu0 %v8855_v32 }
 0xdee   :  { %6607 = vmatpush1.bf16.msra.mxu1 %v8858_v18  ;;  %7839 = vmatprep.subr.bf16.mxu0 %v8873_v19 }
 0xdef   :  { %6608 = vmatprep.subr.bf16.mxu1 %v8863_v22 }
 0xdf0   :  { %5669 = vmatmul.mubr.bf16.vlgmr.msra.gmra.mrb[32].mxu0 %v4723_v25 }
 0xdf1   :  { %7840 = vmatpush3.bf16.msra.mxu0 %v8874_v24 }
 0xdf2   :  { %6609 = vmatpush1.bf16.msra.mxu1 %v8861_v26  ;;  %7841 = vmatprep.subr.bf16.mxu0 %v8875_v61 }
 0xdf3   :  { %6610 = vmatprep.subr.bf16.mxu1 %v8866_v37 }
 0xdf5   :  { %7842 = vmatpush3.bf16.msra.mxu0 %v8876_v31  ;;  %v22_v31 = vstv %s14455_s14 }
 0xdf6   :  { %6611 = vmatpush1.bf16.msra.mxu1 %v8864_v55  ;;  %7843 = vmatprep.subr.bf16.mxu0 %v8877_v35  ;;  %23 = vst [vmem:[#allocation2] sm:$0x1] %v22_v31 }
 0xdf7   :  { %6612 = vmatprep.subr.bf16.mxu1 %v8869_v36 }
 0xdf9   :  { %7844 = vmatpush3.bf16.msra.mxu0 %v8878_v34 }
 0xdfa   :  { %6613 = vmatpush1.bf16.msra.mxu1 %v8867_v20  ;;  %7845 = vmatprep.subr.bf16.mxu0 %v8879_v33 }
 0xdfb   :  { %6614 = vmatprep.subr.bf16.mxu1 %v8872_v54 }
 0xdfd   :  { %7846 = vmatpush3.bf16.msra.mxu0 %v8880_v28 }
 0xdfe   :  { %6615 = vmatpush1.bf16.msra.mxu1 %v8870_v23  ;;  %7847 = vmatprep.subr.bf16.mxu0 %v8881_v17  ;;  %v7734_v23 = vld [vmem:[#allocation2] ss:$0 sm:$0xff] }
 0xdff   :  { %7861 = vmatprep.subr.bf16.mxu1 %v8882_v16 }
 0xe01   :  { %6617 = vmatmul.mubr.bf16.vlgmr.msra.gmra.mrb[32].mxu1 %v4731_v38  ;;  %7848 = vmatpush3.bf16.msra.mxu0 %v8883_v27 }
 0xe02   :  { %7862 = vmatpush3.bf16.msra.mxu1 %v8884_v52  ;;  %7849 = vmatprep.subr.bf16.mxu0 %v8885_v59 }
 0xe03   :  { %7863 = vmatprep.subr.bf16.mxu1 %v8886_v39 }
 0xe05   :  { %7850 = vmatpush3.bf16.msra.mxu0 %v8887_v40 }
 0xe06   :  { %7864 = vmatpush3.bf16.msra.mxu1 %v8888_v41  ;;  %7851 = vmatprep.subr.bf16.mxu0 %v8889_v42 }
 0xe07   :  { %7865 = vmatprep.subr.bf16.mxu1 %v8890_v43 }
 0xe09   :  { %7852 = vmatpush3.bf16.msra.mxu0 %v8891_v44 }
 0xe0a   :  { %7866 = vmatpush3.bf16.msra.mxu1 %v8892_v45  ;;  %7853 = vmatprep.subr.bf16.mxu0 %v8893_v46 }
 0xe0b   :  { %7867 = vmatprep.subr.bf16.mxu1 %v8894_v47 }
 0xe0d   :  { %7854 = vmatpush3.bf16.msra.mxu0 %v8895_v56 }
 0xe0e   :  { %7868 = vmatpush3.bf16.msra.mxu1 %v8896_v48 }
 0xe0f   :  { %7869 = vmatprep.subr.bf16.mxu1 %v8897_v50 }
 0xe12   :  { %7870 = vmatpush3.bf16.msra.mxu1 %v8898_v21 }
 0xe13   :  { %7871 = vmatprep.subr.bf16.mxu1 %v8899_v58 }
 0xe16   :  { %7872 = vmatpush3.bf16.msra.mxu1 %v8900_v51 }
 0xe17   :  { %7873 = vmatprep.subr.bf16.mxu1 %v8901_v6 }
 0xe1a   :  { %7874 = vmatpush3.bf16.msra.mxu1 %v8902_v5 }
 0xe1b   :  { %7875 = vmatprep.subr.bf16.mxu1 %v8903_v60 }
 0xe1e   :  { %7876 = vmatpush3.bf16.msra.mxu1 %v8904_v30 }
 0xec3   :  { %v5670_v0 = vpop.f32.mrb[32].mxu0 }
 0xec4   :  { %v7891_v2 = vadd.f32 %v5670_v0, %v4866_v63  ;;  %v5672_v53 = vpop.f32.mrb[33].mxu0 }
 0xec5   :  { %v7892_v3 = vadd.f32 %v5672_v53, %v4870_v10  ;;  %v5674_v4 = vpop.f32.mrb[34].mxu0 }
 0xec6   :  { %v5677_v49 = vmax.f32 %v7891_v2, 0.0  ;;  %v5675_v29 = vpop.f32.mrb[35].mxu0 }
 0xec7   :  { %v5678_v8 = vmax.f32 %v7892_v3, 0.0 }
 0xec8   :  { %v5679_v1 = vpack.c.bf16 %v5677_v49, %v5677_v49 }
 0xec9   :  { %v5680_v7 = vpack.c.bf16 %v5678_v8, %v5678_v8 }
 0xecb   :  { %6796 = vmatprep.mubr.bf16.mxu0 %v5680_v7 }
 0xecc   :  { %6797 = vmatmul.mubr.bf16.vlgmr.msra.gmra.mrb[36].mxu0 %v5679_v1 }
 0xed4   :  { %v6618_v32 = vpop.f32.mrb[32].mxu1 }
 0xed5   :  { %v7893_v15 = vadd.f32 %v6618_v32, %v5814_v14  ;;  %v6620_v18 = vpop.f32.mrb[33].mxu1 }
 0xed6   :  { %v7894_v19 = vadd.f32 %v6620_v18, %v5818_v12  ;;  %v6622_v22 = vpop.f32.mrb[34].mxu1 }
 0xed7   :  { %v6625_v24 = vmax.f32 %v7893_v15, 0.0  ;;  %v6623_v25 = vpop.f32.mrb[35].mxu1 }
 0xed8   :  { %v6626_v26 = vmax.f32 %v7894_v19, 0.0 }
 0xed9   :  { %v6627_v37 = vpack.c.bf16 %v6625_v24, %v6625_v24 }
 0xeda   :  { %v6628_v61 = vpack.c.bf16 %v6626_v26, %v6626_v26 }
 0xedc   :  { %6977 = vmatprep.mubr.bf16.mxu1 %v6628_v61 }
 0xedd   :  { %6978 = vmatmul.mubr.bf16.vlgmr.msra.gmra.mrb[36].mxu1 %v6627_v37 }
 0xf9f   :  { %v7855_v9 = vpop.f32.mrb[36].mxu0 }
 0xfa0   :  { %v7856_v55 = vpop.f32.mrb[37].mxu0 }
 0xfa1   :  { %v7857_v35 = vadd.f32 %v7856_v55, %v7855_v9  ;;  %v7858_v36 = vpop.f32.mrb[38].mxu0 }
 0xfa2   :  { %v7859_v34 = vpop.f32.mrb[39].mxu0 }
 0xfa3   :  { %v6799_v20 = vadd.f32 %v7857_v35, %v7716_v13 }
 0xfa5   :  { %v7733_v33 = vmul.f32 -1.442695, %v6799_v20 }
 0xfa7   :  { %8905 = vpow2.f32 %v7733_v33 }
 0xfb0   :  { %v7877_v54 = vpop.f32.mrb[36].mxu1 }
 0xfb1   :  { %v8906_v28 = vpop.eup %8905  ;;  %v7878_v17 = vpop.f32.mrb[37].mxu1 }
 0xfb2   :  { %v6807_v57 = vadd.f32 1.0, %v8906_v28  ;;  %v7879_v16 = vadd.f32 %v7878_v17, %v7877_v54  ;;  %v7880_v27 = vpop.f32.mrb[38].mxu1 }
 0xfb3   :  { %v7881_v52 = vpop.f32.mrb[39].mxu1 }
 0xfb4   :  { %8907 = vrcp.f32 %v6807_v57  ;;  %v6980_v59 = vadd.f32 %v7879_v16, %v7734_v23 }
 0xfb6   :  { %6988 = vst.msk [vmem:[%s14457_s16] sm:$0x3] %vm6987_vm1, %v6980_v59 }
 0xfbe   :  { %v8908_v38 = vpop.eup %8907 }
 0xfbf   :  { %6986 = vst.msk [vmem:[%s14458_s15] sm:$0x3] %vm6985_vm2, %v8908_v38 }

</bundles_post_ra>
